<compile_context>
chip_gen: v7x
topology: tpu7x:2x2x1
jax: 0.10.0
libtpu: 0.0.40
codegen_flags: <defaults>
</compile_context>

<pallas_src>
import functools

import jax
import jax.numpy as jnp
from jax import lax
from jax.experimental import pallas as pl
from jax.experimental.pallas import tpu as pltpu

LANE = 128
VMEM_LIMIT = 32 * 1024 * 1024  # safe on v5e (raises 16MiB default) and v6e/v7x


def _round_up(x, m):
    return (x + m - 1) // m * m


def _pad_last(a, lane=LANE):
    n = a.shape[-1]
    n_pad = _round_up(n, lane)
    if n_pad == n:
        return a
    pad = [(0, 0)] * (a.ndim - 1) + [(0, n_pad - n)]
    return jnp.pad(a, pad)


# ----------------------------------------------------------------------------
# Pallas kernel 1: fused matmul + bias + (optional) ReLU — the conv hot path.
#   x: [M, K] (bf16), w: [K, N] (bf16, N padded to 128 lanes), b: [1, N] (f32)
# ----------------------------------------------------------------------------
def matmul_bias_act(x, w, b, *, relu=True, out_dtype=jnp.float32, tm_cap=1024):
    M, K = x.shape
    Kw, N = w.shape
    assert Kw == K

    # Large, lane/sublane-friendly row tile: whole M when small, else a capped
    # multiple-of-256 tile.  Pad M so the grid divides evenly (padded rows are
    # sliced off afterwards).
    tm = min(_round_up(M, 256), tm_cap)
    Mp = _round_up(M, tm)
    if Mp != M:
        x = jnp.pad(x, ((0, Mp - M), (0, 0)))

    def kernel(x_ref, w_ref, b_ref, o_ref):
        acc = jnp.dot(x_ref[...], w_ref[...], preferred_element_type=jnp.float32)
        acc = acc + b_ref[...].astype(jnp.float32)
        if relu:
            acc = jnp.maximum(acc, 0.0)
        o_ref[...] = acc.astype(o_ref.dtype)

    out = pl.pallas_call(
        kernel,
        out_shape=jax.ShapeDtypeStruct((Mp, N), out_dtype),
        grid=(Mp // tm,),
        in_specs=[
            pl.BlockSpec((tm, K), lambda i: (i, 0)),
            pl.BlockSpec((K, N), lambda i: (0, 0)),
            pl.BlockSpec((1, N), lambda i: (0, 0)),
        ],
        out_specs=pl.BlockSpec((tm, N), lambda i: (i, 0)),
        compiler_params=pltpu.CompilerParams(
            dimension_semantics=("parallel",),
            vmem_limit_bytes=VMEM_LIMIT,
        ),
    )(x, w, b)
    return out[:M] if Mp != M else out


# ----------------------------------------------------------------------------
# Pallas kernel 2: batched MAML inner loop + query prediction.
#   Processes a block of Tb tasks per grid step with batched einsums.
#   For each task t:
#     W, b <- meta params
#     repeat update_step times:
#       logits = Xs @ W + b (+ class mask) ; p = softmax(logits)
#       gW = Xs^T (p - Ys)/Ns ; gb = sum((p - Ys)/Ns)
#       W -= lr*gW ; b -= lr*gb
#     pred_q = Xq @ W + b
# ----------------------------------------------------------------------------
def maml_forward_pallas(xs, ys, xq, w, b, *, num_classes, update_lr,
                        update_step, t_blk=8):
    T, Ns, D = xs.shape
    _, Nq, _ = xq.shape
    Cp = w.shape[1]                       # class axis padded to 128 lanes
    C = int(num_classes)
    lr = float(update_lr)                 # Python scalars -> no captured tracers
    inv_ns = 1.0 / float(Ns)
    steps = int(update_step)

    Tb = min(int(t_blk), T)
    Tp = _round_up(T, Tb)
    if Tp != T:
        pad_t = Tp - T
        xs = jnp.pad(xs, ((0, pad_t), (0, 0), (0, 0)))
        ys = jnp.pad(ys, ((0, pad_t), (0, 0), (0, 0)))
        xq = jnp.pad(xq, ((0, pad_t), (0, 0), (0, 0)))

    # Hoist the Xs^T layout out of the inner loop: one transpose per task,
    # fed through its own BlockSpec and reused by every unrolled SGD step.
    xst = jnp.swapaxes(xs, 1, 2)          # [Tp, D, Ns]

    def kernel(xs_ref, xst_ref, ys_ref, xq_ref, w_ref, b_ref, o_ref,
               w_sc, b_sc):
        xs_t = xs_ref[...]                # [Tb, Ns, D]
        xst_t = xst_ref[...]              # [Tb, D, Ns]
        ys_t = ys_ref[...]                # [Tb, Ns, Cp]

        # Per-task fast weights initialised from the meta parameters.
        w_sc[...] = jnp.broadcast_to(w_ref[...], (Tb, D, Cp))
        b_sc[...] = jnp.broadcast_to(b_ref[...], (Tb, 1, Cp))

        # Mask padded class lanes out of the softmax (hoisted out of the loop).
        class_mask = jnp.where(
            lax.broadcasted_iota(jnp.int32, (1, 1, Cp), 2) < C, 0.0, -1e30
        ).astype(jnp.float32)

        def step(_, carry):
            logits = jnp.einsum('tnd,tdc->tnc', xs_t, w_sc[...],
                                preferred_element_type=jnp.float32)
            logits = logits + b_sc[...] + class_mask
            logits = logits - jnp.max(logits, axis=-1, keepdims=True)
            e = jnp.exp(logits)
            p = e / jnp.sum(e, axis=-1, keepdims=True)
            g = (p - ys_t) * inv_ns                          # [Tb, Ns, Cp]
            gw = jnp.einsum('tdn,tnc->tdc', xst_t, g,
                            preferred_element_type=jnp.float32)
            gb = jnp.sum(g, axis=1, keepdims=True)           # [Tb, 1, Cp]
            w_sc[...] = w_sc[...] - lr * gw
            b_sc[...] = b_sc[...] - lr * gb
            return carry

        lax.fori_loop(0, steps, step, 0, unroll=True)

        pred = jnp.einsum('tqd,tdc->tqc', xq_ref[...], w_sc[...],
                          preferred_element_type=jnp.float32)
        o_ref[...] = (pred + b_sc[...]).astype(o_ref.dtype)

    out = pl.pallas_call(
        kernel,
        out_shape=jax.ShapeDtypeStruct((Tp, Nq, Cp), jnp.float32),
        grid=(Tp // Tb,),
        in_specs=[
            pl.BlockSpec((Tb, Ns, D), lambda t: (t, 0, 0)),
            pl.BlockSpec((Tb, D, Ns), lambda t: (t, 0, 0)),
            pl.BlockSpec((Tb, Ns, Cp), lambda t: (t, 0, 0)),
            pl.BlockSpec((Tb, Nq, D), lambda t: (t, 0, 0)),
            pl.BlockSpec((D, Cp), lambda t: (0, 0)),
            pl.BlockSpec((1, Cp), lambda t: (0, 0)),
        ],
        out_specs=pl.BlockSpec((Tb, Nq, Cp), lambda t: (t, 0, 0)),
        scratch_shapes=[
            pltpu.VMEM((Tb, D, Cp), jnp.float32),
            pltpu.VMEM((Tb, 1, Cp), jnp.float32),
        ],
        compiler_params=pltpu.CompilerParams(
            dimension_semantics=("parallel",),   # tasks are independent (v7x: 2 TCs)
            vmem_limit_bytes=VMEM_LIMIT,
        ),
    )(xs, xst, ys, xq, w, b)

    return out[:T, :, :C]


# ----------------------------------------------------------------------------
# Glue: im2col (NHWC) so the conv runs on the Pallas matmul kernel.
# ----------------------------------------------------------------------------
def im2col(x_nhwc, k=3, stride=2, pad=1):
    B, H, W, C = x_nhwc.shape
    xp = jnp.pad(x_nhwc, ((0, 0), (pad, pad), (pad, pad), (0, 0)))
    Ho = (H + 2 * pad - k) // stride + 1
    Wo = (W + 2 * pad - k) // stride + 1
    cols = []
    for di in range(k):
        for dj in range(k):
            cols.append(xp[:, di:di + stride * Ho:stride,
                           dj:dj + stride * Wo:stride, :])
    patches = jnp.concatenate(cols, axis=-1)          # [B, Ho, Wo, k*k*C]
    return patches.reshape(B * Ho * Wo, k * k * C), (Ho, Wo)


# ----------------------------------------------------------------------------
# Deterministic conv encoder: 2 x (3x3 conv, stride 2, pad 1, ReLU), flatten.
# Conv weights/activations in bf16 for the MXU, f32 accumulation; output
# channels padded to 128 lanes for unmasked stores.
# ----------------------------------------------------------------------------
def encoder_forward(params, x):
    # x: [B0, N, K, C, H, W]  (NCHW image block, like the PyTorch module)
    B0, N, K, C, H, W = x.shape
    B = B0 * N * K
    xb = x.reshape(B, C, H, W).transpose(0, 2, 3, 1).astype(jnp.bfloat16)  # NHWC

    c1 = params["w1"].shape[1]
    c2 = params["w2"].shape[1]
    w1p = _pad_last(params["w1"]).astype(jnp.bfloat16)   # [27, 128]
    b1p = _pad_last(params["b1"])                        # [1, 128] f32
    w2p = _pad_last(params["w2"]).astype(jnp.bfloat16)   # [9*c1, 128]
    b2p = _pad_last(params["b2"])

    p1, (Ho1, Wo1) = im2col(xb, 3, 2, 1)
    h1 = matmul_bias_act(p1, w1p, b1p, relu=True, out_dtype=jnp.bfloat16)
    h1 = h1[:, :c1].reshape(B, Ho1, Wo1, c1)

    p2, (Ho2, Wo2) = im2col(h1, 3, 2, 1)
    h2 = matmul_bias_act(p2, w2p, b2p, relu=True, out_dtype=jnp.float32)
    feat = h2[:, :c2].reshape(B, Ho2 * Wo2 * c2)

    return feat.reshape(B0, N, K, Ho2 * Wo2 * c2), None  # (encoded, kl_loss=None)


# ----------------------------------------------------------------------------
# MLwM forward: encode support/query, MAML-adapt on support, predict query.
# ----------------------------------------------------------------------------
def mlwm_forward(params, x_support, y_support, x_query,
                 *, update_lr=0.01, update_step=5,
                 is_hessian=True, is_adaptation=True):
    del is_hessian  # prediction path is identical for first/second order MAML
    T, N, K = x_support.shape[:3]

    # One batched encoder pass over support + query (fewer kernel launches).
    x_all = jnp.concatenate([x_support, x_query], axis=0)      # [2T, N, K, C, H, W]
    feat_all, _ = encoder_forward(params, x_all)                # [2T, N, K, D]
    D = feat_all.shape[-1]
    feat_s, feat_q = feat_all[:T], feat_all[T:]

    xs = feat_s.reshape(T, N * K, D)
    xq = feat_q.reshape(T, N * K, D)

    C = params["w_head"].shape[1]          # num_classes = n_way
    Cp = _round_up(C, LANE)
    # one-hot over the padded class axis (labels < C, so padded lanes are 0)
    ys = jax.nn.one_hot(y_support.reshape(T, N * K), Cp, dtype=jnp.float32)

    w_head = _pad_last(params["w_head"])   # [D, 128]
    b_head = _pad_last(params["b_head"])   # [1, 128]

    steps = update_step if is_adaptation else 0
    pred = maml_forward_pallas(xs, ys, xq, w_head, b_head,
                               num_classes=C, update_lr=update_lr,
                               update_step=steps)
    return pred.reshape(T, N, K, C)        # [task_size, n_way, k_shot, num_classes]


def init_params(key, c_in=3, c1=8, c2=16, feat_dim=256, n_way=4):
    k1, k2, k3 = jax.random.split(key, 3)
    return {
        "w1": (jax.random.normal(k1, (3 * 3 * c_in, c1), jnp.float32) * 0.1),
        "b1": jnp.zeros((1, c1), jnp.float32),
        "w2": (jax.random.normal(k2, (3 * 3 * c1, c2), jnp.float32) * 0.1),
        "b2": jnp.zeros((1, c2), jnp.float32),
        "w_head": (jax.random.normal(k3, (feat_dim, n_way), jnp.float32) * 0.1),
        "b_head": jnp.zeros((1, n_way), jnp.float32),
    }


if __name__ == "__main__":
    key = jax.random.PRNGKey(0)
    k_params, k_xs, k_xq = jax.random.split(key, 3)

    task_size, n_way, k_shot, C, H, W = 2, 4, 2, 3, 16, 16
    params = init_params(k_params, c_in=C, c1=8, c2=16,
                         feat_dim=16 * (H // 4) * (W // 4), n_way=n_way)

    x_support = jax.random.normal(k_xs, (task_size, n_way, k_shot, C, H, W),
                                  jnp.float32)
    x_query = jax.random.normal(k_xq, (task_size, n_way, k_shot, C, H, W),
                                jnp.float32)
    # labels are the way-index (not one-hot), as in the PyTorch docstring
    y_support = jnp.tile(jnp.arange(n_way, dtype=jnp.int32)[None, :, None],
                         (task_size, 1, k_shot))

    fwd = jax.jit(functools.partial(mlwm_forward, update_lr=0.01, update_step=5))
    pred = fwd(params, x_support, y_support, x_query)
    jax.block_until_ready(pred)

    assert pred.shape == (task_size, n_way, k_shot, n_way)
    assert jnp.all(jnp.isfinite(pred))
    print("KERNEL_OK")
</pallas_src>

<mosaic_0001>
module attributes {stable_mosaic.version = 11 : i64} {
  func.func @kernel(%arg0: i32, %arg1: memref<1024x27xbf16, #tpu.memory_space<vmem>>, %arg2: memref<27x128xbf16, #tpu.memory_space<vmem>>, %arg3: memref<1x128xf32, #tpu.memory_space<vmem>>, %arg4: memref<1024x128xbf16, #tpu.memory_space<vmem>>) attributes {dimension_semantics = [#tpu.dimension_semantics<parallel>], iteration_bounds = array<i64: 2>, scalar_prefetch = 0 : i64, scratch_operands = 0 : i64, tpu.core_type = #tpu.core_type<tc>, window_params = [{transform_indices = @transform_0, window_bounds = array<i64: 1024, 27>}, {pipeline_mode = #tpu.pipeline_mode<synchronous>, transform_indices = @transform_1, window_bounds = array<i64: 27, 128>}, {pipeline_mode = #tpu.pipeline_mode<synchronous>, transform_indices = @transform_2, window_bounds = array<i64: 1, 128>}, {transform_indices = @transform_3, window_bounds = array<i64: 1024, 128>}]} {
    %c0 = arith.constant 0 : index
    %c0_0 = arith.constant 0 : index
    %0 = vector.load %arg1[%c0, %c0_0] : memref<1024x27xbf16, #tpu.memory_space<vmem>>, vector<1024x27xbf16>
    %c0_1 = arith.constant 0 : index
    %c0_2 = arith.constant 0 : index
    %1 = vector.load %arg2[%c0_1, %c0_2] : memref<27x128xbf16, #tpu.memory_space<vmem>>, vector<27x128xbf16>
    %cst = arith.constant dense<0.000000e+00> : vector<1024x128xf32>
    %2 = tpu.matmul %0, %1, %cst {dimension_numbers = #tpu.dot_dimension_numbers<[1], [0], [0], [1], [0, 0, 1, 1], [], []>} : vector<1024x27xbf16>, vector<27x128xbf16>, vector<1024x128xf32> -> vector<1024x128xf32>
    %c0_3 = arith.constant 0 : index
    %c0_4 = arith.constant 0 : index
    %3 = vector.load %arg3[%c0_3, %c0_4] : memref<1x128xf32, #tpu.memory_space<vmem>>, vector<1x128xf32>
    %4 = vector.broadcast %3 : vector<1x128xf32> to vector<1024x128xf32>
    %5 = arith.addf %2, %4 : vector<1024x128xf32>
    %cst_5 = arith.constant 0.000000e+00 : f32
    %6 = vector.broadcast %cst_5 : f32 to vector<1024x128xf32>
    %7 = arith.maximumf %5, %6 : vector<1024x128xf32>
    %8 = arith.truncf %7 : vector<1024x128xf32> to vector<1024x128xbf16>
    %c0_6 = arith.constant 0 : index
    %c0_7 = arith.constant 0 : index
    %9 = vector.load %arg4[%c0_6, %c0_7] : memref<1024x128xbf16, #tpu.memory_space<vmem>>, vector<1024x128xbf16>
    tpu.vector_store %arg4[%c0_6, %c0_7], %8 {strides = array<i32>} : memref<1024x128xbf16, #tpu.memory_space<vmem>>, vector<1024x128xbf16>,
    return
  }
  func.func @transform_0(%arg0: i32) -> (i32, i32) {
    %c0_i32 = arith.constant 0 : i32
    %c0_i32_0 = arith.constant 0 : i32
    return %arg0, %c0_i32 : i32, i32
  }
  func.func @transform_1(%arg0: i32) -> (i32, i32) {
    %c0_i32 = arith.constant 0 : i32
    %c0_i32_0 = arith.constant 0 : i32
    %c0_i32_1 = arith.constant 0 : i32
    return %c0_i32, %c0_i32_0 : i32, i32
  }
  func.func @transform_2(%arg0: i32) -> (i32, i32) {
    %c0_i32 = arith.constant 0 : i32
    %c0_i32_0 = arith.constant 0 : i32
    %c0_i32_1 = arith.constant 0 : i32
    return %c0_i32, %c0_i32_0 : i32, i32
  }
  func.func @transform_3(%arg0: i32) -> (i32, i32) {
    %c0_i32 = arith.constant 0 : i32
    %c0_i32_0 = arith.constant 0 : i32
    return %arg0, %c0_i32 : i32, i32
  }
}

module attributes {stable_mosaic.version = 11 : i64} {
  func.func @kernel(%arg0: i32, %arg1: memref<512x72xbf16, #tpu.memory_space<vmem>>, %arg2: memref<72x128xbf16, #tpu.memory_space<vmem>>, %arg3: memref<1x128xf32, #tpu.memory_space<vmem>>, %arg4: memref<512x128xf32, #tpu.memory_space<vmem>>) attributes {dimension_semantics = [#tpu.dimension_semantics<parallel>], iteration_bounds = array<i64: 1>, scalar_prefetch = 0 : i64, scratch_operands = 0 : i64, tpu.core_type = #tpu.core_type<tc>, window_params = [{transform_indices = @transform_0, window_bounds = array<i64: 512, 72>}, {pipeline_mode = #tpu.pipeline_mode<synchronous>, transform_indices = @transform_1, window_bounds = array<i64: 72, 128>}, {pipeline_mode = #tpu.pipeline_mode<synchronous>, transform_indices = @transform_2, window_bounds = array<i64: 1, 128>}, {transform_indices = @transform_3, window_bounds = array<i64: 512, 128>}]} {
    %c0 = arith.constant 0 : index
    %c0_0 = arith.constant 0 : index
    %0 = vector.load %arg1[%c0, %c0_0] : memref<512x72xbf16, #tpu.memory_space<vmem>>, vector<512x72xbf16>
    %c0_1 = arith.constant 0 : index
    %c0_2 = arith.constant 0 : index
    %1 = vector.load %arg2[%c0_1, %c0_2] : memref<72x128xbf16, #tpu.memory_space<vmem>>, vector<72x128xbf16>
    %cst = arith.constant dense<0.000000e+00> : vector<512x128xf32>
    %2 = tpu.matmul %0, %1, %cst {dimension_numbers = #tpu.dot_dimension_numbers<[1], [0], [0], [1], [0, 0, 1, 1], [], []>} : vector<512x72xbf16>, vector<72x128xbf16>, vector<512x128xf32> -> vector<512x128xf32>
    %c0_3 = arith.constant 0 : index
    %c0_4 = arith.constant 0 : index
    %3 = vector.load %arg3[%c0_3, %c0_4] : memref<1x128xf32, #tpu.memory_space<vmem>>, vector<1x128xf32>
    %4 = vector.broadcast %3 : vector<1x128xf32> to vector<512x128xf32>
    %5 = arith.addf %2, %4 : vector<512x128xf32>
    %cst_5 = arith.constant 0.000000e+00 : f32
    %6 = vector.broadcast %cst_5 : f32 to vector<512x128xf32>
    %7 = arith.maximumf %5, %6 : vector<512x128xf32>
    %c0_6 = arith.constant 0 : index
    %c0_7 = arith.constant 0 : index
    %8 = vector.load %arg4[%c0_6, %c0_7] : memref<512x128xf32, #tpu.memory_space<vmem>>, vector<512x128xf32>
    tpu.vector_store %arg4[%c0_6, %c0_7], %7 {strides = array<i32>} : memref<512x128xf32, #tpu.memory_space<vmem>>, vector<512x128xf32>,
    return
  }
  func.func @transform_0(%arg0: i32) -> (i32, i32) {
    %c0_i32 = arith.constant 0 : i32
    %c0_i32_0 = arith.constant 0 : i32
    return %arg0, %c0_i32 : i32, i32
  }
  func.func @transform_1(%arg0: i32) -> (i32, i32) {
    %c0_i32 = arith.constant 0 : i32
    %c0_i32_0 = arith.constant 0 : i32
    %c0_i32_1 = arith.constant 0 : i32
    return %c0_i32, %c0_i32_0 : i32, i32
  }
  func.func @transform_2(%arg0: i32) -> (i32, i32) {
    %c0_i32 = arith.constant 0 : i32
    %c0_i32_0 = arith.constant 0 : i32
    %c0_i32_1 = arith.constant 0 : i32
    return %c0_i32, %c0_i32_0 : i32, i32
  }
  func.func @transform_3(%arg0: i32) -> (i32, i32) {
    %c0_i32 = arith.constant 0 : i32
    %c0_i32_0 = arith.constant 0 : i32
    return %arg0, %c0_i32 : i32, i32
  }
}

module attributes {stable_mosaic.version = 11 : i64} {
  func.func @kernel(%arg0: i32, %arg1: memref<2x8x256xf32, #tpu.memory_space<vmem>>, %arg2: memref<2x256x8xf32, #tpu.memory_space<vmem>>, %arg3: memref<2x8x128xf32, #tpu.memory_space<vmem>>, %arg4: memref<2x8x256xf32, #tpu.memory_space<vmem>>, %arg5: memref<256x128xf32, #tpu.memory_space<vmem>>, %arg6: memref<1x128xf32, #tpu.memory_space<vmem>>, %arg7: memref<2x8x128xf32, #tpu.memory_space<vmem>>, %arg8: memref<2x256x128xf32, #tpu.memory_space<vmem>>, %arg9: memref<2x1x128xf32, #tpu.memory_space<vmem>>) attributes {dimension_semantics = [#tpu.dimension_semantics<parallel>], iteration_bounds = array<i64: 1>, scalar_prefetch = 0 : i64, scratch_operands = 2 : i64, tpu.core_type = #tpu.core_type<tc>, window_params = [{transform_indices = @transform_0, window_bounds = array<i64: 2, 8, 256>}, {transform_indices = @transform_1, window_bounds = array<i64: 2, 256, 8>}, {transform_indices = @transform_2, window_bounds = array<i64: 2, 8, 128>}, {transform_indices = @transform_3, window_bounds = array<i64: 2, 8, 256>}, {pipeline_mode = #tpu.pipeline_mode<synchronous>, transform_indices = @transform_4, window_bounds = array<i64: 256, 128>}, {pipeline_mode = #tpu.pipeline_mode<synchronous>, transform_indices = @transform_5, window_bounds = array<i64: 1, 128>}, {transform_indices = @transform_6, window_bounds = array<i64: 2, 8, 128>}]} {
    %c0 = arith.constant 0 : index
    %c0_0 = arith.constant 0 : index
    %c0_1 = arith.constant 0 : index
    %0 = vector.load %arg1[%c0, %c0_0, %c0_1] : memref<2x8x256xf32, #tpu.memory_space<vmem>>, vector<2x8x256xf32>
    %c0_2 = arith.constant 0 : index
    %c0_3 = arith.constant 0 : index
    %c0_4 = arith.constant 0 : index
    %1 = vector.load %arg2[%c0_2, %c0_3, %c0_4] : memref<2x256x8xf32, #tpu.memory_space<vmem>>, vector<2x256x8xf32>
    %c0_5 = arith.constant 0 : index
    %c0_6 = arith.constant 0 : index
    %c0_7 = arith.constant 0 : index
    %2 = vector.load %arg3[%c0_5, %c0_6, %c0_7] : memref<2x8x128xf32, #tpu.memory_space<vmem>>, vector<2x8x128xf32>
    %c0_8 = arith.constant 0 : index
    %c0_9 = arith.constant 0 : index
    %3 = vector.load %arg5[%c0_8, %c0_9] : memref<256x128xf32, #tpu.memory_space<vmem>>, vector<256x128xf32>
    %4 = vector.shape_cast %3 : vector<256x128xf32> to vector<1x256x128xf32>
    %5 = vector.broadcast %4 : vector<1x256x128xf32> to vector<2x256x128xf32>
    %c0_10 = arith.constant 0 : index
    %c0_11 = arith.constant 0 : index
    %c0_12 = arith.constant 0 : index
    %6 = vector.load %arg8[%c0_10, %c0_11, %c0_12] : memref<2x256x128xf32, #tpu.memory_space<vmem>>, vector<2x256x128xf32>
    tpu.vector_store %arg8[%c0_10, %c0_11, %c0_12], %5 {strides = array<i32>} : memref<2x256x128xf32, #tpu.memory_space<vmem>>, vector<2x256x128xf32>,
    %c0_13 = arith.constant 0 : index
    %c0_14 = arith.constant 0 : index
    %7 = vector.load %arg6[%c0_13, %c0_14] : memref<1x128xf32, #tpu.memory_space<vmem>>, vector<1x128xf32>
    %8 = vector.shape_cast %7 : vector<1x128xf32> to vector<1x1x128xf32>
    %9 = vector.broadcast %8 : vector<1x1x128xf32> to vector<2x1x128xf32>
    %c0_15 = arith.constant 0 : index
    %c0_16 = arith.constant 0 : index
    %c0_17 = arith.constant 0 : index
    %10 = vector.load %arg9[%c0_15, %c0_16, %c0_17] : memref<2x1x128xf32, #tpu.memory_space<vmem>>, vector<2x1x128xf32>
    tpu.vector_store %arg9[%c0_15, %c0_16, %c0_17], %9 {strides = array<i32>} : memref<2x1x128xf32, #tpu.memory_space<vmem>>, vector<2x1x128xf32>,
    %11 = tpu.iota {dimensions = array<i32: 2>} : vector<1x1x128xi32>
    %c4_i32 = arith.constant 4 : i32
    %12 = vector.broadcast %c4_i32 : i32 to vector<1x1x128xi32>
    %13 = arith.cmpi slt, %11, %12 : vector<1x1x128xi32>
    %cst = arith.constant 0.000000e+00 : f32
    %cst_18 = arith.constant -1.000000e+30 : f32
    %14 = vector.broadcast %cst : f32 to vector<1x1x128xf32>
    %15 = vector.broadcast %cst_18 : f32 to vector<1x1x128xf32>
    %16 = arith.select %13, %14, %15 : vector<1x1x128xi1>, vector<1x1x128xf32>
    %c0_i32 = arith.constant 0 : i32
    %c0_19 = arith.constant 0 : index
    %c0_20 = arith.constant 0 : index
    %c0_21 = arith.constant 0 : index
    %17 = vector.load %arg8[%c0_19, %c0_20, %c0_21] : memref<2x256x128xf32, #tpu.memory_space<vmem>>, vector<2x256x128xf32>
    "tpu.trace_start"() <{level = 10 : i32, message = "tnd,tdc->tnc"}> : () -> ()
    %cst_22 = arith.constant dense<0.000000e+00> : vector<2x8x128xf32>
    %18 = tpu.matmul %0, %17, %cst_22 {dimension_numbers = #tpu.dot_dimension_numbers<[2], [1], [1], [2], [0, 0, 0, 1, 1, 2], [0], [0]>} : vector<2x8x256xf32>, vector<2x256x128xf32>, vector<2x8x128xf32> -> vector<2x8x128xf32>
    "tpu.trace_stop"() : () -> ()
    %c0_23 = arith.constant 0 : index
    %c0_24 = arith.constant 0 : index
    %c0_25 = arith.constant 0 : index
    %19 = vector.load %arg9[%c0_23, %c0_24, %c0_25] : memref<2x1x128xf32, #tpu.memory_space<vmem>>, vector<2x1x128xf32>
    %20 = vector.broadcast %19 : vector<2x1x128xf32> to vector<2x8x128xf32>
    %21 = arith.addf %18, %20 : vector<2x8x128xf32>
    %22 = vector.broadcast %16 : vector<1x1x128xf32> to vector<2x8x128xf32>
    %23 = arith.addf %21, %22 : vector<2x8x128xf32>
    %cst_26 = arith.constant dense<0xFF800000> : vector<2x8xf32>
    %24 = vector.multi_reduction <maximumf>, %23, %cst_26 [2] : vector<2x8x128xf32> to vector<2x8xf32>
    %25 = vector.shape_cast %24 : vector<2x8xf32> to vector<2x8x1xf32>
    %26 = vector.broadcast %25 : vector<2x8x1xf32> to vector<2x8x128xf32>
    %27 = arith.subf %23, %26 : vector<2x8x128xf32>
    %28 = math.exp %27 : vector<2x8x128xf32>
    %cst_27 = arith.constant dense<0.000000e+00> : vector<2x8xf32>
    %29 = vector.multi_reduction <add>, %28, %cst_27 [2] : vector<2x8x128xf32> to vector<2x8xf32>
    %30 = vector.shape_cast %29 : vector<2x8xf32> to vector<2x8x1xf32>
    %31 = vector.broadcast %30 : vector<2x8x1xf32> to vector<2x8x128xf32>
    %32 = arith.divf %28, %31 : vector<2x8x128xf32>
    %33 = arith.subf %32, %2 : vector<2x8x128xf32>
    %cst_28 = arith.constant 1.250000e-01 : f32
    %34 = vector.broadcast %cst_28 : f32 to vector<2x8x128xf32>
    %35 = arith.mulf %33, %34 : vector<2x8x128xf32>
    "tpu.trace_start"() <{level = 10 : i32, message = "tdn,tnc->tdc"}> : () -> ()
    %cst_29 = arith.constant dense<0.000000e+00> : vector<2x256x128xf32>
    %36 = tpu.matmul %1, %35, %cst_29 {dimension_numbers = #tpu.dot_dimension_numbers<[2], [1], [1], [2], [0, 0, 0, 1, 1, 2], [0], [0]>} : vector<2x256x8xf32>, vector<2x8x128xf32>, vector<2x256x128xf32> -> vector<2x256x128xf32>
    "tpu.trace_stop"() : () -> ()
    %cst_30 = arith.constant dense<0.000000e+00> : vector<2x128xf32>
    %37 = vector.multi_reduction <add>, %35, %cst_30 [1] : vector<2x8x128xf32> to vector<2x128xf32>
    %38 = vector.shape_cast %37 : vector<2x128xf32> to vector<2x1x128xf32>
    %c0_31 = arith.constant 0 : index
    %c0_32 = arith.constant 0 : index
    %c0_33 = arith.constant 0 : index
    %39 = vector.load %arg8[%c0_31, %c0_32, %c0_33] : memref<2x256x128xf32, #tpu.memory_space<vmem>>, vector<2x256x128xf32>
    %cst_34 = arith.constant 0.00999999977 : f32
    %40 = vector.broadcast %cst_34 : f32 to vector<2x256x128xf32>
    %41 = arith.mulf %40, %36 : vector<2x256x128xf32>
    %42 = arith.subf %39, %41 : vector<2x256x128xf32>
    %c0_35 = arith.constant 0 : index
    %c0_36 = arith.constant 0 : index
    %c0_37 = arith.constant 0 : index
    %43 = vector.load %arg8[%c0_35, %c0_36, %c0_37] : memref<2x256x128xf32, #tpu.memory_space<vmem>>, vector<2x256x128xf32>
    tpu.vector_store %arg8[%c0_35, %c0_36, %c0_37], %42 {strides = array<i32>} : memref<2x256x128xf32, #tpu.memory_space<vmem>>, vector<2x256x128xf32>,
    %c0_38 = arith.constant 0 : index
    %c0_39 = arith.constant 0 : index
    %c0_40 = arith.constant 0 : index
    %44 = vector.load %arg9[%c0_38, %c0_39, %c0_40] : memref<2x1x128xf32, #tpu.memory_space<vmem>>, vector<2x1x128xf32>
    %cst_41 = arith.constant 0.00999999977 : f32
    %45 = vector.broadcast %cst_41 : f32 to vector<2x1x128xf32>
    %46 = arith.mulf %45, %38 : vector<2x1x128xf32>
    %47 = arith.subf %44, %46 : vector<2x1x128xf32>
    %c0_42 = arith.constant 0 : index
    %c0_43 = arith.constant 0 : index
    %c0_44 = arith.constant 0 : index
    %48 = vector.load %arg9[%c0_42, %c0_43, %c0_44] : memref<2x1x128xf32, #tpu.memory_space<vmem>>, vector<2x1x128xf32>
    tpu.vector_store %arg9[%c0_42, %c0_43, %c0_44], %47 {strides = array<i32>} : memref<2x1x128xf32, #tpu.memory_space<vmem>>, vector<2x1x128xf32>,
    %c1_i32 = arith.constant 1 : i32
    %c0_45 = arith.constant 0 : index
    %c0_46 = arith.constant 0 : index
    %c0_47 = arith.constant 0 : index
    %49 = vector.load %arg8[%c0_45, %c0_46, %c0_47] : memref<2x256x128xf32, #tpu.memory_space<vmem>>, vector<2x256x128xf32>
    "tpu.trace_start"() <{level = 10 : i32, message = "tnd,tdc->tnc"}> : () -> ()
    %cst_48 = arith.constant dense<0.000000e+00> : vector<2x8x128xf32>
    %50 = tpu.matmul %0, %49, %cst_48 {dimension_numbers = #tpu.dot_dimension_numbers<[2], [1], [1], [2], [0, 0, 0, 1, 1, 2], [0], [0]>} : vector<2x8x256xf32>, vector<2x256x128xf32>, vector<2x8x128xf32> -> vector<2x8x128xf32>
    "tpu.trace_stop"() : () -> ()
    %c0_49 = arith.constant 0 : index
    %c0_50 = arith.constant 0 : index
    %c0_51 = arith.constant 0 : index
    %51 = vector.load %arg9[%c0_49, %c0_50, %c0_51] : memref<2x1x128xf32, #tpu.memory_space<vmem>>, vector<2x1x128xf32>
    %52 = vector.broadcast %51 : vector<2x1x128xf32> to vector<2x8x128xf32>
    %53 = arith.addf %50, %52 : vector<2x8x128xf32>
    %54 = vector.broadcast %16 : vector<1x1x128xf32> to vector<2x8x128xf32>
    %55 = arith.addf %53, %54 : vector<2x8x128xf32>
    %cst_52 = arith.constant dense<0xFF800000> : vector<2x8xf32>
    %56 = vector.multi_reduction <maximumf>, %55, %cst_52 [2] : vector<2x8x128xf32> to vector<2x8xf32>
    %57 = vector.shape_cast %56 : vector<2x8xf32> to vector<2x8x1xf32>
    %58 = vector.broadcast %57 : vector<2x8x1xf32> to vector<2x8x128xf32>
    %59 = arith.subf %55, %58 : vector<2x8x128xf32>
    %60 = math.exp %59 : vector<2x8x128xf32>
    %cst_53 = arith.constant dense<0.000000e+00> : vector<2x8xf32>
    %61 = vector.multi_reduction <add>, %60, %cst_53 [2] : vector<2x8x128xf32> to vector<2x8xf32>
    %62 = vector.shape_cast %61 : vector<2x8xf32> to vector<2x8x1xf32>
    %63 = vector.broadcast %62 : vector<2x8x1xf32> to vector<2x8x128xf32>
    %64 = arith.divf %60, %63 : vector<2x8x128xf32>
    %65 = arith.subf %64, %2 : vector<2x8x128xf32>
    %cst_54 = arith.constant 1.250000e-01 : f32
    %66 = vector.broadcast %cst_54 : f32 to vector<2x8x128xf32>
    %67 = arith.mulf %65, %66 : vector<2x8x128xf32>
    "tpu.trace_start"() <{level = 10 : i32, message = "tdn,tnc->tdc"}> : () -> ()
    %cst_55 = arith.constant dense<0.000000e+00> : vector<2x256x128xf32>
    %68 = tpu.matmul %1, %67, %cst_55 {dimension_numbers = #tpu.dot_dimension_numbers<[2], [1], [1], [2], [0, 0, 0, 1, 1, 2], [0], [0]>} : vector<2x256x8xf32>, vector<2x8x128xf32>, vector<2x256x128xf32> -> vector<2x256x128xf32>
    "tpu.trace_stop"() : () -> ()
    %cst_56 = arith.constant dense<0.000000e+00> : vector<2x128xf32>
    %69 = vector.multi_reduction <add>, %67, %cst_56 [1] : vector<2x8x128xf32> to vector<2x128xf32>
    %70 = vector.shape_cast %69 : vector<2x128xf32> to vector<2x1x128xf32>
    %c0_57 = arith.constant 0 : index
    %c0_58 = arith.constant 0 : index
    %c0_59 = arith.constant 0 : index
    %71 = vector.load %arg8[%c0_57, %c0_58, %c0_59] : memref<2x256x128xf32, #tpu.memory_space<vmem>>, vector<2x256x128xf32>
    %cst_60 = arith.constant 0.00999999977 : f32
    %72 = vector.broadcast %cst_60 : f32 to vector<2x256x128xf32>
    %73 = arith.mulf %72, %68 : vector<2x256x128xf32>
    %74 = arith.subf %71, %73 : vector<2x256x128xf32>
    %c0_61 = arith.constant 0 : index
    %c0_62 = arith.constant 0 : index
    %c0_63 = arith.constant 0 : index
    %75 = vector.load %arg8[%c0_61, %c0_62, %c0_63] : memref<2x256x128xf32, #tpu.memory_space<vmem>>, vector<2x256x128xf32>
    tpu.vector_store %arg8[%c0_61, %c0_62, %c0_63], %74 {strides = array<i32>} : memref<2x256x128xf32, #tpu.memory_space<vmem>>, vector<2x256x128xf32>,
    %c0_64 = arith.constant 0 : index
    %c0_65 = arith.constant 0 : index
    %c0_66 = arith.constant 0 : index
    %76 = vector.load %arg9[%c0_64, %c0_65, %c0_66] : memref<2x1x128xf32, #tpu.memory_space<vmem>>, vector<2x1x128xf32>
    %cst_67 = arith.constant 0.00999999977 : f32
    %77 = vector.broadcast %cst_67 : f32 to vector<2x1x128xf32>
    %78 = arith.mulf %77, %70 : vector<2x1x128xf32>
    %79 = arith.subf %76, %78 : vector<2x1x128xf32>
    %c0_68 = arith.constant 0 : index
    %c0_69 = arith.constant 0 : index
    %c0_70 = arith.constant 0 : index
    %80 = vector.load %arg9[%c0_68, %c0_69, %c0_70] : memref<2x1x128xf32, #tpu.memory_space<vmem>>, vector<2x1x128xf32>
    tpu.vector_store %arg9[%c0_68, %c0_69, %c0_70], %79 {strides = array<i32>} : memref<2x1x128xf32, #tpu.memory_space<vmem>>, vector<2x1x128xf32>,
    %c2_i32 = arith.constant 2 : i32
    %c0_71 = arith.constant 0 : index
    %c0_72 = arith.constant 0 : index
    %c0_73 = arith.constant 0 : index
    %81 = vector.load %arg8[%c0_71, %c0_72, %c0_73] : memref<2x256x128xf32, #tpu.memory_space<vmem>>, vector<2x256x128xf32>
    "tpu.trace_start"() <{level = 10 : i32, message = "tnd,tdc->tnc"}> : () -> ()
    %cst_74 = arith.constant dense<0.000000e+00> : vector<2x8x128xf32>
    %82 = tpu.matmul %0, %81, %cst_74 {dimension_numbers = #tpu.dot_dimension_numbers<[2], [1], [1], [2], [0, 0, 0, 1, 1, 2], [0], [0]>} : vector<2x8x256xf32>, vector<2x256x128xf32>, vector<2x8x128xf32> -> vector<2x8x128xf32>
    "tpu.trace_stop"() : () -> ()
    %c0_75 = arith.constant 0 : index
    %c0_76 = arith.constant 0 : index
    %c0_77 = arith.constant 0 : index
    %83 = vector.load %arg9[%c0_75, %c0_76, %c0_77] : memref<2x1x128xf32, #tpu.memory_space<vmem>>, vector<2x1x128xf32>
    %84 = vector.broadcast %83 : vector<2x1x128xf32> to vector<2x8x128xf32>
    %85 = arith.addf %82, %84 : vector<2x8x128xf32>
    %86 = vector.broadcast %16 : vector<1x1x128xf32> to vector<2x8x128xf32>
    %87 = arith.addf %85, %86 : vector<2x8x128xf32>
    %cst_78 = arith.constant dense<0xFF800000> : vector<2x8xf32>
    %88 = vector.multi_reduction <maximumf>, %87, %cst_78 [2] : vector<2x8x128xf32> to vector<2x8xf32>
    %89 = vector.shape_cast %88 : vector<2x8xf32> to vector<2x8x1xf32>
    %90 = vector.broadcast %89 : vector<2x8x1xf32> to vector<2x8x128xf32>
    %91 = arith.subf %87, %90 : vector<2x8x128xf32>
    %92 = math.exp %91 : vector<2x8x128xf32>
    %cst_79 = arith.constant dense<0.000000e+00> : vector<2x8xf32>
    %93 = vector.multi_reduction <add>, %92, %cst_79 [2] : vector<2x8x128xf32> to vector<2x8xf32>
    %94 = vector.shape_cast %93 : vector<2x8xf32> to vector<2x8x1xf32>
    %95 = vector.broadcast %94 : vector<2x8x1xf32> to vector<2x8x128xf32>
    %96 = arith.divf %92, %95 : vector<2x8x128xf32>
    %97 = arith.subf %96, %2 : vector<2x8x128xf32>
    %cst_80 = arith.constant 1.250000e-01 : f32
    %98 = vector.broadcast %cst_80 : f32 to vector<2x8x128xf32>
    %99 = arith.mulf %97, %98 : vector<2x8x128xf32>
    "tpu.trace_start"() <{level = 10 : i32, message = "tdn,tnc->tdc"}> : () -> ()
    %cst_81 = arith.constant dense<0.000000e+00> : vector<2x256x128xf32>
    %100 = tpu.matmul %1, %99, %cst_81 {dimension_numbers = #tpu.dot_dimension_numbers<[2], [1], [1], [2], [0, 0, 0, 1, 1, 2], [0], [0]>} : vector<2x256x8xf32>, vector<2x8x128xf32>, vector<2x256x128xf32> -> vector<2x256x128xf32>
    "tpu.trace_stop"() : () -> ()
    %cst_82 = arith.constant dense<0.000000e+00> : vector<2x128xf32>
    %101 = vector.multi_reduction <add>, %99, %cst_82 [1] : vector<2x8x128xf32> to vector<2x128xf32>
    %102 = vector.shape_cast %101 : vector<2x128xf32> to vector<2x1x128xf32>
    %c0_83 = arith.constant 0 : index
    %c0_84 = arith.constant 0 : index
    %c0_85 = arith.constant 0 : index
    %103 = vector.load %arg8[%c0_83, %c0_84, %c0_85] : memref<2x256x128xf32, #tpu.memory_space<vmem>>, vector<2x256x128xf32>
    %cst_86 = arith.constant 0.00999999977 : f32
    %104 = vector.broadcast %cst_86 : f32 to vector<2x256x128xf32>
    %105 = arith.mulf %104, %100 : vector<2x256x128xf32>
    %106 = arith.subf %103, %105 : vector<2x256x128xf32>
    %c0_87 = arith.constant 0 : index
    %c0_88 = arith.constant 0 : index
    %c0_89 = arith.constant 0 : index
    %107 = vector.load %arg8[%c0_87, %c0_88, %c0_89] : memref<2x256x128xf32, #tpu.memory_space<vmem>>, vector<2x256x128xf32>
    tpu.vector_store %arg8[%c0_87, %c0_88, %c0_89], %106 {strides = array<i32>} : memref<2x256x128xf32, #tpu.memory_space<vmem>>, vector<2x256x128xf32>,
    %c0_90 = arith.constant 0 : index
    %c0_91 = arith.constant 0 : index
    %c0_92 = arith.constant 0 : index
    %108 = vector.load %arg9[%c0_90, %c0_91, %c0_92] : memref<2x1x128xf32, #tpu.memory_space<vmem>>, vector<2x1x128xf32>
    %cst_93 = arith.constant 0.00999999977 : f32
    %109 = vector.broadcast %cst_93 : f32 to vector<2x1x128xf32>
    %110 = arith.mulf %109, %102 : vector<2x1x128xf32>
    %111 = arith.subf %108, %110 : vector<2x1x128xf32>
    %c0_94 = arith.constant 0 : index
    %c0_95 = arith.constant 0 : index
    %c0_96 = arith.constant 0 : index
    %112 = vector.load %arg9[%c0_94, %c0_95, %c0_96] : memref<2x1x128xf32, #tpu.memory_space<vmem>>, vector<2x1x128xf32>
    tpu.vector_store %arg9[%c0_94, %c0_95, %c0_96], %111 {strides = array<i32>} : memref<2x1x128xf32, #tpu.memory_space<vmem>>, vector<2x1x128xf32>,
    %c3_i32 = arith.constant 3 : i32
    %c0_97 = arith.constant 0 : index
    %c0_98 = arith.constant 0 : index
    %c0_99 = arith.constant 0 : index
    %113 = vector.load %arg8[%c0_97, %c0_98, %c0_99] : memref<2x256x128xf32, #tpu.memory_space<vmem>>, vector<2x256x128xf32>
    "tpu.trace_start"() <{level = 10 : i32, message = "tnd,tdc->tnc"}> : () -> ()
    %cst_100 = arith.constant dense<0.000000e+00> : vector<2x8x128xf32>
    %114 = tpu.matmul %0, %113, %cst_100 {dimension_numbers = #tpu.dot_dimension_numbers<[2], [1], [1], [2], [0, 0, 0, 1, 1, 2], [0], [0]>} : vector<2x8x256xf32>, vector<2x256x128xf32>, vector<2x8x128xf32> -> vector<2x8x128xf32>
    "tpu.trace_stop"() : () -> ()
    %c0_101 = arith.constant 0 : index
    %c0_102 = arith.constant 0 : index
    %c0_103 = arith.constant 0 : index
    %115 = vector.load %arg9[%c0_101, %c0_102, %c0_103] : memref<2x1x128xf32, #tpu.memory_space<vmem>>, vector<2x1x128xf32>
    %116 = vector.broadcast %115 : vector<2x1x128xf32> to vector<2x8x128xf32>
    %117 = arith.addf %114, %116 : vector<2x8x128xf32>
    %118 = vector.broadcast %16 : vector<1x1x128xf32> to vector<2x8x128xf32>
    %119 = arith.addf %117, %118 : vector<2x8x128xf32>
    %cst_104 = arith.constant dense<0xFF800000> : vector<2x8xf32>
    %120 = vector.multi_reduction <maximumf>, %119, %cst_104 [2] : vector<2x8x128xf32> to vector<2x8xf32>
    %121 = vector.shape_cast %120 : vector<2x8xf32> to vector<2x8x1xf32>
    %122 = vector.broadcast %121 : vector<2x8x1xf32> to vector<2x8x128xf32>
    %123 = arith.subf %119, %122 : vector<2x8x128xf32>
    %124 = math.exp %123 : vector<2x8x128xf32>
    %cst_105 = arith.constant dense<0.000000e+00> : vector<2x8xf32>
    %125 = vector.multi_reduction <add>, %124, %cst_105 [2] : vector<2x8x128xf32> to vector<2x8xf32>
    %126 = vector.shape_cast %125 : vector<2x8xf32> to vector<2x8x1xf32>
    %127 = vector.broadcast %126 : vector<2x8x1xf32> to vector<2x8x128xf32>
    %128 = arith.divf %124, %127 : vector<2x8x128xf32>
    %129 = arith.subf %128, %2 : vector<2x8x128xf32>
    %cst_106 = arith.constant 1.250000e-01 : f32
    %130 = vector.broadcast %cst_106 : f32 to vector<2x8x128xf32>
    %131 = arith.mulf %129, %130 : vector<2x8x128xf32>
    "tpu.trace_start"() <{level = 10 : i32, message = "tdn,tnc->tdc"}> : () -> ()
    %cst_107 = arith.constant dense<0.000000e+00> : vector<2x256x128xf32>
    %132 = tpu.matmul %1, %131, %cst_107 {dimension_numbers = #tpu.dot_dimension_numbers<[2], [1], [1], [2], [0, 0, 0, 1, 1, 2], [0], [0]>} : vector<2x256x8xf32>, vector<2x8x128xf32>, vector<2x256x128xf32> -> vector<2x256x128xf32>
    "tpu.trace_stop"() : () -> ()
    %cst_108 = arith.constant dense<0.000000e+00> : vector<2x128xf32>
    %133 = vector.multi_reduction <add>, %131, %cst_108 [1] : vector<2x8x128xf32> to vector<2x128xf32>
    %134 = vector.shape_cast %133 : vector<2x128xf32> to vector<2x1x128xf32>
    %c0_109 = arith.constant 0 : index
    %c0_110 = arith.constant 0 : index
    %c0_111 = arith.constant 0 : index
    %135 = vector.load %arg8[%c0_109, %c0_110, %c0_111] : memref<2x256x128xf32, #tpu.memory_space<vmem>>, vector<2x256x128xf32>
    %cst_112 = arith.constant 0.00999999977 : f32
    %136 = vector.broadcast %cst_112 : f32 to vector<2x256x128xf32>
    %137 = arith.mulf %136, %132 : vector<2x256x128xf32>
    %138 = arith.subf %135, %137 : vector<2x256x128xf32>
    %c0_113 = arith.constant 0 : index
    %c0_114 = arith.constant 0 : index
    %c0_115 = arith.constant 0 : index
    %139 = vector.load %arg8[%c0_113, %c0_114, %c0_115] : memref<2x256x128xf32, #tpu.memory_space<vmem>>, vector<2x256x128xf32>
    tpu.vector_store %arg8[%c0_113, %c0_114, %c0_115], %138 {strides = array<i32>} : memref<2x256x128xf32, #tpu.memory_space<vmem>>, vector<2x256x128xf32>,
    %c0_116 = arith.constant 0 : index
    %c0_117 = arith.constant 0 : index
    %c0_118 = arith.constant 0 : index
    %140 = vector.load %arg9[%c0_116, %c0_117, %c0_118] : memref<2x1x128xf32, #tpu.memory_space<vmem>>, vector<2x1x128xf32>
    %cst_119 = arith.constant 0.00999999977 : f32
    %141 = vector.broadcast %cst_119 : f32 to vector<2x1x128xf32>
    %142 = arith.mulf %141, %134 : vector<2x1x128xf32>
    %143 = arith.subf %140, %142 : vector<2x1x128xf32>
    %c0_120 = arith.constant 0 : index
    %c0_121 = arith.constant 0 : index
    %c0_122 = arith.constant 0 : index
    %144 = vector.load %arg9[%c0_120, %c0_121, %c0_122] : memref<2x1x128xf32, #tpu.memory_space<vmem>>, vector<2x1x128xf32>
    tpu.vector_store %arg9[%c0_120, %c0_121, %c0_122], %143 {strides = array<i32>} : memref<2x1x128xf32, #tpu.memory_space<vmem>>, vector<2x1x128xf32>,
    %c4_i32_123 = arith.constant 4 : i32
    %c0_124 = arith.constant 0 : index
    %c0_125 = arith.constant 0 : index
    %c0_126 = arith.constant 0 : index
    %145 = vector.load %arg8[%c0_124, %c0_125, %c0_126] : memref<2x256x128xf32, #tpu.memory_space<vmem>>, vector<2x256x128xf32>
    "tpu.trace_start"() <{level = 10 : i32, message = "tnd,tdc->tnc"}> : () -> ()
    %cst_127 = arith.constant dense<0.000000e+00> : vector<2x8x128xf32>
    %146 = tpu.matmul %0, %145, %cst_127 {dimension_numbers = #tpu.dot_dimension_numbers<[2], [1], [1], [2], [0, 0, 0, 1, 1, 2], [0], [0]>} : vector<2x8x256xf32>, vector<2x256x128xf32>, vector<2x8x128xf32> -> vector<2x8x128xf32>
    "tpu.trace_stop"() : () -> ()
    %c0_128 = arith.constant 0 : index
    %c0_129 = arith.constant 0 : index
    %c0_130 = arith.constant 0 : index
    %147 = vector.load %arg9[%c0_128, %c0_129, %c0_130] : memref<2x1x128xf32, #tpu.memory_space<vmem>>, vector<2x1x128xf32>
    %148 = vector.broadcast %147 : vector<2x1x128xf32> to vector<2x8x128xf32>
    %149 = arith.addf %146, %148 : vector<2x8x128xf32>
    %150 = vector.broadcast %16 : vector<1x1x128xf32> to vector<2x8x128xf32>
    %151 = arith.addf %149, %150 : vector<2x8x128xf32>
    %cst_131 = arith.constant dense<0xFF800000> : vector<2x8xf32>
    %152 = vector.multi_reduction <maximumf>, %151, %cst_131 [2] : vector<2x8x128xf32> to vector<2x8xf32>
    %153 = vector.shape_cast %152 : vector<2x8xf32> to vector<2x8x1xf32>
    %154 = vector.broadcast %153 : vector<2x8x1xf32> to vector<2x8x128xf32>
    %155 = arith.subf %151, %154 : vector<2x8x128xf32>
    %156 = math.exp %155 : vector<2x8x128xf32>
    %cst_132 = arith.constant dense<0.000000e+00> : vector<2x8xf32>
    %157 = vector.multi_reduction <add>, %156, %cst_132 [2] : vector<2x8x128xf32> to vector<2x8xf32>
    %158 = vector.shape_cast %157 : vector<2x8xf32> to vector<2x8x1xf32>
    %159 = vector.broadcast %158 : vector<2x8x1xf32> to vector<2x8x128xf32>
    %160 = arith.divf %156, %159 : vector<2x8x128xf32>
    %161 = arith.subf %160, %2 : vector<2x8x128xf32>
    %cst_133 = arith.constant 1.250000e-01 : f32
    %162 = vector.broadcast %cst_133 : f32 to vector<2x8x128xf32>
    %163 = arith.mulf %161, %162 : vector<2x8x128xf32>
    "tpu.trace_start"() <{level = 10 : i32, message = "tdn,tnc->tdc"}> : () -> ()
    %cst_134 = arith.constant dense<0.000000e+00> : vector<2x256x128xf32>
    %164 = tpu.matmul %1, %163, %cst_134 {dimension_numbers = #tpu.dot_dimension_numbers<[2], [1], [1], [2], [0, 0, 0, 1, 1, 2], [0], [0]>} : vector<2x256x8xf32>, vector<2x8x128xf32>, vector<2x256x128xf32> -> vector<2x256x128xf32>
    "tpu.trace_stop"() : () -> ()
    %cst_135 = arith.constant dense<0.000000e+00> : vector<2x128xf32>
    %165 = vector.multi_reduction <add>, %163, %cst_135 [1] : vector<2x8x128xf32> to vector<2x128xf32>
    %166 = vector.shape_cast %165 : vector<2x128xf32> to vector<2x1x128xf32>
    %c0_136 = arith.constant 0 : index
    %c0_137 = arith.constant 0 : index
    %c0_138 = arith.constant 0 : index
    %167 = vector.load %arg8[%c0_136, %c0_137, %c0_138] : memref<2x256x128xf32, #tpu.memory_space<vmem>>, vector<2x256x128xf32>
    %cst_139 = arith.constant 0.00999999977 : f32
    %168 = vector.broadcast %cst_139 : f32 to vector<2x256x128xf32>
    %169 = arith.mulf %168, %164 : vector<2x256x128xf32>
    %170 = arith.subf %167, %169 : vector<2x256x128xf32>
    %c0_140 = arith.constant 0 : index
    %c0_141 = arith.constant 0 : index
    %c0_142 = arith.constant 0 : index
    %171 = vector.load %arg8[%c0_140, %c0_141, %c0_142] : memref<2x256x128xf32, #tpu.memory_space<vmem>>, vector<2x256x128xf32>
    tpu.vector_store %arg8[%c0_140, %c0_141, %c0_142], %170 {strides = array<i32>} : memref<2x256x128xf32, #tpu.memory_space<vmem>>, vector<2x256x128xf32>,
    %c0_143 = arith.constant 0 : index
    %c0_144 = arith.constant 0 : index
    %c0_145 = arith.constant 0 : index
    %172 = vector.load %arg9[%c0_143, %c0_144, %c0_145] : memref<2x1x128xf32, #tpu.memory_space<vmem>>, vector<2x1x128xf32>
    %cst_146 = arith.constant 0.00999999977 : f32
    %173 = vector.broadcast %cst_146 : f32 to vector<2x1x128xf32>
    %174 = arith.mulf %173, %166 : vector<2x1x128xf32>
    %175 = arith.subf %172, %174 : vector<2x1x128xf32>
    %c0_147 = arith.constant 0 : index
    %c0_148 = arith.constant 0 : index
    %c0_149 = arith.constant 0 : index
    %176 = vector.load %arg9[%c0_147, %c0_148, %c0_149] : memref<2x1x128xf32, #tpu.memory_space<vmem>>, vector<2x1x128xf32>
    tpu.vector_store %arg9[%c0_147, %c0_148, %c0_149], %175 {strides = array<i32>} : memref<2x1x128xf32, #tpu.memory_space<vmem>>, vector<2x1x128xf32>,
    %c0_150 = arith.constant 0 : index
    %c0_151 = arith.constant 0 : index
    %c0_152 = arith.constant 0 : index
    %177 = vector.load %arg4[%c0_150, %c0_151, %c0_152] : memref<2x8x256xf32, #tpu.memory_space<vmem>>, vector<2x8x256xf32>
    %c0_153 = arith.constant 0 : index
    %c0_154 = arith.constant 0 : index
    %c0_155 = arith.constant 0 : index
    %178 = vector.load %arg8[%c0_153, %c0_154, %c0_155] : memref<2x256x128xf32, #tpu.memory_space<vmem>>, vector<2x256x128xf32>
    "tpu.trace_start"() <{level = 10 : i32, message = "tqd,tdc->tqc"}> : () -> ()
    %cst_156 = arith.constant dense<0.000000e+00> : vector<2x8x128xf32>
    %179 = tpu.matmul %177, %178, %cst_156 {dimension_numbers = #tpu.dot_dimension_numbers<[2], [1], [1], [2], [0, 0, 0, 1, 1, 2], [0], [0]>} : vector<2x8x256xf32>, vector<2x256x128xf32>, vector<2x8x128xf32> -> vector<2x8x128xf32>
    "tpu.trace_stop"() : () -> ()
    %c0_157 = arith.constant 0 : index
    %c0_158 = arith.constant 0 : index
    %c0_159 = arith.constant 0 : index
    %180 = vector.load %arg9[%c0_157, %c0_158, %c0_159] : memref<2x1x128xf32, #tpu.memory_space<vmem>>, vector<2x1x128xf32>
    %181 = vector.broadcast %180 : vector<2x1x128xf32> to vector<2x8x128xf32>
    %182 = arith.addf %179, %181 : vector<2x8x128xf32>
    %c0_160 = arith.constant 0 : index
    %c0_161 = arith.constant 0 : index
    %c0_162 = arith.constant 0 : index
    %183 = vector.load %arg7[%c0_160, %c0_161, %c0_162] : memref<2x8x128xf32, #tpu.memory_space<vmem>>, vector<2x8x128xf32>
    tpu.vector_store %arg7[%c0_160, %c0_161, %c0_162], %182 {strides = array<i32>} : memref<2x8x128xf32, #tpu.memory_space<vmem>>, vector<2x8x128xf32>,
    return
  }
  func.func @transform_0(%arg0: i32) -> (i32, i32, i32) {
    %c0_i32 = arith.constant 0 : i32
    %c0_i32_0 = arith.constant 0 : i32
    %c0_i32_1 = arith.constant 0 : i32
    return %arg0, %c0_i32, %c0_i32_0 : i32, i32, i32
  }
  func.func @transform_1(%arg0: i32) -> (i32, i32, i32) {
    %c0_i32 = arith.constant 0 : i32
    %c0_i32_0 = arith.constant 0 : i32
    %c0_i32_1 = arith.constant 0 : i32
    return %arg0, %c0_i32, %c0_i32_0 : i32, i32, i32
  }
  func.func @transform_2(%arg0: i32) -> (i32, i32, i32) {
    %c0_i32 = arith.constant 0 : i32
    %c0_i32_0 = arith.constant 0 : i32
    %c0_i32_1 = arith.constant 0 : i32
    return %arg0, %c0_i32, %c0_i32_0 : i32, i32, i32
  }
  func.func @transform_3(%arg0: i32) -> (i32, i32, i32) {
    %c0_i32 = arith.constant 0 : i32
    %c0_i32_0 = arith.constant 0 : i32
    %c0_i32_1 = arith.constant 0 : i32
    return %arg0, %c0_i32, %c0_i32_0 : i32, i32, i32
  }
  func.func @transform_4(%arg0: i32) -> (i32, i32) {
    %c0_i32 = arith.constant 0 : i32
    %c0_i32_0 = arith.constant 0 : i32
    %c0_i32_1 = arith.constant 0 : i32
    return %c0_i32, %c0_i32_0 : i32, i32
  }
  func.func @transform_5(%arg0: i32) -> (i32, i32) {
    %c0_i32 = arith.constant 0 : i32
    %c0_i32_0 = arith.constant 0 : i32
    %c0_i32_1 = arith.constant 0 : i32
    return %c0_i32, %c0_i32_0 : i32, i32
  }
  func.func @transform_6(%arg0: i32) -> (i32, i32, i32) {
    %c0_i32 = arith.constant 0 : i32
    %c0_i32_0 = arith.constant 0 : i32
    %c0_i32_1 = arith.constant 0 : i32
    return %arg0, %c0_i32, %c0_i32_0 : i32, i32, i32
  }
}

</mosaic_0001>

<bundles_post_ra>
// kernel: mlwm_forward.3
= control target key start
LH: loop header
LB: loop body
LE: loop exit
PB: predicated region body
PF: predicated region fallthrough
CT: control target
= control target key end

     0   :  { %s3301_s12 = smov 0   ;;  %s3660_s0 = inlined_call_operand.vmem [shape: bf16[2048,27], index: 0, kind: input, shape index: {}]   ;;  %s3661_s1 = inlined_call_operand.vmem [shape: bf16[27,128], index: 1, kind: input, shape index: {}]   ;;  %s3662_s2 = inlined_call_operand.vmem [shape: f32[1,128], index: 2, kind: input, shape index: {}]   ;;  %s3663_s3 = inlined_call_operand.vmem [shape: bf16[2048,128], index: 3, kind: output, shape index: {}]  }
   0x1 LB: > { %s2214_s13 = sadd.s32 4294967295, %s3278_s12   ;;  %p2218_p0 = scmp.ge.s32.totalorder %s3278_s12, 1  ;;  %s3278_s12 = sphi %s3301_s12, %s13_s12  }
   0x2   : > { %p138_p1 = scmp.lt.s32.totalorder %s3278_s12, 3 }
   0x4   : > { %p139_p2 = pnand %p2218_p0, %p138_p1 }
   0x5   : > { %v3206_v0 = vld [vmem:[%s3661_s1] sm:$0xff] (!%p139_p2)   ;;  %vm838_vm0 = vcmask (!%p139_p2), 1044480   ;;  %v3207_v1 = vld [vmem:[%s3661_s1 + $0x8] sm:$0x3f] (!%p139_p2)   ;;  %vm839_vm1 = vcmask (!%p139_p2), 1045504   ;;  %s2219_s18 = sshll.u32 (!%p139_p2), %s2214_s13, 7 }
   0x6   : > { %142 = sbr.rel (%p139_p2) target bundleno = 361 (0x169), region = 32  ;;  %3061 = vmatprep.subr.bf16.mxu0 (!%p139_p2), %v3206_v0  ;;  %3193 = vmatprep.subr.bf16.mxu1 (!%p139_p2), %v3206_v0  ;;  %v3280_v2 = vmov (!%p139_p2), 65535   ;;  %p163_p3 = scmp.lt.s32.totalorder (!%p139_p2), %s2219_s18, 255  ;;  %vm645_vm2 = vcmask (!%p139_p2), 220160  }
   0x7   : > { %3062 = vmatpush3.bf16.msra.mxu0 (!%p139_p2), %v3206_v0  ;;  %3195 = vmatpush3.bf16.msra.mxu1 (!%p139_p2), %v3206_v0  ;;  %v840_v3 = vsel (!%p139_p2), %vm838_vm0, 4294967295, %v3280_v2 }
   0x8   : > { %v841_v4 = vsel (!%p139_p2), %vm839_vm1, %v840_v3, 0 }
   0x9   : > { %v843_v5 = vand.u32 (!%p139_p2), %v3207_v1, %v841_v4 }
   0xb   : > { %3063 = vmatprep.subr.bf16.mxu0 (!%p139_p2), %v843_v5  ;;  %3194 = vmatprep.subr.bf16.mxu1 (!%p139_p2), %v843_v5 }
   0xc   : > { %3064 = vmatpush3.bf16.msra.mxu0 (!%p139_p2), %v843_v5  ;;  %3196 = vmatpush3.bf16.msra.mxu1 (!%p139_p2), %v843_v5 }
   0xd   : > { %s3665_s18 = smov (!%p163_p3, %s2219_s18), 255 }
   0xe   : > { %s2220_s19 = sshll.u32 %s3665_s18, 2 }
   0xf   : > { %s3323_s22 = scalar_lea.vmem %s3660_s0, %s2220_s19  ;;  %s3471_s27 = scalar_lea.vmem %s3663_s3, %s2220_s19 }
  0x10   : > { %v3208_v6 = vld [vmem:[%s3323_s22] sm:$0xff]   ;;  %v3210_v8 = vld [vmem:[%s3323_s22 + $0x8] sm:$0xff]   ;;  %v3212_v10 = vld [vmem:[%s3323_s22 + $0x10] sm:$0xff]  }
  0x11   : > { %v3209_v7 = vld [vmem:[%s3323_s22 + $0x100] sm:$0xff]   ;;  %3065 = vmatprep.mubr.msk.bf16.mxu0 %vm645_vm2, %v3208_v6  ;;  %v3211_v9 = vld [vmem:[%s3323_s22 + $0x108] sm:$0xff]   ;;  %v3213_v11 = vld [vmem:[%s3323_s22 + $0x110] sm:$0xff]  }
  0x12   : > { %3129 = vmatprep.mubr.msk.bf16.mxu1 %vm645_vm2, %v3209_v7  ;;  %3066 = vmatmul.mubr.msk.bf16.vlgmr.msra.gmra.mrb[0].mxu0 %vm645_vm2, %v3210_v8  ;;  %v3214_v12 = vld [vmem:[%s3323_s22 + $0x18] sm:$0xff]   ;;  %v3216_v14 = vld [vmem:[%s3323_s22 + $0x20] sm:$0xff]   ;;  %v3218_v16 = vld [vmem:[%s3323_s22 + $0x28] sm:$0xff]  }
  0x13   : > { %3130 = vmatmul.mubr.msk.bf16.vlgmr.msra.gmra.mrb[0].mxu1 %vm645_vm2, %v3211_v9  ;;  %3069 = vmatprep.mubr.msk.bf16.mxu0 %vm645_vm2, %v3212_v10  ;;  %v3215_v13 = vld [vmem:[%s3323_s22 + $0x118] sm:$0xff]   ;;  %v3217_v15 = vld [vmem:[%s3323_s22 + $0x120] sm:$0xff]   ;;  %v3219_v17 = vld [vmem:[%s3323_s22 + $0x128] sm:$0xff]  }
  0x14   : > { %3133 = vmatprep.mubr.msk.bf16.mxu1 %vm645_vm2, %v3213_v11  ;;  %v3220_v18 = vld [vmem:[%s3323_s22 + $0x30] sm:$0xff]   ;;  %v3222_v20 = vld [vmem:[%s3323_s22 + $0x38] sm:$0xff]   ;;  %v3224_v22 = vld [vmem:[%s3323_s22 + $0x40] sm:$0xff]  }
  0x15   : > { %v3221_v19 = vld [vmem:[%s3323_s22 + $0x130] sm:$0xff]   ;;  %v3223_v21 = vld [vmem:[%s3323_s22 + $0x138] sm:$0xff]   ;;  %v3225_v23 = vld [vmem:[%s3323_s22 + $0x140] sm:$0xff]  }
  0x16   : > { %v3226_v24 = vld [vmem:[%s3323_s22 + $0x48] sm:$0xff]   ;;  %v3228_v26 = vld [vmem:[%s3323_s22 + $0x50] sm:$0xff]   ;;  %v3230_v28 = vld [vmem:[%s3323_s22 + $0x58] sm:$0xff]  }
  0x17   : > { %v3227_v25 = vld [vmem:[%s3323_s22 + $0x148] sm:$0xff]   ;;  %v3229_v27 = vld [vmem:[%s3323_s22 + $0x150] sm:$0xff]   ;;  %v3231_v29 = vld [vmem:[%s3323_s22 + $0x158] sm:$0xff]  }
  0x18   : > { %v3232_v30 = vld [vmem:[%s3323_s22 + $0x60] sm:$0xff]   ;;  %v3234_v32 = vld [vmem:[%s3323_s22 + $0x68] sm:$0xff]   ;;  %v3236_v34 = vld [vmem:[%s3323_s22 + $0x70] sm:$0xff]  }
  0x19   : > { %v3233_v31 = vld [vmem:[%s3323_s22 + $0x160] sm:$0xff]   ;;  %v3235_v33 = vld [vmem:[%s3323_s22 + $0x168] sm:$0xff]   ;;  %v3237_v35 = vld [vmem:[%s3323_s22 + $0x170] sm:$0xff]  }
  0x1a   : > { %3070 = vmatmul.mubr.msk.bf16.gmra.mrb[4].mxu0 %vm645_vm2, %v3214_v12  ;;  %v3238_v36 = vld [vmem:[%s3323_s22 + $0x78] sm:$0xff]   ;;  %v3240_v38 = vld [vmem:[%s3323_s22 + $0x80] sm:$0xff]   ;;  %v3242_v40 = vld [vmem:[%s3323_s22 + $0x88] sm:$0xff]  }
  0x1b   : > { %3134 = vmatmul.mubr.msk.bf16.gmra.mrb[4].mxu1 %vm645_vm2, %v3215_v13  ;;  %3073 = vmatprep.mubr.msk.bf16.mxu0 %vm645_vm2, %v3216_v14  ;;  %v3239_v37 = vld [vmem:[%s3323_s22 + $0x178] sm:$0xff]   ;;  %v3241_v39 = vld [vmem:[%s3323_s22 + $0x180] sm:$0xff]   ;;  %v3243_v41 = vld [vmem:[%s3323_s22 + $0x188] sm:$0xff]  }
  0x1c   : > { %3137 = vmatprep.mubr.msk.bf16.mxu1 %vm645_vm2, %v3217_v15  ;;  %v3244_v42 = vld [vmem:[%s3323_s22 + $0x90] sm:$0xff]   ;;  %v3246_v44 = vld [vmem:[%s3323_s22 + $0x98] sm:$0xff]   ;;  %v3248_v46 = vld [vmem:[%s3323_s22 + $0xa0] sm:$0xff]  }
  0x1d   : > { %v3245_v43 = vld [vmem:[%s3323_s22 + $0x190] sm:$0xff]   ;;  %v3247_v45 = vld [vmem:[%s3323_s22 + $0x198] sm:$0xff]   ;;  %v3249_v47 = vld [vmem:[%s3323_s22 + $0x1a0] sm:$0xff]  }
  0x1e   : > { %v3250_v48 = vld [vmem:[%s3323_s22 + $0xa8] sm:$0xff]   ;;  %v3252_v50 = vld [vmem:[%s3323_s22 + $0xb0] sm:$0xff]   ;;  %v3254_v52 = vld [vmem:[%s3323_s22 + $0xb8] sm:$0xff]  }
  0x1f   : > { %v3251_v49 = vld [vmem:[%s3323_s22 + $0x1a8] sm:$0xff]   ;;  %v3253_v51 = vld [vmem:[%s3323_s22 + $0x1b0] sm:$0xff]   ;;  %v3255_v53 = vld [vmem:[%s3323_s22 + $0x1b8] sm:$0xff]  }
  0x20   : > { %v3256_v54 = vld [vmem:[%s3323_s22 + $0xc0] sm:$0xff]   ;;  %v3258_v56 = vld [vmem:[%s3323_s22 + $0xc8] sm:$0xff]   ;;  %v3260_v58 = vld [vmem:[%s3323_s22 + $0xd0] sm:$0xff]  }
  0x21   : > { %v3257_v55 = vld [vmem:[%s3323_s22 + $0x1c0] sm:$0xff]   ;;  %v3259_v57 = vld [vmem:[%s3323_s22 + $0x1c8] sm:$0xff]   ;;  %v3261_v59 = vld [vmem:[%s3323_s22 + $0x1d0] sm:$0xff]  }
  0x22   : > { %3074 = vmatmul.mubr.msk.bf16.gmra.mrb[8].mxu0 %vm645_vm2, %v3218_v16  ;;  %v3262_v60 = vld [vmem:[%s3323_s22 + $0xd8] sm:$0xff]   ;;  %v3264_v62 = vld [vmem:[%s3323_s22 + $0xe0] sm:$0xff]   ;;  %v3266_v0 = vld [vmem:[%s3323_s22 + $0xe8] sm:$0xff]  }
  0x23   : > { %3138 = vmatmul.mubr.msk.bf16.gmra.mrb[8].mxu1 %vm645_vm2, %v3219_v17  ;;  %3077 = vmatprep.mubr.msk.bf16.mxu0 %vm645_vm2, %v3220_v18  ;;  %v3263_v61 = vld [vmem:[%s3323_s22 + $0x1d8] sm:$0xff]   ;;  %v3265_v63 = vld [vmem:[%s3323_s22 + $0x1e0] sm:$0xff]   ;;  %v3267_v1 = vld [vmem:[%s3323_s22 + $0x1e8] sm:$0xff]  }
  0x24   : > { %3141 = vmatprep.mubr.msk.bf16.mxu1 %vm645_vm2, %v3221_v19  ;;  %v3268_v2 = vld [vmem:[%s3323_s22 + $0xf0] sm:$0xff]   ;;  %v3270_v4 = vld [vmem:[%s3323_s22 + $0xf8] sm:$0xff]   ;;  %v3456_v6 = vld [vmem:[%s3662_s2] ss:$0 sm:$0xff] }
  0x25   : > { %v3269_v3 = vld [vmem:[%s3323_s22 + $0x1f0] sm:$0xff]   ;;  %v3271_v5 = vld [vmem:[%s3323_s22 + $0x1f8] sm:$0xff]  }
  0x2a   : > { %3078 = vmatmul.mubr.msk.bf16.gmra.mrb[12].mxu0 %vm645_vm2, %v3222_v20 }
  0x2b   : > { %3142 = vmatmul.mubr.msk.bf16.gmra.mrb[12].mxu1 %vm645_vm2, %v3223_v21  ;;  %3081 = vmatprep.mubr.msk.bf16.mxu0 %vm645_vm2, %v3224_v22 }
  0x2c   : > { %3145 = vmatprep.mubr.msk.bf16.mxu1 %vm645_vm2, %v3225_v23 }
  0x32   : > { %3082 = vmatmul.mubr.msk.bf16.gmra.mrb[16].mxu0 %vm645_vm2, %v3226_v24 }
  0x33   : > { %3146 = vmatmul.mubr.msk.bf16.gmra.mrb[16].mxu1 %vm645_vm2, %v3227_v25  ;;  %3085 = vmatprep.mubr.msk.bf16.mxu0 %vm645_vm2, %v3228_v26 }
  0x34   : > { %3149 = vmatprep.mubr.msk.bf16.mxu1 %vm645_vm2, %v3229_v27 }
  0x3a   : > { %3086 = vmatmul.mubr.msk.bf16.gmra.mrb[20].mxu0 %vm645_vm2, %v3230_v28 }
  0x3b   : > { %3150 = vmatmul.mubr.msk.bf16.gmra.mrb[20].mxu1 %vm645_vm2, %v3231_v29  ;;  %3089 = vmatprep.mubr.msk.bf16.mxu0 %vm645_vm2, %v3232_v30 }
  0x3c   : > { %3153 = vmatprep.mubr.msk.bf16.mxu1 %vm645_vm2, %v3233_v31 }
  0x42   : > { %3090 = vmatmul.mubr.msk.bf16.gmra.mrb[24].mxu0 %vm645_vm2, %v3234_v32 }
  0x43   : > { %3154 = vmatmul.mubr.msk.bf16.gmra.mrb[24].mxu1 %vm645_vm2, %v3235_v33  ;;  %3093 = vmatprep.mubr.msk.bf16.mxu0 %vm645_vm2, %v3236_v34 }
  0x44   : > { %3157 = vmatprep.mubr.msk.bf16.mxu1 %vm645_vm2, %v3237_v35 }
  0x4a   : > { %3094 = vmatmul.mubr.msk.bf16.gmra.mrb[28].mxu0 %vm645_vm2, %v3238_v36 }
  0x4b   : > { %3158 = vmatmul.mubr.msk.bf16.gmra.mrb[28].mxu1 %vm645_vm2, %v3239_v37  ;;  %3097 = vmatprep.mubr.msk.bf16.mxu0 %vm645_vm2, %v3240_v38 }
  0x4c   : > { %3161 = vmatprep.mubr.msk.bf16.mxu1 %vm645_vm2, %v3241_v39 }
  0x52   : > { %3098 = vmatmul.mubr.msk.bf16.gmra.mrb[32].mxu0 %vm645_vm2, %v3242_v40 }
  0x53   : > { %3162 = vmatmul.mubr.msk.bf16.gmra.mrb[32].mxu1 %vm645_vm2, %v3243_v41  ;;  %3101 = vmatprep.mubr.msk.bf16.mxu0 %vm645_vm2, %v3244_v42 }
  0x54   : > { %3165 = vmatprep.mubr.msk.bf16.mxu1 %vm645_vm2, %v3245_v43 }
  0x5a   : > { %3102 = vmatmul.mubr.msk.bf16.gmra.mrb[36].mxu0 %vm645_vm2, %v3246_v44 }
  0x5b   : > { %3166 = vmatmul.mubr.msk.bf16.gmra.mrb[36].mxu1 %vm645_vm2, %v3247_v45  ;;  %3105 = vmatprep.mubr.msk.bf16.mxu0 %vm645_vm2, %v3248_v46 }
  0x5c   : > { %3169 = vmatprep.mubr.msk.bf16.mxu1 %vm645_vm2, %v3249_v47 }
  0x62   : > { %3106 = vmatmul.mubr.msk.bf16.gmra.mrb[40].mxu0 %vm645_vm2, %v3250_v48 }
  0x63   : > { %3170 = vmatmul.mubr.msk.bf16.gmra.mrb[40].mxu1 %vm645_vm2, %v3251_v49  ;;  %3109 = vmatprep.mubr.msk.bf16.mxu0 %vm645_vm2, %v3252_v50 }
  0x64   : > { %3173 = vmatprep.mubr.msk.bf16.mxu1 %vm645_vm2, %v3253_v51 }
  0x6a   : > { %3110 = vmatmul.mubr.msk.bf16.gmra.mrb[44].mxu0 %vm645_vm2, %v3254_v52 }
  0x6b   : > { %3174 = vmatmul.mubr.msk.bf16.gmra.mrb[44].mxu1 %vm645_vm2, %v3255_v53  ;;  %3113 = vmatprep.mubr.msk.bf16.mxu0 %vm645_vm2, %v3256_v54 }
  0x6c   : > { %3177 = vmatprep.mubr.msk.bf16.mxu1 %vm645_vm2, %v3257_v55 }
  0x72   : > { %3114 = vmatmul.mubr.msk.bf16.gmra.mrb[48].mxu0 %vm645_vm2, %v3258_v56 }
  0x73   : > { %3178 = vmatmul.mubr.msk.bf16.gmra.mrb[48].mxu1 %vm645_vm2, %v3259_v57  ;;  %3117 = vmatprep.mubr.msk.bf16.mxu0 %vm645_vm2, %v3260_v58 }
  0x74   : > { %3181 = vmatprep.mubr.msk.bf16.mxu1 %vm645_vm2, %v3261_v59 }
  0x7a   : > { %3118 = vmatmul.mubr.msk.bf16.gmra.mrb[52].mxu0 %vm645_vm2, %v3262_v60 }
  0x7b   : > { %3182 = vmatmul.mubr.msk.bf16.gmra.mrb[52].mxu1 %vm645_vm2, %v3263_v61  ;;  %3121 = vmatprep.mubr.msk.bf16.mxu0 %vm645_vm2, %v3264_v62 }
  0x7c   : > { %3185 = vmatprep.mubr.msk.bf16.mxu1 %vm645_vm2, %v3265_v63 }
  0x82   : > { %3122 = vmatmul.mubr.msk.bf16.gmra.mrb[56].mxu0 %vm645_vm2, %v3266_v0 }
  0x83   : > { %3186 = vmatmul.mubr.msk.bf16.gmra.mrb[56].mxu1 %vm645_vm2, %v3267_v1  ;;  %3125 = vmatprep.mubr.msk.bf16.mxu0 %vm645_vm2, %v3268_v2 }
  0x84   : > { %3189 = vmatprep.mubr.msk.bf16.mxu1 %vm645_vm2, %v3269_v3 }
  0x8a   : > { %3126 = vmatmul.mubr.msk.bf16.gmra.mrb[60].mxu0 %vm645_vm2, %v3270_v4 }
  0x8b   : > { %3190 = vmatmul.mubr.msk.bf16.gmra.mrb[60].mxu1 %vm645_vm2, %v3271_v5 }
  0xe5   : > { %v3067_v7 = vpop.f32.mrb[0].mxu0 }
  0xe6   : > { %v888_v8 = vadd.f32 %v3067_v7, %v3456_v6  ;;  %v3131_v9 = vpop.f32.mrb[0].mxu1  ;;  %v879_v10 = vpop.f32.mrb[1].mxu0 }
  0xe7   : > { %v1144_v11 = vadd.f32 %v3131_v9, %v3456_v6  ;;  %v880_v12 = vadd.f32 %v3456_v6, %v879_v10  ;;  %v1135_v13 = vpop.f32.mrb[1].mxu1  ;;  %v3068_v14 = vpop.f32.mrb[2].mxu0 }
  0xe8   : > { %v1136_v15 = vadd.f32 %v3456_v6, %v1135_v13  ;;  %v891_v16 = vadd.f32 %v3068_v14, %v3456_v6  ;;  %v3132_v17 = vpop.f32.mrb[2].mxu1  ;;  %v882_v18 = vpop.f32.mrb[3].mxu0  ;;  %v1392_v22 = vmax.f32 %v888_v8, 0.0 }
  0xe9   : > { %v1147_v19 = vadd.f32 %v3132_v17, %v3456_v6  ;;  %v883_v20 = vadd.f32 %v3456_v6, %v882_v18  ;;  %v1138_v21 = vpop.f32.mrb[3].mxu1  ;;  %v1456_v25 = vmax.f32 %v1144_v11, 0.0  ;;  %v1390_v26 = vmax.f32 %v880_v12, 0.0 }
  0xea   : > { %v1393_v23 = vmax.f32 %v891_v16, 0.0  ;;  %v1139_v24 = vadd.f32 %v3456_v6, %v1138_v21  ;;  %v1454_v29 = vmax.f32 %v1136_v15, 0.0 }
  0xeb   : > { %v1457_v27 = vmax.f32 %v1147_v19, 0.0  ;;  %v1391_v28 = vmax.f32 %v883_v20, 0.0 }
  0xec   : > { %v2620_v30 = vpack.c.bf16 %v1393_v23, %v1392_v22  ;;  %v1455_v31 = vmax.f32 %v1139_v24, 0.0 }
  0xed   : > { %v2780_v32 = vpack.c.bf16 %v1457_v27, %v1456_v25  ;;  %v2615_v33 = vpack.c.bf16 %v1391_v28, %v1390_v26  ;;  %v3071_v34 = vpop.f32.mrb[4].mxu0 }
  0xee   : > { %2932 = vst [vmem:[%s3471_s27 + $0x8] sm:$0xff] %v2620_v30   ;;  %v2775_v35 = vpack.c.bf16 %v1455_v31, %v1454_v29  ;;  %v904_v36 = vadd.f32 %v3071_v34, %v3456_v6  ;;  %v3135_v37 = vpop.f32.mrb[4].mxu1  ;;  %v895_v38 = vpop.f32.mrb[5].mxu0 }
  0xef   : > { %2964 = vst [vmem:[%s3471_s27 + $0x108] sm:$0xff] %v2780_v32   ;;  %2616 = vst [vmem:[%s3471_s27] sm:$0xff] %v2615_v33   ;;  %v1160_v39 = vadd.f32 %v3135_v37, %v3456_v6  ;;  %v896_v40 = vadd.f32 %v3456_v6, %v895_v38  ;;  %v1151_v41 = vpop.f32.mrb[5].mxu1  ;;  %v3072_v42 = vpop.f32.mrb[6].mxu0 }
  0xf0   : > { %2963 = vst [vmem:[%s3471_s27 + $0x100] sm:$0xff] %v2775_v35   ;;  %v1152_v43 = vadd.f32 %v3456_v6, %v1151_v41  ;;  %v907_v44 = vadd.f32 %v3072_v42, %v3456_v6  ;;  %v3136_v45 = vpop.f32.mrb[6].mxu1  ;;  %v898_v46 = vpop.f32.mrb[7].mxu0  ;;  %v1396_v50 = vmax.f32 %v904_v36, 0.0 }
  0xf1   : > { %v1163_v47 = vadd.f32 %v3136_v45, %v3456_v6  ;;  %v899_v48 = vadd.f32 %v3456_v6, %v898_v46  ;;  %v1154_v49 = vpop.f32.mrb[7].mxu1  ;;  %v1460_v53 = vmax.f32 %v1160_v39, 0.0  ;;  %v1394_v54 = vmax.f32 %v896_v40, 0.0 }
  0xf2   : > { %v1397_v51 = vmax.f32 %v907_v44, 0.0  ;;  %v1155_v52 = vadd.f32 %v3456_v6, %v1154_v49  ;;  %v1458_v57 = vmax.f32 %v1152_v43, 0.0 }
  0xf3   : > { %v1461_v55 = vmax.f32 %v1163_v47, 0.0  ;;  %v1395_v56 = vmax.f32 %v899_v48, 0.0 }
  0xf4   : > { %v2630_v58 = vpack.c.bf16 %v1397_v51, %v1396_v50  ;;  %v1459_v59 = vmax.f32 %v1155_v52, 0.0 }
  0xf5   : > { %v2790_v60 = vpack.c.bf16 %v1461_v55, %v1460_v53  ;;  %v2625_v61 = vpack.c.bf16 %v1395_v56, %v1394_v54  ;;  %v3075_v62 = vpop.f32.mrb[8].mxu0 }
  0xf6   : > { %2934 = vst [vmem:[%s3471_s27 + $0x18] sm:$0xff] %v2630_v58   ;;  %v2785_v63 = vpack.c.bf16 %v1459_v59, %v1458_v57  ;;  %v920_v0 = vadd.f32 %v3075_v62, %v3456_v6  ;;  %v3139_v1 = vpop.f32.mrb[8].mxu1  ;;  %v911_v2 = vpop.f32.mrb[9].mxu0 }
  0xf7   : > { %2966 = vst [vmem:[%s3471_s27 + $0x118] sm:$0xff] %v2790_v60   ;;  %2933 = vst [vmem:[%s3471_s27 + $0x10] sm:$0xff] %v2625_v61   ;;  %v1176_v3 = vadd.f32 %v3139_v1, %v3456_v6  ;;  %v912_v4 = vadd.f32 %v3456_v6, %v911_v2  ;;  %v1167_v5 = vpop.f32.mrb[9].mxu1  ;;  %v3076_v7 = vpop.f32.mrb[10].mxu0 }
  0xf8   : > { %2965 = vst [vmem:[%s3471_s27 + $0x110] sm:$0xff] %v2785_v63   ;;  %v1168_v8 = vadd.f32 %v3456_v6, %v1167_v5  ;;  %v923_v9 = vadd.f32 %v3076_v7, %v3456_v6  ;;  %v3140_v10 = vpop.f32.mrb[10].mxu1  ;;  %v914_v11 = vpop.f32.mrb[11].mxu0  ;;  %v1400_v15 = vmax.f32 %v920_v0, 0.0 }
  0xf9   : > { %v1179_v12 = vadd.f32 %v3140_v10, %v3456_v6  ;;  %v915_v13 = vadd.f32 %v3456_v6, %v914_v11  ;;  %v1170_v14 = vpop.f32.mrb[11].mxu1  ;;  %v1464_v18 = vmax.f32 %v1176_v3, 0.0  ;;  %v1398_v19 = vmax.f32 %v912_v4, 0.0 }
  0xfa   : > { %v1401_v16 = vmax.f32 %v923_v9, 0.0  ;;  %v1171_v17 = vadd.f32 %v3456_v6, %v1170_v14  ;;  %v1462_v22 = vmax.f32 %v1168_v8, 0.0 }
  0xfb   : > { %v1465_v20 = vmax.f32 %v1179_v12, 0.0  ;;  %v1399_v21 = vmax.f32 %v915_v13, 0.0 }
  0xfc   : > { %v2640_v23 = vpack.c.bf16 %v1401_v16, %v1400_v15  ;;  %v1463_v24 = vmax.f32 %v1171_v17, 0.0 }
  0xfd   : > { %v2800_v25 = vpack.c.bf16 %v1465_v20, %v1464_v18  ;;  %v2635_v26 = vpack.c.bf16 %v1399_v21, %v1398_v19  ;;  %v3079_v27 = vpop.f32.mrb[12].mxu0 }
  0xfe   : > { %2936 = vst [vmem:[%s3471_s27 + $0x28] sm:$0xff] %v2640_v23   ;;  %v2795_v28 = vpack.c.bf16 %v1463_v24, %v1462_v22  ;;  %v936_v29 = vadd.f32 %v3079_v27, %v3456_v6  ;;  %v3143_v30 = vpop.f32.mrb[12].mxu1  ;;  %v927_v31 = vpop.f32.mrb[13].mxu0 }
  0xff   : > { %2968 = vst [vmem:[%s3471_s27 + $0x128] sm:$0xff] %v2800_v25   ;;  %2935 = vst [vmem:[%s3471_s27 + $0x20] sm:$0xff] %v2635_v26   ;;  %v1192_v32 = vadd.f32 %v3143_v30, %v3456_v6  ;;  %v928_v33 = vadd.f32 %v3456_v6, %v927_v31  ;;  %v1183_v34 = vpop.f32.mrb[13].mxu1  ;;  %v3080_v35 = vpop.f32.mrb[14].mxu0 }
 0x100   : > { %2967 = vst [vmem:[%s3471_s27 + $0x120] sm:$0xff] %v2795_v28   ;;  %v1184_v36 = vadd.f32 %v3456_v6, %v1183_v34  ;;  %v939_v37 = vadd.f32 %v3080_v35, %v3456_v6  ;;  %v3144_v38 = vpop.f32.mrb[14].mxu1  ;;  %v930_v39 = vpop.f32.mrb[15].mxu0  ;;  %v1404_v43 = vmax.f32 %v936_v29, 0.0 }
 0x101   : > { %v1195_v40 = vadd.f32 %v3144_v38, %v3456_v6  ;;  %v931_v41 = vadd.f32 %v3456_v6, %v930_v39  ;;  %v1186_v42 = vpop.f32.mrb[15].mxu1  ;;  %v1468_v46 = vmax.f32 %v1192_v32, 0.0  ;;  %v1402_v47 = vmax.f32 %v928_v33, 0.0 }
 0x102   : > { %v1405_v44 = vmax.f32 %v939_v37, 0.0  ;;  %v1187_v45 = vadd.f32 %v3456_v6, %v1186_v42  ;;  %v1466_v50 = vmax.f32 %v1184_v36, 0.0 }
 0x103   : > { %v1469_v48 = vmax.f32 %v1195_v40, 0.0  ;;  %v1403_v49 = vmax.f32 %v931_v41, 0.0 }
 0x104   : > { %v2650_v51 = vpack.c.bf16 %v1405_v44, %v1404_v43  ;;  %v1467_v52 = vmax.f32 %v1187_v45, 0.0 }
 0x105   : > { %v2810_v53 = vpack.c.bf16 %v1469_v48, %v1468_v46  ;;  %v2645_v54 = vpack.c.bf16 %v1403_v49, %v1402_v47  ;;  %v3083_v55 = vpop.f32.mrb[16].mxu0 }
 0x106   : > { %2938 = vst [vmem:[%s3471_s27 + $0x38] sm:$0xff] %v2650_v51   ;;  %v2805_v56 = vpack.c.bf16 %v1467_v52, %v1466_v50  ;;  %v952_v57 = vadd.f32 %v3083_v55, %v3456_v6  ;;  %v3147_v58 = vpop.f32.mrb[16].mxu1  ;;  %v943_v59 = vpop.f32.mrb[17].mxu0 }
 0x107   : > { %2970 = vst [vmem:[%s3471_s27 + $0x138] sm:$0xff] %v2810_v53   ;;  %2937 = vst [vmem:[%s3471_s27 + $0x30] sm:$0xff] %v2645_v54   ;;  %v1208_v60 = vadd.f32 %v3147_v58, %v3456_v6  ;;  %v944_v61 = vadd.f32 %v3456_v6, %v943_v59  ;;  %v1199_v62 = vpop.f32.mrb[17].mxu1  ;;  %v3084_v63 = vpop.f32.mrb[18].mxu0 }
 0x108   : > { %2969 = vst [vmem:[%s3471_s27 + $0x130] sm:$0xff] %v2805_v56   ;;  %v1200_v0 = vadd.f32 %v3456_v6, %v1199_v62  ;;  %v955_v1 = vadd.f32 %v3084_v63, %v3456_v6  ;;  %v3148_v2 = vpop.f32.mrb[18].mxu1  ;;  %v946_v3 = vpop.f32.mrb[19].mxu0  ;;  %v1408_v8 = vmax.f32 %v952_v57, 0.0 }
 0x109   : > { %v1211_v4 = vadd.f32 %v3148_v2, %v3456_v6  ;;  %v947_v5 = vadd.f32 %v3456_v6, %v946_v3  ;;  %v1202_v7 = vpop.f32.mrb[19].mxu1  ;;  %v1472_v11 = vmax.f32 %v1208_v60, 0.0  ;;  %v1406_v12 = vmax.f32 %v944_v61, 0.0 }
 0x10a   : > { %v1409_v9 = vmax.f32 %v955_v1, 0.0  ;;  %v1203_v10 = vadd.f32 %v3456_v6, %v1202_v7  ;;  %v1470_v15 = vmax.f32 %v1200_v0, 0.0 }
 0x10b   : > { %v1473_v13 = vmax.f32 %v1211_v4, 0.0  ;;  %v1407_v14 = vmax.f32 %v947_v5, 0.0 }
 0x10c   : > { %v2660_v16 = vpack.c.bf16 %v1409_v9, %v1408_v8  ;;  %v1471_v17 = vmax.f32 %v1203_v10, 0.0 }
 0x10d   : > { %v2820_v18 = vpack.c.bf16 %v1473_v13, %v1472_v11  ;;  %v2655_v19 = vpack.c.bf16 %v1407_v14, %v1406_v12  ;;  %v3087_v20 = vpop.f32.mrb[20].mxu0 }
 0x10e   : > { %2940 = vst [vmem:[%s3471_s27 + $0x48] sm:$0xff] %v2660_v16   ;;  %v2815_v21 = vpack.c.bf16 %v1471_v17, %v1470_v15  ;;  %v968_v22 = vadd.f32 %v3087_v20, %v3456_v6  ;;  %v3151_v23 = vpop.f32.mrb[20].mxu1  ;;  %v959_v24 = vpop.f32.mrb[21].mxu0 }
 0x10f   : > { %2972 = vst [vmem:[%s3471_s27 + $0x148] sm:$0xff] %v2820_v18   ;;  %2939 = vst [vmem:[%s3471_s27 + $0x40] sm:$0xff] %v2655_v19   ;;  %v1224_v25 = vadd.f32 %v3151_v23, %v3456_v6  ;;  %v960_v26 = vadd.f32 %v3456_v6, %v959_v24  ;;  %v1215_v27 = vpop.f32.mrb[21].mxu1  ;;  %v3088_v28 = vpop.f32.mrb[22].mxu0 }
 0x110   : > { %2971 = vst [vmem:[%s3471_s27 + $0x140] sm:$0xff] %v2815_v21   ;;  %v1216_v29 = vadd.f32 %v3456_v6, %v1215_v27  ;;  %v971_v30 = vadd.f32 %v3088_v28, %v3456_v6  ;;  %v3152_v31 = vpop.f32.mrb[22].mxu1  ;;  %v962_v32 = vpop.f32.mrb[23].mxu0  ;;  %v1412_v36 = vmax.f32 %v968_v22, 0.0 }
 0x111   : > { %v1227_v33 = vadd.f32 %v3152_v31, %v3456_v6  ;;  %v963_v34 = vadd.f32 %v3456_v6, %v962_v32  ;;  %v1218_v35 = vpop.f32.mrb[23].mxu1  ;;  %v1476_v39 = vmax.f32 %v1224_v25, 0.0  ;;  %v1410_v40 = vmax.f32 %v960_v26, 0.0 }
 0x112   : > { %v1413_v37 = vmax.f32 %v971_v30, 0.0  ;;  %v1219_v38 = vadd.f32 %v3456_v6, %v1218_v35  ;;  %v1474_v43 = vmax.f32 %v1216_v29, 0.0 }
 0x113   : > { %v1477_v41 = vmax.f32 %v1227_v33, 0.0  ;;  %v1411_v42 = vmax.f32 %v963_v34, 0.0 }
 0x114   : > { %v2670_v44 = vpack.c.bf16 %v1413_v37, %v1412_v36  ;;  %v1475_v45 = vmax.f32 %v1219_v38, 0.0 }
 0x115   : > { %v2830_v46 = vpack.c.bf16 %v1477_v41, %v1476_v39  ;;  %v2665_v47 = vpack.c.bf16 %v1411_v42, %v1410_v40  ;;  %v3091_v48 = vpop.f32.mrb[24].mxu0 }
 0x116   : > { %2942 = vst [vmem:[%s3471_s27 + $0x58] sm:$0xff] %v2670_v44   ;;  %v2825_v49 = vpack.c.bf16 %v1475_v45, %v1474_v43  ;;  %v984_v50 = vadd.f32 %v3091_v48, %v3456_v6  ;;  %v3155_v51 = vpop.f32.mrb[24].mxu1  ;;  %v975_v52 = vpop.f32.mrb[25].mxu0 }
 0x117   : > { %2974 = vst [vmem:[%s3471_s27 + $0x158] sm:$0xff] %v2830_v46   ;;  %2941 = vst [vmem:[%s3471_s27 + $0x50] sm:$0xff] %v2665_v47   ;;  %v1240_v53 = vadd.f32 %v3155_v51, %v3456_v6  ;;  %v976_v54 = vadd.f32 %v3456_v6, %v975_v52  ;;  %v1231_v55 = vpop.f32.mrb[25].mxu1  ;;  %v3092_v56 = vpop.f32.mrb[26].mxu0 }
 0x118   : > { %2973 = vst [vmem:[%s3471_s27 + $0x150] sm:$0xff] %v2825_v49   ;;  %v1232_v57 = vadd.f32 %v3456_v6, %v1231_v55  ;;  %v987_v58 = vadd.f32 %v3092_v56, %v3456_v6  ;;  %v3156_v59 = vpop.f32.mrb[26].mxu1  ;;  %v978_v60 = vpop.f32.mrb[27].mxu0  ;;  %v1416_v0 = vmax.f32 %v984_v50, 0.0 }
 0x119   : > { %v1243_v61 = vadd.f32 %v3156_v59, %v3456_v6  ;;  %v979_v62 = vadd.f32 %v3456_v6, %v978_v60  ;;  %v1234_v63 = vpop.f32.mrb[27].mxu1  ;;  %v1480_v3 = vmax.f32 %v1240_v53, 0.0  ;;  %v1414_v4 = vmax.f32 %v976_v54, 0.0 }
 0x11a   : > { %v1417_v1 = vmax.f32 %v987_v58, 0.0  ;;  %v1235_v2 = vadd.f32 %v3456_v6, %v1234_v63  ;;  %v1478_v8 = vmax.f32 %v1232_v57, 0.0 }
 0x11b   : > { %v1481_v5 = vmax.f32 %v1243_v61, 0.0  ;;  %v1415_v7 = vmax.f32 %v979_v62, 0.0 }
 0x11c   : > { %v2680_v9 = vpack.c.bf16 %v1417_v1, %v1416_v0  ;;  %v1479_v10 = vmax.f32 %v1235_v2, 0.0 }
 0x11d   : > { %v2840_v11 = vpack.c.bf16 %v1481_v5, %v1480_v3  ;;  %v2675_v12 = vpack.c.bf16 %v1415_v7, %v1414_v4  ;;  %v3095_v13 = vpop.f32.mrb[28].mxu0 }
 0x11e   : > { %2944 = vst [vmem:[%s3471_s27 + $0x68] sm:$0xff] %v2680_v9   ;;  %v2835_v14 = vpack.c.bf16 %v1479_v10, %v1478_v8  ;;  %v1000_v15 = vadd.f32 %v3095_v13, %v3456_v6  ;;  %v3159_v16 = vpop.f32.mrb[28].mxu1  ;;  %v991_v17 = vpop.f32.mrb[29].mxu0 }
 0x11f   : > { %2976 = vst [vmem:[%s3471_s27 + $0x168] sm:$0xff] %v2840_v11   ;;  %2943 = vst [vmem:[%s3471_s27 + $0x60] sm:$0xff] %v2675_v12   ;;  %v1256_v18 = vadd.f32 %v3159_v16, %v3456_v6  ;;  %v992_v19 = vadd.f32 %v3456_v6, %v991_v17  ;;  %v1247_v20 = vpop.f32.mrb[29].mxu1  ;;  %v3096_v21 = vpop.f32.mrb[30].mxu0 }
 0x120   : > { %2975 = vst [vmem:[%s3471_s27 + $0x160] sm:$0xff] %v2835_v14   ;;  %v1248_v22 = vadd.f32 %v3456_v6, %v1247_v20  ;;  %v1003_v23 = vadd.f32 %v3096_v21, %v3456_v6  ;;  %v3160_v24 = vpop.f32.mrb[30].mxu1  ;;  %v994_v25 = vpop.f32.mrb[31].mxu0  ;;  %v1420_v29 = vmax.f32 %v1000_v15, 0.0 }
 0x121   : > { %v1259_v26 = vadd.f32 %v3160_v24, %v3456_v6  ;;  %v995_v27 = vadd.f32 %v3456_v6, %v994_v25  ;;  %v1250_v28 = vpop.f32.mrb[31].mxu1  ;;  %v1484_v32 = vmax.f32 %v1256_v18, 0.0  ;;  %v1418_v33 = vmax.f32 %v992_v19, 0.0 }
 0x122   : > { %v1421_v30 = vmax.f32 %v1003_v23, 0.0  ;;  %v1251_v31 = vadd.f32 %v3456_v6, %v1250_v28  ;;  %v1482_v36 = vmax.f32 %v1248_v22, 0.0 }
 0x123   : > { %v1485_v34 = vmax.f32 %v1259_v26, 0.0  ;;  %v1419_v35 = vmax.f32 %v995_v27, 0.0 }
 0x124   : > { %v2690_v37 = vpack.c.bf16 %v1421_v30, %v1420_v29  ;;  %v1483_v38 = vmax.f32 %v1251_v31, 0.0 }
 0x125   : > { %v2850_v39 = vpack.c.bf16 %v1485_v34, %v1484_v32  ;;  %v2685_v40 = vpack.c.bf16 %v1419_v35, %v1418_v33  ;;  %v3099_v41 = vpop.f32.mrb[32].mxu0 }
 0x126   : > { %2946 = vst [vmem:[%s3471_s27 + $0x78] sm:$0xff] %v2690_v37   ;;  %v2845_v42 = vpack.c.bf16 %v1483_v38, %v1482_v36  ;;  %v1016_v43 = vadd.f32 %v3099_v41, %v3456_v6  ;;  %v3163_v44 = vpop.f32.mrb[32].mxu1  ;;  %v1007_v45 = vpop.f32.mrb[33].mxu0 }
 0x127   : > { %2978 = vst [vmem:[%s3471_s27 + $0x178] sm:$0xff] %v2850_v39   ;;  %2945 = vst [vmem:[%s3471_s27 + $0x70] sm:$0xff] %v2685_v40   ;;  %v1272_v46 = vadd.f32 %v3163_v44, %v3456_v6  ;;  %v1008_v47 = vadd.f32 %v3456_v6, %v1007_v45  ;;  %v1263_v48 = vpop.f32.mrb[33].mxu1  ;;  %v3100_v49 = vpop.f32.mrb[34].mxu0 }
 0x128   : > { %2977 = vst [vmem:[%s3471_s27 + $0x170] sm:$0xff] %v2845_v42   ;;  %v1264_v50 = vadd.f32 %v3456_v6, %v1263_v48  ;;  %v1019_v51 = vadd.f32 %v3100_v49, %v3456_v6  ;;  %v3164_v52 = vpop.f32.mrb[34].mxu1  ;;  %v1010_v53 = vpop.f32.mrb[35].mxu0  ;;  %v1424_v57 = vmax.f32 %v1016_v43, 0.0 }
 0x129   : > { %v1275_v54 = vadd.f32 %v3164_v52, %v3456_v6  ;;  %v1011_v55 = vadd.f32 %v3456_v6, %v1010_v53  ;;  %v1266_v56 = vpop.f32.mrb[35].mxu1  ;;  %v1488_v60 = vmax.f32 %v1272_v46, 0.0  ;;  %v1422_v61 = vmax.f32 %v1008_v47, 0.0 }
 0x12a   : > { %v1425_v58 = vmax.f32 %v1019_v51, 0.0  ;;  %v1267_v59 = vadd.f32 %v3456_v6, %v1266_v56  ;;  %v1486_v0 = vmax.f32 %v1264_v50, 0.0 }
 0x12b   : > { %v1489_v62 = vmax.f32 %v1275_v54, 0.0  ;;  %v1423_v63 = vmax.f32 %v1011_v55, 0.0 }
 0x12c   : > { %v2700_v1 = vpack.c.bf16 %v1425_v58, %v1424_v57  ;;  %v1487_v2 = vmax.f32 %v1267_v59, 0.0 }
 0x12d   : > { %v2860_v3 = vpack.c.bf16 %v1489_v62, %v1488_v60  ;;  %v2695_v4 = vpack.c.bf16 %v1423_v63, %v1422_v61  ;;  %v3103_v5 = vpop.f32.mrb[36].mxu0 }
 0x12e   : > { %2948 = vst [vmem:[%s3471_s27 + $0x88] sm:$0xff] %v2700_v1   ;;  %v2855_v7 = vpack.c.bf16 %v1487_v2, %v1486_v0  ;;  %v1032_v8 = vadd.f32 %v3103_v5, %v3456_v6  ;;  %v3167_v9 = vpop.f32.mrb[36].mxu1  ;;  %v1023_v10 = vpop.f32.mrb[37].mxu0 }
 0x12f   : > { %2980 = vst [vmem:[%s3471_s27 + $0x188] sm:$0xff] %v2860_v3   ;;  %2947 = vst [vmem:[%s3471_s27 + $0x80] sm:$0xff] %v2695_v4   ;;  %v1288_v11 = vadd.f32 %v3167_v9, %v3456_v6  ;;  %v1024_v12 = vadd.f32 %v3456_v6, %v1023_v10  ;;  %v1279_v13 = vpop.f32.mrb[37].mxu1  ;;  %v3104_v14 = vpop.f32.mrb[38].mxu0 }
 0x130   : > { %2979 = vst [vmem:[%s3471_s27 + $0x180] sm:$0xff] %v2855_v7   ;;  %v1280_v15 = vadd.f32 %v3456_v6, %v1279_v13  ;;  %v1035_v16 = vadd.f32 %v3104_v14, %v3456_v6  ;;  %v3168_v17 = vpop.f32.mrb[38].mxu1  ;;  %v1026_v18 = vpop.f32.mrb[39].mxu0  ;;  %v1428_v22 = vmax.f32 %v1032_v8, 0.0 }
 0x131   : > { %v1291_v19 = vadd.f32 %v3168_v17, %v3456_v6  ;;  %v1027_v20 = vadd.f32 %v3456_v6, %v1026_v18  ;;  %v1282_v21 = vpop.f32.mrb[39].mxu1  ;;  %v1492_v25 = vmax.f32 %v1288_v11, 0.0  ;;  %v1426_v26 = vmax.f32 %v1024_v12, 0.0 }
 0x132   : > { %v1429_v23 = vmax.f32 %v1035_v16, 0.0  ;;  %v1283_v24 = vadd.f32 %v3456_v6, %v1282_v21  ;;  %v1490_v29 = vmax.f32 %v1280_v15, 0.0 }
 0x133   : > { %v1493_v27 = vmax.f32 %v1291_v19, 0.0  ;;  %v1427_v28 = vmax.f32 %v1027_v20, 0.0 }
 0x134   : > { %v2710_v30 = vpack.c.bf16 %v1429_v23, %v1428_v22  ;;  %v1491_v31 = vmax.f32 %v1283_v24, 0.0 }
 0x135   : > { %v2870_v32 = vpack.c.bf16 %v1493_v27, %v1492_v25  ;;  %v2705_v33 = vpack.c.bf16 %v1427_v28, %v1426_v26  ;;  %v3107_v34 = vpop.f32.mrb[40].mxu0 }
 0x136   : > { %2950 = vst [vmem:[%s3471_s27 + $0x98] sm:$0xff] %v2710_v30   ;;  %v2865_v35 = vpack.c.bf16 %v1491_v31, %v1490_v29  ;;  %v1048_v36 = vadd.f32 %v3107_v34, %v3456_v6  ;;  %v3171_v37 = vpop.f32.mrb[40].mxu1  ;;  %v1039_v38 = vpop.f32.mrb[41].mxu0 }
 0x137   : > { %2982 = vst [vmem:[%s3471_s27 + $0x198] sm:$0xff] %v2870_v32   ;;  %2949 = vst [vmem:[%s3471_s27 + $0x90] sm:$0xff] %v2705_v33   ;;  %v1304_v39 = vadd.f32 %v3171_v37, %v3456_v6  ;;  %v1040_v40 = vadd.f32 %v3456_v6, %v1039_v38  ;;  %v1295_v41 = vpop.f32.mrb[41].mxu1  ;;  %v3108_v42 = vpop.f32.mrb[42].mxu0 }
 0x138   : > { %2981 = vst [vmem:[%s3471_s27 + $0x190] sm:$0xff] %v2865_v35   ;;  %v1296_v43 = vadd.f32 %v3456_v6, %v1295_v41  ;;  %v1051_v44 = vadd.f32 %v3108_v42, %v3456_v6  ;;  %v3172_v45 = vpop.f32.mrb[42].mxu1  ;;  %v1042_v46 = vpop.f32.mrb[43].mxu0  ;;  %v1432_v50 = vmax.f32 %v1048_v36, 0.0 }
 0x139   : > { %v1307_v47 = vadd.f32 %v3172_v45, %v3456_v6  ;;  %v1043_v48 = vadd.f32 %v3456_v6, %v1042_v46  ;;  %v1298_v49 = vpop.f32.mrb[43].mxu1  ;;  %v1496_v53 = vmax.f32 %v1304_v39, 0.0  ;;  %v1430_v54 = vmax.f32 %v1040_v40, 0.0 }
 0x13a   : > { %v1433_v51 = vmax.f32 %v1051_v44, 0.0  ;;  %v1299_v52 = vadd.f32 %v3456_v6, %v1298_v49  ;;  %v1494_v57 = vmax.f32 %v1296_v43, 0.0 }
 0x13b   : > { %v1497_v55 = vmax.f32 %v1307_v47, 0.0  ;;  %v1431_v56 = vmax.f32 %v1043_v48, 0.0 }
 0x13c   : > { %v2720_v58 = vpack.c.bf16 %v1433_v51, %v1432_v50  ;;  %v1495_v59 = vmax.f32 %v1299_v52, 0.0 }
 0x13d   : > { %v2880_v60 = vpack.c.bf16 %v1497_v55, %v1496_v53  ;;  %v2715_v61 = vpack.c.bf16 %v1431_v56, %v1430_v54  ;;  %v3111_v62 = vpop.f32.mrb[44].mxu0 }
 0x13e   : > { %2952 = vst [vmem:[%s3471_s27 + $0xa8] sm:$0xff] %v2720_v58   ;;  %v2875_v63 = vpack.c.bf16 %v1495_v59, %v1494_v57  ;;  %v1064_v0 = vadd.f32 %v3111_v62, %v3456_v6  ;;  %v3175_v1 = vpop.f32.mrb[44].mxu1  ;;  %v1055_v2 = vpop.f32.mrb[45].mxu0 }
 0x13f   : > { %2984 = vst [vmem:[%s3471_s27 + $0x1a8] sm:$0xff] %v2880_v60   ;;  %2951 = vst [vmem:[%s3471_s27 + $0xa0] sm:$0xff] %v2715_v61   ;;  %v1320_v3 = vadd.f32 %v3175_v1, %v3456_v6  ;;  %v1056_v4 = vadd.f32 %v3456_v6, %v1055_v2  ;;  %v1311_v5 = vpop.f32.mrb[45].mxu1  ;;  %v3112_v7 = vpop.f32.mrb[46].mxu0 }
 0x140   : > { %2983 = vst [vmem:[%s3471_s27 + $0x1a0] sm:$0xff] %v2875_v63   ;;  %v1312_v8 = vadd.f32 %v3456_v6, %v1311_v5  ;;  %v1067_v9 = vadd.f32 %v3112_v7, %v3456_v6  ;;  %v3176_v10 = vpop.f32.mrb[46].mxu1  ;;  %v1058_v11 = vpop.f32.mrb[47].mxu0  ;;  %v1436_v15 = vmax.f32 %v1064_v0, 0.0 }
 0x141   : > { %v1323_v12 = vadd.f32 %v3176_v10, %v3456_v6  ;;  %v1059_v13 = vadd.f32 %v3456_v6, %v1058_v11  ;;  %v1314_v14 = vpop.f32.mrb[47].mxu1  ;;  %v1500_v18 = vmax.f32 %v1320_v3, 0.0  ;;  %v1434_v19 = vmax.f32 %v1056_v4, 0.0 }
 0x142   : > { %v1437_v16 = vmax.f32 %v1067_v9, 0.0  ;;  %v1315_v17 = vadd.f32 %v3456_v6, %v1314_v14  ;;  %v1498_v22 = vmax.f32 %v1312_v8, 0.0 }
 0x143   : > { %v1501_v20 = vmax.f32 %v1323_v12, 0.0  ;;  %v1435_v21 = vmax.f32 %v1059_v13, 0.0 }
 0x144   : > { %v2730_v23 = vpack.c.bf16 %v1437_v16, %v1436_v15  ;;  %v1499_v24 = vmax.f32 %v1315_v17, 0.0 }
 0x145   : > { %v2890_v25 = vpack.c.bf16 %v1501_v20, %v1500_v18  ;;  %v2725_v26 = vpack.c.bf16 %v1435_v21, %v1434_v19  ;;  %v3115_v27 = vpop.f32.mrb[48].mxu0 }
 0x146   : > { %2954 = vst [vmem:[%s3471_s27 + $0xb8] sm:$0xff] %v2730_v23   ;;  %v2885_v28 = vpack.c.bf16 %v1499_v24, %v1498_v22  ;;  %v1080_v29 = vadd.f32 %v3115_v27, %v3456_v6  ;;  %v3179_v30 = vpop.f32.mrb[48].mxu1  ;;  %v1071_v31 = vpop.f32.mrb[49].mxu0 }
 0x147   : > { %2986 = vst [vmem:[%s3471_s27 + $0x1b8] sm:$0xff] %v2890_v25   ;;  %2953 = vst [vmem:[%s3471_s27 + $0xb0] sm:$0xff] %v2725_v26   ;;  %v1336_v32 = vadd.f32 %v3179_v30, %v3456_v6  ;;  %v1072_v33 = vadd.f32 %v3456_v6, %v1071_v31  ;;  %v1327_v34 = vpop.f32.mrb[49].mxu1  ;;  %v3116_v35 = vpop.f32.mrb[50].mxu0 }
 0x148   : > { %2985 = vst [vmem:[%s3471_s27 + $0x1b0] sm:$0xff] %v2885_v28   ;;  %v1328_v36 = vadd.f32 %v3456_v6, %v1327_v34  ;;  %v1083_v37 = vadd.f32 %v3116_v35, %v3456_v6  ;;  %v3180_v38 = vpop.f32.mrb[50].mxu1  ;;  %v1074_v39 = vpop.f32.mrb[51].mxu0  ;;  %v1440_v43 = vmax.f32 %v1080_v29, 0.0 }
 0x149   : > { %v1339_v40 = vadd.f32 %v3180_v38, %v3456_v6  ;;  %v1075_v41 = vadd.f32 %v3456_v6, %v1074_v39  ;;  %v1330_v42 = vpop.f32.mrb[51].mxu1  ;;  %v1504_v46 = vmax.f32 %v1336_v32, 0.0  ;;  %v1438_v47 = vmax.f32 %v1072_v33, 0.0 }
 0x14a   : > { %v1441_v44 = vmax.f32 %v1083_v37, 0.0  ;;  %v1331_v45 = vadd.f32 %v3456_v6, %v1330_v42  ;;  %v1502_v50 = vmax.f32 %v1328_v36, 0.0 }
 0x14b   : > { %v1505_v48 = vmax.f32 %v1339_v40, 0.0  ;;  %v1439_v49 = vmax.f32 %v1075_v41, 0.0 }
 0x14c   : > { %v2740_v51 = vpack.c.bf16 %v1441_v44, %v1440_v43  ;;  %v1503_v52 = vmax.f32 %v1331_v45, 0.0 }
 0x14d   : > { %v2900_v53 = vpack.c.bf16 %v1505_v48, %v1504_v46  ;;  %v2735_v54 = vpack.c.bf16 %v1439_v49, %v1438_v47  ;;  %v3119_v55 = vpop.f32.mrb[52].mxu0 }
 0x14e   : > { %2956 = vst [vmem:[%s3471_s27 + $0xc8] sm:$0xff] %v2740_v51   ;;  %v2895_v56 = vpack.c.bf16 %v1503_v52, %v1502_v50  ;;  %v1096_v57 = vadd.f32 %v3119_v55, %v3456_v6  ;;  %v3183_v58 = vpop.f32.mrb[52].mxu1  ;;  %v1087_v59 = vpop.f32.mrb[53].mxu0 }
 0x14f   : > { %2988 = vst [vmem:[%s3471_s27 + $0x1c8] sm:$0xff] %v2900_v53   ;;  %2955 = vst [vmem:[%s3471_s27 + $0xc0] sm:$0xff] %v2735_v54   ;;  %v1352_v60 = vadd.f32 %v3183_v58, %v3456_v6  ;;  %v1088_v61 = vadd.f32 %v3456_v6, %v1087_v59  ;;  %v1343_v62 = vpop.f32.mrb[53].mxu1  ;;  %v3120_v63 = vpop.f32.mrb[54].mxu0 }
 0x150   : > { %2987 = vst [vmem:[%s3471_s27 + $0x1c0] sm:$0xff] %v2895_v56   ;;  %v1344_v0 = vadd.f32 %v3456_v6, %v1343_v62  ;;  %v1099_v1 = vadd.f32 %v3120_v63, %v3456_v6  ;;  %v3184_v2 = vpop.f32.mrb[54].mxu1  ;;  %v1090_v3 = vpop.f32.mrb[55].mxu0  ;;  %v1444_v8 = vmax.f32 %v1096_v57, 0.0 }
 0x151   : > { %v1355_v4 = vadd.f32 %v3184_v2, %v3456_v6  ;;  %v1091_v5 = vadd.f32 %v3456_v6, %v1090_v3  ;;  %v1346_v7 = vpop.f32.mrb[55].mxu1  ;;  %v1508_v11 = vmax.f32 %v1352_v60, 0.0  ;;  %v1442_v12 = vmax.f32 %v1088_v61, 0.0 }
 0x152   : > { %v1445_v9 = vmax.f32 %v1099_v1, 0.0  ;;  %v1347_v10 = vadd.f32 %v3456_v6, %v1346_v7  ;;  %v1506_v15 = vmax.f32 %v1344_v0, 0.0 }
 0x153   : > { %v1509_v13 = vmax.f32 %v1355_v4, 0.0  ;;  %v1443_v14 = vmax.f32 %v1091_v5, 0.0 }
 0x154   : > { %v2750_v16 = vpack.c.bf16 %v1445_v9, %v1444_v8  ;;  %v1507_v17 = vmax.f32 %v1347_v10, 0.0 }
 0x155   : > { %v2910_v18 = vpack.c.bf16 %v1509_v13, %v1508_v11  ;;  %v2745_v19 = vpack.c.bf16 %v1443_v14, %v1442_v12  ;;  %v3123_v20 = vpop.f32.mrb[56].mxu0 }
 0x156   : > { %2958 = vst [vmem:[%s3471_s27 + $0xd8] sm:$0xff] %v2750_v16   ;;  %v2905_v21 = vpack.c.bf16 %v1507_v17, %v1506_v15  ;;  %v1112_v22 = vadd.f32 %v3123_v20, %v3456_v6  ;;  %v3187_v23 = vpop.f32.mrb[56].mxu1  ;;  %v1103_v24 = vpop.f32.mrb[57].mxu0 }
 0x157   : > { %2990 = vst [vmem:[%s3471_s27 + $0x1d8] sm:$0xff] %v2910_v18   ;;  %2957 = vst [vmem:[%s3471_s27 + $0xd0] sm:$0xff] %v2745_v19   ;;  %v1368_v25 = vadd.f32 %v3187_v23, %v3456_v6  ;;  %v1104_v26 = vadd.f32 %v3456_v6, %v1103_v24  ;;  %v1359_v27 = vpop.f32.mrb[57].mxu1  ;;  %v3124_v28 = vpop.f32.mrb[58].mxu0 }
 0x158   : > { %2989 = vst [vmem:[%s3471_s27 + $0x1d0] sm:$0xff] %v2905_v21   ;;  %v1360_v29 = vadd.f32 %v3456_v6, %v1359_v27  ;;  %v1115_v30 = vadd.f32 %v3124_v28, %v3456_v6  ;;  %v3188_v31 = vpop.f32.mrb[58].mxu1  ;;  %v1106_v32 = vpop.f32.mrb[59].mxu0  ;;  %v1448_v36 = vmax.f32 %v1112_v22, 0.0 }
 0x159   : > { %v1371_v33 = vadd.f32 %v3188_v31, %v3456_v6  ;;  %v1107_v34 = vadd.f32 %v3456_v6, %v1106_v32  ;;  %v1362_v35 = vpop.f32.mrb[59].mxu1  ;;  %v1512_v39 = vmax.f32 %v1368_v25, 0.0  ;;  %v1446_v40 = vmax.f32 %v1104_v26, 0.0 }
 0x15a   : > { %v1449_v37 = vmax.f32 %v1115_v30, 0.0  ;;  %v1363_v38 = vadd.f32 %v3456_v6, %v1362_v35  ;;  %v1510_v43 = vmax.f32 %v1360_v29, 0.0 }
 0x15b   : > { %v1513_v41 = vmax.f32 %v1371_v33, 0.0  ;;  %v1447_v42 = vmax.f32 %v1107_v34, 0.0 }
 0x15c   : > { %v2760_v44 = vpack.c.bf16 %v1449_v37, %v1448_v36  ;;  %v1511_v45 = vmax.f32 %v1363_v38, 0.0 }
 0x15d   : > { %v2920_v46 = vpack.c.bf16 %v1513_v41, %v1512_v39  ;;  %v2755_v47 = vpack.c.bf16 %v1447_v42, %v1446_v40  ;;  %v3127_v48 = vpop.f32.mrb[60].mxu0 }
 0x15e   : > { %2960 = vst [vmem:[%s3471_s27 + $0xe8] sm:$0xff] %v2760_v44   ;;  %v2915_v49 = vpack.c.bf16 %v1511_v45, %v1510_v43  ;;  %v1128_v50 = vadd.f32 %v3127_v48, %v3456_v6  ;;  %v3191_v51 = vpop.f32.mrb[60].mxu1  ;;  %v1119_v52 = vpop.f32.mrb[61].mxu0 }
 0x15f   : > { %2992 = vst [vmem:[%s3471_s27 + $0x1e8] sm:$0xff] %v2920_v46   ;;  %2959 = vst [vmem:[%s3471_s27 + $0xe0] sm:$0xff] %v2755_v47   ;;  %v1384_v53 = vadd.f32 %v3191_v51, %v3456_v6  ;;  %v1120_v54 = vadd.f32 %v3456_v6, %v1119_v52  ;;  %v1375_v55 = vpop.f32.mrb[61].mxu1  ;;  %v3128_v56 = vpop.f32.mrb[62].mxu0 }
 0x160   : > { %2991 = vst [vmem:[%s3471_s27 + $0x1e0] sm:$0xff] %v2915_v49   ;;  %v1376_v57 = vadd.f32 %v3456_v6, %v1375_v55  ;;  %v1131_v58 = vadd.f32 %v3128_v56, %v3456_v6  ;;  %v3192_v59 = vpop.f32.mrb[62].mxu1  ;;  %v1122_v60 = vpop.f32.mrb[63].mxu0  ;;  %v1452_v0 = vmax.f32 %v1128_v50, 0.0 }
 0x161   : > { %v1387_v61 = vadd.f32 %v3192_v59, %v3456_v6  ;;  %v1123_v62 = vadd.f32 %v3456_v6, %v1122_v60  ;;  %v1378_v63 = vpop.f32.mrb[63].mxu1  ;;  %v1516_v3 = vmax.f32 %v1384_v53, 0.0  ;;  %v1450_v4 = vmax.f32 %v1120_v54, 0.0 }
 0x162   : > { %v1453_v1 = vmax.f32 %v1131_v58, 0.0  ;;  %v1379_v2 = vadd.f32 %v3456_v6, %v1378_v63  ;;  %v1514_v8 = vmax.f32 %v1376_v57, 0.0 }
 0x163   : > { %v1517_v5 = vmax.f32 %v1387_v61, 0.0  ;;  %v1451_v7 = vmax.f32 %v1123_v62, 0.0 }
 0x164   : > { %v2770_v9 = vpack.c.bf16 %v1453_v1, %v1452_v0  ;;  %v1515_v10 = vmax.f32 %v1379_v2, 0.0 }
 0x165   : > { %v2930_v11 = vpack.c.bf16 %v1517_v5, %v1516_v3  ;;  %v2765_v12 = vpack.c.bf16 %v1451_v7, %v1450_v4 }
 0x166   : > { %2962 = vst [vmem:[%s3471_s27 + $0xf8] sm:$0xff] %v2770_v9   ;;  %v2925_v13 = vpack.c.bf16 %v1515_v10, %v1514_v8 }
 0x167   : > { %2994 = vst [vmem:[%s3471_s27 + $0x1f8] sm:$0xff] %v2930_v11   ;;  %2961 = vst [vmem:[%s3471_s27 + $0xf0] sm:$0xff] %v2765_v12  }
 0x168   : > { %2993 = vst [vmem:[%s3471_s27 + $0x1f0] sm:$0xff] %v2925_v13  }
 0x169 PF: > { %s13_s12 = sadd.s32 1, %s3278_s12  }
 0x16a   : > { %p10_p4 = scmp.ge.s32.totalorder %s13_s12, 4  }
 0x16c   :  { %12 = sbr.rel (!%p10_p4) target bundleno = 1 (0x1), region = 62 }

// kernel: mlwm_forward.4
= control target key start
LH: loop header
LB: loop body
LE: loop exit
PB: predicated region body
PF: predicated region fallthrough
CT: control target
= control target key end

     0   :  { %vm282_vm0 = vcmask 588800   ;;  %vm379_vm1 = vcmask 1043456   ;;  %s1458_s1 = inlined_call_operand.vmem [shape: bf16[72,128], index: 1, kind: input, shape index: {}]   ;;  %s1459_s0 = inlined_call_operand.vmem [shape: bf16[512,72], index: 0, kind: input, shape index: {}]   ;;  %s1460_s2 = inlined_call_operand.vmem [shape: f32[1,128], index: 2, kind: input, shape index: {}]   ;;  %s1461_s3 = inlined_call_operand.vmem [shape: f32[512,128], index: 3, kind: output, shape index: {}]  }
   0x1   :  { %v997_v0 = vld [vmem:[%s1458_s1] sm:$0xff]   ;;  %v998_v1 = vld [vmem:[%s1458_s1 + $0x8] sm:$0xff]   ;;  %v999_v2 = vld [vmem:[%s1458_s1 + $0x10] sm:$0xff]  }
   0x2   :  { %911 = vmatprep.subr.bf16.mxu0 %v997_v0  ;;  %985 = vmatprep.subr.bf16.mxu1 %v997_v0  ;;  %v1002_v3 = vld [vmem:[%s1459_s0] sm:$0xff]   ;;  %v1000_v5 = vld [vmem:[%s1458_s1 + $0x18] sm:$0xff]   ;;  %v1004_v8 = vld [vmem:[%s1459_s0 + $0x8] sm:$0xff]  }
   0x3   :  { %912 = vmatpush3.bf16.msra.mxu0 %v997_v0  ;;  %990 = vmatpush3.bf16.msra.mxu1 %v997_v0  ;;  %v1003_v4 = vld [vmem:[%s1459_s0 + $0x80] sm:$0xff]   ;;  %v1005_v9 = vld [vmem:[%s1459_s0 + $0x88] sm:$0xff]   ;;  %v1006_v10 = vld [vmem:[%s1459_s0 + $0x10] sm:$0xff]  }
   0x4   :  { %913 = vmatprep.subr.bf16.mxu0 %v998_v1  ;;  %986 = vmatprep.subr.bf16.mxu1 %v998_v1  ;;  %v1001_v6 = vld [vmem:[%s1458_s1 + $0x20] ss:$0 sps:$4 sm:$0xff]   ;;  %v1007_v11 = vld [vmem:[%s1459_s0 + $0x90] sm:$0xff]   ;;  %v1008_v12 = vld [vmem:[%s1459_s0 + $0x18] sm:$0xff]  }
   0x5   :  { %921 = vmatprep.mubr.msk.bf16.mxu0 %vm282_vm0, %v1002_v3  ;;  %953 = vmatprep.mubr.msk.bf16.mxu1 %vm282_vm0, %v1003_v4  ;;  %v381_v7 = vsel %vm379_vm1, %v1001_v6, 0  ;;  %v1009_v13 = vld [vmem:[%s1459_s0 + $0x98] sm:$0xff]   ;;  %v1010_v14 = vld [vmem:[%s1459_s0 + $0x20] sm:$0xff]   ;;  %v1012_v16 = vld [vmem:[%s1459_s0 + $0x28] sm:$0xff]  }
   0x6   :  { %v1011_v15 = vld [vmem:[%s1459_s0 + $0xa0] sm:$0xff]   ;;  %v1013_v17 = vld [vmem:[%s1459_s0 + $0xa8] sm:$0xff]   ;;  %v1014_v18 = vld [vmem:[%s1459_s0 + $0x30] sm:$0xff]  }
   0x7   :  { %914 = vmatpush3.bf16.msra.mxu0 %v998_v1  ;;  %991 = vmatpush3.bf16.msra.mxu1 %v998_v1  ;;  %v1015_v19 = vld [vmem:[%s1459_s0 + $0xb0] sm:$0xff]   ;;  %v1016_v20 = vld [vmem:[%s1459_s0 + $0x38] sm:$0xff]   ;;  %v1018_v22 = vld [vmem:[%s1459_s0 + $0x40] sm:$0xff]  }
   0x8   :  { %915 = vmatprep.subr.bf16.mxu0 %v999_v2  ;;  %987 = vmatprep.subr.bf16.mxu1 %v999_v2  ;;  %v1017_v21 = vld [vmem:[%s1459_s0 + $0xb8] sm:$0xff]   ;;  %v1019_v23 = vld [vmem:[%s1459_s0 + $0xc0] sm:$0xff]   ;;  %v1020_v24 = vld [vmem:[%s1459_s0 + $0x48] sm:$0xff]  }
   0x9   :  { %v1021_v25 = vld [vmem:[%s1459_s0 + $0xc8] sm:$0xff]   ;;  %v1022_v26 = vld [vmem:[%s1459_s0 + $0x50] sm:$0xff]   ;;  %v1024_v28 = vld [vmem:[%s1459_s0 + $0x58] sm:$0xff]  }
   0xa   :  { %v1023_v27 = vld [vmem:[%s1459_s0 + $0xd0] sm:$0xff]   ;;  %v1025_v29 = vld [vmem:[%s1459_s0 + $0xd8] sm:$0xff]   ;;  %v1026_v30 = vld [vmem:[%s1459_s0 + $0x60] sm:$0xff]  }
   0xb   :  { %916 = vmatpush3.bf16.msra.mxu0 %v999_v2  ;;  %992 = vmatpush3.bf16.msra.mxu1 %v999_v2  ;;  %v1027_v31 = vld [vmem:[%s1459_s0 + $0xe0] sm:$0xff]   ;;  %v1028_v32 = vld [vmem:[%s1459_s0 + $0x68] sm:$0xff]   ;;  %v1030_v34 = vld [vmem:[%s1459_s0 + $0x70] sm:$0xff]  }
   0xc   :  { %917 = vmatprep.subr.bf16.mxu0 %v1000_v5  ;;  %988 = vmatprep.subr.bf16.mxu1 %v1000_v5  ;;  %v1029_v33 = vld [vmem:[%s1459_s0 + $0xe8] sm:$0xff]   ;;  %v1031_v35 = vld [vmem:[%s1459_s0 + $0xf0] sm:$0xff]   ;;  %v1032_v36 = vld [vmem:[%s1459_s0 + $0x78] sm:$0xff]  }
   0xd   :  { %v1033_v37 = vld [vmem:[%s1459_s0 + $0xf8] sm:$0xff]   ;;  %v1200_v38 = vld [vmem:[%s1460_s2] ss:$0 sm:$0xff] }
   0xf   :  { %918 = vmatpush3.bf16.msra.mxu0 %v1000_v5  ;;  %993 = vmatpush3.bf16.msra.mxu1 %v1000_v5 }
  0x10   :  { %995 = vmatprep.subr.msk.bf16.mxu0 %vm379_vm1, %v1001_v6  ;;  %996 = vmatprep.subr.msk.bf16.mxu1 %vm379_vm1, %v1001_v6 }
  0x13   :  { %920 = vmatpush3.bf16.msra.mxu0 %v381_v7  ;;  %994 = vmatpush3.bf16.msra.mxu1 %v381_v7 }
  0x16   :  { %922 = vmatmul.mubr.msk.bf16.vlgmr.msra.gmra.mrb[0].mxu0 %vm282_vm0, %v1004_v8  ;;  %954 = vmatmul.mubr.msk.bf16.vlgmr.msra.gmra.mrb[0].mxu1 %vm282_vm0, %v1005_v9 }
  0x17   :  { %925 = vmatprep.mubr.msk.bf16.mxu0 %vm282_vm0, %v1006_v10  ;;  %957 = vmatprep.mubr.msk.bf16.mxu1 %vm282_vm0, %v1007_v11 }
  0x1e   :  { %926 = vmatmul.mubr.msk.bf16.gmra.mrb[4].mxu0 %vm282_vm0, %v1008_v12  ;;  %958 = vmatmul.mubr.msk.bf16.gmra.mrb[4].mxu1 %vm282_vm0, %v1009_v13 }
  0x1f   :  { %929 = vmatprep.mubr.msk.bf16.mxu0 %vm282_vm0, %v1010_v14  ;;  %961 = vmatprep.mubr.msk.bf16.mxu1 %vm282_vm0, %v1011_v15 }
  0x26   :  { %930 = vmatmul.mubr.msk.bf16.gmra.mrb[8].mxu0 %vm282_vm0, %v1012_v16  ;;  %962 = vmatmul.mubr.msk.bf16.gmra.mrb[8].mxu1 %vm282_vm0, %v1013_v17 }
  0x27   :  { %933 = vmatprep.mubr.msk.bf16.mxu0 %vm282_vm0, %v1014_v18  ;;  %965 = vmatprep.mubr.msk.bf16.mxu1 %vm282_vm0, %v1015_v19 }
  0x2e   :  { %934 = vmatmul.mubr.msk.bf16.gmra.mrb[12].mxu0 %vm282_vm0, %v1016_v20  ;;  %966 = vmatmul.mubr.msk.bf16.gmra.mrb[12].mxu1 %vm282_vm0, %v1017_v21 }
  0x2f   :  { %937 = vmatprep.mubr.msk.bf16.mxu0 %vm282_vm0, %v1018_v22  ;;  %969 = vmatprep.mubr.msk.bf16.mxu1 %vm282_vm0, %v1019_v23 }
  0x36   :  { %938 = vmatmul.mubr.msk.bf16.gmra.mrb[16].mxu0 %vm282_vm0, %v1020_v24  ;;  %970 = vmatmul.mubr.msk.bf16.gmra.mrb[16].mxu1 %vm282_vm0, %v1021_v25 }
  0x37   :  { %941 = vmatprep.mubr.msk.bf16.mxu0 %vm282_vm0, %v1022_v26  ;;  %973 = vmatprep.mubr.msk.bf16.mxu1 %vm282_vm0, %v1023_v27 }
  0x3e   :  { %942 = vmatmul.mubr.msk.bf16.gmra.mrb[20].mxu0 %vm282_vm0, %v1024_v28  ;;  %974 = vmatmul.mubr.msk.bf16.gmra.mrb[20].mxu1 %vm282_vm0, %v1025_v29 }
  0x3f   :  { %945 = vmatprep.mubr.msk.bf16.mxu0 %vm282_vm0, %v1026_v30  ;;  %977 = vmatprep.mubr.msk.bf16.mxu1 %vm282_vm0, %v1027_v31 }
  0x46   :  { %946 = vmatmul.mubr.msk.bf16.gmra.mrb[24].mxu0 %vm282_vm0, %v1028_v32  ;;  %978 = vmatmul.mubr.msk.bf16.gmra.mrb[24].mxu1 %vm282_vm0, %v1029_v33 }
  0x47   :  { %949 = vmatprep.mubr.msk.bf16.mxu0 %vm282_vm0, %v1030_v34  ;;  %981 = vmatprep.mubr.msk.bf16.mxu1 %vm282_vm0, %v1031_v35 }
  0x4e   :  { %950 = vmatmul.mubr.msk.bf16.gmra.mrb[28].mxu0 %vm282_vm0, %v1032_v36  ;;  %982 = vmatmul.mubr.msk.bf16.gmra.mrb[28].mxu1 %vm282_vm0, %v1033_v37 }
  0xe9   :  { %v923_v39 = vpop.f32.mrb[0].mxu0  ;;  %v955_v40 = vpop.f32.mrb[0].mxu1 }
  0xea   :  { %v426_v41 = vadd.f32 %v923_v39, %v1200_v38  ;;  %v554_v42 = vadd.f32 %v955_v40, %v1200_v38  ;;  %v417_v43 = vpop.f32.mrb[1].mxu0  ;;  %v545_v44 = vpop.f32.mrb[1].mxu1 }
  0xeb   :  { %v418_v45 = vadd.f32 %v1200_v38, %v417_v43  ;;  %v546_v46 = vadd.f32 %v1200_v38, %v545_v44  ;;  %v924_v47 = vpop.f32.mrb[2].mxu0  ;;  %v956_v48 = vpop.f32.mrb[2].mxu1 }
  0xec   :  { %v674_v49 = vmax.f32 %v426_v41, 0.0  ;;  %v706_v50 = vmax.f32 %v554_v42, 0.0  ;;  %v429_v51 = vadd.f32 %v924_v47, %v1200_v38  ;;  %v557_v52 = vadd.f32 %v956_v48, %v1200_v38  ;;  %v420_v53 = vpop.f32.mrb[3].mxu0  ;;  %v548_v54 = vpop.f32.mrb[3].mxu1 }
  0xed   :  { %v672_v55 = vmax.f32 %v418_v45, 0.0  ;;  %v704_v56 = vmax.f32 %v546_v46, 0.0  ;;  %v421_v57 = vadd.f32 %v1200_v38, %v420_v53  ;;  %v549_v58 = vadd.f32 %v1200_v38, %v548_v54 }
  0xee   :  { %738 = vst [vmem:[%s1461_s3 + $0x10] sm:$0xff] %v674_v49  ;;  %770 = vst [vmem:[%s1461_s3 + $0x110] sm:$0xff] %v706_v50  ;;  %v675_v59 = vmax.f32 %v429_v51, 0.0  ;;  %v707_v60 = vmax.f32 %v557_v52, 0.0 }
  0xef   :  { %736 = vst [vmem:[%s1461_s3] sm:$0xff] %v672_v55  ;;  %768 = vst [vmem:[%s1461_s3 + $0x100] sm:$0xff] %v704_v56  ;;  %v673_v61 = vmax.f32 %v421_v57, 0.0  ;;  %v705_v62 = vmax.f32 %v549_v58, 0.0 }
  0xf0   :  { %739 = vst [vmem:[%s1461_s3 + $0x18] sm:$0xff] %v675_v59  ;;  %771 = vst [vmem:[%s1461_s3 + $0x118] sm:$0xff] %v707_v60 }
  0xf1   :  { %737 = vst [vmem:[%s1461_s3 + $0x8] sm:$0xff] %v673_v61  ;;  %769 = vst [vmem:[%s1461_s3 + $0x108] sm:$0xff] %v705_v62  ;;  %v927_v63 = vpop.f32.mrb[4].mxu0  ;;  %v959_v0 = vpop.f32.mrb[4].mxu1 }
  0xf2   :  { %v442_v1 = vadd.f32 %v927_v63, %v1200_v38  ;;  %v570_v2 = vadd.f32 %v959_v0, %v1200_v38  ;;  %v433_v3 = vpop.f32.mrb[5].mxu0  ;;  %v561_v4 = vpop.f32.mrb[5].mxu1 }
  0xf3   :  { %v434_v5 = vadd.f32 %v1200_v38, %v433_v3  ;;  %v562_v6 = vadd.f32 %v1200_v38, %v561_v4  ;;  %v928_v7 = vpop.f32.mrb[6].mxu0  ;;  %v960_v8 = vpop.f32.mrb[6].mxu1 }
  0xf4   :  { %v678_v9 = vmax.f32 %v442_v1, 0.0  ;;  %v710_v10 = vmax.f32 %v570_v2, 0.0  ;;  %v445_v11 = vadd.f32 %v928_v7, %v1200_v38  ;;  %v573_v12 = vadd.f32 %v960_v8, %v1200_v38  ;;  %v436_v13 = vpop.f32.mrb[7].mxu0  ;;  %v564_v14 = vpop.f32.mrb[7].mxu1 }
  0xf5   :  { %v676_v15 = vmax.f32 %v434_v5, 0.0  ;;  %v708_v16 = vmax.f32 %v562_v6, 0.0  ;;  %v437_v17 = vadd.f32 %v1200_v38, %v436_v13  ;;  %v565_v18 = vadd.f32 %v1200_v38, %v564_v14 }
  0xf6   :  { %742 = vst [vmem:[%s1461_s3 + $0x30] sm:$0xff] %v678_v9  ;;  %774 = vst [vmem:[%s1461_s3 + $0x130] sm:$0xff] %v710_v10  ;;  %v679_v19 = vmax.f32 %v445_v11, 0.0  ;;  %v711_v20 = vmax.f32 %v573_v12, 0.0 }
  0xf7   :  { %740 = vst [vmem:[%s1461_s3 + $0x20] sm:$0xff] %v676_v15  ;;  %772 = vst [vmem:[%s1461_s3 + $0x120] sm:$0xff] %v708_v16  ;;  %v677_v21 = vmax.f32 %v437_v17, 0.0  ;;  %v709_v22 = vmax.f32 %v565_v18, 0.0 }
  0xf8   :  { %743 = vst [vmem:[%s1461_s3 + $0x38] sm:$0xff] %v679_v19  ;;  %775 = vst [vmem:[%s1461_s3 + $0x138] sm:$0xff] %v711_v20 }
  0xf9   :  { %741 = vst [vmem:[%s1461_s3 + $0x28] sm:$0xff] %v677_v21  ;;  %773 = vst [vmem:[%s1461_s3 + $0x128] sm:$0xff] %v709_v22  ;;  %v931_v23 = vpop.f32.mrb[8].mxu0  ;;  %v963_v24 = vpop.f32.mrb[8].mxu1 }
  0xfa   :  { %v458_v25 = vadd.f32 %v931_v23, %v1200_v38  ;;  %v586_v26 = vadd.f32 %v963_v24, %v1200_v38  ;;  %v449_v27 = vpop.f32.mrb[9].mxu0  ;;  %v577_v28 = vpop.f32.mrb[9].mxu1 }
  0xfb   :  { %v450_v29 = vadd.f32 %v1200_v38, %v449_v27  ;;  %v578_v30 = vadd.f32 %v1200_v38, %v577_v28  ;;  %v932_v31 = vpop.f32.mrb[10].mxu0  ;;  %v964_v32 = vpop.f32.mrb[10].mxu1 }
  0xfc   :  { %v682_v33 = vmax.f32 %v458_v25, 0.0  ;;  %v714_v34 = vmax.f32 %v586_v26, 0.0  ;;  %v461_v35 = vadd.f32 %v932_v31, %v1200_v38  ;;  %v589_v36 = vadd.f32 %v964_v32, %v1200_v38  ;;  %v452_v37 = vpop.f32.mrb[11].mxu0  ;;  %v580_v39 = vpop.f32.mrb[11].mxu1 }
  0xfd   :  { %v680_v40 = vmax.f32 %v450_v29, 0.0  ;;  %v712_v41 = vmax.f32 %v578_v30, 0.0  ;;  %v453_v42 = vadd.f32 %v1200_v38, %v452_v37  ;;  %v581_v43 = vadd.f32 %v1200_v38, %v580_v39 }
  0xfe   :  { %746 = vst [vmem:[%s1461_s3 + $0x50] sm:$0xff] %v682_v33  ;;  %778 = vst [vmem:[%s1461_s3 + $0x150] sm:$0xff] %v714_v34  ;;  %v683_v44 = vmax.f32 %v461_v35, 0.0  ;;  %v715_v45 = vmax.f32 %v589_v36, 0.0 }
  0xff   :  { %744 = vst [vmem:[%s1461_s3 + $0x40] sm:$0xff] %v680_v40  ;;  %776 = vst [vmem:[%s1461_s3 + $0x140] sm:$0xff] %v712_v41  ;;  %v681_v46 = vmax.f32 %v453_v42, 0.0  ;;  %v713_v47 = vmax.f32 %v581_v43, 0.0 }
 0x100   :  { %747 = vst [vmem:[%s1461_s3 + $0x58] sm:$0xff] %v683_v44  ;;  %779 = vst [vmem:[%s1461_s3 + $0x158] sm:$0xff] %v715_v45 }
 0x101   :  { %745 = vst [vmem:[%s1461_s3 + $0x48] sm:$0xff] %v681_v46  ;;  %777 = vst [vmem:[%s1461_s3 + $0x148] sm:$0xff] %v713_v47  ;;  %v935_v48 = vpop.f32.mrb[12].mxu0  ;;  %v967_v49 = vpop.f32.mrb[12].mxu1 }
 0x102   :  { %v474_v50 = vadd.f32 %v935_v48, %v1200_v38  ;;  %v602_v51 = vadd.f32 %v967_v49, %v1200_v38  ;;  %v465_v52 = vpop.f32.mrb[13].mxu0  ;;  %v593_v53 = vpop.f32.mrb[13].mxu1 }
 0x103   :  { %v466_v54 = vadd.f32 %v1200_v38, %v465_v52  ;;  %v594_v55 = vadd.f32 %v1200_v38, %v593_v53  ;;  %v936_v56 = vpop.f32.mrb[14].mxu0  ;;  %v968_v57 = vpop.f32.mrb[14].mxu1 }
 0x104   :  { %v686_v58 = vmax.f32 %v474_v50, 0.0  ;;  %v718_v59 = vmax.f32 %v602_v51, 0.0  ;;  %v477_v60 = vadd.f32 %v936_v56, %v1200_v38  ;;  %v605_v61 = vadd.f32 %v968_v57, %v1200_v38  ;;  %v468_v62 = vpop.f32.mrb[15].mxu0  ;;  %v596_v63 = vpop.f32.mrb[15].mxu1 }
 0x105   :  { %v684_v0 = vmax.f32 %v466_v54, 0.0  ;;  %v716_v1 = vmax.f32 %v594_v55, 0.0  ;;  %v469_v2 = vadd.f32 %v1200_v38, %v468_v62  ;;  %v597_v3 = vadd.f32 %v1200_v38, %v596_v63 }
 0x106   :  { %750 = vst [vmem:[%s1461_s3 + $0x70] sm:$0xff] %v686_v58  ;;  %782 = vst [vmem:[%s1461_s3 + $0x170] sm:$0xff] %v718_v59  ;;  %v687_v4 = vmax.f32 %v477_v60, 0.0  ;;  %v719_v5 = vmax.f32 %v605_v61, 0.0 }
 0x107   :  { %748 = vst [vmem:[%s1461_s3 + $0x60] sm:$0xff] %v684_v0  ;;  %780 = vst [vmem:[%s1461_s3 + $0x160] sm:$0xff] %v716_v1  ;;  %v685_v6 = vmax.f32 %v469_v2, 0.0  ;;  %v717_v7 = vmax.f32 %v597_v3, 0.0 }
 0x108   :  { %751 = vst [vmem:[%s1461_s3 + $0x78] sm:$0xff] %v687_v4  ;;  %783 = vst [vmem:[%s1461_s3 + $0x178] sm:$0xff] %v719_v5 }
 0x109   :  { %749 = vst [vmem:[%s1461_s3 + $0x68] sm:$0xff] %v685_v6  ;;  %781 = vst [vmem:[%s1461_s3 + $0x168] sm:$0xff] %v717_v7  ;;  %v939_v8 = vpop.f32.mrb[16].mxu0  ;;  %v971_v9 = vpop.f32.mrb[16].mxu1 }
 0x10a   :  { %v490_v10 = vadd.f32 %v939_v8, %v1200_v38  ;;  %v618_v11 = vadd.f32 %v971_v9, %v1200_v38  ;;  %v481_v12 = vpop.f32.mrb[17].mxu0  ;;  %v609_v13 = vpop.f32.mrb[17].mxu1 }
 0x10b   :  { %v482_v14 = vadd.f32 %v1200_v38, %v481_v12  ;;  %v610_v15 = vadd.f32 %v1200_v38, %v609_v13  ;;  %v940_v16 = vpop.f32.mrb[18].mxu0  ;;  %v972_v17 = vpop.f32.mrb[18].mxu1 }
 0x10c   :  { %v690_v18 = vmax.f32 %v490_v10, 0.0  ;;  %v722_v19 = vmax.f32 %v618_v11, 0.0  ;;  %v493_v20 = vadd.f32 %v940_v16, %v1200_v38  ;;  %v621_v21 = vadd.f32 %v972_v17, %v1200_v38  ;;  %v484_v22 = vpop.f32.mrb[19].mxu0  ;;  %v612_v23 = vpop.f32.mrb[19].mxu1 }
 0x10d   :  { %v688_v24 = vmax.f32 %v482_v14, 0.0  ;;  %v720_v25 = vmax.f32 %v610_v15, 0.0  ;;  %v485_v26 = vadd.f32 %v1200_v38, %v484_v22  ;;  %v613_v27 = vadd.f32 %v1200_v38, %v612_v23 }
 0x10e   :  { %754 = vst [vmem:[%s1461_s3 + $0x90] sm:$0xff] %v690_v18  ;;  %786 = vst [vmem:[%s1461_s3 + $0x190] sm:$0xff] %v722_v19  ;;  %v691_v28 = vmax.f32 %v493_v20, 0.0  ;;  %v723_v29 = vmax.f32 %v621_v21, 0.0 }
 0x10f   :  { %752 = vst [vmem:[%s1461_s3 + $0x80] sm:$0xff] %v688_v24  ;;  %784 = vst [vmem:[%s1461_s3 + $0x180] sm:$0xff] %v720_v25  ;;  %v689_v30 = vmax.f32 %v485_v26, 0.0  ;;  %v721_v31 = vmax.f32 %v613_v27, 0.0 }
 0x110   :  { %755 = vst [vmem:[%s1461_s3 + $0x98] sm:$0xff] %v691_v28  ;;  %787 = vst [vmem:[%s1461_s3 + $0x198] sm:$0xff] %v723_v29 }
 0x111   :  { %753 = vst [vmem:[%s1461_s3 + $0x88] sm:$0xff] %v689_v30  ;;  %785 = vst [vmem:[%s1461_s3 + $0x188] sm:$0xff] %v721_v31  ;;  %v943_v32 = vpop.f32.mrb[20].mxu0  ;;  %v975_v33 = vpop.f32.mrb[20].mxu1 }
 0x112   :  { %v506_v34 = vadd.f32 %v943_v32, %v1200_v38  ;;  %v634_v35 = vadd.f32 %v975_v33, %v1200_v38  ;;  %v497_v36 = vpop.f32.mrb[21].mxu0  ;;  %v625_v37 = vpop.f32.mrb[21].mxu1 }
 0x113   :  { %v498_v39 = vadd.f32 %v1200_v38, %v497_v36  ;;  %v626_v40 = vadd.f32 %v1200_v38, %v625_v37  ;;  %v944_v41 = vpop.f32.mrb[22].mxu0  ;;  %v976_v42 = vpop.f32.mrb[22].mxu1 }
 0x114   :  { %v694_v43 = vmax.f32 %v506_v34, 0.0  ;;  %v726_v44 = vmax.f32 %v634_v35, 0.0  ;;  %v509_v45 = vadd.f32 %v944_v41, %v1200_v38  ;;  %v637_v46 = vadd.f32 %v976_v42, %v1200_v38  ;;  %v500_v47 = vpop.f32.mrb[23].mxu0  ;;  %v628_v48 = vpop.f32.mrb[23].mxu1 }
 0x115   :  { %v692_v49 = vmax.f32 %v498_v39, 0.0  ;;  %v724_v50 = vmax.f32 %v626_v40, 0.0  ;;  %v501_v51 = vadd.f32 %v1200_v38, %v500_v47  ;;  %v629_v52 = vadd.f32 %v1200_v38, %v628_v48 }
 0x116   :  { %758 = vst [vmem:[%s1461_s3 + $0xb0] sm:$0xff] %v694_v43  ;;  %790 = vst [vmem:[%s1461_s3 + $0x1b0] sm:$0xff] %v726_v44  ;;  %v695_v53 = vmax.f32 %v509_v45, 0.0  ;;  %v727_v54 = vmax.f32 %v637_v46, 0.0 }
 0x117   :  { %756 = vst [vmem:[%s1461_s3 + $0xa0] sm:$0xff] %v692_v49  ;;  %788 = vst [vmem:[%s1461_s3 + $0x1a0] sm:$0xff] %v724_v50  ;;  %v693_v55 = vmax.f32 %v501_v51, 0.0  ;;  %v725_v56 = vmax.f32 %v629_v52, 0.0 }
 0x118   :  { %759 = vst [vmem:[%s1461_s3 + $0xb8] sm:$0xff] %v695_v53  ;;  %791 = vst [vmem:[%s1461_s3 + $0x1b8] sm:$0xff] %v727_v54 }
 0x119   :  { %757 = vst [vmem:[%s1461_s3 + $0xa8] sm:$0xff] %v693_v55  ;;  %789 = vst [vmem:[%s1461_s3 + $0x1a8] sm:$0xff] %v725_v56  ;;  %v947_v57 = vpop.f32.mrb[24].mxu0  ;;  %v979_v58 = vpop.f32.mrb[24].mxu1 }
 0x11a   :  { %v522_v59 = vadd.f32 %v947_v57, %v1200_v38  ;;  %v650_v60 = vadd.f32 %v979_v58, %v1200_v38  ;;  %v513_v61 = vpop.f32.mrb[25].mxu0  ;;  %v641_v62 = vpop.f32.mrb[25].mxu1 }
 0x11b   :  { %v514_v63 = vadd.f32 %v1200_v38, %v513_v61  ;;  %v642_v0 = vadd.f32 %v1200_v38, %v641_v62  ;;  %v948_v1 = vpop.f32.mrb[26].mxu0  ;;  %v980_v2 = vpop.f32.mrb[26].mxu1 }
 0x11c   :  { %v698_v3 = vmax.f32 %v522_v59, 0.0  ;;  %v730_v4 = vmax.f32 %v650_v60, 0.0  ;;  %v525_v5 = vadd.f32 %v948_v1, %v1200_v38  ;;  %v653_v6 = vadd.f32 %v980_v2, %v1200_v38  ;;  %v516_v7 = vpop.f32.mrb[27].mxu0  ;;  %v644_v8 = vpop.f32.mrb[27].mxu1 }
 0x11d   :  { %v696_v9 = vmax.f32 %v514_v63, 0.0  ;;  %v728_v10 = vmax.f32 %v642_v0, 0.0  ;;  %v517_v11 = vadd.f32 %v1200_v38, %v516_v7  ;;  %v645_v12 = vadd.f32 %v1200_v38, %v644_v8 }
 0x11e   :  { %762 = vst [vmem:[%s1461_s3 + $0xd0] sm:$0xff] %v698_v3  ;;  %794 = vst [vmem:[%s1461_s3 + $0x1d0] sm:$0xff] %v730_v4  ;;  %v699_v13 = vmax.f32 %v525_v5, 0.0  ;;  %v731_v14 = vmax.f32 %v653_v6, 0.0 }
 0x11f   :  { %760 = vst [vmem:[%s1461_s3 + $0xc0] sm:$0xff] %v696_v9  ;;  %792 = vst [vmem:[%s1461_s3 + $0x1c0] sm:$0xff] %v728_v10  ;;  %v697_v15 = vmax.f32 %v517_v11, 0.0  ;;  %v729_v16 = vmax.f32 %v645_v12, 0.0 }
 0x120   :  { %763 = vst [vmem:[%s1461_s3 + $0xd8] sm:$0xff] %v699_v13  ;;  %795 = vst [vmem:[%s1461_s3 + $0x1d8] sm:$0xff] %v731_v14 }
 0x121   :  { %761 = vst [vmem:[%s1461_s3 + $0xc8] sm:$0xff] %v697_v15  ;;  %793 = vst [vmem:[%s1461_s3 + $0x1c8] sm:$0xff] %v729_v16  ;;  %v951_v17 = vpop.f32.mrb[28].mxu0  ;;  %v983_v18 = vpop.f32.mrb[28].mxu1 }
 0x122   :  { %v538_v19 = vadd.f32 %v951_v17, %v1200_v38  ;;  %v666_v20 = vadd.f32 %v983_v18, %v1200_v38  ;;  %v529_v21 = vpop.f32.mrb[29].mxu0  ;;  %v657_v22 = vpop.f32.mrb[29].mxu1 }
 0x123   :  { %v530_v23 = vadd.f32 %v1200_v38, %v529_v21  ;;  %v658_v24 = vadd.f32 %v1200_v38, %v657_v22  ;;  %v952_v25 = vpop.f32.mrb[30].mxu0  ;;  %v984_v26 = vpop.f32.mrb[30].mxu1 }
 0x124   :  { %v702_v27 = vmax.f32 %v538_v19, 0.0  ;;  %v734_v28 = vmax.f32 %v666_v20, 0.0  ;;  %v541_v29 = vadd.f32 %v952_v25, %v1200_v38  ;;  %v669_v30 = vadd.f32 %v984_v26, %v1200_v38  ;;  %v532_v31 = vpop.f32.mrb[31].mxu0  ;;  %v660_v32 = vpop.f32.mrb[31].mxu1 }
 0x125   :  { %v700_v33 = vmax.f32 %v530_v23, 0.0  ;;  %v732_v34 = vmax.f32 %v658_v24, 0.0  ;;  %v533_v35 = vadd.f32 %v1200_v38, %v532_v31  ;;  %v661_v36 = vadd.f32 %v1200_v38, %v660_v32 }
 0x126   :  { %766 = vst [vmem:[%s1461_s3 + $0xf0] sm:$0xff] %v702_v27  ;;  %798 = vst [vmem:[%s1461_s3 + $0x1f0] sm:$0xff] %v734_v28  ;;  %v703_v37 = vmax.f32 %v541_v29, 0.0  ;;  %v735_v39 = vmax.f32 %v669_v30, 0.0 }
 0x127   :  { %764 = vst [vmem:[%s1461_s3 + $0xe0] sm:$0xff] %v700_v33  ;;  %796 = vst [vmem:[%s1461_s3 + $0x1e0] sm:$0xff] %v732_v34  ;;  %v701_v40 = vmax.f32 %v533_v35, 0.0  ;;  %v733_v38 = vmax.f32 %v661_v36, 0.0 }
 0x128   :  { %767 = vst [vmem:[%s1461_s3 + $0xf8] sm:$0xff] %v703_v37  ;;  %799 = vst [vmem:[%s1461_s3 + $0x1f8] sm:$0xff] %v735_v39 }
 0x129   :  { %765 = vst [vmem:[%s1461_s3 + $0xe8] sm:$0xff] %v701_v40  ;;  %797 = vst [vmem:[%s1461_s3 + $0x1e8] sm:$0xff] %v733_v38 }

// kernel: eq.1
= control target key start
LH: loop header
LB: loop body
LE: loop exit
PB: predicated region body
PF: predicated region fallthrough
CT: control target
= control target key end

     0   :  { %s29_s10 = smov 3  ;;  %s10_s11 = smov 3  ;;  %vm12_vm0 = vcmask 15360   ;;  %vm19_vm1 = vcmask 64560   ;;  %vm26_vm2 = vcmask 48160   ;;  %vm33_vm3 = vcmask 31760   ;;  %s67_s0 = inlined_call_operand.vmem [shape: s32[2,4,2], index: 0, kind: input, shape index: {}]   ;;  %s68_s1 = inlined_call_operand.vmem [shape: s32[2,8], index: 1, kind: output, shape index: {}]  }
   0x1   :  { %v41_v0 = vld [vmem:[%s67_s0 + $0x4] sm:$0xf]  ;;  %v8_v1 = vld [vmem:[%s67_s0] sm:$0xf]  ;;  %s15_s0 = smov 3  ;;  %s22_s12 = smov 3 }
   0x2   :  { %7 = vst [vmem:[#allocation1 + $0x8] sm:$0xf] %v41_v0  ;;  %9 = vst [vmem:[#allocation1] sm:$0xf] %v8_v1  ;;  %s45_s13 = smov 6   ;;  %s46_s14 = smov 2  }
   0x3   :  { %s47_s15 = smov 4  }
   0x9   :  { %v16_v2 = vld [vmem:[#allocation1 + $0x3] ss:$8 sm:%s15_s0]   ;;  %v30_v3 = vld [vmem:[#allocation1 + $0x1] ss:$8 sm:%s29_s10]   ;;  %v11_v4 = vld [vmem:[#allocation1] ss:$8 sm:%s10_s11]  }
   0xa   :  { %17 = vrot.lane.b32.xlu0 %v16_v2, %s45_s13  ;;  %31 = vrot.lane.b32.xlu1 %v30_v3, %s46_s14  ;;  %v23_v5 = vld [vmem:[#allocation1 + $0x2] ss:$8 sm:%s22_s12]   ;;  %13 = vst.msk [vmem:[#allocation0] sm:$0x3] %vm12_vm0, %v11_v4  }
   0xe   :  { %24 = vrot.lane.b32.xlu0 %v23_v5, %s47_s15 }
  0x7c   :  { %v18_v6 = vpop.permute.xlu0 %17   ;;  %v32_v7 = vpop.permute.xlu1 %31  }
  0x7d   :  { %20 = vst.msk [vmem:[#allocation0] sm:$0x3] %vm19_vm1, %v18_v6  }
  0x80   :  { %v25_v8 = vpop.permute.xlu0 %24  }
  0x81   :  { %27 = vst.msk [vmem:[#allocation0] sm:$0x3] %vm26_vm2, %v25_v8  }
  0x82   :  { %34 = vst.msk [vmem:[#allocation0] sm:$0x3] %vm33_vm3, %v32_v7  }
  0x89   :  { %v38_v9 = vld [vmem:[#allocation0] sm:$0x3] }
  0x8a   :  { %40 = vst [vmem:[%s68_s1] sm:$0x3] %v38_v9 }

// kernel: mlwm_forward.5
= control target key start
LH: loop header
LB: loop body
LE: loop exit
PB: predicated region body
PF: predicated region fallthrough
CT: control target
= control target key end

     0   :  { %s10836_s0 = inlined_call_operand.vmem [shape: f32[2,8,256], index: 0, kind: input, shape index: {}]   ;;  %s10837_s1 = inlined_call_operand.vmem [shape: f32[2,256,8], index: 1, kind: input, shape index: {}]   ;;  %s10838_s2 = inlined_call_operand.vmem [shape: f32[2,8,128], index: 2, kind: input, shape index: {}]   ;;  %s10839_s3 = inlined_call_operand.vmem [shape: f32[2,8,256], index: 3, kind: input, shape index: {}]   ;;  %s10840_s4 = inlined_call_operand.vmem [shape: f32[256,128], index: 4, kind: input, shape index: {}]   ;;  %s10841_s5 = inlined_call_operand.vmem [shape: f32[1,128], index: 5, kind: input, shape index: {}]   ;;  %s10842_s6 = inlined_call_operand.hbm [shape: f32[2,8,128], index: 6, kind: output, shape index: {}]  }
   0x1   :  { %v7686_v0 = vld [vmem:[%s10840_s4 + $0x80] sm:$0xff]  ;;  %v7691_v1 = vld [vmem:[%s10840_s4 + $0x88] sm:$0xff]  ;;  %v7708_v5 = vld [vmem:[%s10840_s4 + $0x90] sm:$0xff] }
   0x2   :  { %v7696_v2 = vld [vmem:[%s10840_s4] sm:$0xff]  ;;  %v7052_v3 = vpack.c.bf16 %v7691_v1, %v7686_v0  ;;  %v7703_v4 = vld [vmem:[%s10840_s4 + $0x8] sm:$0xff]  ;;  %v7713_v6 = vld [vmem:[%s10840_s4 + $0x98] sm:$0xff] }
   0x3   :  { %v7054_v7 = vpack.c.bf16 %v7703_v4, %v7696_v2  ;;  %v7056_v8 = vpack.c.bf16 %v7713_v6, %v7708_v5  ;;  %v7722_v9 = vld [vmem:[%s10840_s4 + $0x10] sm:$0xff]  ;;  %v7727_v10 = vld [vmem:[%s10840_s4 + $0x18] sm:$0xff]  ;;  %v7732_v11 = vld [vmem:[%s10840_s4 + $0xa0] sm:$0xff] }
   0x4   :  { %7053 = vmatprep.subr.bf16.mxu0 %v7052_v3  ;;  %7085 = vmatprep.subr.bf16.mxu1 %v7052_v3  ;;  %v7737_v12 = vld [vmem:[%s10840_s4 + $0xa8] sm:$0xff]  ;;  %v7058_v13 = vpack.c.bf16 %v7727_v10, %v7722_v9  ;;  %v7746_v15 = vld [vmem:[%s10840_s4 + $0x20] sm:$0xff]  ;;  %v7756_v17 = vld [vmem:[%s10840_s4 + $0xb0] sm:$0xff] }
   0x5   :  { %7055 = vmatpush3.bf16.msra.mxu0 %v7054_v7  ;;  %7087 = vmatpush3.bf16.msra.mxu1 %v7054_v7  ;;  %v7060_v14 = vpack.c.bf16 %v7737_v12, %v7732_v11  ;;  %v7751_v16 = vld [vmem:[%s10840_s4 + $0x28] sm:$0xff]  ;;  %v7761_v18 = vld [vmem:[%s10840_s4 + $0xb8] sm:$0xff]  ;;  %v7770_v21 = vld [vmem:[%s10840_s4 + $0x30] sm:$0xff] }
   0x6   :  { %7057 = vmatprep.subr.bf16.mxu0 %v7056_v8  ;;  %7089 = vmatprep.subr.bf16.mxu1 %v7056_v8  ;;  %v7062_v19 = vpack.c.bf16 %v7751_v16, %v7746_v15  ;;  %v7064_v20 = vpack.c.bf16 %v7761_v18, %v7756_v17  ;;  %v7775_v22 = vld [vmem:[%s10840_s4 + $0x38] sm:$0xff]  ;;  %v7780_v23 = vld [vmem:[%s10840_s4 + $0xc0] sm:$0xff]  ;;  %v7785_v24 = vld [vmem:[%s10840_s4 + $0xc8] sm:$0xff] }
   0x7   :  { %v7790_v25 = vld [vmem:[%s10836_s0 + $0x8] sm:$0xff]  ;;  %v7796_v26 = vld [vmem:[%s10836_s0 + $0x18] sm:$0xff]  ;;  %v7066_v27 = vpack.c.bf16 %v7775_v22, %v7770_v21 }
   0x8   :  { %339 = vmatprep.mubr.f32.mxu0 %v7790_v25 }
   0x9   :  { %7059 = vmatpush3.bf16.msra.mxu0 %v7058_v13  ;;  %7091 = vmatpush3.bf16.msra.mxu1 %v7058_v13 }
   0xa   :  { %7061 = vmatprep.subr.bf16.mxu0 %v7060_v14  ;;  %7093 = vmatprep.subr.bf16.mxu1 %v7060_v14 }
   0xd   :  { %7063 = vmatpush3.bf16.msra.mxu0 %v7062_v19  ;;  %7095 = vmatpush3.bf16.msra.mxu1 %v7062_v19 }
   0xe   :  { %11 = vsyncpa [#allocation5], 0  ;;  %7065 = vmatprep.subr.bf16.mxu0 %v7064_v20  ;;  %7097 = vmatprep.subr.bf16.mxu1 %v7064_v20  ;;  %v7068_v28 = vpack.c.bf16 %v7785_v24, %v7780_v23  ;;  %v7805_v29 = vld [vmem:[%s10840_s4 + $0x40] sm:$0xff]  ;;  %v7810_v30 = vld [vmem:[%s10840_s4 + $0x48] sm:$0xff]  ;;  %v193_v53 = vlaneseq  ;;  %v7644_v63 = vmov -1e+30  }
   0xf   :  { %v7815_v31 = vld [vmem:[%s10840_s4 + $0xd0] sm:$0xff]  ;;  %v7820_v32 = vld [vmem:[%s10840_s4 + $0xd8] sm:$0xff]  ;;  %409 = vmatprep.mubr.f32.mxu1 %v7796_v26  ;;  %v7070_v33 = vpack.c.bf16 %v7810_v30, %v7805_v29  ;;  %v7840_v37 = vld [vmem:[%s10840_s4 + $0xe0] sm:$0xff]  ;;  %vm439_vm1 = vcmask 64512   ;;  %s7645_s16 = smov [#allocation4]  }
  0x10   :  { %11129 = vst [vmem:[#allocation7_spill] sm:$0xff] %v7815_v31  ;;  %v7072_v34 = vpack.c.bf16 %v7820_v32, %v7815_v31  ;;  %v7830_v35 = vld [vmem:[%s10840_s4 + $0x50] sm:$0xff]  ;;  %v7835_v36 = vld [vmem:[%s10840_s4 + $0x58] sm:$0xff]  ;;  %11130 = vst [vmem:[#allocation8_spill] sm:$0xff] %v7840_v37  ;;  %v194_v54 = vand.u32 127, %v193_v53  ;;  %s5459_s17 = sshll.u32 %s7645_s16, 4  ;;  %s5460_s17 = int_to_ptr.vmem [resolvable:$true] %s5459_s17 }
  0x11   :  { %7067 = vmatpush3.bf16.msra.mxu0 %v7066_v27  ;;  %7099 = vmatpush3.bf16.msra.mxu1 %v7066_v27  ;;  %v7845_v38 = vld [vmem:[%s10840_s4 + $0xe8] sm:$0xff]  ;;  %v7074_v39 = vpack.c.bf16 %v7835_v36, %v7830_v35  ;;  %v7854_v41 = vld [vmem:[%s10840_s4 + $0x60] sm:$0xff]  ;;  %v7864_v43 = vld [vmem:[%s10840_s4 + $0xf0] sm:$0xff]  ;;  %s7620_s18 = scalar_lea.vmem %s5460_s17, 256  ;;  %p7625_p1 = scmp.lt.s32.totalorder %s5460_s17, %s5460_s17 }
  0x12   :  { %7069 = vmatprep.subr.bf16.mxu0 %v7068_v28  ;;  %7101 = vmatprep.subr.bf16.mxu1 %v7068_v28  ;;  %11131 = vst [vmem:[#allocation9_spill] sm:$0xff] %v7845_v38  ;;  %v7076_v40 = vpack.c.bf16 %v7845_v38, %v7840_v37  ;;  %v7859_v42 = vld [vmem:[%s10840_s4 + $0x68] sm:$0xff]  ;;  %11132 = vst [vmem:[#allocation10_spill] sm:$0xff] %v7864_v43  ;;  %v7869_v44 = vld [vmem:[%s10840_s4 + $0xf8] sm:$0xff]  ;;  %vm195_vm0 = vcmp.lt.s32.totalorder %v194_v54, 4  ;;  %p7621_p0 = scmp.ne.s32.totalorder %s5460_s17, %s7620_s18  ;;  %p7626_p2 = scmp.lt.s32.totalorder %s7620_s18, %s7620_s18 }
  0x13   :  { %11133 = vst [vmem:[#allocation11_spill] sm:$0xff] %v7869_v44  ;;  %v7078_v45 = vpack.c.bf16 %v7859_v42, %v7854_v41  ;;  %v7080_v46 = vpack.c.bf16 %v7869_v44, %v7864_v43  ;;  %v7878_v47 = vld [vmem:[%s10840_s4 + $0x70] sm:$0xff]  ;;  %v7883_v48 = vld [vmem:[%s10840_s4 + $0x78] sm:$0xff]  ;;  %v7890_v50 = vld [vmem:[%s10836_s0] sm:$0xff]  ;;  %v7902_v3 = vsel %vm195_vm0, 0.0, %v7644_v63 }
  0x14   :  { %11134 = vst [vmem:[#allocation12_spill] sm:$0xff] %v7878_v47  ;;  %11135 = vst [vmem:[#allocation13_spill] sm:$0xff] %v7883_v48  ;;  %v7082_v49 = vpack.c.bf16 %v7883_v48, %v7878_v47  ;;  %v7895_v51 = vld [vmem:[%s10836_s0 + $0x10] sm:$0xff]  ;;  %v190_v52 = vld [vmem:[%s10841_s5] sm:$0x1]  ;;  %p7627_p3 = por %p7626_p2, %p7625_p1 }
  0x15   :  { %7071 = vmatpush3.bf16.msra.mxu0 %v7070_v33  ;;  %7103 = vmatpush3.bf16.msra.mxu1 %v7070_v33  ;;  %11136 = vst [vmem:[#allocation14_spill] sm:$0xff] %v7890_v50  ;;  %11137 = vst [vmem:[#allocation15_spill] sm:$0xff] %v7895_v51  ;;  %v7923_v54 = vld [vmem:[%s10838_s2] sm:$0xff] }
  0x16   :  { %7073 = vmatprep.subr.bf16.mxu0 %v7072_v34  ;;  %7105 = vmatprep.subr.bf16.mxu1 %v7072_v34  ;;  %191 = vst [vmem:[#allocation3] sm:$0x1] %v190_v52  ;;  %192 = vst [vmem:[#allocation3 + $0x1] sm:$0x1] %v190_v52  ;;  %p7628_p4 = pnand %p7627_p3, %p7621_p0 }
  0x17   :  { %11138 = vst [vmem:[#allocation16_spill] sm:$0xff] %v7902_v3  ;;  %11141 = vst [vmem:[#allocation19_spill] sm:$0xff] %v7923_v54 }
  0x19   :  { %7075 = vmatpush3.bf16.msra.mxu0 %v7074_v39  ;;  %7107 = vmatpush3.bf16.msra.mxu1 %v7074_v39 }
  0x1a   :  { %7077 = vmatprep.subr.bf16.mxu0 %v7076_v40  ;;  %7109 = vmatprep.subr.bf16.mxu1 %v7076_v40 }
  0x1d   :  { %7079 = vmatpush3.bf16.msra.mxu0 %v7078_v45  ;;  %7111 = vmatpush3.bf16.msra.mxu1 %v7078_v45  ;;  %v5470_v57 = vld [vmem:[#allocation3] ss:$0 sm:$0xff]  ;;  %v5471_v59 = vld [vmem:[#allocation3 + $0x1] ss:$0 sm:$0xff] }
  0x1e   :  { %7081 = vmatprep.subr.bf16.mxu0 %v7080_v46  ;;  %7113 = vmatprep.subr.bf16.mxu1 %v7080_v46  ;;  %v7909_v45 = vld [vmem:[%s10837_s1] sm:$0xff] }
  0x1f   :  { %11139 = vst [vmem:[#allocation17_spill] sm:$0xff] %v7909_v45  ;;  %v7916_v46 = vld [vmem:[%s10837_s1 + $0x100] sm:$0xff] }
  0x20   :  { %11140 = vst [vmem:[#allocation18_spill] sm:$0xff] %v7916_v46 }
  0x21   :  { %7083 = vmatpush3.bf16.msra.mxu0 %v7082_v49  ;;  %7115 = vmatpush3.bf16.msra.mxu1 %v7082_v49 }
  0x24   :  { %340 = vmatmul.mubr.f32.vlgmr.msra.gmra.mrb[0].mxu0 %v7890_v50  ;;  %410 = vmatmul.mubr.f32.vlgmr.msra.gmra.mrb[0].mxu1 %v7895_v51 }
  0x25   :  { %6554 = vmatprep.mubr.msk.f32.mxu0 %vm439_vm1, %v7909_v45  ;;  %6604 = vmatprep.mubr.msk.f32.mxu1 %vm439_vm1, %v7916_v46 }
  0xf7   :  { %v5834_v55 = vpop.f32.mrb[0].mxu0  ;;  %v5869_v56 = vpop.f32.mrb[0].mxu1 }
  0xf8   :  { %v5835_v58 = vpop.f32.mrb[1].mxu0  ;;  %v5870_v60 = vpop.f32.mrb[1].mxu1 }
  0xf9   :  { %v5836_v61 = vadd.f32 %v5835_v58, %v5834_v55  ;;  %v5871_v62 = vadd.f32 %v5870_v60, %v5869_v56  ;;  %v7929_v58 = vld [vmem:[%s10838_s2 + $0x8] sm:$0xff] }
  0xfa   :  { %11142 = vst [vmem:[#allocation20_spill] sm:$0xff] %v7929_v58 }
  0xfb   :  { %v342_v7 = vadd.f32 %v5836_v61, %v5470_v57  ;;  %v412_v8 = vadd.f32 %v5871_v62, %v5471_v59  ;;  %v7934_v61 = vld [vmem:[%s10837_s1 + $0x8] sm:$0xff] }
  0xfc   :  { %11143 = vst [vmem:[#allocation21_spill] sm:$0xff] %v7934_v61 }
  0xfd   :  { %v415_v13 = vadd.f32 %v342_v7, %v7902_v3  ;;  %v416_v14 = vadd.f32 %v412_v8, %v7902_v3  ;;  %v7940_v7 = vld [vmem:[%s10837_s1 + $0x10] sm:$0xff] }
  0xfe   :  { %11144 = vst [vmem:[#allocation22_spill] sm:$0xff] %v7940_v7 }
  0xff   :  { %417 = vmax.xlane.f32.xlu0 %v415_v13 }
 0x103   :  { %419 = vmax.xlane.f32.xlu0 %v416_v14 }
 0x18c   :  { %v418_v19 = vpop.xlane.xlu0 %417 }
 0x18d   :  { %v421_v20 = vsub.f32 %v415_v13, %v418_v19  ;;  %v7954_v19 = vld [vmem:[%s10837_s1 + $0x108] sm:$0xff] }
 0x18e   :  { %11146 = vst [vmem:[#allocation24_spill] sm:$0xff] %v7954_v19 }
 0x18f   :  { %v423_v27 = vmul.f32 1.442695, %v421_v20 }
 0x190   :  { %v420_v28 = vpop.xlane.xlu0 %419 }
 0x191   :  { %7440 = vpow2.f32 %v423_v27  ;;  %v422_v33 = vsub.f32 %v416_v14, %v420_v28  ;;  %v7949_v14 = vld [vmem:[%s10837_s1 + $0x18] sm:$0xff]  ;;  %v7959_v28 = vld [vmem:[%s10837_s1 + $0x20] sm:$0xff] }
 0x192   :  { %11145 = vst [vmem:[#allocation23_spill] sm:$0xff] %v7949_v14  ;;  %11147 = vst [vmem:[#allocation25_spill] sm:$0xff] %v7959_v28 }
 0x193   :  { %v425_v34 = vmul.f32 1.442695, %v422_v33  ;;  %v7964_v33 = vld [vmem:[%s10837_s1 + $0x110] sm:$0xff] }
 0x194   :  { %11148 = vst [vmem:[#allocation26_spill] sm:$0xff] %v7964_v33 }
 0x195   :  { %7442 = vpow2.f32 %v425_v34 }
 0x19b   :  { %v7441_v39 = vpop.eup %7440 }
 0x19c   :  { %427 = vadd.xlane.f32.xlu1 %v7441_v39 }
 0x19f   :  { %v7443_v40 = vpop.eup %7442 }
 0x1a0   :  { %429 = vadd.xlane.f32.xlu1 %v7443_v40 }
 0x229   :  { %v428_v49 = vpop.xlane.xlu1 %427 }
 0x22a   :  { %7444 = vrcp.f32 %v428_v49  ;;  %v7982_v49 = vld [vmem:[%s10837_s1 + $0x118] sm:$0xff] }
 0x22b   :  { %11150 = vst [vmem:[#allocation28_spill] sm:$0xff] %v7982_v49 }
 0x22d   :  { %v430_v52 = vpop.xlane.xlu1 %429 }
 0x22e   :  { %7446 = vrcp.f32 %v430_v52 }
 0x234   :  { %v7445_v53 = vpop.eup %7444 }
 0x235   :  { %v432_v55 = vmul.f32 %v7445_v53, %v7441_v39 }
 0x237   :  { %v435_v56 = vsub.f32 %v432_v55, %v7923_v54  ;;  %v7987_v55 = vld [vmem:[%s10837_s1 + $0x30] sm:$0xff] }
 0x238   :  { %v7447_v57 = vpop.eup %7446  ;;  %11151 = vst [vmem:[#allocation29_spill] sm:$0xff] %v7987_v55 }
 0x239   :  { %v437_v59 = vmul.f32 0.125, %v435_v56  ;;  %v434_v60 = vmul.f32 %v7447_v57, %v7443_v40  ;;  %v7977_v40 = vld [vmem:[%s10837_s1 + $0x28] sm:$0xff]  ;;  %v7992_v56 = vld [vmem:[%s10837_s1 + $0x120] sm:$0xff] }
 0x23a   :  { %11149 = vst [vmem:[#allocation27_spill] sm:$0xff] %v7977_v40  ;;  %11152 = vst [vmem:[#allocation30_spill] sm:$0xff] %v7992_v56 }
 0x23b   :  { %6552 = vmatprep.subr.mxu0 %v437_v59  ;;  %v1082_v62 = vrot.slane %v437_v59, 4  ;;  %v436_v63 = vsub.f32 %v434_v60, %v7929_v58  ;;  %v1350_v60 = vld [vmem:[#allocation3] sm:$0x1] }
 0x23c   :  { %6553 = vmatpush3.msra.mxu0 %v437_v59 }
 0x23d   :  { %v1083_v8 = vadd.f32 %v1082_v62, %v437_v59  ;;  %6555 = vmatmul.mubr.msk.f32.vlgmr.msra.gmra.mrb[2].mxu0 %vm439_vm1, %v7934_v61  ;;  %v438_v13 = vmul.f32 0.125, %v436_v63  ;;  %v8005_v62 = vld [vmem:[%s10837_s1 + $0x38] sm:$0xff]  ;;  %v8010_v63 = vld [vmem:[%s10837_s1 + $0x128] sm:$0xff] }
 0x23e   :  { %6557 = vmatprep.mubr.msk.f32.mxu0 %vm439_vm1, %v7940_v7  ;;  %11153 = vst [vmem:[#allocation31_spill] sm:$0xff] %v8005_v62  ;;  %11154 = vst [vmem:[#allocation32_spill] sm:$0xff] %v8010_v63 }
 0x23f   :  { %v1084_v20 = vrot.slane %v1083_v8, 2  ;;  %6602 = vmatprep.subr.mxu1 %v438_v13  ;;  %v1088_v27 = vrot.slane %v438_v13, 4 }
 0x240   :  { %6603 = vmatpush3.msra.mxu1 %v438_v13 }
 0x241   :  { %v1085_v34 = vadd.f32 %v1084_v20, %v1083_v8  ;;  %v1089_v39 = vadd.f32 %v1088_v27, %v438_v13  ;;  %6558 = vmatmul.mubr.msk.f32.gmra.mrb[4].mxu0 %vm439_vm1, %v7949_v14  ;;  %6605 = vmatmul.mubr.msk.f32.vlgmr.msra.gmra.mrb[2].mxu1 %vm439_vm1, %v7954_v19  ;;  %v8015_v20 = vld [vmem:[%s10837_s1 + $0x40] sm:$0xff]  ;;  %v8020_v27 = vld [vmem:[%s10837_s1 + $0x130] sm:$0xff] }
 0x242   :  { %6560 = vmatprep.mubr.msk.f32.mxu0 %vm439_vm1, %v7959_v28  ;;  %6607 = vmatprep.mubr.msk.f32.mxu1 %vm439_vm1, %v7964_v33  ;;  %11155 = vst [vmem:[#allocation33_spill] sm:$0xff] %v8015_v20  ;;  %11156 = vst [vmem:[#allocation34_spill] sm:$0xff] %v8020_v27 }
 0x243   :  { %v1086_v52 = vrot.slane %v1085_v34, 1  ;;  %v1090_v53 = vrot.slane %v1089_v39, 2 }
 0x245   :  { %v1087_v57 = vadd.f32 %v1086_v52, %v1085_v34  ;;  %v1091_v59 = vadd.f32 %v1090_v53, %v1089_v39  ;;  %6561 = vmatmul.mubr.msk.f32.gmra.mrb[6].mxu0 %vm439_vm1, %v7977_v40  ;;  %6608 = vmatmul.mubr.msk.f32.gmra.mrb[4].mxu1 %vm439_vm1, %v7982_v49  ;;  %v1351_v52 = vld [vmem:[#allocation3 + $0x1] sm:$0x1]  ;;  %v8033_v53 = vld [vmem:[%s10837_s1 + $0x48] sm:$0xff] }
 0x246   :  { %6563 = vmatprep.mubr.msk.f32.mxu0 %vm439_vm1, %v7987_v55  ;;  %6610 = vmatprep.mubr.msk.f32.mxu1 %vm439_vm1, %v7992_v56  ;;  %11157 = vst [vmem:[#allocation35_spill] sm:$0xff] %v8033_v53 }
 0x247   :  { %v1352_v8 = vmul.f32 0.01, %v1087_v57  ;;  %v1092_v13 = vrot.slane %v1091_v59, 1  ;;  %v8038_v57 = vld [vmem:[%s10837_s1 + $0x138] sm:$0xff] }
 0x248   :  { %11158 = vst [vmem:[#allocation36_spill] sm:$0xff] %v8038_v57 }
 0x249   :  { %v1354_v34 = vsub.f32 %v1350_v60, %v1352_v8  ;;  %v1093_v39 = vadd.f32 %v1092_v13, %v1091_v59  ;;  %6564 = vmatmul.mubr.msk.f32.gmra.mrb[8].mxu0 %vm439_vm1, %v8005_v62  ;;  %6611 = vmatmul.mubr.msk.f32.gmra.mrb[6].mxu1 %vm439_vm1, %v8010_v63  ;;  %v8043_v60 = vld [vmem:[%s10837_s1 + $0x50] sm:$0xff]  ;;  %v8048_v8 = vld [vmem:[%s10837_s1 + $0x140] sm:$0xff] }
 0x24a   :  { %6566 = vmatprep.mubr.msk.f32.mxu0 %vm439_vm1, %v8015_v20  ;;  %6613 = vmatprep.mubr.msk.f32.mxu1 %vm439_vm1, %v8020_v27  ;;  %11159 = vst [vmem:[#allocation37_spill] sm:$0xff] %v8043_v60  ;;  %11160 = vst [vmem:[#allocation38_spill] sm:$0xff] %v8048_v8 }
 0x24b   :  { %1356 = vst [vmem:[#allocation3] sm:$0x1] %v1354_v34  ;;  %v1353_v59 = vmul.f32 0.01, %v1093_v39  ;;  %v8061_v34 = vld [vmem:[%s10837_s1 + $0x58] sm:$0xff]  ;;  %v8066_v39 = vld [vmem:[%s10837_s1 + $0x148] sm:$0xff] }
 0x24c   :  { %11161 = vst [vmem:[#allocation39_spill] sm:$0xff] %v8061_v34  ;;  %11162 = vst [vmem:[#allocation40_spill] sm:$0xff] %v8066_v39 }
 0x24d   :  { %v1355_v13 = vsub.f32 %v1351_v52, %v1353_v59  ;;  %6567 = vmatmul.mubr.msk.f32.gmra.mrb[10].mxu0 %vm439_vm1, %v8033_v53  ;;  %6614 = vmatmul.mubr.msk.f32.gmra.mrb[8].mxu1 %vm439_vm1, %v8038_v57  ;;  %v8071_v52 = vld [vmem:[%s10837_s1 + $0x60] sm:$0xff]  ;;  %v8076_v59 = vld [vmem:[%s10837_s1 + $0x150] sm:$0xff] }
 0x24e   :  { %6569 = vmatprep.mubr.msk.f32.mxu0 %vm439_vm1, %v8043_v60  ;;  %6616 = vmatprep.mubr.msk.f32.mxu1 %vm439_vm1, %v8048_v8  ;;  %11163 = vst [vmem:[#allocation41_spill] sm:$0xff] %v8071_v52  ;;  %11164 = vst [vmem:[#allocation42_spill] sm:$0xff] %v8076_v59  ;;  %v8094_v8 = vld [vmem:[%s10837_s1 + $0x158] sm:$0xff] }
 0x24f   :  { %1357 = vst [vmem:[#allocation3 + $0x1] sm:$0x1] %v1355_v13  ;;  %v8089_v13 = vld [vmem:[%s10837_s1 + $0x68] sm:$0xff]  ;;  %11166 = vst [vmem:[#allocation44_spill] sm:$0xff] %v8094_v8 }
 0x250   :  { %11165 = vst [vmem:[#allocation43_spill] sm:$0xff] %v8089_v13 }
 0x251   :  { %6570 = vmatmul.mubr.msk.f32.gmra.mrb[12].mxu0 %vm439_vm1, %v8061_v34  ;;  %6617 = vmatmul.mubr.msk.f32.gmra.mrb[10].mxu1 %vm439_vm1, %v8066_v39  ;;  %v8099_v39 = vld [vmem:[%s10837_s1 + $0x70] sm:$0xff]  ;;  %v8122_v34 = vld [vmem:[%s10837_s1 + $0x168] sm:$0xff] }
 0x252   :  { %6572 = vmatprep.mubr.msk.f32.mxu0 %vm439_vm1, %v8071_v52  ;;  %6619 = vmatprep.mubr.msk.f32.mxu1 %vm439_vm1, %v8076_v59  ;;  %11167 = vst [vmem:[#allocation45_spill] sm:$0xff] %v8099_v39  ;;  %v8104_v52 = vld [vmem:[%s10837_s1 + $0x160] sm:$0xff]  ;;  %v8117_v59 = vld [vmem:[%s10837_s1 + $0x78] sm:$0xff]  ;;  %11170 = vst [vmem:[#allocation48_spill] sm:$0xff] %v8122_v34 }
 0x253   :  { %11168 = vst [vmem:[#allocation46_spill] sm:$0xff] %v8104_v52  ;;  %11169 = vst [vmem:[#allocation47_spill] sm:$0xff] %v8117_v59 }
 0x255   :  { %6573 = vmatmul.mubr.msk.f32.gmra.mrb[14].mxu0 %vm439_vm1, %v8089_v13  ;;  %6620 = vmatmul.mubr.msk.f32.gmra.mrb[12].mxu1 %vm439_vm1, %v8094_v8  ;;  %v8127_v8 = vld [vmem:[%s10837_s1 + $0x80] sm:$0xff]  ;;  %v8150_v13 = vld [vmem:[%s10837_s1 + $0x178] sm:$0xff] }
 0x256   :  { %6575 = vmatprep.mubr.msk.f32.mxu0 %vm439_vm1, %v8099_v39  ;;  %6622 = vmatprep.mubr.msk.f32.mxu1 %vm439_vm1, %v8104_v52  ;;  %11171 = vst [vmem:[#allocation49_spill] sm:$0xff] %v8127_v8  ;;  %v8132_v39 = vld [vmem:[%s10837_s1 + $0x170] sm:$0xff]  ;;  %v8145_v52 = vld [vmem:[%s10837_s1 + $0x88] sm:$0xff]  ;;  %11174 = vst [vmem:[#allocation52_spill] sm:$0xff] %v8150_v13 }
 0x257   :  { %11172 = vst [vmem:[#allocation50_spill] sm:$0xff] %v8132_v39  ;;  %11173 = vst [vmem:[#allocation51_spill] sm:$0xff] %v8145_v52 }
 0x259   :  { %6576 = vmatmul.mubr.msk.f32.gmra.mrb[16].mxu0 %vm439_vm1, %v8117_v59  ;;  %6623 = vmatmul.mubr.msk.f32.gmra.mrb[14].mxu1 %vm439_vm1, %v8122_v34  ;;  %v8155_v34 = vld [vmem:[%s10837_s1 + $0x90] sm:$0xff]  ;;  %v8178_v59 = vld [vmem:[%s10837_s1 + $0x188] sm:$0xff] }
 0x25a   :  { %6578 = vmatprep.mubr.msk.f32.mxu0 %vm439_vm1, %v8127_v8  ;;  %6625 = vmatprep.mubr.msk.f32.mxu1 %vm439_vm1, %v8132_v39  ;;  %11175 = vst [vmem:[#allocation53_spill] sm:$0xff] %v8155_v34  ;;  %v8160_v8 = vld [vmem:[%s10837_s1 + $0x180] sm:$0xff]  ;;  %v8173_v39 = vld [vmem:[%s10837_s1 + $0x98] sm:$0xff]  ;;  %11178 = vst [vmem:[#allocation56_spill] sm:$0xff] %v8178_v59 }
 0x25b   :  { %11176 = vst [vmem:[#allocation54_spill] sm:$0xff] %v8160_v8  ;;  %11177 = vst [vmem:[#allocation55_spill] sm:$0xff] %v8173_v39 }
 0x25d   :  { %6579 = vmatmul.mubr.msk.f32.gmra.mrb[18].mxu0 %vm439_vm1, %v8145_v52  ;;  %6626 = vmatmul.mubr.msk.f32.gmra.mrb[16].mxu1 %vm439_vm1, %v8150_v13  ;;  %v8183_v13 = vld [vmem:[%s10837_s1 + $0xa0] sm:$0xff]  ;;  %v8206_v52 = vld [vmem:[%s10837_s1 + $0x198] sm:$0xff] }
 0x25e   :  { %6581 = vmatprep.mubr.msk.f32.mxu0 %vm439_vm1, %v8155_v34  ;;  %6628 = vmatprep.mubr.msk.f32.mxu1 %vm439_vm1, %v8160_v8  ;;  %11179 = vst [vmem:[#allocation57_spill] sm:$0xff] %v8183_v13  ;;  %v8188_v34 = vld [vmem:[%s10837_s1 + $0x190] sm:$0xff]  ;;  %v8201_v8 = vld [vmem:[%s10837_s1 + $0xa8] sm:$0xff]  ;;  %11182 = vst [vmem:[#allocation60_spill] sm:$0xff] %v8206_v52 }
 0x25f   :  { %11180 = vst [vmem:[#allocation58_spill] sm:$0xff] %v8188_v34  ;;  %11181 = vst [vmem:[#allocation59_spill] sm:$0xff] %v8201_v8 }
 0x261   :  { %6582 = vmatmul.mubr.msk.f32.gmra.mrb[20].mxu0 %vm439_vm1, %v8173_v39  ;;  %6629 = vmatmul.mubr.msk.f32.gmra.mrb[18].mxu1 %vm439_vm1, %v8178_v59  ;;  %v8211_v59 = vld [vmem:[%s10837_s1 + $0xb0] sm:$0xff]  ;;  %v8234_v39 = vld [vmem:[%s10837_s1 + $0x1a8] sm:$0xff] }
 0x262   :  { %6584 = vmatprep.mubr.msk.f32.mxu0 %vm439_vm1, %v8183_v13  ;;  %6631 = vmatprep.mubr.msk.f32.mxu1 %vm439_vm1, %v8188_v34  ;;  %11183 = vst [vmem:[#allocation61_spill] sm:$0xff] %v8211_v59  ;;  %v8216_v13 = vld [vmem:[%s10837_s1 + $0x1a0] sm:$0xff]  ;;  %v8229_v34 = vld [vmem:[%s10837_s1 + $0xb8] sm:$0xff]  ;;  %11186 = vst [vmem:[#allocation64_spill] sm:$0xff] %v8234_v39 }
 0x263   :  { %11184 = vst [vmem:[#allocation62_spill] sm:$0xff] %v8216_v13  ;;  %11185 = vst [vmem:[#allocation63_spill] sm:$0xff] %v8229_v34 }
 0x265   :  { %6585 = vmatmul.mubr.msk.f32.gmra.mrb[22].mxu0 %vm439_vm1, %v8201_v8  ;;  %6632 = vmatmul.mubr.msk.f32.gmra.mrb[20].mxu1 %vm439_vm1, %v8206_v52  ;;  %v8239_v52 = vld [vmem:[%s10837_s1 + $0xc0] sm:$0xff]  ;;  %v8262_v8 = vld [vmem:[%s10837_s1 + $0x1b8] sm:$0xff] }
 0x266   :  { %6587 = vmatprep.mubr.msk.f32.mxu0 %vm439_vm1, %v8211_v59  ;;  %6634 = vmatprep.mubr.msk.f32.mxu1 %vm439_vm1, %v8216_v13  ;;  %11187 = vst [vmem:[#allocation65_spill] sm:$0xff] %v8239_v52  ;;  %v8244_v59 = vld [vmem:[%s10837_s1 + $0x1b0] sm:$0xff]  ;;  %v8257_v13 = vld [vmem:[%s10837_s1 + $0xc8] sm:$0xff]  ;;  %11190 = vst [vmem:[#allocation68_spill] sm:$0xff] %v8262_v8 }
 0x267   :  { %11188 = vst [vmem:[#allocation66_spill] sm:$0xff] %v8244_v59  ;;  %11189 = vst [vmem:[#allocation67_spill] sm:$0xff] %v8257_v13 }
 0x269   :  { %6588 = vmatmul.mubr.msk.f32.gmra.mrb[24].mxu0 %vm439_vm1, %v8229_v34  ;;  %6635 = vmatmul.mubr.msk.f32.gmra.mrb[22].mxu1 %vm439_vm1, %v8234_v39  ;;  %v8267_v39 = vld [vmem:[%s10837_s1 + $0xd0] sm:$0xff]  ;;  %v8290_v34 = vld [vmem:[%s10837_s1 + $0x1c8] sm:$0xff] }
 0x26a   :  { %6590 = vmatprep.mubr.msk.f32.mxu0 %vm439_vm1, %v8239_v52  ;;  %6637 = vmatprep.mubr.msk.f32.mxu1 %vm439_vm1, %v8244_v59  ;;  %11191 = vst [vmem:[#allocation69_spill] sm:$0xff] %v8267_v39  ;;  %v8272_v52 = vld [vmem:[%s10837_s1 + $0x1c0] sm:$0xff]  ;;  %v8285_v59 = vld [vmem:[%s10837_s1 + $0xd8] sm:$0xff]  ;;  %11194 = vst [vmem:[#allocation72_spill] sm:$0xff] %v8290_v34 }
 0x26b   :  { %11192 = vst [vmem:[#allocation70_spill] sm:$0xff] %v8272_v52  ;;  %11193 = vst [vmem:[#allocation71_spill] sm:$0xff] %v8285_v59 }
 0x26d   :  { %6591 = vmatmul.mubr.msk.f32.gmra.mrb[26].mxu0 %vm439_vm1, %v8257_v13  ;;  %6638 = vmatmul.mubr.msk.f32.gmra.mrb[24].mxu1 %vm439_vm1, %v8262_v8  ;;  %v8295_v8 = vld [vmem:[%s10837_s1 + $0xe0] sm:$0xff]  ;;  %v8318_v13 = vld [vmem:[%s10837_s1 + $0x1d8] sm:$0xff] }
 0x26e   :  { %6593 = vmatprep.mubr.msk.f32.mxu0 %vm439_vm1, %v8267_v39  ;;  %6640 = vmatprep.mubr.msk.f32.mxu1 %vm439_vm1, %v8272_v52  ;;  %11195 = vst [vmem:[#allocation73_spill] sm:$0xff] %v8295_v8  ;;  %v8300_v39 = vld [vmem:[%s10837_s1 + $0x1d0] sm:$0xff]  ;;  %v8313_v52 = vld [vmem:[%s10837_s1 + $0xe8] sm:$0xff]  ;;  %11198 = vst [vmem:[#allocation76_spill] sm:$0xff] %v8318_v13 }
 0x26f   :  { %11196 = vst [vmem:[#allocation74_spill] sm:$0xff] %v8300_v39  ;;  %11197 = vst [vmem:[#allocation75_spill] sm:$0xff] %v8313_v52 }
 0x271   :  { %6594 = vmatmul.mubr.msk.f32.gmra.mrb[28].mxu0 %vm439_vm1, %v8285_v59  ;;  %6641 = vmatmul.mubr.msk.f32.gmra.mrb[26].mxu1 %vm439_vm1, %v8290_v34  ;;  %v8323_v34 = vld [vmem:[%s10837_s1 + $0xf0] sm:$0xff]  ;;  %v8346_v59 = vld [vmem:[%s10837_s1 + $0x1e8] sm:$0xff] }
 0x272   :  { %6596 = vmatprep.mubr.msk.f32.mxu0 %vm439_vm1, %v8295_v8  ;;  %6643 = vmatprep.mubr.msk.f32.mxu1 %vm439_vm1, %v8300_v39  ;;  %11199 = vst [vmem:[#allocation77_spill] sm:$0xff] %v8323_v34  ;;  %v8328_v8 = vld [vmem:[%s10837_s1 + $0x1e0] sm:$0xff]  ;;  %v8341_v39 = vld [vmem:[%s10837_s1 + $0xf8] sm:$0xff]  ;;  %11202 = vst [vmem:[#allocation80_spill] sm:$0xff] %v8346_v59 }
 0x273   :  { %11200 = vst [vmem:[#allocation78_spill] sm:$0xff] %v8328_v8  ;;  %11201 = vst [vmem:[#allocation79_spill] sm:$0xff] %v8341_v39 }
 0x275   :  { %6597 = vmatmul.mubr.msk.f32.gmra.mrb[30].mxu0 %vm439_vm1, %v8313_v52  ;;  %6644 = vmatmul.mubr.msk.f32.gmra.mrb[28].mxu1 %vm439_vm1, %v8318_v13  ;;  %v8351_v13 = vld [vmem:[%s10837_s1 + $0x1f0] sm:$0xff] }
 0x276   :  { %6599 = vmatprep.mubr.msk.f32.mxu0 %vm439_vm1, %v8323_v34  ;;  %6646 = vmatprep.mubr.msk.f32.mxu1 %vm439_vm1, %v8328_v8  ;;  %11203 = vst [vmem:[#allocation81_spill] sm:$0xff] %v8351_v13  ;;  %v8362_v8 = vld [vmem:[%s10837_s1 + $0x1f8] sm:$0xff] }
 0x277   :  { %11204 = vst [vmem:[#allocation82_spill] sm:$0xff] %v8362_v8 }
 0x279   :  { %6600 = vmatmul.mubr.msk.f32.gmra.mrb[32].mxu0 %vm439_vm1, %v8341_v39  ;;  %6647 = vmatmul.mubr.msk.f32.gmra.mrb[30].mxu1 %vm439_vm1, %v8346_v59 }
 0x27a   :  { %6649 = vmatprep.mubr.msk.f32.mxu1 %vm439_vm1, %v8351_v13  ;;  %1500 = vmatprep.mubr.f32.mxu0 %v7790_v25 }
 0x27d   :  { %6650 = vmatmul.mubr.msk.f32.gmra.mrb[32].mxu1 %vm439_vm1, %v8362_v8 }
 0x27e   :  { %1570 = vmatprep.mubr.f32.mxu1 %v7796_v26 }
 0x310   :  { %v6556_v34 = vpop.f32.mrb[2].mxu0 }
 0x311   :  { %v602_v39 = vpop.f32.mrb[3].mxu0  ;;  %v1159_v14 = vmul.f32 0.01, %v6556_v34 }
 0x312   :  { %v1158_v7 = vmul.f32 0.01, %v602_v39 }
 0x313   :  { %v8389_v39 = vsub.f32 %v7703_v4, %v1159_v14 }
 0x314   :  { %v6606_v52 = vpop.f32.mrb[2].mxu1  ;;  %v6559_v60 = vpop.f32.mrb[4].mxu0 }
 0x315   :  { %v923_v59 = vpop.f32.mrb[3].mxu1  ;;  %v612_v57 = vpop.f32.mrb[5].mxu0  ;;  %v1191_v61 = vmul.f32 0.01, %v6606_v52  ;;  %v1161_v46 = vmul.f32 0.01, %v6559_v60  ;;  %v8392_v52 = vsub.f32 %v7696_v2, %v1158_v7 }
 0x316   :  { %v1190_v3 = vmul.f32 0.01, %v923_v59  ;;  %v1160_v50 = vmul.f32 0.01, %v612_v57  ;;  %11205 = vst [vmem:[#allocation83_spill] sm:$0xff] %v8389_v39 }
 0x317   :  { %11206 = vst [vmem:[#allocation84_spill] sm:$0xff] %v8392_v52  ;;  %v8395_v60 = vsub.f32 %v7703_v4, %v1191_v61 }
 0x318   :  { %v6609_v53 = vpop.f32.mrb[4].mxu1  ;;  %v6562_v13 = vpop.f32.mrb[6].mxu0  ;;  %v8398_v59 = vsub.f32 %v7696_v2, %v1190_v3  ;;  %v8408_v57 = vsub.f32 %v7722_v9, %v1160_v50 }
 0x319   :  { %v933_v27 = vpop.f32.mrb[5].mxu1  ;;  %v622_v20 = vpop.f32.mrb[7].mxu0  ;;  %v1193_v43 = vmul.f32 0.01, %v6609_v53  ;;  %v1163_v47 = vmul.f32 0.01, %v6562_v13 }
 0x31a   :  { %v1192_v44 = vmul.f32 0.01, %v933_v27  ;;  %v1162_v37 = vmul.f32 0.01, %v622_v20  ;;  %v8405_v20 = vsub.f32 %v7727_v10, %v1161_v46 }
 0x31b   :  { %v8411_v14 = vsub.f32 %v7727_v10, %v1193_v43  ;;  %v8417_v4 = vsub.f32 %v7751_v16, %v1163_v47  ;;  %v7118_v10 = vpack.c.bf16 %v8389_v39, %v8392_v52 }
 0x31c   :  { %v6612_v63 = vpop.f32.mrb[6].mxu1  ;;  %v6565_v62 = vpop.f32.mrb[8].mxu0  ;;  %v8414_v7 = vsub.f32 %v7722_v9, %v1192_v44  ;;  %v8420_v2 = vsub.f32 %v7746_v15, %v1162_v37 }
 0x31d   :  { %v943_v56 = vpop.f32.mrb[7].mxu1  ;;  %v632_v55 = vpop.f32.mrb[9].mxu0  ;;  %v1195_v3 = vmul.f32 0.01, %v6612_v63  ;;  %v1165_v61 = vmul.f32 0.01, %v6565_v62 }
 0x31e   :  { %v1194_v13 = vmul.f32 0.01, %v943_v56  ;;  %v1164_v46 = vmul.f32 0.01, %v632_v55 }
 0x31f   :  { %v8446_v37 = vsub.f32 %v7775_v22, %v1165_v61 }
 0x320   :  { %v6615_v25 = vpop.f32.mrb[8].mxu1  ;;  %v6568_v49 = vpop.f32.mrb[10].mxu0 }
 0x321   :  { %v953_v40 = vpop.f32.mrb[9].mxu1  ;;  %v642_v8 = vpop.f32.mrb[11].mxu0  ;;  %v1197_v43 = vmul.f32 0.01, %v6615_v25  ;;  %v1167_v56 = vmul.f32 0.01, %v6568_v49  ;;  %v8443_v25 = vsub.f32 %v7746_v15, %v1194_v13 }
 0x322   :  { %v1196_v52 = vmul.f32 0.01, %v953_v40  ;;  %v1166_v39 = vmul.f32 0.01, %v642_v8  ;;  %v8452_v40 = vsub.f32 %v7770_v21, %v1164_v46 }
 0x323   :  { %v8455_v8 = vsub.f32 %v7775_v22, %v1197_v43  ;;  %v8458_v15 = vsub.f32 %v7810_v30, %v1167_v56 }
 0x324   :  { %v8368_v33 = vpop.f32.mrb[10].mxu1  ;;  %v8370_v26 = vpop.f32.mrb[12].mxu0  ;;  %v8466_v46 = vsub.f32 %v7805_v29, %v1166_v39 }
 0x325   :  { %v8372_v28 = vpop.f32.mrb[11].mxu1  ;;  %v8374_v19 = vpop.f32.mrb[13].mxu0  ;;  %v1169_v39 = vmul.f32 0.01, %v8370_v26 }
 0x326   :  { %v1198_v56 = vmul.f32 0.01, %v8372_v28 }
 0x328   :  { %v8376_v58 = vpop.f32.mrb[12].mxu1  ;;  %v8378_v54 = vpop.f32.mrb[14].mxu0 }
 0x329   :  { %v8380_v51 = vpop.f32.mrb[13].mxu1  ;;  %v8382_v45 = vpop.f32.mrb[15].mxu0 }
 0x32c   :  { %v8384_v48 = vpop.f32.mrb[14].mxu1  ;;  %v8386_v34 = vpop.f32.mrb[16].mxu0 }
 0x32d   :  { %v8400_v53 = vpop.f32.mrb[15].mxu1  ;;  %v8402_v27 = vpop.f32.mrb[17].mxu0 }
 0x330   :  { %v6580_v38 = vpop.f32.mrb[18].mxu0  ;;  %v8422_v31 = vpop.f32.mrb[16].mxu1 }
 0x331   :  { %v1175_v44 = vmul.f32 0.01, %v6580_v38  ;;  %v682_v47 = vpop.f32.mrb[19].mxu0  ;;  %v8428_v50 = vpop.f32.mrb[17].mxu1  ;;  %v8440_v38 = vsub.f32 %v7751_v16, %v1195_v3 }
 0x332   :  { %11207 = vst [vmem:[#allocation85_spill] sm:$0xff] %v8428_v50  ;;  %v1174_v62 = vmul.f32 0.01, %v682_v47  ;;  %v8463_v50 = vsub.f32 %v7770_v21, %v1196_v52 }
 0x333   :  { %v8437_v9 = vsub.f32 %v7691_v1, %v1175_v44 }
 0x334   :  { %v8449_v49 = vsub.f32 %v7686_v0, %v1174_v62  ;;  %v6583_v47 = vpop.f32.mrb[20].mxu0  ;;  %v6630_v55 = vpop.f32.mrb[18].mxu1 }
 0x335   :  { %v1177_v44 = vmul.f32 0.01, %v6583_v47  ;;  %v1207_v16 = vmul.f32 0.01, %v6630_v55  ;;  %v692_v3 = vpop.f32.mrb[21].mxu0  ;;  %v1003_v63 = vpop.f32.mrb[19].mxu1 }
 0x336   :  { %v1176_v61 = vmul.f32 0.01, %v692_v3  ;;  %v1206_v13 = vmul.f32 0.01, %v1003_v63  ;;  %v7116_v62 = vpack.c.bf16 %v8437_v9, %v8449_v49  ;;  %v1199_v55 = vmul.f32 0.01, %v8368_v33 }
 0x337   :  { %v8469_v22 = vsub.f32 %v7713_v6, %v1177_v44  ;;  %v8472_v43 = vsub.f32 %v7691_v1, %v1207_v16 }
 0x338   :  { %v8477_v63 = vsub.f32 %v7708_v5, %v1176_v61  ;;  %v8480_v47 = vsub.f32 %v7686_v0, %v1206_v13  ;;  %v6586_v21 = vpop.f32.mrb[22].mxu0  ;;  %v6633_v52 = vpop.f32.mrb[20].mxu1  ;;  %7117 = vmatprep.subr.bf16.mxu0 %v7116_v62  ;;  %v8509_v26 = vsub.f32 %v7810_v30, %v1199_v55  ;;  %v1201_v55 = vmul.f32 0.01, %v8376_v58 }
 0x339   :  { %v1179_v44 = vmul.f32 0.01, %v6586_v21  ;;  %v1209_v16 = vmul.f32 0.01, %v6633_v52  ;;  %v702_v33 = vpop.f32.mrb[23].mxu0  ;;  %v1013_v3 = vpop.f32.mrb[21].mxu1  ;;  %7119 = vmatpush3.bf16.msra.mxu0 %v7118_v10 }
 0x33a   :  { %11208 = vst [vmem:[#allocation86_spill] sm:$0xff] %v8480_v47  ;;  %v1178_v28 = vmul.f32 0.01, %v702_v33  ;;  %v1208_v61 = vmul.f32 0.01, %v1013_v3  ;;  %v7120_v0 = vpack.c.bf16 %v8469_v22, %v8477_v63  ;;  %v7148_v13 = vpack.c.bf16 %v8472_v43, %v8480_v47  ;;  %11209 = vst [vmem:[#allocation87_spill] sm:$0xff] %v8509_v26 }
 0x33b   :  { %v8494_v1 = vsub.f32 %v7737_v12, %v1179_v44  ;;  %v8497_v21 = vsub.f32 %v7713_v6, %v1209_v16  ;;  %v1168_v52 = vmul.f32 0.01, %v8374_v19  ;;  %v8512_v6 = vsub.f32 %v7805_v29, %v1198_v56 }
 0x33c   :  { %v8503_v33 = vsub.f32 %v7732_v11, %v1178_v28  ;;  %v8506_v3 = vsub.f32 %v7708_v5, %v1208_v61  ;;  %v6589_v62 = vpop.f32.mrb[24].mxu0  ;;  %v6636_v47 = vpop.f32.mrb[22].mxu1  ;;  %7121 = vmatprep.subr.bf16.mxu0 %v7120_v0  ;;  %7149 = vmatprep.subr.bf16.mxu1 %v7148_v13  ;;  %v11211_v28 = vpack.c.bf16 %v8405_v20, %v8408_v57  ;;  %v1171_v56 = vmul.f32 0.01, %v8378_v54 }
 0x33d   :  { %11210 = vst [vmem:[#allocation88_spill] sm:$0xff] %v8512_v6  ;;  %v1181_v44 = vmul.f32 0.01, %v6589_v62  ;;  %v1211_v16 = vmul.f32 0.01, %v6636_v47  ;;  %v712_v10 = vpop.f32.mrb[25].mxu0  ;;  %v11212_v5 = vpack.c.bf16 %v8395_v60, %v8398_v59  ;;  %v8541_v54 = vsub.f32 %v7835_v36, %v1169_v39 }
 0x33e   :  { %v1023_v19 = vpop.f32.mrb[23].mxu1  ;;  %7123 = vmatpush3.bf16.msra.mxu0 %v11211_v28  ;;  %v1180_v61 = vmul.f32 0.01, %v712_v10  ;;  %v7124_v30 = vpack.c.bf16 %v8494_v1, %v8503_v33  ;;  %v7152_v29 = vpack.c.bf16 %v8497_v21, %v8506_v3  ;;  %v1200_v62 = vmul.f32 0.01, %v8380_v51 }
 0x33f   :  { %7151 = vmatpush3.bf16.msra.mxu1 %v11212_v5  ;;  %v1210_v0 = vmul.f32 0.01, %v1023_v19  ;;  %v8527_v47 = vsub.f32 %v7761_v18, %v1181_v44  ;;  %v8530_v13 = vsub.f32 %v7737_v12, %v1211_v16  ;;  %v1170_v10 = vmul.f32 0.01, %v8382_v45 }
 0x340   :  { %v8535_v19 = vsub.f32 %v7756_v17, %v1180_v61  ;;  %v6592_v5 = vpop.f32.mrb[26].mxu0  ;;  %v6639_v58 = vpop.f32.mrb[24].mxu1  ;;  %7125 = vmatprep.subr.bf16.mxu0 %v7124_v30  ;;  %7153 = vmatprep.subr.bf16.mxu1 %v7152_v29  ;;  %v8544_v12 = vsub.f32 %v7830_v35, %v1168_v52  ;;  %v11217_v61 = vpack.c.bf16 %v8417_v4, %v8420_v2 }
 0x341   :  { %11213 = vst [vmem:[#allocation89_spill] sm:$0xff] %v8527_v47  ;;  %11214 = vst [vmem:[#allocation90_spill] sm:$0xff] %v8530_v13  ;;  %v8538_v28 = vsub.f32 %v7732_v11, %v1210_v0  ;;  %v1183_v44 = vmul.f32 0.01, %v6592_v5  ;;  %v1213_v51 = vmul.f32 0.01, %v6639_v58  ;;  %v11218_v11 = vpack.c.bf16 %v8411_v14, %v8414_v7 }
 0x342   :  { %11215 = vst [vmem:[#allocation91_spill] sm:$0xff] %v8535_v19  ;;  %v722_v16 = vpop.f32.mrb[27].mxu0  ;;  %v1033_v45 = vpop.f32.mrb[25].mxu1  ;;  %7127 = vmatpush3.bf16.msra.mxu0 %v11217_v61  ;;  %v7128_v39 = vpack.c.bf16 %v8527_v47, %v8535_v19  ;;  %v8559_v5 = vsub.f32 %v7835_v36, %v1201_v55  ;;  %v8577_v36 = vsub.f32 %v7830_v35, %v1200_v62 }
 0x343   :  { %11216 = vst [vmem:[#allocation92_spill] sm:$0xff] %v8538_v28  ;;  %7155 = vmatpush3.bf16.msra.mxu1 %v11218_v11  ;;  %v1182_v0 = vmul.f32 0.01, %v722_v16  ;;  %v1212_v30 = vmul.f32 0.01, %v1033_v45  ;;  %v7156_v52 = vpack.c.bf16 %v8530_v13, %v8538_v28  ;;  %v8562_v58 = vsub.f32 %v7785_v24, %v1183_v44 }
 0x344   :  { %11219 = vst [vmem:[#allocation93_spill] sm:$0xff] %v8559_v5  ;;  %v8565_v61 = vsub.f32 %v7761_v18, %v1213_v51  ;;  %v8568_v16 = vsub.f32 %v7859_v42, %v1171_v56  ;;  %v6595_v28 = vpop.f32.mrb[28].mxu0  ;;  %v6642_v29 = vpop.f32.mrb[26].mxu1  ;;  %7129 = vmatprep.subr.bf16.mxu0 %v7128_v39  ;;  %11225 = vst [vmem:[#allocation99_spill] sm:$0xff] %v8577_v36  ;;  %v8580_v55 = vsub.f32 %v7854_v41, %v1170_v10 }
 0x345   :  { %11220 = vst [vmem:[#allocation94_spill] sm:$0xff] %v8562_v58  ;;  %v8571_v45 = vsub.f32 %v7780_v23, %v1182_v0  ;;  %v8574_v11 = vsub.f32 %v7756_v17, %v1212_v30  ;;  %7157 = vmatprep.subr.bf16.mxu1 %v7156_v52  ;;  %v1185_v18 = vmul.f32 0.01, %v6595_v28  ;;  %v1215_v44 = vmul.f32 0.01, %v6642_v29  ;;  %v732_v56 = vpop.f32.mrb[29].mxu0 }
 0x346   :  { %11221 = vst [vmem:[#allocation95_spill] sm:$0xff] %v8565_v61  ;;  %11222 = vst [vmem:[#allocation96_spill] sm:$0xff] %v8568_v16  ;;  %v1043_v51 = vpop.f32.mrb[27].mxu1  ;;  %v11227_v0 = vpack.c.bf16 %v8446_v37, %v8452_v40  ;;  %v11228_v17 = vpack.c.bf16 %v8440_v38, %v8443_v25  ;;  %v1184_v30 = vmul.f32 0.01, %v732_v56 }
 0x347   :  { %11223 = vst [vmem:[#allocation97_spill] sm:$0xff] %v8571_v45  ;;  %11224 = vst [vmem:[#allocation98_spill] sm:$0xff] %v8574_v11  ;;  %v1214_v39 = vmul.f32 0.01, %v1043_v51  ;;  %v7132_v35 = vpack.c.bf16 %v8562_v58, %v8571_v45  ;;  %v7160_v62 = vpack.c.bf16 %v8565_v61, %v8574_v11  ;;  %v1203_v10 = vmul.f32 0.01, %v8384_v48 }
 0x348   :  { %11226 = vst [vmem:[#allocation100_spill] sm:$0xff] %v8580_v55  ;;  %7131 = vmatpush3.bf16.msra.mxu0 %v11227_v0  ;;  %7159 = vmatpush3.bf16.msra.mxu1 %v11228_v17  ;;  %v1173_v28 = vmul.f32 0.01, %v8386_v34  ;;  %v8595_v52 = vsub.f32 %v7820_v32, %v1185_v18  ;;  %v8598_v29 = vsub.f32 %v7785_v24, %v1215_v44  ;;  %v1202_v0 = vmul.f32 0.01, %v8400_v53  ;;  %v11231_v51 = vld [vmem:[#allocation7_spill] sm:$0xff] }
 0x349   :  { %v1172_v56 = vmul.f32 0.01, %v8402_v27  ;;  %v8603_v17 = vsub.f32 %v11231_v51, %v1184_v30  ;;  %v8606_v45 = vsub.f32 %v7780_v23, %v1214_v39  ;;  %v6598_v11 = vpop.f32.mrb[30].mxu0  ;;  %v6645_v48 = vpop.f32.mrb[28].mxu1  ;;  %7133 = vmatprep.subr.bf16.mxu0 %v7132_v35  ;;  %7161 = vmatprep.subr.bf16.mxu1 %v7160_v62  ;;  %v7138_v34 = vpack.c.bf16 %v8541_v54, %v8544_v12  ;;  %v11253_v58 = vld [vmem:[#allocation10_spill] sm:$0xff] }
 0x34a   :  { %11229 = vst [vmem:[#allocation101_spill] sm:$0xff] %v8595_v52  ;;  %11230 = vst [vmem:[#allocation102_spill] sm:$0xff] %v8598_v29  ;;  %v7170_v24 = vpack.c.bf16 %v8559_v5, %v8577_v36  ;;  %v1187_v18 = vmul.f32 0.01, %v6598_v11  ;;  %v1217_v53 = vmul.f32 0.01, %v6645_v48  ;;  %v11234_v30 = vpack.c.bf16 %v8458_v15, %v8466_v46 }
 0x34b   :  { %11232 = vst [vmem:[#allocation7_spill] sm:$0xff] %v8603_v17  ;;  %11233 = vst [vmem:[#allocation103_spill] sm:$0xff] %v8606_v45  ;;  %v742_v44 = vpop.f32.mrb[31].mxu0  ;;  %v1053_v27 = vpop.f32.mrb[29].mxu1  ;;  %v11235_v23 = vpack.c.bf16 %v8455_v8, %v8463_v50  ;;  %v7136_v62 = vpack.c.bf16 %v8595_v52, %v8603_v17  ;;  %v7164_v36 = vpack.c.bf16 %v8598_v29, %v8606_v45  ;;  %v11237_v5 = vld [vmem:[#allocation9_spill] sm:$0xff] }
 0x34c   :  { %7135 = vmatpush3.bf16.msra.mxu0 %v11234_v30  ;;  %v1186_v39 = vmul.f32 0.01, %v742_v44  ;;  %v1216_v35 = vmul.f32 0.01, %v1053_v27  ;;  %v7142_v11 = vpack.c.bf16 %v8568_v16, %v8580_v55  ;;  %v8625_v48 = vsub.f32 %v7859_v42, %v1203_v10  ;;  %v11240_v44 = vld [vmem:[#allocation13_spill] sm:$0xff]  ;;  %v6601_v29 = vpop.f32.mrb[32].mxu0 }
 0x34d   :  { %7163 = vmatpush3.bf16.msra.mxu1 %v11235_v23  ;;  %v8628_v30 = vsub.f32 %v11237_v5, %v1187_v18  ;;  %v8631_v61 = vsub.f32 %v7820_v32, %v1217_v53  ;;  %v8634_v27 = vsub.f32 %v11240_v44, %v1173_v28  ;;  %v11242_v23 = vld [vmem:[#allocation8_spill] sm:$0xff]  ;;  %v6648_v52 = vpop.f32.mrb[30].mxu1  ;;  %7137 = vmatprep.subr.bf16.mxu0 %v7136_v62  ;;  %v1189_v32 = vmul.f32 0.01, %v6601_v29  ;;  %v752_v28 = vpop.f32.mrb[33].mxu0 }
 0x34e   :  { %11236 = vst [vmem:[#allocation104_spill] sm:$0xff] %v8625_v48  ;;  %v8637_v17 = vsub.f32 %v11242_v23, %v1186_v39  ;;  %v8640_v45 = vsub.f32 %v11231_v51, %v1216_v35  ;;  %7165 = vmatprep.subr.bf16.mxu1 %v7164_v36  ;;  %v8643_v42 = vsub.f32 %v7854_v41, %v1202_v0  ;;  %v11246_v10 = vld [vmem:[#allocation12_spill] sm:$0xff]  ;;  %v1219_v53 = vmul.f32 0.01, %v6648_v52  ;;  %v1063_v55 = vpop.f32.mrb[31].mxu1  ;;  %v11250_v52 = vld [vmem:[#allocation11_spill] sm:$0xff] }
 0x34f   :  { %11238 = vst [vmem:[#allocation9_spill] sm:$0xff] %v8628_v30  ;;  %11239 = vst [vmem:[#allocation105_spill] sm:$0xff] %v8631_v61  ;;  %v8646_v18 = vsub.f32 %v11246_v10, %v1172_v56  ;;  %v11248_v39 = vpack.c.bf16 %v8509_v26, %v8512_v6  ;;  %v1188_v51 = vmul.f32 0.01, %v752_v28  ;;  %v1218_v35 = vmul.f32 0.01, %v1063_v55 }
 0x350   :  { %11241 = vst [vmem:[#allocation13_spill] sm:$0xff] %v8634_v27  ;;  %11243 = vst [vmem:[#allocation8_spill] sm:$0xff] %v8637_v17  ;;  %7139 = vmatpush3.bf16.msra.mxu0 %v7138_v34  ;;  %v7140_v36 = vpack.c.bf16 %v8628_v30, %v8637_v17  ;;  %v7168_v41 = vpack.c.bf16 %v8631_v61, %v8640_v45  ;;  %v1205_v0 = vmul.f32 0.01, %v8422_v31  ;;  %v11249_v56 = vld [vmem:[#allocation85_spill] sm:$0xff]  ;;  %v6651_v28 = vpop.f32.mrb[32].mxu1 }
 0x351   :  { %11244 = vst [vmem:[#allocation106_spill] sm:$0xff] %v8640_v45  ;;  %11245 = vst [vmem:[#allocation107_spill] sm:$0xff] %v8643_v42  ;;  %7167 = vmatpush3.bf16.msra.mxu1 %v11248_v39  ;;  %v1204_v29 = vmul.f32 0.01, %v11249_v56  ;;  %v8658_v62 = vsub.f32 %v11250_v52, %v1189_v32  ;;  %v8661_v34 = vsub.f32 %v11237_v5, %v1219_v53  ;;  %v1221_v45 = vmul.f32 0.01, %v6651_v28 }
 0x352   :  { %11247 = vst [vmem:[#allocation12_spill] sm:$0xff] %v8646_v18  ;;  %v8664_v39 = vsub.f32 %v11253_v58, %v1188_v51  ;;  %v8667_v55 = vsub.f32 %v11242_v23, %v1218_v35  ;;  %7141 = vmatprep.subr.bf16.mxu0 %v7140_v36  ;;  %7169 = vmatprep.subr.bf16.mxu1 %v7168_v41  ;;  %v1073_v17 = vpop.f32.mrb[33].mxu1  ;;  %v11260_v36 = vld [vmem:[#allocation14_spill] sm:$0xff] }
 0x353   :  { %11251 = vst [vmem:[#allocation85_spill] sm:$0xff] %v8658_v62  ;;  %11252 = vst [vmem:[#allocation11_spill] sm:$0xff] %v8661_v34  ;;  %v7174_v31 = vpack.c.bf16 %v8625_v48, %v8643_v42  ;;  %v1220_v32 = vmul.f32 0.01, %v1073_v17  ;;  %v7146_v23 = vpack.c.bf16 %v8634_v27, %v8646_v18  ;;  %v8678_v51 = vsub.f32 %v11240_v44, %v1205_v0 }
 0x354   :  { %11254 = vst [vmem:[#allocation10_spill] sm:$0xff] %v8664_v39  ;;  %11255 = vst [vmem:[#allocation108_spill] sm:$0xff] %v8667_v55  ;;  %7143 = vmatpush3.bf16.msra.mxu0 %v7142_v11  ;;  %v7144_v5 = vpack.c.bf16 %v8658_v62, %v8664_v39  ;;  %v7172_v53 = vpack.c.bf16 %v8661_v34, %v8667_v55  ;;  %v8681_v35 = vsub.f32 %v11246_v10, %v1204_v29  ;;  %v11261_v10 = vld [vmem:[#allocation17_spill] sm:$0xff]  ;;  %v5536_v29 = vld [vmem:[#allocation3] ss:$0 sm:$0xff] }
 0x355   :  { %7171 = vmatpush3.bf16.msra.mxu1 %v7170_v24  ;;  %11256 = vst [vmem:[#allocation109_spill] sm:$0xff] %v8678_v51  ;;  %v8684_v24 = vsub.f32 %v11250_v52, %v1221_v45  ;;  %v8687_v17 = vsub.f32 %v11253_v58, %v1220_v32  ;;  %v11262_v45 = vld [vmem:[#allocation15_spill] sm:$0xff]  ;;  %v11263_v58 = vld [vmem:[#allocation18_spill] sm:$0xff] }
 0x356   :  { %11257 = vst [vmem:[#allocation110_spill] sm:$0xff] %v8681_v35  ;;  %7145 = vmatprep.subr.bf16.mxu0 %v7144_v5  ;;  %7173 = vmatprep.subr.bf16.mxu1 %v7172_v53  ;;  %v7178_v44 = vpack.c.bf16 %v8678_v51, %v8681_v35  ;;  %v11264_v5 = vld [vmem:[#allocation16_spill] sm:$0xff] }
 0x357   :  { %11258 = vst [vmem:[#allocation111_spill] sm:$0xff] %v8684_v24  ;;  %11259 = vst [vmem:[#allocation112_spill] sm:$0xff] %v8687_v17  ;;  %v7176_v11 = vpack.c.bf16 %v8684_v24, %v8687_v17 }
 0x358   :  { %7147 = vmatpush3.bf16.msra.mxu0 %v7146_v23  ;;  %v5537_v23 = vld [vmem:[#allocation3 + $0x1] ss:$0 sm:$0xff] }
 0x359   :  { %7175 = vmatpush3.bf16.msra.mxu1 %v7174_v31 }
 0x35a   :  { %7177 = vmatprep.subr.bf16.mxu1 %v7176_v11 }
 0x35b   :  { %1501 = vmatmul.mubr.f32.vlgmr.msra.gmra.mrb[34].mxu0 %v11260_v36 }
 0x35c   :  { %6654 = vmatprep.mubr.msk.f32.mxu0 %vm439_vm1, %v11261_v10 }
 0x35d   :  { %7179 = vmatpush3.bf16.msra.mxu1 %v7178_v44 }
 0x360   :  { %1571 = vmatmul.mubr.f32.vlgmr.msra.gmra.mrb[34].mxu1 %v11262_v45 }
 0x361   :  { %6704 = vmatprep.mubr.msk.f32.mxu1 %vm439_vm1, %v11263_v58 }
 0x42e   :  { %v5970_v41 = vpop.f32.mrb[34].mxu0 }
 0x42f   :  { %v5971_v0 = vpop.f32.mrb[35].mxu0 }
 0x430   :  { %v5972_v56 = vadd.f32 %v5971_v0, %v5970_v41 }
 0x432   :  { %v1503_v52 = vadd.f32 %v5972_v56, %v5536_v29 }
 0x433   :  { %v6005_v28 = vpop.f32.mrb[34].mxu1 }
 0x434   :  { %v6006_v31 = vpop.f32.mrb[35].mxu1  ;;  %v1576_v53 = vadd.f32 %v1503_v52, %v11264_v5 }
 0x435   :  { %v6007_v32 = vadd.f32 %v6006_v31, %v6005_v28 }
 0x436   :  { %1578 = vmax.xlane.f32.xlu0 %v1576_v53 }
 0x437   :  { %v1573_v11 = vadd.f32 %v6007_v32, %v5537_v23  ;;  %v11265_v32 = vld [vmem:[#allocation19_spill] sm:$0xff] }
 0x439   :  { %v1577_v44 = vadd.f32 %v1573_v11, %v11264_v5 }
 0x43b   :  { %1580 = vmax.xlane.f32.xlu1 %v1577_v44 }
 0x4c3   :  { %v1579_v36 = vpop.xlane.xlu0 %1578 }
 0x4c4   :  { %v1582_v10 = vsub.f32 %v1576_v53, %v1579_v36 }
 0x4c6   :  { %v1584_v45 = vmul.f32 1.442695, %v1582_v10 }
 0x4c8   :  { %v1581_v58 = vpop.xlane.xlu1 %1580  ;;  %7448 = vpow2.f32 %v1584_v45 }
 0x4c9   :  { %v1583_v17 = vsub.f32 %v1577_v44, %v1581_v58  ;;  %v11266_v44 = vld [vmem:[#allocation20_spill] sm:$0xff]  ;;  %v11267_v58 = vld [vmem:[#allocation21_spill] sm:$0xff] }
 0x4cb   :  { %v1586_v41 = vmul.f32 1.442695, %v1583_v17 }
 0x4cd   :  { %7450 = vpow2.f32 %v1586_v41 }
 0x4d2   :  { %v7449_v0 = vpop.eup %7448 }
 0x4d3   :  { %1588 = vadd.xlane.f32.xlu0 %v7449_v0 }
 0x4d7   :  { %v7451_v56 = vpop.eup %7450 }
 0x4d8   :  { %1590 = vadd.xlane.f32.xlu1 %v7451_v56 }
 0x560   :  { %v1589_v29 = vpop.xlane.xlu0 %1588 }
 0x561   :  { %7452 = vrcp.f32 %v1589_v29  ;;  %v11268_v29 = vld [vmem:[#allocation22_spill] sm:$0xff] }
 0x565   :  { %v1591_v52 = vpop.xlane.xlu1 %1590 }
 0x566   :  { %7454 = vrcp.f32 %v1591_v52 }
 0x56b   :  { %v7453_v28 = vpop.eup %7452 }
 0x56c   :  { %v1593_v31 = vmul.f32 %v7453_v28, %v7449_v0 }
 0x56e   :  { %v1596_v23 = vsub.f32 %v1593_v31, %v11265_v32  ;;  %v11270_v32 = vld [vmem:[#allocation24_spill] sm:$0xff] }
 0x570   :  { %v7455_v11 = vpop.eup %7454  ;;  %v1598_v53 = vmul.f32 0.125, %v1596_v23  ;;  %v11271_v23 = vld [vmem:[#allocation25_spill] sm:$0xff] }
 0x571   :  { %v1595_v36 = vmul.f32 %v7455_v11, %v7451_v56  ;;  %v11269_v56 = vld [vmem:[#allocation23_spill] sm:$0xff]  ;;  %v11272_v11 = vld [vmem:[#allocation26_spill] sm:$0xff] }
 0x572   :  { %6652 = vmatprep.subr.mxu0 %v1598_v53  ;;  %v2050_v10 = vrot.slane %v1598_v53, 4 }
 0x573   :  { %v1597_v17 = vsub.f32 %v1595_v36, %v11266_v44  ;;  %6653 = vmatpush3.msra.mxu0 %v1598_v53 }
 0x574   :  { %v2051_v45 = vadd.f32 %v2050_v10, %v1598_v53  ;;  %6655 = vmatmul.mubr.msk.f32.vlgmr.msra.gmra.mrb[36].mxu0 %vm439_vm1, %v11267_v58  ;;  %v11275_v58 = vld [vmem:[#allocation29_spill] sm:$0xff] }
 0x575   :  { %v1599_v41 = vmul.f32 0.125, %v1597_v17  ;;  %6657 = vmatprep.mubr.msk.f32.mxu0 %vm439_vm1, %v11268_v29  ;;  %v11273_v17 = vld [vmem:[#allocation27_spill] sm:$0xff] }
 0x576   :  { %v2052_v52 = vrot.slane %v2051_v45, 2 }
 0x577   :  { %6702 = vmatprep.subr.mxu1 %v1599_v41  ;;  %v2056_v0 = vrot.slane %v1599_v41, 4 }
 0x578   :  { %6703 = vmatpush3.msra.mxu1 %v1599_v41  ;;  %v2053_v28 = vadd.f32 %v2052_v52, %v2051_v45  ;;  %6658 = vmatmul.mubr.msk.f32.gmra.mrb[38].mxu0 %vm439_vm1, %v11269_v56  ;;  %v11274_v45 = vld [vmem:[#allocation28_spill] sm:$0xff] }
 0x579   :  { %v2057_v31 = vadd.f32 %v2056_v0, %v1599_v41  ;;  %6705 = vmatmul.mubr.msk.f32.vlgmr.msra.gmra.mrb[36].mxu1 %vm439_vm1, %v11270_v32  ;;  %6660 = vmatprep.mubr.msk.f32.mxu0 %vm439_vm1, %v11271_v23  ;;  %v11276_v41 = vld [vmem:[#allocation30_spill] sm:$0xff]  ;;  %v2318_v0 = vld [vmem:[#allocation3] sm:$0x1]  ;;  %v11277_v23 = vld [vmem:[#allocation31_spill] sm:$0xff] }
 0x57a   :  { %6707 = vmatprep.mubr.msk.f32.mxu1 %vm439_vm1, %v11272_v11  ;;  %v2054_v53 = vrot.slane %v2053_v28, 1  ;;  %v11280_v11 = vld [vmem:[#allocation34_spill] sm:$0xff] }
 0x57b   :  { %v2058_v36 = vrot.slane %v2057_v31, 2 }
 0x57c   :  { %v2055_v10 = vadd.f32 %v2054_v53, %v2053_v28  ;;  %6661 = vmatmul.mubr.msk.f32.gmra.mrb[40].mxu0 %vm439_vm1, %v11273_v17  ;;  %v11278_v28 = vld [vmem:[#allocation32_spill] sm:$0xff]  ;;  %v11281_v17 = vld [vmem:[#allocation35_spill] sm:$0xff] }
 0x57d   :  { %v2059_v44 = vadd.f32 %v2058_v36, %v2057_v31  ;;  %6708 = vmatmul.mubr.msk.f32.gmra.mrb[38].mxu1 %vm439_vm1, %v11274_v45  ;;  %6663 = vmatprep.mubr.msk.f32.mxu0 %vm439_vm1, %v11275_v58  ;;  %v11279_v31 = vld [vmem:[#allocation33_spill] sm:$0xff]  ;;  %v2319_v36 = vld [vmem:[#allocation3 + $0x1] sm:$0x1]  ;;  %v11284_v58 = vld [vmem:[#allocation38_spill] sm:$0xff] }
 0x57e   :  { %6710 = vmatprep.mubr.msk.f32.mxu1 %vm439_vm1, %v11276_v41  ;;  %v2320_v29 = vmul.f32 0.01, %v2055_v10  ;;  %v11283_v45 = vld [vmem:[#allocation37_spill] sm:$0xff]  ;;  %v11285_v41 = vld [vmem:[#allocation39_spill] sm:$0xff] }
 0x57f   :  { %v2060_v52 = vrot.slane %v2059_v44, 1 }
 0x580   :  { %v2322_v56 = vsub.f32 %v2318_v0, %v2320_v29  ;;  %6664 = vmatmul.mubr.msk.f32.gmra.mrb[42].mxu0 %vm439_vm1, %v11277_v23  ;;  %v11286_v29 = vld [vmem:[#allocation40_spill] sm:$0xff]  ;;  %v11288_v0 = vld [vmem:[#allocation42_spill] sm:$0xff]  ;;  %v11291_v23 = vld [vmem:[#allocation45_spill] sm:$0xff] }
 0x581   :  { %v2061_v32 = vadd.f32 %v2060_v52, %v2059_v44  ;;  %6711 = vmatmul.mubr.msk.f32.gmra.mrb[40].mxu1 %vm439_vm1, %v11278_v28  ;;  %6666 = vmatprep.mubr.msk.f32.mxu0 %vm439_vm1, %v11279_v31  ;;  %v11282_v44 = vld [vmem:[#allocation36_spill] sm:$0xff]  ;;  %v11287_v52 = vld [vmem:[#allocation41_spill] sm:$0xff]  ;;  %v11292_v28 = vld [vmem:[#allocation46_spill] sm:$0xff] }
 0x582   :  { %6713 = vmatprep.mubr.msk.f32.mxu1 %vm439_vm1, %v11280_v11  ;;  %2324 = vst [vmem:[#allocation3] sm:$0x1] %v2322_v56  ;;  %v11289_v56 = vld [vmem:[#allocation43_spill] sm:$0xff]  ;;  %v11294_v11 = vld [vmem:[#allocation48_spill] sm:$0xff] }
 0x583   :  { %v2321_v53 = vmul.f32 0.01, %v2061_v32  ;;  %v11290_v32 = vld [vmem:[#allocation44_spill] sm:$0xff]  ;;  %v11293_v31 = vld [vmem:[#allocation47_spill] sm:$0xff] }
 0x584   :  { %6667 = vmatmul.mubr.msk.f32.gmra.mrb[44].mxu0 %vm439_vm1, %v11281_v17  ;;  %v11298_v17 = vld [vmem:[#allocation52_spill] sm:$0xff] }
 0x585   :  { %v2323_v10 = vsub.f32 %v2319_v36, %v2321_v53  ;;  %6714 = vmatmul.mubr.msk.f32.gmra.mrb[42].mxu1 %vm439_vm1, %v11282_v44  ;;  %6669 = vmatprep.mubr.msk.f32.mxu0 %vm439_vm1, %v11283_v45  ;;  %v11295_v53 = vld [vmem:[#allocation49_spill] sm:$0xff]  ;;  %v11296_v36 = vld [vmem:[#allocation50_spill] sm:$0xff] }
 0x586   :  { %6716 = vmatprep.mubr.msk.f32.mxu1 %vm439_vm1, %v11284_v58  ;;  %v11299_v44 = vld [vmem:[#allocation53_spill] sm:$0xff]  ;;  %v11300_v45 = vld [vmem:[#allocation54_spill] sm:$0xff]  ;;  %v11301_v58 = vld [vmem:[#allocation55_spill] sm:$0xff] }
 0x587   :  { %2325 = vst [vmem:[#allocation3 + $0x1] sm:$0x1] %v2323_v10  ;;  %v11297_v10 = vld [vmem:[#allocation51_spill] sm:$0xff] }
 0x588   :  { %6670 = vmatmul.mubr.msk.f32.gmra.mrb[46].mxu0 %vm439_vm1, %v11285_v41  ;;  %v11302_v41 = vld [vmem:[#allocation56_spill] sm:$0xff] }
 0x589   :  { %6717 = vmatmul.mubr.msk.f32.gmra.mrb[44].mxu1 %vm439_vm1, %v11286_v29  ;;  %6672 = vmatprep.mubr.msk.f32.mxu0 %vm439_vm1, %v11287_v52  ;;  %v11303_v29 = vld [vmem:[#allocation57_spill] sm:$0xff]  ;;  %v11304_v52 = vld [vmem:[#allocation58_spill] sm:$0xff] }
 0x58a   :  { %6719 = vmatprep.mubr.msk.f32.mxu1 %vm439_vm1, %v11288_v0  ;;  %v11305_v0 = vld [vmem:[#allocation59_spill] sm:$0xff] }
 0x58c   :  { %6673 = vmatmul.mubr.msk.f32.gmra.mrb[48].mxu0 %vm439_vm1, %v11289_v56  ;;  %v11306_v56 = vld [vmem:[#allocation60_spill] sm:$0xff] }
 0x58d   :  { %6720 = vmatmul.mubr.msk.f32.gmra.mrb[46].mxu1 %vm439_vm1, %v11290_v32  ;;  %6675 = vmatprep.mubr.msk.f32.mxu0 %vm439_vm1, %v11291_v23  ;;  %v11307_v32 = vld [vmem:[#allocation61_spill] sm:$0xff]  ;;  %v11308_v23 = vld [vmem:[#allocation62_spill] sm:$0xff] }
 0x58e   :  { %6722 = vmatprep.mubr.msk.f32.mxu1 %vm439_vm1, %v11292_v28  ;;  %v11309_v28 = vld [vmem:[#allocation63_spill] sm:$0xff] }
 0x590   :  { %6676 = vmatmul.mubr.msk.f32.gmra.mrb[50].mxu0 %vm439_vm1, %v11293_v31  ;;  %v11310_v31 = vld [vmem:[#allocation64_spill] sm:$0xff] }
 0x591   :  { %6723 = vmatmul.mubr.msk.f32.gmra.mrb[48].mxu1 %vm439_vm1, %v11294_v11  ;;  %6678 = vmatprep.mubr.msk.f32.mxu0 %vm439_vm1, %v11295_v53  ;;  %v11311_v11 = vld [vmem:[#allocation65_spill] sm:$0xff]  ;;  %v11312_v53 = vld [vmem:[#allocation66_spill] sm:$0xff] }
 0x592   :  { %6725 = vmatprep.mubr.msk.f32.mxu1 %vm439_vm1, %v11296_v36  ;;  %v11313_v36 = vld [vmem:[#allocation67_spill] sm:$0xff] }
 0x594   :  { %6679 = vmatmul.mubr.msk.f32.gmra.mrb[52].mxu0 %vm439_vm1, %v11297_v10  ;;  %v11314_v10 = vld [vmem:[#allocation68_spill] sm:$0xff] }
 0x595   :  { %6726 = vmatmul.mubr.msk.f32.gmra.mrb[50].mxu1 %vm439_vm1, %v11298_v17  ;;  %6681 = vmatprep.mubr.msk.f32.mxu0 %vm439_vm1, %v11299_v44  ;;  %v11315_v17 = vld [vmem:[#allocation69_spill] sm:$0xff]  ;;  %v11316_v44 = vld [vmem:[#allocation70_spill] sm:$0xff] }
 0x596   :  { %6728 = vmatprep.mubr.msk.f32.mxu1 %vm439_vm1, %v11300_v45  ;;  %v11317_v45 = vld [vmem:[#allocation71_spill] sm:$0xff] }
 0x598   :  { %6682 = vmatmul.mubr.msk.f32.gmra.mrb[54].mxu0 %vm439_vm1, %v11301_v58  ;;  %v11318_v58 = vld [vmem:[#allocation72_spill] sm:$0xff] }
 0x599   :  { %6729 = vmatmul.mubr.msk.f32.gmra.mrb[52].mxu1 %vm439_vm1, %v11302_v41  ;;  %6684 = vmatprep.mubr.msk.f32.mxu0 %vm439_vm1, %v11303_v29  ;;  %v11319_v41 = vld [vmem:[#allocation73_spill] sm:$0xff]  ;;  %v11320_v29 = vld [vmem:[#allocation74_spill] sm:$0xff] }
 0x59a   :  { %6731 = vmatprep.mubr.msk.f32.mxu1 %vm439_vm1, %v11304_v52  ;;  %v11321_v52 = vld [vmem:[#allocation75_spill] sm:$0xff] }
 0x59c   :  { %6685 = vmatmul.mubr.msk.f32.gmra.mrb[56].mxu0 %vm439_vm1, %v11305_v0  ;;  %v11322_v0 = vld [vmem:[#allocation76_spill] sm:$0xff] }
 0x59d   :  { %6732 = vmatmul.mubr.msk.f32.gmra.mrb[54].mxu1 %vm439_vm1, %v11306_v56  ;;  %6687 = vmatprep.mubr.msk.f32.mxu0 %vm439_vm1, %v11307_v32  ;;  %v11323_v56 = vld [vmem:[#allocation77_spill] sm:$0xff]  ;;  %v11324_v32 = vld [vmem:[#allocation78_spill] sm:$0xff] }
 0x59e   :  { %6734 = vmatprep.mubr.msk.f32.mxu1 %vm439_vm1, %v11308_v23  ;;  %v11325_v23 = vld [vmem:[#allocation79_spill] sm:$0xff] }
 0x5a0   :  { %6688 = vmatmul.mubr.msk.f32.gmra.mrb[58].mxu0 %vm439_vm1, %v11309_v28  ;;  %v11326_v28 = vld [vmem:[#allocation80_spill] sm:$0xff] }
 0x5a1   :  { %6735 = vmatmul.mubr.msk.f32.gmra.mrb[56].mxu1 %vm439_vm1, %v11310_v31  ;;  %6690 = vmatprep.mubr.msk.f32.mxu0 %vm439_vm1, %v11311_v11  ;;  %v11327_v31 = vld [vmem:[#allocation81_spill] sm:$0xff] }
 0x5a2   :  { %6737 = vmatprep.mubr.msk.f32.mxu1 %vm439_vm1, %v11312_v53  ;;  %v8828_v11 = vld [vmem:[%s10836_s0 + $0x8] sm:$0xff] }
 0x5a3   :  { %11328 = vst [vmem:[#allocation14_spill] sm:$0xff] %v8828_v11  ;;  %v11329_v53 = vld [vmem:[#allocation82_spill] sm:$0xff] }
 0x5a4   :  { %6691 = vmatmul.mubr.msk.f32.gmra.mrb[60].mxu0 %vm439_vm1, %v11313_v36  ;;  %v8836_v36 = vld [vmem:[%s10836_s0 + $0x18] sm:$0xff] }
 0x5a5   :  { %6738 = vmatmul.mubr.msk.f32.gmra.mrb[58].mxu1 %vm439_vm1, %v11314_v10  ;;  %6693 = vmatprep.mubr.msk.f32.mxu0 %vm439_vm1, %v11315_v17  ;;  %11330 = vst [vmem:[#allocation17_spill] sm:$0xff] %v8836_v36 }
 0x5a6   :  { %6740 = vmatprep.mubr.msk.f32.mxu1 %vm439_vm1, %v11316_v44 }
 0x5a8   :  { %6694 = vmatmul.mubr.msk.f32.gmra.mrb[62].mxu0 %vm439_vm1, %v11317_v45 }
 0x5a9   :  { %6741 = vmatmul.mubr.msk.f32.gmra.mrb[60].mxu1 %vm439_vm1, %v11318_v58  ;;  %6696 = vmatprep.mubr.msk.f32.mxu0 %vm439_vm1, %v11319_v41 }
 0x5aa   :  { %6743 = vmatprep.mubr.msk.f32.mxu1 %vm439_vm1, %v11320_v29 }
 0x5ac   :  { %6697 = vmatmul.mubr.msk.f32.gmra.mrb[64].mxu0 %vm439_vm1, %v11321_v52 }
 0x5ad   :  { %6744 = vmatmul.mubr.msk.f32.gmra.mrb[62].mxu1 %vm439_vm1, %v11322_v0  ;;  %6699 = vmatprep.mubr.msk.f32.mxu0 %vm439_vm1, %v11323_v56 }
 0x5ae   :  { %6746 = vmatprep.mubr.msk.f32.mxu1 %vm439_vm1, %v11324_v32 }
 0x5b0   :  { %6700 = vmatmul.mubr.msk.f32.gmra.mrb[66].mxu0 %vm439_vm1, %v11325_v23 }
 0x5b1   :  { %6747 = vmatmul.mubr.msk.f32.gmra.mrb[64].mxu1 %vm439_vm1, %v11326_v28  ;;  %2468 = vmatprep.mubr.f32.mxu0 %v8828_v11 }
 0x5b2   :  { %6749 = vmatprep.mubr.msk.f32.mxu1 %vm439_vm1, %v11327_v31 }
 0x5b5   :  { %6750 = vmatmul.mubr.msk.f32.gmra.mrb[66].mxu1 %vm439_vm1, %v11329_v53 }
 0x5b6   :  { %2538 = vmatprep.mubr.f32.mxu1 %v8836_v36 }
 0x647   :  { %v6656_v10 = vpop.f32.mrb[36].mxu0 }
 0x648   :  { %v1666_v17 = vpop.f32.mrb[37].mxu0  ;;  %v2127_v39 = vmul.f32 0.01, %v6656_v10 }
 0x649   :  { %v2126_v34 = vmul.f32 0.01, %v1666_v17  ;;  %v11333_v17 = vld [vmem:[#allocation83_spill] sm:$0xff] }
 0x64b   :  { %v6659_v44 = vpop.f32.mrb[38].mxu0 }
 0x64c   :  { %v6706_v45 = vpop.f32.mrb[36].mxu1  ;;  %v1676_v58 = vpop.f32.mrb[39].mxu0  ;;  %v2129_v62 = vmul.f32 0.01, %v6659_v44  ;;  %v8860_v44 = vsub.f32 %v11333_v17, %v2127_v39 }
 0x64d   :  { %v1891_v41 = vpop.f32.mrb[37].mxu1  ;;  %v2159_v48 = vmul.f32 0.01, %v6706_v45  ;;  %v2128_v61 = vmul.f32 0.01, %v1676_v58 }
 0x64e   :  { %v2158_v16 = vmul.f32 0.01, %v1891_v41  ;;  %v8866_v45 = vsub.f32 %v8405_v20, %v2129_v62 }
 0x64f   :  { %v6662_v29 = vpop.f32.mrb[40].mxu0  ;;  %v8869_v58 = vsub.f32 %v8408_v57, %v2128_v61 }
 0x650   :  { %v6709_v52 = vpop.f32.mrb[38].mxu1  ;;  %v1686_v0 = vpop.f32.mrb[41].mxu0  ;;  %v2131_v6 = vmul.f32 0.01, %v6662_v29 }
 0x651   :  { %v1901_v56 = vpop.f32.mrb[39].mxu1  ;;  %v2130_v26 = vmul.f32 0.01, %v1686_v0  ;;  %v2161_v19 = vmul.f32 0.01, %v6709_v52  ;;  %v8876_v52 = vsub.f32 %v8395_v60, %v2159_v48  ;;  %v8879_v0 = vsub.f32 %v8398_v59, %v2158_v16 }
 0x652   :  { %v2160_v13 = vmul.f32 0.01, %v1901_v56  ;;  %v8882_v39 = vsub.f32 %v8417_v4, %v2131_v6  ;;  %v7186_v4 = vpack.c.bf16 %v8866_v45, %v8869_v58 }
 0x653   :  { %v6665_v32 = vpop.f32.mrb[42].mxu0  ;;  %v8888_v20 = vsub.f32 %v8411_v14, %v2161_v19 }
 0x654   :  { %v6712_v23 = vpop.f32.mrb[40].mxu1  ;;  %v1696_v28 = vpop.f32.mrb[43].mxu0  ;;  %v8891_v57 = vsub.f32 %v8414_v7, %v2160_v13  ;;  %v2133_v61 = vmul.f32 0.01, %v6665_v32  ;;  %v7214_v7 = vpack.c.bf16 %v8876_v52, %v8879_v0 }
 0x655   :  { %v1911_v31 = vpop.f32.mrb[41].mxu1  ;;  %v2163_v62 = vmul.f32 0.01, %v6712_v23 }
 0x656   :  { %v2162_v60 = vmul.f32 0.01, %v1911_v31  ;;  %v7218_v32 = vpack.c.bf16 %v8888_v20, %v8891_v57 }
 0x657   :  { %v6668_v53 = vpop.f32.mrb[44].mxu0  ;;  %v8914_v17 = vsub.f32 %v8440_v38, %v2163_v62 }
 0x658   :  { %v6715_v11 = vpop.f32.mrb[42].mxu1  ;;  %v1706_v5 = vpop.f32.mrb[45].mxu0 }
 0x659   :  { %v1921_v24 = vpop.f32.mrb[43].mxu1  ;;  %v2165_v19 = vmul.f32 0.01, %v6715_v11  ;;  %v2134_v23 = vmul.f32 0.01, %v1706_v5  ;;  %v8923_v5 = vsub.f32 %v8443_v25, %v2162_v60 }
 0x65b   :  { %v8839_v35 = vpop.f32.mrb[46].mxu0  ;;  %v8929_v38 = vsub.f32 %v8455_v8, %v2165_v19  ;;  %v11335_v19 = vld [vmem:[#allocation86_spill] sm:$0xff] }
 0x65c   :  { %v8841_v36 = vpop.f32.mrb[44].mxu1  ;;  %v8843_v51 = vpop.f32.mrb[47].mxu0  ;;  %v2137_v8 = vmul.f32 0.01, %v8839_v35 }
 0x65d   :  { %v8845_v55 = vpop.f32.mrb[45].mxu1 }
 0x65f   :  { %v8847_v42 = vpop.f32.mrb[48].mxu0 }
 0x660   :  { %11331 = vst [vmem:[#allocation15_spill] sm:$0xff] %v8847_v42  ;;  %v8849_v18 = vpop.f32.mrb[46].mxu1  ;;  %v8851_v30 = vpop.f32.mrb[49].mxu0  ;;  %v11334_v42 = vld [vmem:[#allocation84_spill] sm:$0xff] }
 0x661   :  { %11332 = vst [vmem:[#allocation18_spill] sm:$0xff] %v8849_v18  ;;  %v8853_v27 = vpop.f32.mrb[47].mxu1  ;;  %v8863_v18 = vsub.f32 %v11334_v42, %v2126_v34  ;;  %v8885_v42 = vsub.f32 %v8420_v2, %v2130_v26  ;;  %v2132_v34 = vmul.f32 0.01, %v1696_v28  ;;  %v2135_v2 = vmul.f32 0.01, %v6668_v53 }
 0x662   :  { %v2164_v28 = vmul.f32 0.01, %v1921_v24  ;;  %v8911_v53 = vsub.f32 %v8446_v37, %v2133_v61 }
 0x663   :  { %v8855_v47 = vpop.f32.mrb[50].mxu0  ;;  %v7182_v59 = vpack.c.bf16 %v8860_v44, %v8863_v18 }
 0x664   :  { %v8857_v10 = vpop.f32.mrb[48].mxu1  ;;  %v8871_v41 = vpop.f32.mrb[51].mxu0  ;;  %v8937_v25 = vsub.f32 %v8463_v50, %v2164_v28  ;;  %v11364_v50 = vld [vmem:[#allocation98_spill] sm:$0xff] }
 0x665   :  { %v8873_v29 = vpop.f32.mrb[49].mxu1 }
 0x667   :  { %v6680_v48 = vpop.f32.mrb[52].mxu0 }
 0x668   :  { %v8893_v56 = vpop.f32.mrb[50].mxu1  ;;  %v2143_v26 = vmul.f32 0.01, %v6680_v48  ;;  %v1746_v14 = vpop.f32.mrb[53].mxu0  ;;  %v8917_v48 = vsub.f32 %v8452_v40, %v2132_v34  ;;  %v8934_v34 = vsub.f32 %v8466_v46, %v2134_v23 }
 0x669   :  { %v8899_v6 = vpop.f32.mrb[51].mxu1  ;;  %v2142_v16 = vmul.f32 0.01, %v1746_v14 }
 0x66a   :  { %v8908_v31 = vsub.f32 %v8437_v9, %v2143_v26  ;;  %v8926_v9 = vsub.f32 %v8458_v15, %v2135_v2  ;;  %v2136_v2 = vmul.f32 0.01, %v8843_v51 }
 0x66b   :  { %v8920_v11 = vsub.f32 %v8449_v49, %v2142_v16  ;;  %v6683_v14 = vpop.f32.mrb[54].mxu0 }
 0x66c   :  { %v6730_v13 = vpop.f32.mrb[52].mxu1  ;;  %v2145_v24 = vmul.f32 0.01, %v6683_v14  ;;  %v1756_v61 = vpop.f32.mrb[55].mxu0 }
 0x66d   :  { %v2175_v37 = vmul.f32 0.01, %v6730_v13  ;;  %v1971_v26 = vpop.f32.mrb[53].mxu1  ;;  %v2144_v40 = vmul.f32 0.01, %v1756_v61  ;;  %v7180_v49 = vpack.c.bf16 %v8908_v31, %v8920_v11 }
 0x66e   :  { %v2174_v62 = vmul.f32 0.01, %v1971_v26  ;;  %v8940_v15 = vsub.f32 %v8469_v22, %v2145_v24  ;;  %v2167_v26 = vmul.f32 0.01, %v8841_v36 }
 0x66f   :  { %v8943_v60 = vsub.f32 %v8472_v43, %v2175_v37  ;;  %v8948_v13 = vsub.f32 %v8477_v63, %v2144_v40  ;;  %v6686_v46 = vpop.f32.mrb[56].mxu0  ;;  %7181 = vmatprep.subr.bf16.mxu0 %v7180_v49  ;;  %v2166_v49 = vmul.f32 0.01, %v8845_v55 }
 0x670   :  { %v8951_v16 = vsub.f32 %v11335_v19, %v2174_v62  ;;  %v6733_v23 = vpop.f32.mrb[54].mxu1  ;;  %v2147_v43 = vmul.f32 0.01, %v6686_v46  ;;  %v1766_v35 = vpop.f32.mrb[57].mxu0  ;;  %7183 = vmatpush3.bf16.msra.mxu0 %v7182_v59 }
 0x671   :  { %v2177_v28 = vmul.f32 0.01, %v6733_v23  ;;  %v1981_v14 = vpop.f32.mrb[55].mxu1  ;;  %v2146_v51 = vmul.f32 0.01, %v1766_v35  ;;  %v7184_v24 = vpack.c.bf16 %v8940_v15, %v8948_v13 }
 0x672   :  { %v2176_v63 = vmul.f32 0.01, %v1981_v14  ;;  %v7212_v37 = vpack.c.bf16 %v8943_v60, %v8951_v16  ;;  %v8965_v40 = vsub.f32 %v8494_v1, %v2147_v43  ;;  %v8980_v1 = vsub.f32 %v8541_v54, %v2137_v8  ;;  %v11339_v8 = vld [vmem:[#allocation15_spill] sm:$0xff]  ;;  %v11340_v14 = vld [vmem:[#allocation18_spill] sm:$0xff] }
 0x673   :  { %v8968_v62 = vsub.f32 %v8497_v21, %v2177_v28  ;;  %v8974_v19 = vsub.f32 %v8503_v33, %v2146_v51  ;;  %v6689_v23 = vpop.f32.mrb[58].mxu0  ;;  %7185 = vmatprep.subr.bf16.mxu0 %v7184_v24  ;;  %v8983_v21 = vsub.f32 %v8544_v12, %v2136_v2  ;;  %v2139_v2 = vmul.f32 0.01, %v11339_v8 }
 0x674   :  { %v8977_v46 = vsub.f32 %v8506_v3, %v2176_v63  ;;  %v6736_v35 = vpop.f32.mrb[56].mxu1  ;;  %7213 = vmatprep.subr.bf16.mxu1 %v7212_v37  ;;  %11337 = vst [vmem:[#allocation20_spill] sm:$0xff] %v8980_v1  ;;  %v2149_v36 = vmul.f32 0.01, %v6689_v23  ;;  %v1776_v28 = vpop.f32.mrb[59].mxu0  ;;  %7187 = vmatpush3.bf16.msra.mxu0 %v7186_v4  ;;  %v11341_v63 = vld [vmem:[#allocation89_spill] sm:$0xff] }
 0x675   :  { %11338 = vst [vmem:[#allocation21_spill] sm:$0xff] %v8983_v21  ;;  %v2179_v43 = vmul.f32 0.01, %v6736_v35  ;;  %v1991_v55 = vpop.f32.mrb[57].mxu1  ;;  %7215 = vmatpush3.bf16.msra.mxu1 %v7214_v7  ;;  %v2148_v33 = vmul.f32 0.01, %v1776_v28  ;;  %v7188_v54 = vpack.c.bf16 %v8965_v40, %v8974_v19 }
 0x676   :  { %11336 = vst [vmem:[#allocation19_spill] sm:$0xff] %v8977_v46  ;;  %v2178_v3 = vmul.f32 0.01, %v1991_v55  ;;  %v7216_v12 = vpack.c.bf16 %v8968_v62, %v8977_v46  ;;  %v2169_v51 = vmul.f32 0.01, %v11340_v14  ;;  %v8998_v24 = vsub.f32 %v11341_v63, %v2149_v36  ;;  %v11343_v4 = vld [vmem:[#allocation90_spill] sm:$0xff] }
 0x677   :  { %v9001_v37 = vsub.f32 %v11343_v4, %v2179_v43  ;;  %v2138_v7 = vmul.f32 0.01, %v8851_v30  ;;  %v2168_v23 = vmul.f32 0.01, %v8853_v27  ;;  %v11345_v35 = vld [vmem:[#allocation91_spill] sm:$0xff]  ;;  %v11347_v55 = vld [vmem:[#allocation92_spill] sm:$0xff]  ;;  %7189 = vmatprep.subr.bf16.mxu0 %v7188_v54 }
 0x678   :  { %11342 = vst [vmem:[#allocation22_spill] sm:$0xff] %v8998_v24  ;;  %v9006_v28 = vsub.f32 %v11345_v35, %v2148_v33  ;;  %v9009_v59 = vsub.f32 %v11347_v55, %v2178_v3  ;;  %v6692_v61 = vpop.f32.mrb[60].mxu0  ;;  %v6739_v8 = vpop.f32.mrb[58].mxu1  ;;  %7217 = vmatprep.subr.bf16.mxu1 %v7216_v12  ;;  %v11349_v14 = vld [vmem:[#allocation87_spill] sm:$0xff]  ;;  %v11351_v63 = vld [vmem:[#allocation88_spill] sm:$0xff]  ;;  %v11353_v33 = vpack.c.bf16 %v8882_v39, %v8885_v42  ;;  %v11356_v55 = vld [vmem:[#allocation94_spill] sm:$0xff] }
 0x679   :  { %11344 = vst [vmem:[#allocation23_spill] sm:$0xff] %v9001_v37  ;;  %v9012_v36 = vsub.f32 %v11349_v14, %v2167_v26  ;;  %v9015_v43 = vsub.f32 %v11351_v63, %v2166_v49  ;;  %v2151_v4 = vmul.f32 0.01, %v6692_v61  ;;  %v2181_v30 = vmul.f32 0.01, %v6739_v8  ;;  %v1786_v22 = vpop.f32.mrb[61].mxu0  ;;  %7219 = vmatpush3.bf16.msra.mxu1 %v7218_v32 }
 0x67a   :  { %11346 = vst [vmem:[#allocation24_spill] sm:$0xff] %v9006_v28  ;;  %11348 = vst [vmem:[#allocation25_spill] sm:$0xff] %v9009_v59  ;;  %v2001_v27 = vpop.f32.mrb[59].mxu1  ;;  %7191 = vmatpush3.bf16.msra.mxu0 %v11353_v33  ;;  %v2150_v3 = vmul.f32 0.01, %v1786_v22  ;;  %v7192_v26 = vpack.c.bf16 %v8998_v24, %v9006_v28  ;;  %v7220_v49 = vpack.c.bf16 %v9001_v37, %v9009_v59  ;;  %v11354_v12 = vld [vmem:[#allocation96_spill] sm:$0xff] }
 0x67b   :  { %11350 = vst [vmem:[#allocation26_spill] sm:$0xff] %v9012_v36  ;;  %11352 = vst [vmem:[#allocation27_spill] sm:$0xff] %v9015_v43  ;;  %v2180_v54 = vmul.f32 0.01, %v2001_v27  ;;  %v9030_v35 = vsub.f32 %v11354_v12, %v2139_v2  ;;  %v9033_v8 = vsub.f32 %v11356_v55, %v2151_v4  ;;  %v11358_v14 = vld [vmem:[#allocation95_spill] sm:$0xff]  ;;  %v11360_v32 = vld [vmem:[#allocation93_spill] sm:$0xff] }
 0x67c   :  { %v9036_v63 = vsub.f32 %v11358_v14, %v2181_v30  ;;  %v9039_v22 = vsub.f32 %v11360_v32, %v2169_v51  ;;  %v11362_v27 = vld [vmem:[#allocation97_spill] sm:$0xff]  ;;  %v6695_v28 = vpop.f32.mrb[62].mxu0  ;;  %v6742_v61 = vpop.f32.mrb[60].mxu1  ;;  %7193 = vmatprep.subr.bf16.mxu0 %v7192_v26  ;;  %7221 = vmatprep.subr.bf16.mxu1 %v7220_v49  ;;  %v11366_v2 = vld [vmem:[#allocation100_spill] sm:$0xff]  ;;  %v11368_v4 = vld [vmem:[#allocation99_spill] sm:$0xff] }
 0x67d   :  { %11355 = vst [vmem:[#allocation28_spill] sm:$0xff] %v9030_v35  ;;  %11357 = vst [vmem:[#allocation29_spill] sm:$0xff] %v9033_v8  ;;  %v9042_v33 = vsub.f32 %v11362_v27, %v2150_v3  ;;  %v9045_v59 = vsub.f32 %v11364_v50, %v2180_v54  ;;  %v9048_v12 = vsub.f32 %v11366_v2, %v2138_v7  ;;  %v2153_v30 = vmul.f32 0.01, %v6695_v28  ;;  %v1796_v51 = vpop.f32.mrb[63].mxu0  ;;  %v2011_v32 = vpop.f32.mrb[61].mxu1 }
 0x67e   :  { %11359 = vst [vmem:[#allocation30_spill] sm:$0xff] %v9036_v63  ;;  %11361 = vst [vmem:[#allocation31_spill] sm:$0xff] %v9039_v22  ;;  %v9051_v55 = vsub.f32 %v11368_v4, %v2168_v23  ;;  %v2183_v14 = vmul.f32 0.01, %v6742_v61  ;;  %v11370_v3 = vpack.c.bf16 %v8911_v53, %v8917_v48  ;;  %v11371_v50 = vpack.c.bf16 %v8914_v17, %v8923_v5  ;;  %v11372_v61 = vld [vmem:[#allocation101_spill] sm:$0xff]  ;;  %v11374_v2 = vld [vmem:[#allocation102_spill] sm:$0xff] }
 0x67f   :  { %11363 = vst [vmem:[#allocation32_spill] sm:$0xff] %v9042_v33  ;;  %11365 = vst [vmem:[#allocation33_spill] sm:$0xff] %v9045_v59  ;;  %v2152_v54 = vmul.f32 0.01, %v1796_v51  ;;  %v2182_v26 = vmul.f32 0.01, %v2011_v32  ;;  %v7196_v7 = vpack.c.bf16 %v9033_v8, %v9042_v33  ;;  %v7224_v23 = vpack.c.bf16 %v9036_v63, %v9045_v59 }
 0x680   :  { %11367 = vst [vmem:[#allocation34_spill] sm:$0xff] %v9048_v12  ;;  %11369 = vst [vmem:[#allocation35_spill] sm:$0xff] %v9051_v55  ;;  %7195 = vmatpush3.bf16.msra.mxu0 %v11370_v3  ;;  %7223 = vmatpush3.bf16.msra.mxu1 %v11371_v50  ;;  %v2141_v28 = vmul.f32 0.01, %v8855_v47  ;;  %v2171_v49 = vmul.f32 0.01, %v8857_v10  ;;  %v9066_v27 = vsub.f32 %v11372_v61, %v2153_v30 }
 0x681   :  { %v9069_v4 = vsub.f32 %v11374_v2, %v2183_v14  ;;  %v2140_v3 = vmul.f32 0.01, %v8871_v41  ;;  %v2170_v51 = vmul.f32 0.01, %v8873_v29  ;;  %v11376_v32 = vld [vmem:[#allocation7_spill] sm:$0xff]  ;;  %v6698_v59 = vpop.f32.mrb[64].mxu0  ;;  %7197 = vmatprep.subr.bf16.mxu0 %v7196_v7  ;;  %7225 = vmatprep.subr.bf16.mxu1 %v7224_v23  ;;  %v7230_v10 = vpack.c.bf16 %v9012_v36, %v9015_v43 }
 0x682   :  { %11373 = vst [vmem:[#allocation36_spill] sm:$0xff] %v9066_v27  ;;  %v9074_v50 = vsub.f32 %v11376_v32, %v2152_v54  ;;  %v11378_v33 = vld [vmem:[#allocation103_spill] sm:$0xff]  ;;  %v6745_v47 = vpop.f32.mrb[62].mxu1  ;;  %v7206_v30 = vpack.c.bf16 %v9030_v35, %v9048_v12  ;;  %v2155_v14 = vmul.f32 0.01, %v6698_v59  ;;  %v1806_v61 = vpop.f32.mrb[65].mxu0  ;;  %v11380_v54 = vpack.c.bf16 %v8926_v9, %v8934_v34 }
 0x683   :  { %11375 = vst [vmem:[#allocation37_spill] sm:$0xff] %v9069_v4  ;;  %v9077_v8 = vsub.f32 %v11378_v33, %v2182_v26  ;;  %v2185_v41 = vmul.f32 0.01, %v6745_v47  ;;  %v2021_v29 = vpop.f32.mrb[63].mxu1  ;;  %v11381_v33 = vpack.c.bf16 %v8929_v38, %v8937_v25  ;;  %v2154_v26 = vmul.f32 0.01, %v1806_v61 }
 0x684   :  { %11377 = vst [vmem:[#allocation38_spill] sm:$0xff] %v9074_v50  ;;  %7199 = vmatpush3.bf16.msra.mxu0 %v11380_v54  ;;  %v2184_v7 = vmul.f32 0.01, %v2021_v29  ;;  %v7200_v23 = vpack.c.bf16 %v9066_v27, %v9074_v50  ;;  %v7234_v59 = vpack.c.bf16 %v9039_v22, %v9051_v55  ;;  %v11382_v32 = vld [vmem:[#allocation13_spill] sm:$0xff]  ;;  %v11388_v61 = vld [vmem:[#allocation104_spill] sm:$0xff]  ;;  %v11392_v27 = vld [vmem:[#allocation106_spill] sm:$0xff] }
 0x685   :  { %11379 = vst [vmem:[#allocation39_spill] sm:$0xff] %v9077_v8  ;;  %7227 = vmatpush3.bf16.msra.mxu1 %v11381_v33  ;;  %v7228_v2 = vpack.c.bf16 %v9069_v4, %v9077_v8  ;;  %v9096_v47 = vsub.f32 %v11382_v32, %v2141_v28  ;;  %v11384_v12 = vld [vmem:[#allocation9_spill] sm:$0xff]  ;;  %v9105_v29 = vsub.f32 %v11388_v61, %v2171_v49  ;;  %v11390_v33 = vld [vmem:[#allocation8_spill] sm:$0xff]  ;;  %v6701_v4 = vpop.f32.mrb[66].mxu0  ;;  %v6748_v55 = vpop.f32.mrb[64].mxu1 }
 0x686   :  { %v9099_v54 = vsub.f32 %v11384_v12, %v2155_v14  ;;  %v11386_v63 = vld [vmem:[#allocation105_spill] sm:$0xff]  ;;  %v9108_v50 = vsub.f32 %v11390_v33, %v2154_v26  ;;  %v9111_v8 = vsub.f32 %v11392_v27, %v2184_v7  ;;  %7201 = vmatprep.subr.bf16.mxu0 %v7200_v23  ;;  %v11394_v28 = vld [vmem:[#allocation12_spill] sm:$0xff]  ;;  %v11396_v12 = vld [vmem:[#allocation107_spill] sm:$0xff]  ;;  %v1816_v49 = vpop.f32.mrb[67].mxu0  ;;  %v2031_v61 = vpop.f32.mrb[65].mxu1  ;;  %v11398_v26 = vpack.c.bf16 %v8980_v1, %v8983_v21 }
 0x687   :  { %11383 = vst [vmem:[#allocation40_spill] sm:$0xff] %v9096_v47  ;;  %v9102_v35 = vsub.f32 %v11386_v63, %v2185_v41  ;;  %11389 = vst [vmem:[#allocation43_spill] sm:$0xff] %v9105_v29  ;;  %7229 = vmatprep.subr.bf16.mxu1 %v7228_v2  ;;  %v9114_v32 = vsub.f32 %v11394_v28, %v2140_v3  ;;  %v9117_v14 = vsub.f32 %v11396_v12, %v2170_v51  ;;  %v11401_v33 = vld [vmem:[#allocation11_spill] sm:$0xff]  ;;  %v11403_v12 = vld [vmem:[#allocation10_spill] sm:$0xff] }
 0x688   :  { %11385 = vst [vmem:[#allocation41_spill] sm:$0xff] %v9099_v54  ;;  %11391 = vst [vmem:[#allocation44_spill] sm:$0xff] %v9108_v50  ;;  %v2157_v63 = vmul.f32 0.01, %v6701_v4  ;;  %v2187_v41 = vmul.f32 0.01, %v6748_v55  ;;  %7203 = vmatpush3.bf16.msra.mxu0 %v11398_v26  ;;  %v7204_v23 = vpack.c.bf16 %v9099_v54, %v9108_v50 }
 0x689   :  { %11387 = vst [vmem:[#allocation42_spill] sm:$0xff] %v9102_v35  ;;  %11393 = vst [vmem:[#allocation45_spill] sm:$0xff] %v9111_v8  ;;  %7231 = vmatpush3.bf16.msra.mxu1 %v7230_v10  ;;  %v2156_v27 = vmul.f32 0.01, %v1816_v49  ;;  %v2186_v7 = vmul.f32 0.01, %v2031_v61  ;;  %v7232_v3 = vpack.c.bf16 %v9102_v35, %v9111_v8 }
 0x68a   :  { %11395 = vst [vmem:[#allocation46_spill] sm:$0xff] %v9114_v32  ;;  %11397 = vst [vmem:[#allocation47_spill] sm:$0xff] %v9117_v14  ;;  %v2173_v51 = vmul.f32 0.01, %v8893_v56  ;;  %v2172_v4 = vmul.f32 0.01, %v8899_v6  ;;  %v9132_v28 = vsub.f32 %v11401_v33, %v2187_v41  ;;  %7205 = vmatprep.subr.bf16.mxu0 %v7204_v23  ;;  %v7210_v56 = vpack.c.bf16 %v9096_v47, %v9114_v32 }
 0x68b   :  { %v11399_v55 = vld [vmem:[#allocation85_spill] sm:$0xff]  ;;  %v9135_v10 = vsub.f32 %v11403_v12, %v2156_v27  ;;  %v11405_v49 = vld [vmem:[#allocation108_spill] sm:$0xff]  ;;  %v6751_v26 = vpop.f32.mrb[66].mxu1  ;;  %7233 = vmatprep.subr.bf16.mxu1 %v7232_v3  ;;  %v7238_v27 = vpack.c.bf16 %v9105_v29, %v9117_v14  ;;  %v11409_v3 = vld [vmem:[#allocation110_spill] sm:$0xff] }
 0x68c   :  { %v9129_v2 = vsub.f32 %v11399_v55, %v2157_v63  ;;  %11402 = vst [vmem:[#allocation49_spill] sm:$0xff] %v9132_v28  ;;  %v9138_v61 = vsub.f32 %v11405_v49, %v2186_v7  ;;  %v2189_v8 = vmul.f32 0.01, %v6751_v26  ;;  %v2041_v50 = vpop.f32.mrb[67].mxu1  ;;  %7207 = vmatpush3.bf16.msra.mxu0 %v7206_v30  ;;  %v11407_v7 = vld [vmem:[#allocation109_spill] sm:$0xff]  ;;  %v9152_v55 = vsub.f32 %v11409_v3, %v2172_v4  ;;  %v11411_v30 = vld [vmem:[#allocation111_spill] sm:$0xff] }
 0x68d   :  { %11404 = vst [vmem:[#allocation50_spill] sm:$0xff] %v9135_v10  ;;  %7235 = vmatpush3.bf16.msra.mxu1 %v7234_v59  ;;  %v2188_v6 = vmul.f32 0.01, %v2041_v50  ;;  %v9149_v23 = vsub.f32 %v11407_v7, %v2173_v51  ;;  %v11413_v33 = vld [vmem:[#allocation112_spill] sm:$0xff]  ;;  %v9180_v49 = vld [vmem:[%s10836_s0 + $0x10] sm:$0xff] }
 0x68e   :  { %11400 = vst [vmem:[#allocation48_spill] sm:$0xff] %v9129_v2  ;;  %11406 = vst [vmem:[#allocation51_spill] sm:$0xff] %v9138_v61  ;;  %v7208_v63 = vpack.c.bf16 %v9129_v2, %v9135_v10  ;;  %v7236_v41 = vpack.c.bf16 %v9132_v28, %v9138_v61  ;;  %v9155_v59 = vsub.f32 %v11411_v30, %v2189_v8  ;;  %v9167_v4 = vld [vmem:[%s10836_s0] sm:$0xff] }
 0x68f   :  { %11408 = vst [vmem:[#allocation52_spill] sm:$0xff] %v9149_v23  ;;  %11410 = vst [vmem:[#allocation53_spill] sm:$0xff] %v9152_v55  ;;  %v9158_v50 = vsub.f32 %v11413_v33, %v2188_v6  ;;  %v7242_v51 = vpack.c.bf16 %v9149_v23, %v9152_v55  ;;  %v9173_v8 = vld [vmem:[%s10837_s1] sm:$0xff] }
 0x690   :  { %11412 = vst [vmem:[#allocation54_spill] sm:$0xff] %v9155_v59  ;;  %7209 = vmatprep.subr.bf16.mxu0 %v7208_v63  ;;  %7237 = vmatprep.subr.bf16.mxu1 %v7236_v41  ;;  %11415 = vst [vmem:[#allocation56_spill] sm:$0xff] %v9167_v4  ;;  %v9186_v26 = vld [vmem:[%s10837_s1 + $0x100] sm:$0xff] }
 0x691   :  { %11414 = vst [vmem:[#allocation55_spill] sm:$0xff] %v9158_v50  ;;  %7211 = vmatpush3.bf16.msra.mxu0 %v7210_v56  ;;  %7239 = vmatpush3.bf16.msra.mxu1 %v7238_v27  ;;  %v7240_v12 = vpack.c.bf16 %v9155_v59, %v9158_v50  ;;  %11416 = vst [vmem:[#allocation57_spill] sm:$0xff] %v9173_v8  ;;  %v5602_v41 = vld [vmem:[#allocation3] ss:$0 sm:$0xff] }
 0x692   :  { %11417 = vst [vmem:[#allocation58_spill] sm:$0xff] %v9180_v49  ;;  %11418 = vst [vmem:[#allocation59_spill] sm:$0xff] %v9186_v26  ;;  %v11419_v33 = vld [vmem:[#allocation16_spill] sm:$0xff] }
 0x693   :  { %7241 = vmatprep.subr.bf16.mxu1 %v7240_v12 }
 0x694   :  { %2469 = vmatmul.mubr.f32.vlgmr.msra.gmra.mrb[68].mxu0 %v9167_v4 }
 0x695   :  { %7243 = vmatpush3.bf16.msra.mxu1 %v7242_v51  ;;  %6754 = vmatprep.mubr.msk.f32.mxu0 %vm439_vm1, %v9173_v8  ;;  %v5603_v51 = vld [vmem:[#allocation3 + $0x1] ss:$0 sm:$0xff] }
 0x698   :  { %2539 = vmatmul.mubr.f32.vlgmr.msra.gmra.mrb[68].mxu1 %v9180_v49 }
 0x699   :  { %6804 = vmatprep.mubr.msk.f32.mxu1 %vm439_vm1, %v9186_v26 }
 0x767   :  { %v6106_v56 = vpop.f32.mrb[68].mxu0 }
 0x768   :  { %v6107_v6 = vpop.f32.mrb[69].mxu0 }
 0x769   :  { %v6108_v63 = vadd.f32 %v6107_v6, %v6106_v56 }
 0x76b   :  { %v2471_v27 = vadd.f32 %v6108_v63, %v5602_v41  ;;  %v6141_v7 = vpop.f32.mrb[68].mxu1 }
 0x76c   :  { %v6142_v3 = vpop.f32.mrb[69].mxu1 }
 0x76d   :  { %v6143_v30 = vadd.f32 %v6142_v3, %v6141_v7  ;;  %v2544_v12 = vadd.f32 %v2471_v27, %v11419_v33 }
 0x76f   :  { %v2541_v49 = vadd.f32 %v6143_v30, %v5603_v51  ;;  %2546 = vmax.xlane.f32.xlu0 %v2544_v12  ;;  %v9207_v51 = vld [vmem:[%s10837_s1 + $0x8] sm:$0xff] }
 0x770   :  { %11422 = vst [vmem:[#allocation62_spill] sm:$0xff] %v9207_v51 }
 0x771   :  { %v2545_v8 = vadd.f32 %v2541_v49, %v11419_v33 }
 0x773   :  { %2548 = vmax.xlane.f32.xlu1 %v2545_v8 }
 0x7fc   :  { %v2547_v4 = vpop.xlane.xlu0 %2546 }
 0x7fd   :  { %v2550_v50 = vsub.f32 %v2544_v12, %v2547_v4  ;;  %v9195_v4 = vld [vmem:[%s10838_s2] sm:$0xff] }
 0x7fe   :  { %11420 = vst [vmem:[#allocation60_spill] sm:$0xff] %v9195_v4 }
 0x7ff   :  { %v2552_v59 = vmul.f32 1.442695, %v2550_v50 }
 0x800   :  { %v2549_v26 = vpop.xlane.xlu1 %2548 }
 0x801   :  { %7456 = vpow2.f32 %v2552_v59  ;;  %v2551_v55 = vsub.f32 %v2545_v8, %v2549_v26  ;;  %v9201_v26 = vld [vmem:[%s10838_s2 + $0x8] sm:$0xff] }
 0x802   :  { %11421 = vst [vmem:[#allocation61_spill] sm:$0xff] %v9201_v26 }
 0x803   :  { %v2554_v56 = vmul.f32 1.442695, %v2551_v55 }
 0x805   :  { %7458 = vpow2.f32 %v2554_v56 }
 0x80b   :  { %v7457_v6 = vpop.eup %7456 }
 0x80c   :  { %2556 = vadd.xlane.f32.xlu0 %v7457_v6 }
 0x80f   :  { %v7459_v63 = vpop.eup %7458 }
 0x810   :  { %2558 = vadd.xlane.f32.xlu1 %v7459_v63 }
 0x899   :  { %v2557_v41 = vpop.xlane.xlu0 %2556 }
 0x89a   :  { %7460 = vrcp.f32 %v2557_v41 }
 0x89d   :  { %v2559_v27 = vpop.xlane.xlu1 %2558 }
 0x89e   :  { %7462 = vrcp.f32 %v2559_v27 }
 0x8a4   :  { %v7461_v7 = vpop.eup %7460 }
 0x8a5   :  { %v2561_v3 = vmul.f32 %v7461_v7, %v7457_v6  ;;  %v9214_v6 = vld [vmem:[%s10837_s1 + $0x10] sm:$0xff] }
 0x8a6   :  { %11423 = vst [vmem:[#allocation63_spill] sm:$0xff] %v9214_v6 }
 0x8a7   :  { %v2564_v59 = vsub.f32 %v2561_v3, %v9195_v4  ;;  %v9221_v3 = vld [vmem:[%s10837_s1 + $0x18] sm:$0xff] }
 0x8a8   :  { %v7463_v50 = vpop.eup %7462  ;;  %11424 = vst [vmem:[#allocation64_spill] sm:$0xff] %v9221_v3 }
 0x8a9   :  { %v2566_v55 = vmul.f32 0.125, %v2564_v59  ;;  %v2563_v8 = vmul.f32 %v7463_v50, %v7459_v63  ;;  %v9228_v59 = vld [vmem:[%s10837_s1 + $0x108] sm:$0xff]  ;;  %v9235_v50 = vld [vmem:[%s10837_s1 + $0x20] sm:$0xff] }
 0x8aa   :  { %11425 = vst [vmem:[#allocation65_spill] sm:$0xff] %v9228_v59  ;;  %11426 = vst [vmem:[#allocation66_spill] sm:$0xff] %v9235_v50 }
 0x8ab   :  { %6752 = vmatprep.subr.mxu0 %v2566_v55  ;;  %v3018_v49 = vrot.slane %v2566_v55, 4  ;;  %v2565_v30 = vsub.f32 %v2563_v8, %v9201_v26 }
 0x8ac   :  { %6753 = vmatpush3.msra.mxu0 %v2566_v55 }
 0x8ad   :  { %v3019_v12 = vadd.f32 %v3018_v49, %v2566_v55  ;;  %6755 = vmatmul.mubr.msk.f32.vlgmr.msra.gmra.mrb[70].mxu0 %vm439_vm1, %v9207_v51  ;;  %v2567_v56 = vmul.f32 0.125, %v2565_v30  ;;  %v9242_v55 = vld [vmem:[%s10837_s1 + $0x110] sm:$0xff] }
 0x8ae   :  { %6757 = vmatprep.mubr.msk.f32.mxu0 %vm439_vm1, %v9214_v6  ;;  %11427 = vst [vmem:[#allocation67_spill] sm:$0xff] %v9242_v55 }
 0x8af   :  { %v3020_v63 = vrot.slane %v3019_v12, 2  ;;  %6802 = vmatprep.subr.mxu1 %v2567_v56  ;;  %v3024_v41 = vrot.slane %v2567_v56, 4 }
 0x8b0   :  { %6803 = vmatpush3.msra.mxu1 %v2567_v56 }
 0x8b1   :  { %v3021_v27 = vadd.f32 %v3020_v63, %v3019_v12  ;;  %v3025_v7 = vadd.f32 %v3024_v41, %v2567_v56  ;;  %6758 = vmatmul.mubr.msk.f32.gmra.mrb[72].mxu0 %vm439_vm1, %v9221_v3  ;;  %6805 = vmatmul.mubr.msk.f32.vlgmr.msra.gmra.mrb[70].mxu1 %vm439_vm1, %v9228_v59  ;;  %v9249_v56 = vld [vmem:[%s10837_s1 + $0x28] sm:$0xff]  ;;  %v9256_v63 = vld [vmem:[%s10837_s1 + $0x118] sm:$0xff]  ;;  %v9263_v41 = vld [vmem:[%s10837_s1 + $0x30] sm:$0xff] }
 0x8b2   :  { %6760 = vmatprep.mubr.msk.f32.mxu0 %vm439_vm1, %v9235_v50  ;;  %6807 = vmatprep.mubr.msk.f32.mxu1 %vm439_vm1, %v9242_v55  ;;  %11428 = vst [vmem:[#allocation68_spill] sm:$0xff] %v9249_v56  ;;  %11429 = vst [vmem:[#allocation69_spill] sm:$0xff] %v9256_v63  ;;  %v9277_v55 = vld [vmem:[%s10837_s1 + $0x38] sm:$0xff] }
 0x8b3   :  { %v3022_v8 = vrot.slane %v3021_v27, 1  ;;  %v3026_v49 = vrot.slane %v3025_v7, 2  ;;  %11430 = vst [vmem:[#allocation70_spill] sm:$0xff] %v9263_v41  ;;  %11432 = vst [vmem:[#allocation72_spill] sm:$0xff] %v9277_v55 }
 0x8b5   :  { %v3023_v30 = vadd.f32 %v3022_v8, %v3021_v27  ;;  %v3027_v12 = vadd.f32 %v3026_v49, %v3025_v7  ;;  %6761 = vmatmul.mubr.msk.f32.gmra.mrb[74].mxu0 %vm439_vm1, %v9249_v56  ;;  %6808 = vmatmul.mubr.msk.f32.gmra.mrb[72].mxu1 %vm439_vm1, %v9256_v63  ;;  %v9270_v27 = vld [vmem:[%s10837_s1 + $0x120] sm:$0xff] }
 0x8b6   :  { %6763 = vmatprep.mubr.msk.f32.mxu0 %vm439_vm1, %v9263_v41  ;;  %11431 = vst [vmem:[#allocation71_spill] sm:$0xff] %v9270_v27  ;;  %6810 = vmatprep.mubr.msk.f32.mxu1 %vm439_vm1, %v9270_v27  ;;  %v3286_v49 = vld [vmem:[#allocation3] sm:$0x1]  ;;  %v9284_v41 = vld [vmem:[%s10837_s1 + $0x128] sm:$0xff] }
 0x8b7   :  { %v3288_v7 = vmul.f32 0.01, %v3023_v30  ;;  %v3028_v8 = vrot.slane %v3027_v12, 1  ;;  %11433 = vst [vmem:[#allocation73_spill] sm:$0xff] %v9284_v41  ;;  %v9291_v30 = vld [vmem:[%s10837_s1 + $0x40] sm:$0xff] }
 0x8b8   :  { %11434 = vst [vmem:[#allocation74_spill] sm:$0xff] %v9291_v30 }
 0x8b9   :  { %v3290_v63 = vsub.f32 %v3286_v49, %v3288_v7  ;;  %v3029_v56 = vadd.f32 %v3028_v8, %v3027_v12  ;;  %6764 = vmatmul.mubr.msk.f32.gmra.mrb[76].mxu0 %vm439_vm1, %v9277_v55  ;;  %6811 = vmatmul.mubr.msk.f32.gmra.mrb[74].mxu1 %vm439_vm1, %v9284_v41  ;;  %v9298_v12 = vld [vmem:[%s10837_s1 + $0x130] sm:$0xff]  ;;  %v3287_v8 = vld [vmem:[#allocation3 + $0x1] sm:$0x1]  ;;  %v9305_v41 = vld [vmem:[%s10837_s1 + $0x48] sm:$0xff] }
 0x8ba   :  { %6766 = vmatprep.mubr.msk.f32.mxu0 %vm439_vm1, %v9291_v30  ;;  %11435 = vst [vmem:[#allocation75_spill] sm:$0xff] %v9298_v12  ;;  %6813 = vmatprep.mubr.msk.f32.mxu1 %vm439_vm1, %v9298_v12  ;;  %11436 = vst [vmem:[#allocation76_spill] sm:$0xff] %v9305_v41  ;;  %v9312_v30 = vld [vmem:[%s10837_s1 + $0x138] sm:$0xff] }
 0x8bb   :  { %3292 = vst [vmem:[#allocation3] sm:$0x1] %v3290_v63  ;;  %v3289_v7 = vmul.f32 0.01, %v3029_v56  ;;  %11437 = vst [vmem:[#allocation77_spill] sm:$0xff] %v9312_v30  ;;  %v9319_v56 = vld [vmem:[%s10837_s1 + $0x50] sm:$0xff] }
 0x8bc   :  { %11438 = vst [vmem:[#allocation78_spill] sm:$0xff] %v9319_v56  ;;  %v9326_v63 = vld [vmem:[%s10837_s1 + $0x140] sm:$0xff] }
 0x8bd   :  { %v3291_v49 = vsub.f32 %v3287_v8, %v3289_v7  ;;  %6767 = vmatmul.mubr.msk.f32.gmra.mrb[78].mxu0 %vm439_vm1, %v9305_v41  ;;  %6814 = vmatmul.mubr.msk.f32.gmra.mrb[76].mxu1 %vm439_vm1, %v9312_v30  ;;  %11439 = vst [vmem:[#allocation79_spill] sm:$0xff] %v9326_v63  ;;  %v9333_v7 = vld [vmem:[%s10837_s1 + $0x58] sm:$0xff]  ;;  %v9340_v8 = vld [vmem:[%s10837_s1 + $0x148] sm:$0xff] }
 0x8be   :  { %6769 = vmatprep.mubr.msk.f32.mxu0 %vm439_vm1, %v9319_v56  ;;  %6816 = vmatprep.mubr.msk.f32.mxu1 %vm439_vm1, %v9326_v63  ;;  %11440 = vst [vmem:[#allocation80_spill] sm:$0xff] %v9333_v7  ;;  %11441 = vst [vmem:[#allocation81_spill] sm:$0xff] %v9340_v8  ;;  %v11483_v63 = vld [vmem:[#allocation14_spill] sm:$0xff]  ;;  %v11485_v56 = vld [vmem:[#allocation17_spill] sm:$0xff] }
 0x8bf   :  { %3293 = vst [vmem:[#allocation3 + $0x1] sm:$0x1] %v3291_v49  ;;  %v9347_v49 = vld [vmem:[%s10837_s1 + $0x60] sm:$0xff] }
 0x8c0   :  { %11442 = vst [vmem:[#allocation82_spill] sm:$0xff] %v9347_v49 }
 0x8c1   :  { %6770 = vmatmul.mubr.msk.f32.gmra.mrb[80].mxu0 %vm439_vm1, %v9333_v7  ;;  %6817 = vmatmul.mubr.msk.f32.gmra.mrb[78].mxu1 %vm439_vm1, %v9340_v8  ;;  %v9354_v7 = vld [vmem:[%s10837_s1 + $0x150] sm:$0xff]  ;;  %v9361_v8 = vld [vmem:[%s10837_s1 + $0x68] sm:$0xff] }
 0x8c2   :  { %6772 = vmatprep.mubr.msk.f32.mxu0 %vm439_vm1, %v9347_v49  ;;  %11443 = vst [vmem:[#allocation83_spill] sm:$0xff] %v9354_v7  ;;  %6819 = vmatprep.mubr.msk.f32.mxu1 %vm439_vm1, %v9354_v7  ;;  %11444 = vst [vmem:[#allocation84_spill] sm:$0xff] %v9361_v8  ;;  %v9368_v49 = vld [vmem:[%s10837_s1 + $0x158] sm:$0xff]  ;;  %v9375_v7 = vld [vmem:[%s10837_s1 + $0x70] sm:$0xff] }
 0x8c3   :  { %11445 = vst [vmem:[#allocation86_spill] sm:$0xff] %v9368_v49  ;;  %11446 = vst [vmem:[#allocation15_spill] sm:$0xff] %v9375_v7 }
 0x8c5   :  { %6773 = vmatmul.mubr.msk.f32.gmra.mrb[82].mxu0 %vm439_vm1, %v9361_v8  ;;  %6820 = vmatmul.mubr.msk.f32.gmra.mrb[80].mxu1 %vm439_vm1, %v9368_v49  ;;  %v9382_v8 = vld [vmem:[%s10837_s1 + $0x160] sm:$0xff]  ;;  %v9389_v49 = vld [vmem:[%s10837_s1 + $0x78] sm:$0xff] }
 0x8c6   :  { %6775 = vmatprep.mubr.msk.f32.mxu0 %vm439_vm1, %v9375_v7  ;;  %11447 = vst [vmem:[#allocation18_spill] sm:$0xff] %v9382_v8  ;;  %6822 = vmatprep.mubr.msk.f32.mxu1 %vm439_vm1, %v9382_v8  ;;  %11448 = vst [vmem:[#allocation89_spill] sm:$0xff] %v9389_v49  ;;  %v9396_v7 = vld [vmem:[%s10837_s1 + $0x168] sm:$0xff]  ;;  %v9403_v8 = vld [vmem:[%s10837_s1 + $0x80] sm:$0xff] }
 0x8c7   :  { %11449 = vst [vmem:[#allocation90_spill] sm:$0xff] %v9396_v7  ;;  %11450 = vst [vmem:[#allocation91_spill] sm:$0xff] %v9403_v8 }
 0x8c9   :  { %6776 = vmatmul.mubr.msk.f32.gmra.mrb[84].mxu0 %vm439_vm1, %v9389_v49  ;;  %6823 = vmatmul.mubr.msk.f32.gmra.mrb[82].mxu1 %vm439_vm1, %v9396_v7  ;;  %v9410_v49 = vld [vmem:[%s10837_s1 + $0x170] sm:$0xff]  ;;  %v9417_v7 = vld [vmem:[%s10837_s1 + $0x88] sm:$0xff] }
 0x8ca   :  { %6778 = vmatprep.mubr.msk.f32.mxu0 %vm439_vm1, %v9403_v8  ;;  %11451 = vst [vmem:[#allocation92_spill] sm:$0xff] %v9410_v49  ;;  %6825 = vmatprep.mubr.msk.f32.mxu1 %vm439_vm1, %v9410_v49  ;;  %11452 = vst [vmem:[#allocation87_spill] sm:$0xff] %v9417_v7  ;;  %v9424_v8 = vld [vmem:[%s10837_s1 + $0x178] sm:$0xff]  ;;  %v9431_v49 = vld [vmem:[%s10837_s1 + $0x90] sm:$0xff] }
 0x8cb   :  { %11453 = vst [vmem:[#allocation88_spill] sm:$0xff] %v9424_v8  ;;  %11454 = vst [vmem:[#allocation96_spill] sm:$0xff] %v9431_v49 }
 0x8cd   :  { %6779 = vmatmul.mubr.msk.f32.gmra.mrb[86].mxu0 %vm439_vm1, %v9417_v7  ;;  %6826 = vmatmul.mubr.msk.f32.gmra.mrb[84].mxu1 %vm439_vm1, %v9424_v8  ;;  %v9438_v7 = vld [vmem:[%s10837_s1 + $0x180] sm:$0xff]  ;;  %v9445_v8 = vld [vmem:[%s10837_s1 + $0x98] sm:$0xff] }
 0x8ce   :  { %6781 = vmatprep.mubr.msk.f32.mxu0 %vm439_vm1, %v9431_v49  ;;  %11455 = vst [vmem:[#allocation94_spill] sm:$0xff] %v9438_v7  ;;  %6828 = vmatprep.mubr.msk.f32.mxu1 %vm439_vm1, %v9438_v7  ;;  %11456 = vst [vmem:[#allocation95_spill] sm:$0xff] %v9445_v8  ;;  %v9452_v49 = vld [vmem:[%s10837_s1 + $0x188] sm:$0xff]  ;;  %v9459_v7 = vld [vmem:[%s10837_s1 + $0xa0] sm:$0xff] }
 0x8cf   :  { %11457 = vst [vmem:[#allocation93_spill] sm:$0xff] %v9452_v49  ;;  %11458 = vst [vmem:[#allocation97_spill] sm:$0xff] %v9459_v7 }
 0x8d1   :  { %6782 = vmatmul.mubr.msk.f32.gmra.mrb[88].mxu0 %vm439_vm1, %v9445_v8  ;;  %6829 = vmatmul.mubr.msk.f32.gmra.mrb[86].mxu1 %vm439_vm1, %v9452_v49  ;;  %v9466_v8 = vld [vmem:[%s10837_s1 + $0x190] sm:$0xff]  ;;  %v9473_v49 = vld [vmem:[%s10837_s1 + $0xa8] sm:$0xff] }
 0x8d2   :  { %6784 = vmatprep.mubr.msk.f32.mxu0 %vm439_vm1, %v9459_v7  ;;  %11459 = vst [vmem:[#allocation98_spill] sm:$0xff] %v9466_v8  ;;  %6831 = vmatprep.mubr.msk.f32.mxu1 %vm439_vm1, %v9466_v8  ;;  %11460 = vst [vmem:[#allocation100_spill] sm:$0xff] %v9473_v49  ;;  %v9480_v7 = vld [vmem:[%s10837_s1 + $0x198] sm:$0xff]  ;;  %v9487_v8 = vld [vmem:[%s10837_s1 + $0xb0] sm:$0xff] }
 0x8d3   :  { %11461 = vst [vmem:[#allocation99_spill] sm:$0xff] %v9480_v7  ;;  %11462 = vst [vmem:[#allocation101_spill] sm:$0xff] %v9487_v8 }
 0x8d5   :  { %6785 = vmatmul.mubr.msk.f32.gmra.mrb[90].mxu0 %vm439_vm1, %v9473_v49  ;;  %6832 = vmatmul.mubr.msk.f32.gmra.mrb[88].mxu1 %vm439_vm1, %v9480_v7  ;;  %v9494_v49 = vld [vmem:[%s10837_s1 + $0x1a0] sm:$0xff]  ;;  %v9501_v7 = vld [vmem:[%s10837_s1 + $0xb8] sm:$0xff] }
 0x8d6   :  { %6787 = vmatprep.mubr.msk.f32.mxu0 %vm439_vm1, %v9487_v8  ;;  %11463 = vst [vmem:[#allocation102_spill] sm:$0xff] %v9494_v49  ;;  %6834 = vmatprep.mubr.msk.f32.mxu1 %vm439_vm1, %v9494_v49  ;;  %11464 = vst [vmem:[#allocation7_spill] sm:$0xff] %v9501_v7  ;;  %v9508_v8 = vld [vmem:[%s10837_s1 + $0x1a8] sm:$0xff]  ;;  %v9515_v49 = vld [vmem:[%s10837_s1 + $0xc0] sm:$0xff] }
 0x8d7   :  { %11465 = vst [vmem:[#allocation103_spill] sm:$0xff] %v9508_v8  ;;  %11466 = vst [vmem:[#allocation13_spill] sm:$0xff] %v9515_v49 }
 0x8d9   :  { %6788 = vmatmul.mubr.msk.f32.gmra.mrb[92].mxu0 %vm439_vm1, %v9501_v7  ;;  %6835 = vmatmul.mubr.msk.f32.gmra.mrb[90].mxu1 %vm439_vm1, %v9508_v8  ;;  %v9522_v7 = vld [vmem:[%s10837_s1 + $0x1b0] sm:$0xff]  ;;  %v9529_v8 = vld [vmem:[%s10837_s1 + $0xc8] sm:$0xff] }
 0x8da   :  { %6790 = vmatprep.mubr.msk.f32.mxu0 %vm439_vm1, %v9515_v49  ;;  %11467 = vst [vmem:[#allocation9_spill] sm:$0xff] %v9522_v7  ;;  %6837 = vmatprep.mubr.msk.f32.mxu1 %vm439_vm1, %v9522_v7  ;;  %11468 = vst [vmem:[#allocation105_spill] sm:$0xff] %v9529_v8  ;;  %v9536_v49 = vld [vmem:[%s10837_s1 + $0x1b8] sm:$0xff]  ;;  %v9543_v7 = vld [vmem:[%s10837_s1 + $0xd0] sm:$0xff] }
 0x8db   :  { %11469 = vst [vmem:[#allocation104_spill] sm:$0xff] %v9536_v49  ;;  %11470 = vst [vmem:[#allocation8_spill] sm:$0xff] %v9543_v7 }
 0x8dd   :  { %6791 = vmatmul.mubr.msk.f32.gmra.mrb[94].mxu0 %vm439_vm1, %v9529_v8  ;;  %6838 = vmatmul.mubr.msk.f32.gmra.mrb[92].mxu1 %vm439_vm1, %v9536_v49  ;;  %v9550_v8 = vld [vmem:[%s10837_s1 + $0x1c0] sm:$0xff]  ;;  %v9557_v49 = vld [vmem:[%s10837_s1 + $0xd8] sm:$0xff] }
 0x8de   :  { %6793 = vmatprep.mubr.msk.f32.mxu0 %vm439_vm1, %v9543_v7  ;;  %11471 = vst [vmem:[#allocation106_spill] sm:$0xff] %v9550_v8  ;;  %6840 = vmatprep.mubr.msk.f32.mxu1 %vm439_vm1, %v9550_v8  ;;  %11472 = vst [vmem:[#allocation12_spill] sm:$0xff] %v9557_v49  ;;  %v9564_v7 = vld [vmem:[%s10837_s1 + $0x1c8] sm:$0xff]  ;;  %v9571_v8 = vld [vmem:[%s10837_s1 + $0xe0] sm:$0xff] }
 0x8df   :  { %11473 = vst [vmem:[#allocation107_spill] sm:$0xff] %v9564_v7  ;;  %11474 = vst [vmem:[#allocation85_spill] sm:$0xff] %v9571_v8 }
 0x8e1   :  { %6794 = vmatmul.mubr.msk.f32.gmra.mrb[96].mxu0 %vm439_vm1, %v9557_v49  ;;  %6841 = vmatmul.mubr.msk.f32.gmra.mrb[94].mxu1 %vm439_vm1, %v9564_v7  ;;  %v9578_v49 = vld [vmem:[%s10837_s1 + $0x1d0] sm:$0xff]  ;;  %v9585_v7 = vld [vmem:[%s10837_s1 + $0xe8] sm:$0xff] }
 0x8e2   :  { %6796 = vmatprep.mubr.msk.f32.mxu0 %vm439_vm1, %v9571_v8  ;;  %11475 = vst [vmem:[#allocation11_spill] sm:$0xff] %v9578_v49  ;;  %6843 = vmatprep.mubr.msk.f32.mxu1 %vm439_vm1, %v9578_v49  ;;  %11476 = vst [vmem:[#allocation10_spill] sm:$0xff] %v9585_v7  ;;  %v9592_v8 = vld [vmem:[%s10837_s1 + $0x1d8] sm:$0xff]  ;;  %v9599_v49 = vld [vmem:[%s10837_s1 + $0xf0] sm:$0xff] }
 0x8e3   :  { %11477 = vst [vmem:[#allocation108_spill] sm:$0xff] %v9592_v8  ;;  %11478 = vst [vmem:[#allocation109_spill] sm:$0xff] %v9599_v49 }
 0x8e5   :  { %6797 = vmatmul.mubr.msk.f32.gmra.mrb[98].mxu0 %vm439_vm1, %v9585_v7  ;;  %6844 = vmatmul.mubr.msk.f32.gmra.mrb[96].mxu1 %vm439_vm1, %v9592_v8  ;;  %v9606_v7 = vld [vmem:[%s10837_s1 + $0x1e0] sm:$0xff]  ;;  %v9613_v8 = vld [vmem:[%s10837_s1 + $0xf8] sm:$0xff] }
 0x8e6   :  { %6799 = vmatprep.mubr.msk.f32.mxu0 %vm439_vm1, %v9599_v49  ;;  %11479 = vst [vmem:[#allocation110_spill] sm:$0xff] %v9606_v7  ;;  %6846 = vmatprep.mubr.msk.f32.mxu1 %vm439_vm1, %v9606_v7  ;;  %11480 = vst [vmem:[#allocation111_spill] sm:$0xff] %v9613_v8  ;;  %v9620_v49 = vld [vmem:[%s10837_s1 + $0x1e8] sm:$0xff]  ;;  %v9627_v7 = vld [vmem:[%s10837_s1 + $0x1f0] sm:$0xff] }
 0x8e7   :  { %11481 = vst [vmem:[#allocation112_spill] sm:$0xff] %v9620_v49  ;;  %11482 = vst [vmem:[#allocation113_spill] sm:$0xff] %v9627_v7 }
 0x8e9   :  { %6800 = vmatmul.mubr.msk.f32.gmra.mrb[100].mxu0 %vm439_vm1, %v9613_v8  ;;  %6847 = vmatmul.mubr.msk.f32.gmra.mrb[98].mxu1 %vm439_vm1, %v9620_v49  ;;  %v9635_v8 = vld [vmem:[%s10837_s1 + $0x1f8] sm:$0xff] }
 0x8ea   :  { %6849 = vmatprep.mubr.msk.f32.mxu1 %vm439_vm1, %v9627_v7  ;;  %3436 = vmatprep.mubr.f32.mxu0 %v11483_v63  ;;  %11484 = vst [vmem:[#allocation14_spill] sm:$0xff] %v9635_v8 }
 0x8ed   :  { %6850 = vmatmul.mubr.msk.f32.gmra.mrb[100].mxu1 %vm439_vm1, %v9635_v8 }
 0x8ee   :  { %3506 = vmatprep.mubr.f32.mxu1 %v11485_v56 }
 0x980   :  { %v6756_v49 = vpop.f32.mrb[70].mxu0 }
 0x981   :  { %v2634_v30 = vpop.f32.mrb[71].mxu0  ;;  %v3095_v2 = vmul.f32 0.01, %v6756_v49 }
 0x982   :  { %v3094_v14 = vmul.f32 0.01, %v2634_v30 }
 0x984   :  { %v6759_v41 = vpop.f32.mrb[72].mxu0  ;;  %v6806_v12 = vpop.f32.mrb[70].mxu1  ;;  %v9664_v30 = vsub.f32 %v8863_v18, %v3094_v14 }
 0x985   :  { %v2644_v55 = vpop.f32.mrb[73].mxu0  ;;  %v2859_v27 = vpop.f32.mrb[71].mxu1  ;;  %v3097_v32 = vmul.f32 0.01, %v6759_v41  ;;  %v3127_v54 = vmul.f32 0.01, %v6806_v12  ;;  %v9661_v41 = vsub.f32 %v8860_v44, %v3095_v2 }
 0x986   :  { %v3096_v47 = vmul.f32 0.01, %v2644_v55  ;;  %v3126_v36 = vmul.f32 0.01, %v2859_v27 }
 0x987   :  { %v9667_v55 = vsub.f32 %v8866_v45, %v3097_v32  ;;  %v9677_v27 = vsub.f32 %v8876_v52, %v3127_v54 }
 0x988   :  { %v6762_v50 = vpop.f32.mrb[74].mxu0  ;;  %v6809_v7 = vpop.f32.mrb[72].mxu1  ;;  %v9670_v12 = vsub.f32 %v8869_v58, %v3096_v47 }
 0x989   :  { %v2654_v59 = vpop.f32.mrb[75].mxu0  ;;  %v2869_v63 = vpop.f32.mrb[73].mxu1  ;;  %v3099_v37 = vmul.f32 0.01, %v6762_v50  ;;  %v3129_v21 = vmul.f32 0.01, %v6809_v7  ;;  %v9680_v7 = vsub.f32 %v8879_v0, %v3126_v36  ;;  %v7246_v0 = vpack.c.bf16 %v9661_v41, %v9664_v30 }
 0x98a   :  { %v3098_v24 = vmul.f32 0.01, %v2654_v59  ;;  %v3128_v1 = vmul.f32 0.01, %v2869_v63 }
 0x98b   :  { %v9683_v44 = vsub.f32 %v8882_v39, %v3099_v37  ;;  %v9689_v45 = vsub.f32 %v8888_v20, %v3129_v21  ;;  %v7250_v39 = vpack.c.bf16 %v9667_v55, %v9670_v12 }
 0x98c   :  { %v6765_v3 = vpop.f32.mrb[76].mxu0  ;;  %v6812_v6 = vpop.f32.mrb[74].mxu1  ;;  %v9686_v18 = vsub.f32 %v8885_v42, %v3098_v24  ;;  %v9692_v58 = vsub.f32 %v8891_v57, %v3128_v1  ;;  %v7278_v57 = vpack.c.bf16 %v9677_v27, %v9680_v7 }
 0x98d   :  { %v2664_v51 = vpop.f32.mrb[77].mxu0  ;;  %v2879_v26 = vpop.f32.mrb[75].mxu1  ;;  %v3101_v47 = vmul.f32 0.01, %v6765_v3  ;;  %v3131_v32 = vmul.f32 0.01, %v6812_v6 }
 0x98e   :  { %v3100_v14 = vmul.f32 0.01, %v2664_v51  ;;  %v3130_v52 = vmul.f32 0.01, %v2879_v26  ;;  %v7282_v26 = vpack.c.bf16 %v9689_v45, %v9692_v58 }
 0x98f   :  { %v9715_v63 = vsub.f32 %v8914_v17, %v3131_v32 }
 0x990   :  { %v6768_v4 = vpop.f32.mrb[78].mxu0  ;;  %v6815_v33 = vpop.f32.mrb[76].mxu1 }
 0x991   :  { %v2674_v23 = vpop.f32.mrb[79].mxu0  ;;  %v2889_v8 = vpop.f32.mrb[77].mxu1  ;;  %v3103_v42 = vmul.f32 0.01, %v6768_v4  ;;  %v3133_v37 = vmul.f32 0.01, %v6815_v33  ;;  %v9712_v4 = vsub.f32 %v8911_v53, %v3101_v47 }
 0x992   :  { %v3102_v51 = vmul.f32 0.01, %v2674_v23  ;;  %v3132_v6 = vmul.f32 0.01, %v2889_v8  ;;  %v9724_v23 = vsub.f32 %v8923_v5, %v3130_v52 }
 0x993   :  { %v9730_v17 = vsub.f32 %v8929_v38, %v3133_v37 }
 0x994   :  { %v9640_v61 = vpop.f32.mrb[80].mxu0  ;;  %v9642_v56 = vpop.f32.mrb[78].mxu1  ;;  %v9738_v5 = vsub.f32 %v8937_v25, %v3132_v6  ;;  %v11515_v25 = vld [vmem:[#allocation33_spill] sm:$0xff] }
 0x995   :  { %v9644_v10 = vpop.f32.mrb[81].mxu0  ;;  %v9646_v28 = vpop.f32.mrb[79].mxu1  ;;  %v3105_v38 = vmul.f32 0.01, %v9640_v61 }
 0x998   :  { %v9648_v29 = vpop.f32.mrb[82].mxu0  ;;  %v9650_v35 = vpop.f32.mrb[80].mxu1 }
 0x999   :  { %v9652_v22 = vpop.f32.mrb[83].mxu0  ;;  %v9654_v43 = vpop.f32.mrb[81].mxu1 }
 0x99c   :  { %v9656_v46 = vpop.f32.mrb[84].mxu0  ;;  %v9658_v49 = vpop.f32.mrb[82].mxu1 }
 0x99d   :  { %v9672_v50 = vpop.f32.mrb[85].mxu0  ;;  %v9674_v59 = vpop.f32.mrb[83].mxu1 }
 0x9a0   :  { %v6780_v54 = vpop.f32.mrb[86].mxu0  ;;  %v9694_v2 = vpop.f32.mrb[84].mxu1 }
 0x9a1   :  { %v3111_v24 = vmul.f32 0.01, %v6780_v54  ;;  %v2714_v20 = vpop.f32.mrb[87].mxu0  ;;  %v9700_v21 = vpop.f32.mrb[85].mxu1  ;;  %v9718_v54 = vsub.f32 %v8917_v48, %v3100_v14  ;;  %v9735_v14 = vsub.f32 %v8934_v34, %v3102_v51 }
 0x9a2   :  { %v3110_v36 = vmul.f32 0.01, %v2714_v20 }
 0x9a3   :  { %v9709_v3 = vsub.f32 %v8908_v31, %v3111_v24  ;;  %v9727_v31 = vsub.f32 %v8926_v9, %v3103_v42  ;;  %v3104_v42 = vmul.f32 0.01, %v9644_v10 }
 0x9a4   :  { %v9721_v33 = vsub.f32 %v8920_v11, %v3110_v36  ;;  %v6783_v20 = vpop.f32.mrb[88].mxu0  ;;  %v6830_v1 = vpop.f32.mrb[86].mxu1 }
 0x9a5   :  { %v3113_v8 = vmul.f32 0.01, %v6783_v20  ;;  %v3143_v53 = vmul.f32 0.01, %v6830_v1  ;;  %v2724_v47 = vpop.f32.mrb[89].mxu0  ;;  %v2939_v24 = vpop.f32.mrb[87].mxu1 }
 0x9a6   :  { %v3112_v48 = vmul.f32 0.01, %v2724_v47  ;;  %v3142_v32 = vmul.f32 0.01, %v2939_v24  ;;  %v7244_v11 = vpack.c.bf16 %v9709_v3, %v9721_v33 }
 0x9a7   :  { %v9741_v9 = vsub.f32 %v8940_v15, %v3113_v8  ;;  %v9744_v52 = vsub.f32 %v8943_v60, %v3143_v53  ;;  %v3135_v53 = vmul.f32 0.01, %v9642_v56 }
 0x9a8   :  { %v9749_v1 = vsub.f32 %v8948_v13, %v3112_v48  ;;  %v9752_v37 = vsub.f32 %v8951_v16, %v3142_v32  ;;  %v6786_v34 = vpop.f32.mrb[90].mxu0  ;;  %v6833_v36 = vpop.f32.mrb[88].mxu1  ;;  %7245 = vmatprep.subr.bf16.mxu0 %v7244_v11  ;;  %v3134_v48 = vmul.f32 0.01, %v9646_v28  ;;  %v11486_v11 = vld [vmem:[#allocation19_spill] sm:$0xff] }
 0x9a9   :  { %v3115_v60 = vmul.f32 0.01, %v6786_v34  ;;  %v3145_v51 = vmul.f32 0.01, %v6833_v36  ;;  %v2734_v61 = vpop.f32.mrb[91].mxu0  ;;  %v2949_v6 = vpop.f32.mrb[89].mxu1  ;;  %7247 = vmatpush3.bf16.msra.mxu0 %v7246_v0 }
 0x9aa   :  { %v3114_v10 = vmul.f32 0.01, %v2734_v61  ;;  %v3144_v13 = vmul.f32 0.01, %v2949_v6  ;;  %v7248_v16 = vpack.c.bf16 %v9741_v9, %v9749_v1  ;;  %v7276_v20 = vpack.c.bf16 %v9744_v52, %v9752_v37 }
 0x9ab   :  { %v9766_v47 = vsub.f32 %v8965_v40, %v3115_v60  ;;  %v9769_v24 = vsub.f32 %v8968_v62, %v3145_v51  ;;  %v11488_v40 = vld [vmem:[#allocation20_spill] sm:$0xff]  ;;  %v11490_v62 = vld [vmem:[#allocation21_spill] sm:$0xff] }
 0x9ac   :  { %v9775_v32 = vsub.f32 %v8974_v19, %v3114_v10  ;;  %v9778_v34 = vsub.f32 %v11486_v11, %v3144_v13  ;;  %v6789_v36 = vpop.f32.mrb[92].mxu0  ;;  %v6836_v61 = vpop.f32.mrb[90].mxu1  ;;  %7249 = vmatprep.subr.bf16.mxu0 %v7248_v16  ;;  %7277 = vmatprep.subr.bf16.mxu1 %v7276_v20  ;;  %v9781_v56 = vsub.f32 %v11488_v40, %v3105_v38  ;;  %v3107_v13 = vmul.f32 0.01, %v9648_v29  ;;  %v11492_v20 = vld [vmem:[#allocation22_spill] sm:$0xff] }
 0x9ad   :  { %v9784_v60 = vsub.f32 %v11490_v62, %v3104_v42  ;;  %v3117_v51 = vmul.f32 0.01, %v6789_v36  ;;  %v3147_v6 = vmul.f32 0.01, %v6836_v61  ;;  %v2744_v0 = vpop.f32.mrb[93].mxu0  ;;  %v2959_v28 = vpop.f32.mrb[91].mxu1  ;;  %7251 = vmatpush3.bf16.msra.mxu0 %v7250_v39  ;;  %7279 = vmatpush3.bf16.msra.mxu1 %v7278_v57 }
 0x9ae   :  { %11487 = vst [vmem:[#allocation17_spill] sm:$0xff] %v9778_v34  ;;  %11489 = vst [vmem:[#allocation19_spill] sm:$0xff] %v9781_v56  ;;  %v3116_v19 = vmul.f32 0.01, %v2744_v0  ;;  %v3146_v10 = vmul.f32 0.01, %v2959_v28  ;;  %v7252_v38 = vpack.c.bf16 %v9766_v47, %v9775_v32  ;;  %v7280_v42 = vpack.c.bf16 %v9769_v24, %v9778_v34 }
 0x9af   :  { %11491 = vst [vmem:[#allocation20_spill] sm:$0xff] %v9784_v60  ;;  %v3137_v16 = vmul.f32 0.01, %v9650_v35  ;;  %v9799_v11 = vsub.f32 %v11492_v20, %v3117_v51  ;;  %v11494_v39 = vld [vmem:[#allocation23_spill] sm:$0xff]  ;;  %v3106_v57 = vmul.f32 0.01, %v9652_v22 }
 0x9b0   :  { %v9802_v36 = vsub.f32 %v11494_v39, %v3147_v6  ;;  %v3136_v0 = vmul.f32 0.01, %v9654_v43  ;;  %v11496_v61 = vld [vmem:[#allocation24_spill] sm:$0xff]  ;;  %v11498_v62 = vld [vmem:[#allocation25_spill] sm:$0xff]  ;;  %v6792_v8 = vpop.f32.mrb[94].mxu0  ;;  %v6839_v29 = vpop.f32.mrb[92].mxu1  ;;  %7253 = vmatprep.subr.bf16.mxu0 %v7252_v38  ;;  %7281 = vmatprep.subr.bf16.mxu1 %v7280_v42 }
 0x9b1   :  { %11493 = vst [vmem:[#allocation21_spill] sm:$0xff] %v9799_v11  ;;  %v9807_v40 = vsub.f32 %v11496_v61, %v3116_v19  ;;  %v9810_v28 = vsub.f32 %v11498_v62, %v3146_v10  ;;  %v11500_v35 = vld [vmem:[#allocation26_spill] sm:$0xff]  ;;  %v11502_v20 = vld [vmem:[#allocation27_spill] sm:$0xff]  ;;  %v3119_v39 = vmul.f32 0.01, %v6792_v8  ;;  %v2754_v15 = vpop.f32.mrb[95].mxu0  ;;  %v11504_v19 = vpack.c.bf16 %v9683_v44, %v9686_v18  ;;  %7283 = vmatpush3.bf16.msra.mxu1 %v7282_v26 }
 0x9b2   :  { %11495 = vst [vmem:[#allocation22_spill] sm:$0xff] %v9802_v36  ;;  %v9813_v51 = vsub.f32 %v11500_v35, %v3135_v53  ;;  %v9816_v6 = vsub.f32 %v11502_v20, %v3134_v48  ;;  %v3149_v22 = vmul.f32 0.01, %v6839_v29  ;;  %v2969_v43 = vpop.f32.mrb[93].mxu1  ;;  %v3118_v10 = vmul.f32 0.01, %v2754_v15 }
 0x9b3   :  { %11497 = vst [vmem:[#allocation23_spill] sm:$0xff] %v9807_v40  ;;  %11499 = vst [vmem:[#allocation24_spill] sm:$0xff] %v9810_v28  ;;  %7255 = vmatpush3.bf16.msra.mxu0 %v11504_v19  ;;  %v3148_v38 = vmul.f32 0.01, %v2969_v43  ;;  %v7256_v53 = vpack.c.bf16 %v9799_v11, %v9807_v40  ;;  %v7284_v48 = vpack.c.bf16 %v9802_v36, %v9810_v28  ;;  %v11505_v42 = vld [vmem:[#allocation28_spill] sm:$0xff]  ;;  %v11507_v62 = vld [vmem:[#allocation29_spill] sm:$0xff] }
 0x9b4   :  { %11501 = vst [vmem:[#allocation25_spill] sm:$0xff] %v9813_v51  ;;  %11503 = vst [vmem:[#allocation26_spill] sm:$0xff] %v9816_v6  ;;  %v9831_v61 = vsub.f32 %v11505_v42, %v3107_v13  ;;  %v9834_v29 = vsub.f32 %v11507_v62, %v3119_v39  ;;  %v11509_v35 = vld [vmem:[#allocation30_spill] sm:$0xff]  ;;  %v11511_v26 = vld [vmem:[#allocation31_spill] sm:$0xff]  ;;  %v6795_v40 = vpop.f32.mrb[96].mxu0  ;;  %v6842_v8 = vpop.f32.mrb[94].mxu1 }
 0x9b5   :  { %v9837_v20 = vsub.f32 %v11509_v35, %v3149_v22  ;;  %v9840_v15 = vsub.f32 %v11511_v26, %v3137_v16  ;;  %v11513_v43 = vld [vmem:[#allocation32_spill] sm:$0xff]  ;;  %v9846_v28 = vsub.f32 %v11515_v25, %v3148_v38  ;;  %7257 = vmatprep.subr.bf16.mxu0 %v7256_v53  ;;  %7285 = vmatprep.subr.bf16.mxu1 %v7284_v48  ;;  %v11517_v13 = vld [vmem:[#allocation34_spill] sm:$0xff]  ;;  %v11519_v39 = vld [vmem:[#allocation35_spill] sm:$0xff]  ;;  %v3121_v22 = vmul.f32 0.01, %v6795_v40  ;;  %v2764_v16 = vpop.f32.mrb[97].mxu0 }
 0x9b6   :  { %11506 = vst [vmem:[#allocation27_spill] sm:$0xff] %v9831_v61  ;;  %11508 = vst [vmem:[#allocation28_spill] sm:$0xff] %v9834_v29  ;;  %v9843_v19 = vsub.f32 %v11513_v43, %v3118_v10  ;;  %v9849_v42 = vsub.f32 %v11517_v13, %v3106_v57  ;;  %v9852_v62 = vsub.f32 %v11519_v39, %v3136_v0  ;;  %v3151_v35 = vmul.f32 0.01, %v6842_v8  ;;  %v2979_v26 = vpop.f32.mrb[95].mxu1  ;;  %v11523_v8 = vld [vmem:[#allocation36_spill] sm:$0xff] }
 0x9b7   :  { %11510 = vst [vmem:[#allocation29_spill] sm:$0xff] %v9837_v20  ;;  %11512 = vst [vmem:[#allocation30_spill] sm:$0xff] %v9840_v15  ;;  %v11521_v10 = vpack.c.bf16 %v9712_v4, %v9718_v54  ;;  %v11522_v25 = vpack.c.bf16 %v9715_v63, %v9724_v23  ;;  %v3120_v38 = vmul.f32 0.01, %v2764_v16  ;;  %v3150_v53 = vmul.f32 0.01, %v2979_v26 }
 0x9b8   :  { %11514 = vst [vmem:[#allocation31_spill] sm:$0xff] %v9843_v19  ;;  %11516 = vst [vmem:[#allocation32_spill] sm:$0xff] %v9846_v28  ;;  %v7260_v57 = vpack.c.bf16 %v9834_v29, %v9843_v19  ;;  %v7288_v0 = vpack.c.bf16 %v9837_v20, %v9846_v28  ;;  %v3109_v40 = vmul.f32 0.01, %v9656_v46  ;;  %v3139_v48 = vmul.f32 0.01, %v9658_v49 }
 0x9b9   :  { %11518 = vst [vmem:[#allocation33_spill] sm:$0xff] %v9849_v42  ;;  %11520 = vst [vmem:[#allocation34_spill] sm:$0xff] %v9852_v62  ;;  %7259 = vmatpush3.bf16.msra.mxu0 %v11521_v10  ;;  %7287 = vmatpush3.bf16.msra.mxu1 %v11522_v25  ;;  %v9867_v43 = vsub.f32 %v11523_v8, %v3121_v22  ;;  %v11525_v13 = vld [vmem:[#allocation37_spill] sm:$0xff]  ;;  %v3108_v10 = vmul.f32 0.01, %v9672_v50  ;;  %v11527_v26 = vld [vmem:[#allocation38_spill] sm:$0xff]  ;;  %v7294_v49 = vpack.c.bf16 %v9813_v51, %v9816_v6 }
 0x9ba   :  { %v9870_v39 = vsub.f32 %v11525_v13, %v3151_v35  ;;  %v3138_v16 = vmul.f32 0.01, %v9674_v59  ;;  %v9875_v25 = vsub.f32 %v11527_v26, %v3120_v38  ;;  %v11529_v19 = vld [vmem:[#allocation39_spill] sm:$0xff]  ;;  %v6798_v28 = vpop.f32.mrb[98].mxu0  ;;  %v6845_v46 = vpop.f32.mrb[96].mxu1  ;;  %7261 = vmatprep.subr.bf16.mxu0 %v7260_v57  ;;  %7289 = vmatprep.subr.bf16.mxu1 %v7288_v0  ;;  %v7270_v22 = vpack.c.bf16 %v9831_v61, %v9849_v42  ;;  %v11533_v26 = vld [vmem:[#allocation40_spill] sm:$0xff] }
 0x9bb   :  { %11524 = vst [vmem:[#allocation35_spill] sm:$0xff] %v9867_v43  ;;  %v9878_v29 = vsub.f32 %v11529_v19, %v3150_v53  ;;  %v3123_v35 = vmul.f32 0.01, %v6798_v28  ;;  %v3153_v50 = vmul.f32 0.01, %v6845_v46  ;;  %v2774_v8 = vpop.f32.mrb[99].mxu0  ;;  %v11531_v38 = vpack.c.bf16 %v9727_v31, %v9735_v14 }
 0x9bc   :  { %11526 = vst [vmem:[#allocation36_spill] sm:$0xff] %v9870_v39  ;;  %11528 = vst [vmem:[#allocation37_spill] sm:$0xff] %v9875_v25  ;;  %v2989_v59 = vpop.f32.mrb[97].mxu1  ;;  %v11532_v19 = vpack.c.bf16 %v9730_v17, %v9738_v5  ;;  %v3122_v53 = vmul.f32 0.01, %v2774_v8  ;;  %v7264_v0 = vpack.c.bf16 %v9867_v43, %v9875_v25  ;;  %v7298_v28 = vpack.c.bf16 %v9840_v15, %v9852_v62  ;;  %v11535_v42 = vld [vmem:[#allocation41_spill] sm:$0xff] }
 0x9bd   :  { %11530 = vst [vmem:[#allocation38_spill] sm:$0xff] %v9878_v29  ;;  %7263 = vmatpush3.bf16.msra.mxu0 %v11531_v38  ;;  %v3152_v57 = vmul.f32 0.01, %v2989_v59  ;;  %v7292_v13 = vpack.c.bf16 %v9870_v39, %v9878_v29  ;;  %v9897_v46 = vsub.f32 %v11533_v26, %v3109_v40  ;;  %v9900_v38 = vsub.f32 %v11535_v42, %v3123_v35  ;;  %v11537_v20 = vld [vmem:[#allocation42_spill] sm:$0xff]  ;;  %v11539_v8 = vld [vmem:[#allocation43_spill] sm:$0xff]  ;;  %v11543_v43 = vld [vmem:[#allocation45_spill] sm:$0xff] }
 0x9be   :  { %7291 = vmatpush3.bf16.msra.mxu1 %v11532_v19  ;;  %v9903_v61 = vsub.f32 %v11537_v20, %v3153_v50  ;;  %v9906_v59 = vsub.f32 %v11539_v8, %v3139_v48  ;;  %v11541_v19 = vld [vmem:[#allocation44_spill] sm:$0xff]  ;;  %v6801_v39 = vpop.f32.mrb[100].mxu0  ;;  %v6848_v62 = vpop.f32.mrb[98].mxu1  ;;  %7265 = vmatprep.subr.bf16.mxu0 %v7264_v0  ;;  %v11545_v40 = vld [vmem:[#allocation46_spill] sm:$0xff]  ;;  %v11547_v42 = vld [vmem:[#allocation47_spill] sm:$0xff] }
 0x9bf   :  { %11534 = vst [vmem:[#allocation39_spill] sm:$0xff] %v9897_v46  ;;  %11536 = vst [vmem:[#allocation40_spill] sm:$0xff] %v9900_v38  ;;  %v9909_v25 = vsub.f32 %v11541_v19, %v3122_v53  ;;  %v9912_v29 = vsub.f32 %v11543_v43, %v3152_v57  ;;  %7293 = vmatprep.subr.bf16.mxu1 %v7292_v13  ;;  %v9915_v26 = vsub.f32 %v11545_v40, %v3108_v10  ;;  %v2784_v48 = vpop.f32.mrb[101].mxu0  ;;  %v2999_v8 = vpop.f32.mrb[99].mxu1  ;;  %v11552_v19 = vld [vmem:[#allocation49_spill] sm:$0xff] }
 0x9c0   :  { %11538 = vst [vmem:[#allocation41_spill] sm:$0xff] %v9903_v61  ;;  %11540 = vst [vmem:[#allocation42_spill] sm:$0xff] %v9906_v59  ;;  %v9918_v35 = vsub.f32 %v11547_v42, %v3138_v16  ;;  %v3125_v20 = vmul.f32 0.01, %v6801_v39  ;;  %v3155_v50 = vmul.f32 0.01, %v6848_v62  ;;  %v11549_v53 = vpack.c.bf16 %v9781_v56, %v9784_v60 }
 0x9c1   :  { %11542 = vst [vmem:[#allocation43_spill] sm:$0xff] %v9909_v25  ;;  %11544 = vst [vmem:[#allocation44_spill] sm:$0xff] %v9912_v29  ;;  %v3124_v43 = vmul.f32 0.01, %v2784_v48  ;;  %v3154_v57 = vmul.f32 0.01, %v2999_v8  ;;  %v7268_v0 = vpack.c.bf16 %v9900_v38, %v9909_v25  ;;  %v7296_v10 = vpack.c.bf16 %v9903_v61, %v9912_v29 }
 0x9c2   :  { %11546 = vst [vmem:[#allocation45_spill] sm:$0xff] %v9915_v26  ;;  %11548 = vst [vmem:[#allocation46_spill] sm:$0xff] %v9918_v35  ;;  %7267 = vmatpush3.bf16.msra.mxu0 %v11549_v53  ;;  %7295 = vmatpush3.bf16.msra.mxu1 %v7294_v49  ;;  %v3141_v16 = vmul.f32 0.01, %v9694_v2  ;;  %v3140_v39 = vmul.f32 0.01, %v9700_v21  ;;  %v9933_v40 = vsub.f32 %v11552_v19, %v3155_v50 }
 0x9c3   :  { %v11550_v62 = vld [vmem:[#allocation48_spill] sm:$0xff]  ;;  %v11554_v42 = vld [vmem:[#allocation50_spill] sm:$0xff]  ;;  %v11556_v48 = vld [vmem:[#allocation51_spill] sm:$0xff]  ;;  %v6851_v53 = vpop.f32.mrb[100].mxu1  ;;  %7269 = vmatprep.subr.bf16.mxu0 %v7268_v0  ;;  %7297 = vmatprep.subr.bf16.mxu1 %v7296_v10  ;;  %v7274_v2 = vpack.c.bf16 %v9897_v46, %v9915_v26 }
 0x9c4   :  { %v9930_v13 = vsub.f32 %v11550_v62, %v3125_v20  ;;  %11553 = vst [vmem:[#allocation48_spill] sm:$0xff] %v9933_v40  ;;  %v9936_v49 = vsub.f32 %v11554_v42, %v3124_v43  ;;  %v9939_v8 = vsub.f32 %v11556_v48, %v3154_v57  ;;  %v3157_v29 = vmul.f32 0.01, %v6851_v53  ;;  %v3009_v25 = vpop.f32.mrb[101].mxu1  ;;  %v11558_v57 = vld [vmem:[#allocation52_spill] sm:$0xff]  ;;  %v11560_v10 = vld [vmem:[#allocation53_spill] sm:$0xff] }
 0x9c5   :  { %v3156_v21 = vmul.f32 0.01, %v3009_v25  ;;  %v7302_v43 = vpack.c.bf16 %v9906_v59, %v9918_v35  ;;  %v9950_v0 = vsub.f32 %v11558_v57, %v3141_v16  ;;  %v9953_v62 = vsub.f32 %v11560_v10, %v3140_v39  ;;  %v11564_v19 = vld [vmem:[#allocation55_spill] sm:$0xff]  ;;  %v11566_v48 = vld [vmem:[#allocation56_spill] sm:$0xff]  ;;  %v11567_v39 = vld [vmem:[#allocation57_spill] sm:$0xff] }
 0x9c6   :  { %11551 = vst [vmem:[#allocation47_spill] sm:$0xff] %v9930_v13  ;;  %11555 = vst [vmem:[#allocation49_spill] sm:$0xff] %v9936_v49  ;;  %7271 = vmatpush3.bf16.msra.mxu0 %v7270_v22  ;;  %7299 = vmatpush3.bf16.msra.mxu1 %v7298_v28  ;;  %v7272_v20 = vpack.c.bf16 %v9930_v13, %v9936_v49  ;;  %v7300_v50 = vpack.c.bf16 %v9933_v40, %v9939_v8  ;;  %v11562_v22 = vld [vmem:[#allocation54_spill] sm:$0xff]  ;;  %v11569_v53 = vld [vmem:[#allocation59_spill] sm:$0xff] }
 0x9c7   :  { %11557 = vst [vmem:[#allocation50_spill] sm:$0xff] %v9939_v8  ;;  %11559 = vst [vmem:[#allocation51_spill] sm:$0xff] %v9950_v0  ;;  %v9956_v28 = vsub.f32 %v11562_v22, %v3157_v29  ;;  %v9959_v25 = vsub.f32 %v11564_v19, %v3156_v21  ;;  %v7306_v16 = vpack.c.bf16 %v9950_v0, %v9953_v62  ;;  %v11568_v29 = vld [vmem:[#allocation58_spill] sm:$0xff]  ;;  %v11570_v19 = vld [vmem:[#allocation16_spill] sm:$0xff] }
 0x9c8   :  { %11561 = vst [vmem:[#allocation52_spill] sm:$0xff] %v9953_v62  ;;  %7273 = vmatprep.subr.bf16.mxu0 %v7272_v20  ;;  %7301 = vmatprep.subr.bf16.mxu1 %v7300_v50  ;;  %v5668_v50 = vld [vmem:[#allocation3] ss:$0 sm:$0xff] }
 0x9c9   :  { %11563 = vst [vmem:[#allocation53_spill] sm:$0xff] %v9956_v28  ;;  %11565 = vst [vmem:[#allocation54_spill] sm:$0xff] %v9959_v25  ;;  %v7304_v42 = vpack.c.bf16 %v9956_v28, %v9959_v25 }
 0x9ca   :  { %7275 = vmatpush3.bf16.msra.mxu0 %v7274_v2  ;;  %7303 = vmatpush3.bf16.msra.mxu1 %v7302_v43 }
 0x9cb   :  { %7305 = vmatprep.subr.bf16.mxu1 %v7304_v42  ;;  %v5669_v42 = vld [vmem:[#allocation3 + $0x1] ss:$0 sm:$0xff] }
 0x9cd   :  { %3437 = vmatmul.mubr.f32.vlgmr.msra.gmra.mrb[102].mxu0 %v11566_v48 }
 0x9ce   :  { %7307 = vmatpush3.bf16.msra.mxu1 %v7306_v16  ;;  %6854 = vmatprep.mubr.msk.f32.mxu0 %vm439_vm1, %v11567_v39 }
 0x9d1   :  { %3507 = vmatmul.mubr.f32.vlgmr.msra.gmra.mrb[102].mxu1 %v11568_v29 }
 0x9d2   :  { %6904 = vmatprep.mubr.msk.f32.mxu1 %vm439_vm1, %v11569_v53 }
 0xaa0   :  { %v6242_v2 = vpop.f32.mrb[102].mxu0 }
 0xaa1   :  { %v6243_v21 = vpop.f32.mrb[103].mxu0 }
 0xaa2   :  { %v6244_v20 = vadd.f32 %v6243_v21, %v6242_v2 }
 0xaa4   :  { %v3439_v43 = vadd.f32 %v6244_v20, %v5668_v50  ;;  %v6277_v57 = vpop.f32.mrb[102].mxu1 }
 0xaa5   :  { %v6278_v10 = vpop.f32.mrb[103].mxu1 }
 0xaa6   :  { %v6279_v22 = vadd.f32 %v6278_v10, %v6277_v57  ;;  %v3512_v48 = vadd.f32 %v3439_v43, %v11570_v19 }
 0xaa8   :  { %v3509_v16 = vadd.f32 %v6279_v22, %v5669_v42  ;;  %3514 = vmax.xlane.f32.xlu0 %v3512_v48  ;;  %v11571_v22 = vld [vmem:[#allocation60_spill] sm:$0xff] }
 0xaaa   :  { %v3513_v39 = vadd.f32 %v3509_v16, %v11570_v19 }
 0xaac   :  { %3516 = vmax.xlane.f32.xlu1 %v3513_v39 }
 0xb35   :  { %v3515_v29 = vpop.xlane.xlu0 %3514 }
 0xb36   :  { %v3518_v25 = vsub.f32 %v3512_v48, %v3515_v29 }
 0xb38   :  { %v3520_v28 = vmul.f32 1.442695, %v3518_v25 }
 0xb39   :  { %v3517_v53 = vpop.xlane.xlu1 %3516 }
 0xb3a   :  { %7464 = vpow2.f32 %v3520_v28  ;;  %v3519_v62 = vsub.f32 %v3513_v39, %v3517_v53  ;;  %v11572_v39 = vld [vmem:[#allocation61_spill] sm:$0xff]  ;;  %v11573_v53 = vld [vmem:[#allocation62_spill] sm:$0xff] }
 0xb3c   :  { %v3522_v2 = vmul.f32 1.442695, %v3519_v62 }
 0xb3e   :  { %7466 = vpow2.f32 %v3522_v2 }
 0xb44   :  { %v7465_v21 = vpop.eup %7464 }
 0xb45   :  { %3524 = vadd.xlane.f32.xlu0 %v7465_v21 }
 0xb48   :  { %v7467_v20 = vpop.eup %7466 }
 0xb49   :  { %3526 = vadd.xlane.f32.xlu1 %v7467_v20 }
 0xbd2   :  { %v3525_v50 = vpop.xlane.xlu0 %3524 }
 0xbd3   :  { %7468 = vrcp.f32 %v3525_v50  ;;  %v11574_v50 = vld [vmem:[#allocation63_spill] sm:$0xff] }
 0xbd6   :  { %v3527_v43 = vpop.xlane.xlu1 %3526 }
 0xbd7   :  { %7470 = vrcp.f32 %v3527_v43 }
 0xbdd   :  { %v7469_v57 = vpop.eup %7468 }
 0xbde   :  { %v3529_v10 = vmul.f32 %v7469_v57, %v7465_v21 }
 0xbe0   :  { %v3532_v42 = vsub.f32 %v3529_v10, %v11571_v22  ;;  %v11576_v22 = vld [vmem:[#allocation65_spill] sm:$0xff] }
 0xbe1   :  { %v7471_v16 = vpop.eup %7470 }
 0xbe2   :  { %v3534_v48 = vmul.f32 0.125, %v3532_v42  ;;  %v3531_v25 = vmul.f32 %v7471_v16, %v7467_v20  ;;  %v11575_v20 = vld [vmem:[#allocation64_spill] sm:$0xff]  ;;  %v11577_v42 = vld [vmem:[#allocation66_spill] sm:$0xff]  ;;  %v11578_v16 = vld [vmem:[#allocation67_spill] sm:$0xff] }
 0xbe4   :  { %6852 = vmatprep.subr.mxu0 %v3534_v48  ;;  %v3986_v28 = vrot.slane %v3534_v48, 4  ;;  %v3533_v62 = vsub.f32 %v3531_v25, %v11572_v39 }
 0xbe5   :  { %6853 = vmatpush3.msra.mxu0 %v3534_v48 }
 0xbe6   :  { %v3987_v29 = vadd.f32 %v3986_v28, %v3534_v48  ;;  %6855 = vmatmul.mubr.msk.f32.vlgmr.msra.gmra.mrb[104].mxu0 %vm439_vm1, %v11573_v53  ;;  %v3535_v2 = vmul.f32 0.125, %v3533_v62  ;;  %v11579_v62 = vld [vmem:[#allocation68_spill] sm:$0xff]  ;;  %v11581_v53 = vld [vmem:[#allocation70_spill] sm:$0xff] }
 0xbe7   :  { %6857 = vmatprep.mubr.msk.f32.mxu0 %vm439_vm1, %v11574_v50 }
 0xbe8   :  { %v3988_v43 = vrot.slane %v3987_v29, 2  ;;  %6902 = vmatprep.subr.mxu1 %v3535_v2  ;;  %v3992_v21 = vrot.slane %v3535_v2, 4 }
 0xbe9   :  { %6903 = vmatpush3.msra.mxu1 %v3535_v2 }
 0xbea   :  { %v3989_v57 = vadd.f32 %v3988_v43, %v3987_v29  ;;  %v3993_v10 = vadd.f32 %v3992_v21, %v3535_v2  ;;  %6858 = vmatmul.mubr.msk.f32.gmra.mrb[106].mxu0 %vm439_vm1, %v11575_v20  ;;  %6905 = vmatmul.mubr.msk.f32.vlgmr.msra.gmra.mrb[104].mxu1 %vm439_vm1, %v11576_v22  ;;  %v11580_v29 = vld [vmem:[#allocation69_spill] sm:$0xff]  ;;  %v11582_v2 = vld [vmem:[#allocation71_spill] sm:$0xff]  ;;  %v4254_v21 = vld [vmem:[#allocation3] sm:$0x1] }
 0xbeb   :  { %6860 = vmatprep.mubr.msk.f32.mxu0 %vm439_vm1, %v11577_v42  ;;  %6907 = vmatprep.mubr.msk.f32.mxu1 %vm439_vm1, %v11578_v16  ;;  %v11583_v42 = vld [vmem:[#allocation72_spill] sm:$0xff]  ;;  %v11586_v16 = vld [vmem:[#allocation75_spill] sm:$0xff] }
 0xbec   :  { %v3990_v48 = vrot.slane %v3989_v57, 1  ;;  %v3994_v25 = vrot.slane %v3993_v10, 2 }
 0xbee   :  { %v3991_v28 = vadd.f32 %v3990_v48, %v3989_v57  ;;  %v3995_v39 = vadd.f32 %v3994_v25, %v3993_v10  ;;  %6861 = vmatmul.mubr.msk.f32.gmra.mrb[108].mxu0 %vm439_vm1, %v11579_v62  ;;  %6908 = vmatmul.mubr.msk.f32.gmra.mrb[106].mxu1 %vm439_vm1, %v11580_v29  ;;  %v11584_v57 = vld [vmem:[#allocation73_spill] sm:$0xff]  ;;  %v11585_v10 = vld [vmem:[#allocation74_spill] sm:$0xff]  ;;  %v4255_v25 = vld [vmem:[#allocation3 + $0x1] sm:$0x1] }
 0xbef   :  { %6863 = vmatprep.mubr.msk.f32.mxu0 %vm439_vm1, %v11581_v53  ;;  %6910 = vmatprep.mubr.msk.f32.mxu1 %vm439_vm1, %v11582_v2  ;;  %v11587_v62 = vld [vmem:[#allocation76_spill] sm:$0xff]  ;;  %v11589_v29 = vld [vmem:[#allocation78_spill] sm:$0xff]  ;;  %v11590_v53 = vld [vmem:[#allocation79_spill] sm:$0xff] }
 0xbf0   :  { %v4256_v50 = vmul.f32 0.01, %v3991_v28  ;;  %v3996_v43 = vrot.slane %v3995_v39, 1  ;;  %v11591_v2 = vld [vmem:[#allocation80_spill] sm:$0xff] }
 0xbf2   :  { %v4258_v20 = vsub.f32 %v4254_v21, %v4256_v50  ;;  %v3997_v22 = vadd.f32 %v3996_v43, %v3995_v39  ;;  %6864 = vmatmul.mubr.msk.f32.gmra.mrb[110].mxu0 %vm439_vm1, %v11583_v42  ;;  %6911 = vmatmul.mubr.msk.f32.gmra.mrb[108].mxu1 %vm439_vm1, %v11584_v57  ;;  %v11588_v39 = vld [vmem:[#allocation77_spill] sm:$0xff]  ;;  %v11593_v43 = vld [vmem:[#allocation82_spill] sm:$0xff]  ;;  %v11594_v21 = vld [vmem:[#allocation83_spill] sm:$0xff] }
 0xbf3   :  { %6866 = vmatprep.mubr.msk.f32.mxu0 %vm439_vm1, %v11585_v10  ;;  %6913 = vmatprep.mubr.msk.f32.mxu1 %vm439_vm1, %v11586_v16  ;;  %v11592_v50 = vld [vmem:[#allocation81_spill] sm:$0xff]  ;;  %v11597_v42 = vld [vmem:[#allocation15_spill] sm:$0xff]  ;;  %v11598_v57 = vld [vmem:[#allocation18_spill] sm:$0xff] }
 0xbf4   :  { %4260 = vst [vmem:[#allocation3] sm:$0x1] %v4258_v20  ;;  %v4257_v48 = vmul.f32 0.01, %v3997_v22  ;;  %v11595_v20 = vld [vmem:[#allocation84_spill] sm:$0xff]  ;;  %v11596_v22 = vld [vmem:[#allocation86_spill] sm:$0xff] }
 0xbf5   :  { %v11599_v10 = vld [vmem:[#allocation89_spill] sm:$0xff]  ;;  %v11600_v16 = vld [vmem:[#allocation90_spill] sm:$0xff] }
 0xbf6   :  { %v4259_v28 = vsub.f32 %v4255_v25, %v4257_v48  ;;  %6867 = vmatmul.mubr.msk.f32.gmra.mrb[112].mxu0 %vm439_vm1, %v11587_v62  ;;  %6914 = vmatmul.mubr.msk.f32.gmra.mrb[110].mxu1 %vm439_vm1, %v11588_v39  ;;  %v11601_v48 = vld [vmem:[#allocation91_spill] sm:$0xff]  ;;  %v11602_v25 = vld [vmem:[#allocation92_spill] sm:$0xff] }
 0xbf7   :  { %6869 = vmatprep.mubr.msk.f32.mxu0 %vm439_vm1, %v11589_v29  ;;  %6916 = vmatprep.mubr.msk.f32.mxu1 %vm439_vm1, %v11590_v53  ;;  %v11604_v62 = vld [vmem:[#allocation88_spill] sm:$0xff]  ;;  %v11606_v29 = vld [vmem:[#allocation94_spill] sm:$0xff]  ;;  %v11607_v53 = vld [vmem:[#allocation95_spill] sm:$0xff] }
 0xbf8   :  { %4261 = vst [vmem:[#allocation3 + $0x1] sm:$0x1] %v4259_v28  ;;  %v11603_v28 = vld [vmem:[#allocation87_spill] sm:$0xff]  ;;  %v11605_v39 = vld [vmem:[#allocation96_spill] sm:$0xff] }
 0xbfa   :  { %6870 = vmatmul.mubr.msk.f32.gmra.mrb[114].mxu0 %vm439_vm1, %v11591_v2  ;;  %6917 = vmatmul.mubr.msk.f32.gmra.mrb[112].mxu1 %vm439_vm1, %v11592_v50  ;;  %v11608_v2 = vld [vmem:[#allocation93_spill] sm:$0xff] }
 0xbfb   :  { %6872 = vmatprep.mubr.msk.f32.mxu0 %vm439_vm1, %v11593_v43  ;;  %6919 = vmatprep.mubr.msk.f32.mxu1 %vm439_vm1, %v11594_v21  ;;  %v11609_v50 = vld [vmem:[#allocation97_spill] sm:$0xff]  ;;  %v11610_v43 = vld [vmem:[#allocation98_spill] sm:$0xff]  ;;  %v11611_v21 = vld [vmem:[#allocation100_spill] sm:$0xff] }
 0xbfe   :  { %6873 = vmatmul.mubr.msk.f32.gmra.mrb[116].mxu0 %vm439_vm1, %v11595_v20  ;;  %6920 = vmatmul.mubr.msk.f32.gmra.mrb[114].mxu1 %vm439_vm1, %v11596_v22  ;;  %v11612_v20 = vld [vmem:[#allocation99_spill] sm:$0xff]  ;;  %v11613_v22 = vld [vmem:[#allocation101_spill] sm:$0xff] }
 0xbff   :  { %6875 = vmatprep.mubr.msk.f32.mxu0 %vm439_vm1, %v11597_v42  ;;  %6922 = vmatprep.mubr.msk.f32.mxu1 %vm439_vm1, %v11598_v57  ;;  %v11614_v42 = vld [vmem:[#allocation102_spill] sm:$0xff]  ;;  %v11615_v57 = vld [vmem:[#allocation7_spill] sm:$0xff] }
 0xc02   :  { %6876 = vmatmul.mubr.msk.f32.gmra.mrb[118].mxu0 %vm439_vm1, %v11599_v10  ;;  %6923 = vmatmul.mubr.msk.f32.gmra.mrb[116].mxu1 %vm439_vm1, %v11600_v16  ;;  %v11616_v10 = vld [vmem:[#allocation103_spill] sm:$0xff]  ;;  %v11617_v16 = vld [vmem:[#allocation13_spill] sm:$0xff] }
 0xc03   :  { %6878 = vmatprep.mubr.msk.f32.mxu0 %vm439_vm1, %v11601_v48  ;;  %6925 = vmatprep.mubr.msk.f32.mxu1 %vm439_vm1, %v11602_v25  ;;  %v11618_v48 = vld [vmem:[#allocation9_spill] sm:$0xff] }
 0xc04   :  { %v11619_v25 = vld [vmem:[#allocation105_spill] sm:$0xff] }
 0xc06   :  { %6879 = vmatmul.mubr.msk.f32.gmra.mrb[120].mxu0 %vm439_vm1, %v11603_v28  ;;  %6926 = vmatmul.mubr.msk.f32.gmra.mrb[118].mxu1 %vm439_vm1, %v11604_v62  ;;  %v11620_v28 = vld [vmem:[#allocation104_spill] sm:$0xff] }
 0xc07   :  { %6881 = vmatprep.mubr.msk.f32.mxu0 %vm439_vm1, %v11605_v39  ;;  %6928 = vmatprep.mubr.msk.f32.mxu1 %vm439_vm1, %v11606_v29  ;;  %v11621_v62 = vld [vmem:[#allocation8_spill] sm:$0xff]  ;;  %v11622_v39 = vld [vmem:[#allocation106_spill] sm:$0xff] }
 0xc08   :  { %v11623_v29 = vld [vmem:[#allocation12_spill] sm:$0xff] }
 0xc0a   :  { %6882 = vmatmul.mubr.msk.f32.gmra.mrb[122].mxu0 %vm439_vm1, %v11607_v53  ;;  %6929 = vmatmul.mubr.msk.f32.gmra.mrb[120].mxu1 %vm439_vm1, %v11608_v2  ;;  %v11624_v53 = vld [vmem:[#allocation107_spill] sm:$0xff]  ;;  %v11625_v2 = vld [vmem:[#allocation85_spill] sm:$0xff] }
 0xc0b   :  { %6884 = vmatprep.mubr.msk.f32.mxu0 %vm439_vm1, %v11609_v50  ;;  %6931 = vmatprep.mubr.msk.f32.mxu1 %vm439_vm1, %v11610_v43  ;;  %v11626_v50 = vld [vmem:[#allocation11_spill] sm:$0xff]  ;;  %v11627_v43 = vld [vmem:[#allocation10_spill] sm:$0xff] }
 0xc0e   :  { %6885 = vmatmul.mubr.msk.f32.gmra.mrb[124].mxu0 %vm439_vm1, %v11611_v21  ;;  %6932 = vmatmul.mubr.msk.f32.gmra.mrb[122].mxu1 %vm439_vm1, %v11612_v20  ;;  %v11628_v21 = vld [vmem:[#allocation108_spill] sm:$0xff]  ;;  %v11629_v20 = vld [vmem:[#allocation109_spill] sm:$0xff] }
 0xc0f   :  { %6887 = vmatprep.mubr.msk.f32.mxu0 %vm439_vm1, %v11613_v22  ;;  %6934 = vmatprep.mubr.msk.f32.mxu1 %vm439_vm1, %v11614_v42  ;;  %v11630_v22 = vld [vmem:[#allocation110_spill] sm:$0xff]  ;;  %v11631_v42 = vld [vmem:[#allocation111_spill] sm:$0xff] }
 0xc12   :  { %6888 = vmatmul.mubr.msk.f32.gmra.mrb[126].mxu0 %vm439_vm1, %v11615_v57  ;;  %6935 = vmatmul.mubr.msk.f32.gmra.mrb[124].mxu1 %vm439_vm1, %v11616_v10  ;;  %v11632_v57 = vld [vmem:[#allocation112_spill] sm:$0xff]  ;;  %v11633_v10 = vld [vmem:[#allocation113_spill] sm:$0xff] }
 0xc13   :  { %6890 = vmatprep.mubr.msk.f32.mxu0 %vm439_vm1, %v11617_v16  ;;  %6937 = vmatprep.mubr.msk.f32.mxu1 %vm439_vm1, %v11618_v48  ;;  %v7550_v16 = vld [vmem:[%s10836_s0 + $0x8] sm:$0xff] }
 0xc14   :  { %v11634_v48 = vld [vmem:[#allocation14_spill] sm:$0xff] }
 0xc16   :  { %6891 = vmatmul.mubr.msk.f32.gmra.mrb[128].mxu0 %vm439_vm1, %v11619_v25  ;;  %6938 = vmatmul.mubr.msk.f32.gmra.mrb[126].mxu1 %vm439_vm1, %v11620_v28  ;;  %v7551_v25 = vld [vmem:[%s10836_s0 + $0x18] sm:$0xff] }
 0xc17   :  { %6893 = vmatprep.mubr.msk.f32.mxu0 %vm439_vm1, %v11621_v62  ;;  %6940 = vmatprep.mubr.msk.f32.mxu1 %vm439_vm1, %v11622_v39 }
 0xc1a   :  { %6894 = vmatmul.mubr.msk.f32.gmra.mrb[130].mxu0 %vm439_vm1, %v11623_v29  ;;  %6941 = vmatmul.mubr.msk.f32.gmra.mrb[128].mxu1 %vm439_vm1, %v11624_v53 }
 0xc1b   :  { %6896 = vmatprep.mubr.msk.f32.mxu0 %vm439_vm1, %v11625_v2  ;;  %6943 = vmatprep.mubr.msk.f32.mxu1 %vm439_vm1, %v11626_v50 }
 0xc1e   :  { %6897 = vmatmul.mubr.msk.f32.gmra.mrb[132].mxu0 %vm439_vm1, %v11627_v43  ;;  %6944 = vmatmul.mubr.msk.f32.gmra.mrb[130].mxu1 %vm439_vm1, %v11628_v21 }
 0xc1f   :  { %6899 = vmatprep.mubr.msk.f32.mxu0 %vm439_vm1, %v11629_v20  ;;  %6946 = vmatprep.mubr.msk.f32.mxu1 %vm439_vm1, %v11630_v22 }
 0xc22   :  { %6900 = vmatmul.mubr.msk.f32.gmra.mrb[134].mxu0 %vm439_vm1, %v11631_v42  ;;  %6947 = vmatmul.mubr.msk.f32.gmra.mrb[132].mxu1 %vm439_vm1, %v11632_v57 }
 0xc23   :  { %6949 = vmatprep.mubr.msk.f32.mxu1 %vm439_vm1, %v11633_v10  ;;  %4404 = vmatprep.mubr.f32.mxu0 %v7550_v16 }
 0xc26   :  { %6950 = vmatmul.mubr.msk.f32.gmra.mrb[134].mxu1 %vm439_vm1, %v11634_v48 }
 0xc27   :  { %4474 = vmatprep.mubr.f32.mxu1 %v7551_v25 }
 0xcb9   :  { %v6856_v28 = vpop.f32.mrb[104].mxu0 }
 0xcba   :  { %v3602_v62 = vpop.f32.mrb[105].mxu0  ;;  %v4063_v13 = vmul.f32 0.01, %v6856_v28 }
 0xcbb   :  { %v4062_v35 = vmul.f32 0.01, %v3602_v62 }
 0xcbc   :  { %v10126_v62 = vsub.f32 %v9661_v41, %v4063_v13 }
 0xcbd   :  { %v6859_v39 = vpop.f32.mrb[106].mxu0  ;;  %v6906_v29 = vpop.f32.mrb[104].mxu1 }
 0xcbe   :  { %v3612_v53 = vpop.f32.mrb[107].mxu0  ;;  %v3827_v2 = vpop.f32.mrb[105].mxu1  ;;  %v4065_v26 = vmul.f32 0.01, %v6859_v39  ;;  %v4095_v38 = vmul.f32 0.01, %v6906_v29  ;;  %v10129_v39 = vsub.f32 %v9664_v30, %v4062_v35 }
 0xcbf   :  { %v4064_v46 = vmul.f32 0.01, %v3612_v53  ;;  %v4094_v51 = vmul.f32 0.01, %v3827_v2 }
 0xcc0   :  { %v10132_v29 = vsub.f32 %v9667_v55, %v4065_v26 }
 0xcc1   :  { %v6862_v50 = vpop.f32.mrb[108].mxu0  ;;  %v6909_v43 = vpop.f32.mrb[106].mxu1  ;;  %v10135_v53 = vsub.f32 %v9670_v12, %v4064_v46 }
 0xcc2   :  { %v3622_v21 = vpop.f32.mrb[109].mxu0  ;;  %v3837_v20 = vpop.f32.mrb[107].mxu1  ;;  %v4067_v36 = vmul.f32 0.01, %v6862_v50  ;;  %v4097_v60 = vmul.f32 0.01, %v6909_v43  ;;  %v10142_v43 = vsub.f32 %v9677_v27, %v4095_v38 }
 0xcc3   :  { %v4066_v11 = vmul.f32 0.01, %v3622_v21  ;;  %v4096_v56 = vmul.f32 0.01, %v3837_v20  ;;  %v10145_v21 = vsub.f32 %v9680_v7, %v4094_v51  ;;  %v7310_v7 = vpack.c.bf16 %v10126_v62, %v10129_v39 }
 0xcc4   :  { %v10148_v41 = vsub.f32 %v9683_v44, %v4067_v36  ;;  %v10154_v55 = vsub.f32 %v9689_v45, %v4097_v60  ;;  %v7314_v44 = vpack.c.bf16 %v10132_v29, %v10135_v53 }
 0xcc5   :  { %v6865_v22 = vpop.f32.mrb[110].mxu0  ;;  %v6912_v42 = vpop.f32.mrb[108].mxu1  ;;  %v10151_v30 = vsub.f32 %v9686_v18, %v4066_v11  ;;  %v10157_v12 = vsub.f32 %v9692_v58, %v4096_v56  ;;  %v7342_v58 = vpack.c.bf16 %v10142_v43, %v10145_v21 }
 0xcc6   :  { %v3632_v57 = vpop.f32.mrb[111].mxu0  ;;  %v3847_v10 = vpop.f32.mrb[109].mxu1  ;;  %v4069_v46 = vmul.f32 0.01, %v6865_v22  ;;  %v4099_v26 = vmul.f32 0.01, %v6912_v42 }
 0xcc7   :  { %v4068_v35 = vmul.f32 0.01, %v3632_v57  ;;  %v4098_v27 = vmul.f32 0.01, %v3847_v10  ;;  %v7346_v20 = vpack.c.bf16 %v10154_v55, %v10157_v12 }
 0xcc8   :  { %v10177_v10 = vsub.f32 %v9712_v4, %v4069_v46 }
 0xcc9   :  { %v6868_v16 = vpop.f32.mrb[112].mxu0  ;;  %v6915_v48 = vpop.f32.mrb[110].mxu1 }
 0xcca   :  { %v3642_v19 = vpop.f32.mrb[113].mxu0  ;;  %v3857_v0 = vpop.f32.mrb[111].mxu1  ;;  %v4071_v18 = vmul.f32 0.01, %v6868_v16  ;;  %v4101_v36 = vmul.f32 0.01, %v6915_v48  ;;  %v10180_v16 = vsub.f32 %v9715_v63, %v4099_v26 }
 0xccb   :  { %v4070_v22 = vmul.f32 0.01, %v3642_v19  ;;  %v4100_v42 = vmul.f32 0.01, %v3857_v0  ;;  %v10189_v19 = vsub.f32 %v9724_v23, %v4098_v27 }
 0xccc   :  { %v10195_v63 = vsub.f32 %v9730_v17, %v4101_v36 }
 0xccd   :  { %v10105_v8 = vpop.f32.mrb[114].mxu0  ;;  %v10107_v25 = vpop.f32.mrb[112].mxu1  ;;  %v10203_v23 = vsub.f32 %v9738_v5, %v4100_v42  ;;  %v11658_v5 = vld [vmem:[#allocation32_spill] sm:$0xff] }
 0xcce   :  { %v10109_v49 = vpop.f32.mrb[115].mxu0  ;;  %v10111_v40 = vpop.f32.mrb[113].mxu1  ;;  %v4073_v17 = vmul.f32 0.01, %v10105_v8 }
 0xcd1   :  { %v10113_v59 = vpop.f32.mrb[116].mxu0  ;;  %v10115_v61 = vpop.f32.mrb[114].mxu1 }
 0xcd2   :  { %v10117_v15 = vpop.f32.mrb[117].mxu0  ;;  %v10119_v6 = vpop.f32.mrb[115].mxu1 }
 0xcd5   :  { %v10121_v34 = vpop.f32.mrb[118].mxu0  ;;  %v10123_v28 = vpop.f32.mrb[116].mxu1 }
 0xcd6   :  { %v10137_v2 = vpop.f32.mrb[119].mxu0  ;;  %v10139_v50 = vpop.f32.mrb[117].mxu1 }
 0xcd9   :  { %v6880_v38 = vpop.f32.mrb[120].mxu0  ;;  %v10159_v13 = vpop.f32.mrb[118].mxu1 }
 0xcda   :  { %v4079_v11 = vmul.f32 0.01, %v6880_v38  ;;  %v3682_v45 = vpop.f32.mrb[121].mxu0  ;;  %v10165_v60 = vpop.f32.mrb[119].mxu1  ;;  %v10183_v38 = vsub.f32 %v9718_v54, %v4068_v35  ;;  %v10200_v35 = vsub.f32 %v9735_v14, %v4070_v22 }
 0xcdb   :  { %v4078_v51 = vmul.f32 0.01, %v3682_v45 }
 0xcdc   :  { %v10174_v57 = vsub.f32 %v9709_v3, %v4079_v11  ;;  %v10192_v3 = vsub.f32 %v9727_v31, %v4071_v18  ;;  %v4072_v18 = vmul.f32 0.01, %v10109_v49 }
 0xcdd   :  { %v10186_v48 = vsub.f32 %v9721_v33, %v4078_v51  ;;  %v6883_v45 = vpop.f32.mrb[122].mxu0  ;;  %v6930_v56 = vpop.f32.mrb[120].mxu1 }
 0xcde   :  { %v4081_v0 = vmul.f32 0.01, %v6883_v45  ;;  %v4111_v4 = vmul.f32 0.01, %v6930_v56  ;;  %v3692_v46 = vpop.f32.mrb[123].mxu0  ;;  %v3907_v11 = vpop.f32.mrb[121].mxu1 }
 0xcdf   :  { %v4080_v54 = vmul.f32 0.01, %v3692_v46  ;;  %v4110_v26 = vmul.f32 0.01, %v3907_v11  ;;  %v7308_v33 = vpack.c.bf16 %v10174_v57, %v10186_v48 }
 0xce0   :  { %v10206_v31 = vsub.f32 %v9741_v9, %v4081_v0  ;;  %v10209_v27 = vsub.f32 %v9744_v52, %v4111_v4  ;;  %v4103_v4 = vmul.f32 0.01, %v10107_v25 }
 0xce1   :  { %v10214_v56 = vsub.f32 %v9749_v1, %v4080_v54  ;;  %v10217_v36 = vsub.f32 %v9752_v37, %v4110_v26  ;;  %v6886_v14 = vpop.f32.mrb[124].mxu0  ;;  %v6933_v51 = vpop.f32.mrb[122].mxu1  ;;  %7309 = vmatprep.subr.bf16.mxu0 %v7308_v33  ;;  %v4102_v54 = vmul.f32 0.01, %v10111_v40  ;;  %v11635_v33 = vld [vmem:[#allocation17_spill] sm:$0xff] }
 0xce2   :  { %v4083_v52 = vmul.f32 0.01, %v6886_v14  ;;  %v4113_v22 = vmul.f32 0.01, %v6933_v51  ;;  %v3702_v8 = vpop.f32.mrb[125].mxu0  ;;  %v3917_v42 = vpop.f32.mrb[123].mxu1  ;;  %7311 = vmatpush3.bf16.msra.mxu0 %v7310_v7 }
 0xce3   :  { %v4082_v49 = vmul.f32 0.01, %v3702_v8  ;;  %v4112_v1 = vmul.f32 0.01, %v3917_v42  ;;  %v7312_v37 = vpack.c.bf16 %v10206_v31, %v10214_v56  ;;  %v7340_v45 = vpack.c.bf16 %v10209_v27, %v10217_v36 }
 0xce4   :  { %v10231_v46 = vsub.f32 %v9766_v47, %v4083_v52  ;;  %v10234_v11 = vsub.f32 %v9769_v24, %v4113_v22  ;;  %v11637_v47 = vld [vmem:[#allocation19_spill] sm:$0xff]  ;;  %v11638_v24 = vld [vmem:[#allocation20_spill] sm:$0xff] }
 0xce5   :  { %v10240_v26 = vsub.f32 %v9775_v32, %v4082_v49  ;;  %v10243_v14 = vsub.f32 %v11635_v33, %v4112_v1  ;;  %v6889_v51 = vpop.f32.mrb[126].mxu0  ;;  %v6936_v8 = vpop.f32.mrb[124].mxu1  ;;  %7313 = vmatprep.subr.bf16.mxu0 %v7312_v37  ;;  %7341 = vmatprep.subr.bf16.mxu1 %v7340_v45  ;;  %v10246_v25 = vsub.f32 %v11637_v47, %v4073_v17  ;;  %v4075_v1 = vmul.f32 0.01, %v10113_v59  ;;  %v11639_v45 = vld [vmem:[#allocation21_spill] sm:$0xff] }
 0xce6   :  { %v10249_v52 = vsub.f32 %v11638_v24, %v4072_v18  ;;  %v4085_v22 = vmul.f32 0.01, %v6889_v51  ;;  %v4115_v42 = vmul.f32 0.01, %v6936_v8  ;;  %v3712_v7 = vpop.f32.mrb[127].mxu0  ;;  %v3927_v40 = vpop.f32.mrb[125].mxu1  ;;  %7315 = vmatpush3.bf16.msra.mxu0 %v7314_v44  ;;  %7343 = vmatpush3.bf16.msra.mxu1 %v7342_v58 }
 0xce7   :  { %11636 = vst [vmem:[#allocation55_spill] sm:$0xff] %v10243_v14  ;;  %v4084_v32 = vmul.f32 0.01, %v3712_v7  ;;  %v4114_v49 = vmul.f32 0.01, %v3927_v40  ;;  %v7316_v17 = vpack.c.bf16 %v10231_v46, %v10240_v26  ;;  %v7344_v18 = vpack.c.bf16 %v10234_v11, %v10243_v14  ;;  %v11641_v44 = vld [vmem:[#allocation22_spill] sm:$0xff] }
 0xce8   :  { %v4105_v37 = vmul.f32 0.01, %v10115_v61  ;;  %v10264_v33 = vsub.f32 %v11639_v45, %v4085_v22  ;;  %v10267_v51 = vsub.f32 %v11641_v44, %v4115_v42  ;;  %v4074_v58 = vmul.f32 0.01, %v10117_v15  ;;  %v11643_v8 = vld [vmem:[#allocation23_spill] sm:$0xff]  ;;  %v11645_v24 = vld [vmem:[#allocation24_spill] sm:$0xff] }
 0xce9   :  { %v4104_v7 = vmul.f32 0.01, %v10119_v6  ;;  %v10272_v47 = vsub.f32 %v11643_v8, %v4084_v32  ;;  %v10275_v40 = vsub.f32 %v11645_v24, %v4114_v49  ;;  %v6892_v0 = vpop.f32.mrb[128].mxu0  ;;  %v6939_v59 = vpop.f32.mrb[126].mxu1  ;;  %7317 = vmatprep.subr.bf16.mxu0 %v7316_v17  ;;  %7345 = vmatprep.subr.bf16.mxu1 %v7344_v18  ;;  %v11647_v61 = vld [vmem:[#allocation25_spill] sm:$0xff]  ;;  %v11648_v45 = vld [vmem:[#allocation26_spill] sm:$0xff]  ;;  %v11649_v32 = vpack.c.bf16 %v10148_v41, %v10151_v30 }
 0xcea   :  { %11640 = vst [vmem:[#allocation56_spill] sm:$0xff] %v10264_v33  ;;  %11642 = vst [vmem:[#allocation57_spill] sm:$0xff] %v10267_v51  ;;  %v10278_v22 = vsub.f32 %v11647_v61, %v4103_v4  ;;  %v10281_v42 = vsub.f32 %v11648_v45, %v4102_v54  ;;  %v4087_v44 = vmul.f32 0.01, %v6892_v0  ;;  %v4117_v15 = vmul.f32 0.01, %v6939_v59  ;;  %7347 = vmatpush3.bf16.msra.mxu1 %v7346_v20 }
 0xceb   :  { %11644 = vst [vmem:[#allocation58_spill] sm:$0xff] %v10272_v47  ;;  %11646 = vst [vmem:[#allocation59_spill] sm:$0xff] %v10275_v40  ;;  %v3722_v9 = vpop.f32.mrb[129].mxu0  ;;  %v3937_v6 = vpop.f32.mrb[127].mxu1  ;;  %7319 = vmatpush3.bf16.msra.mxu0 %v11649_v32  ;;  %v7320_v4 = vpack.c.bf16 %v10264_v33, %v10272_v47  ;;  %v7348_v54 = vpack.c.bf16 %v10267_v51, %v10275_v40  ;;  %v11650_v18 = vld [vmem:[#allocation27_spill] sm:$0xff]  ;;  %v11651_v24 = vld [vmem:[#allocation28_spill] sm:$0xff] }
 0xcec   :  { %v4086_v49 = vmul.f32 0.01, %v3722_v9  ;;  %v4116_v17 = vmul.f32 0.01, %v3937_v6  ;;  %v10296_v8 = vsub.f32 %v11650_v18, %v4075_v1  ;;  %v10299_v59 = vsub.f32 %v11651_v24, %v4087_v44  ;;  %v11653_v61 = vld [vmem:[#allocation29_spill] sm:$0xff]  ;;  %v11655_v20 = vld [vmem:[#allocation30_spill] sm:$0xff] }
 0xced   :  { %v10302_v45 = vsub.f32 %v11653_v61, %v4117_v15  ;;  %v10305_v9 = vsub.f32 %v11655_v20, %v4105_v37  ;;  %v11656_v6 = vld [vmem:[#allocation31_spill] sm:$0xff]  ;;  %v6895_v47 = vpop.f32.mrb[130].mxu0  ;;  %v6942_v0 = vpop.f32.mrb[128].mxu1  ;;  %7321 = vmatprep.subr.bf16.mxu0 %v7320_v4  ;;  %7349 = vmatprep.subr.bf16.mxu1 %v7348_v54  ;;  %v11660_v1 = vld [vmem:[#allocation33_spill] sm:$0xff]  ;;  %v11661_v44 = vld [vmem:[#allocation34_spill] sm:$0xff] }
 0xcee   :  { %11652 = vst [vmem:[#allocation60_spill] sm:$0xff] %v10299_v59  ;;  %v10308_v32 = vsub.f32 %v11656_v6, %v4086_v49  ;;  %v10311_v40 = vsub.f32 %v11658_v5, %v4116_v17  ;;  %v10314_v18 = vsub.f32 %v11660_v1, %v4074_v58  ;;  %v10317_v24 = vsub.f32 %v11661_v44, %v4104_v7  ;;  %v3732_v37 = vpop.f32.mrb[131].mxu0  ;;  %v3947_v20 = vpop.f32.mrb[129].mxu1  ;;  %v11666_v1 = vld [vmem:[#allocation36_spill] sm:$0xff]  ;;  %v11676_v51 = vld [vmem:[#allocation41_spill] sm:$0xff] }
 0xcef   :  { %11654 = vst [vmem:[#allocation61_spill] sm:$0xff] %v10302_v45  ;;  %v4089_v15 = vmul.f32 0.01, %v6895_v47  ;;  %v4119_v61 = vmul.f32 0.01, %v6942_v0  ;;  %v11662_v49 = vpack.c.bf16 %v10177_v10, %v10183_v38  ;;  %v11663_v5 = vpack.c.bf16 %v10180_v16, %v10189_v19  ;;  %v11664_v0 = vld [vmem:[#allocation35_spill] sm:$0xff] }
 0xcf0   :  { %11657 = vst [vmem:[#allocation62_spill] sm:$0xff] %v10308_v32  ;;  %11659 = vst [vmem:[#allocation63_spill] sm:$0xff] %v10311_v40  ;;  %v4088_v17 = vmul.f32 0.01, %v3732_v37  ;;  %v4118_v4 = vmul.f32 0.01, %v3947_v20  ;;  %v7324_v58 = vpack.c.bf16 %v10299_v59, %v10308_v32  ;;  %v7352_v7 = vpack.c.bf16 %v10302_v45, %v10311_v40 }
 0xcf1   :  { %7323 = vmatpush3.bf16.msra.mxu0 %v11662_v49  ;;  %7351 = vmatpush3.bf16.msra.mxu1 %v11663_v5  ;;  %v4077_v47 = vmul.f32 0.01, %v10121_v34  ;;  %v4107_v54 = vmul.f32 0.01, %v10123_v28  ;;  %v10332_v6 = vsub.f32 %v11664_v0, %v4089_v15  ;;  %v10335_v44 = vsub.f32 %v11666_v1, %v4119_v61  ;;  %v11668_v20 = vld [vmem:[#allocation37_spill] sm:$0xff]  ;;  %v11670_v32 = vld [vmem:[#allocation38_spill] sm:$0xff] }
 0xcf2   :  { %v4076_v49 = vmul.f32 0.01, %v10137_v2  ;;  %v4106_v37 = vmul.f32 0.01, %v10139_v50  ;;  %v10340_v5 = vsub.f32 %v11668_v20, %v4088_v17  ;;  %v10343_v59 = vsub.f32 %v11670_v32, %v4118_v4  ;;  %v6898_v40 = vpop.f32.mrb[132].mxu0  ;;  %v6945_v34 = vpop.f32.mrb[130].mxu1  ;;  %7325 = vmatprep.subr.bf16.mxu0 %v7324_v58  ;;  %7353 = vmatprep.subr.bf16.mxu1 %v7352_v7 }
 0xcf3   :  { %11665 = vst [vmem:[#allocation64_spill] sm:$0xff] %v10332_v6  ;;  %11667 = vst [vmem:[#allocation65_spill] sm:$0xff] %v10335_v44  ;;  %v7358_v28 = vpack.c.bf16 %v10278_v22, %v10281_v42  ;;  %v7334_v15 = vpack.c.bf16 %v10296_v8, %v10314_v18  ;;  %v4091_v61 = vmul.f32 0.01, %v6898_v40  ;;  %v4121_v2 = vmul.f32 0.01, %v6945_v34 }
 0xcf4   :  { %11669 = vst [vmem:[#allocation66_spill] sm:$0xff] %v10340_v5  ;;  %11671 = vst [vmem:[#allocation67_spill] sm:$0xff] %v10343_v59  ;;  %v3742_v0 = vpop.f32.mrb[133].mxu0  ;;  %v3957_v50 = vpop.f32.mrb[131].mxu1  ;;  %v11672_v17 = vpack.c.bf16 %v10192_v3, %v10200_v35  ;;  %v11673_v32 = vpack.c.bf16 %v10195_v63, %v10203_v23  ;;  %v7328_v7 = vpack.c.bf16 %v10332_v6, %v10340_v5  ;;  %v11674_v20 = vld [vmem:[#allocation39_spill] sm:$0xff]  ;;  %v11675_v45 = vld [vmem:[#allocation40_spill] sm:$0xff] }
 0xcf5   :  { %v4090_v4 = vmul.f32 0.01, %v3742_v0  ;;  %v4120_v58 = vmul.f32 0.01, %v3957_v50  ;;  %v7356_v1 = vpack.c.bf16 %v10335_v44, %v10343_v59  ;;  %v7362_v40 = vpack.c.bf16 %v10305_v9, %v10317_v24  ;;  %v11677_v0 = vld [vmem:[#allocation42_spill] sm:$0xff]  ;;  %v11680_v6 = vld [vmem:[#allocation44_spill] sm:$0xff] }
 0xcf6   :  { %7327 = vmatpush3.bf16.msra.mxu0 %v11672_v17  ;;  %7355 = vmatpush3.bf16.msra.mxu1 %v11673_v32  ;;  %v10362_v34 = vsub.f32 %v11674_v20, %v4077_v47  ;;  %v10365_v17 = vsub.f32 %v11675_v45, %v4091_v61  ;;  %v10368_v33 = vsub.f32 %v11676_v51, %v4121_v2  ;;  %v11678_v32 = vld [vmem:[#allocation43_spill] sm:$0xff]  ;;  %v6901_v44 = vpop.f32.mrb[134].mxu0  ;;  %v6948_v14 = vpop.f32.mrb[132].mxu1  ;;  %v11682_v47 = vld [vmem:[#allocation45_spill] sm:$0xff]  ;;  %v11683_v45 = vld [vmem:[#allocation46_spill] sm:$0xff] }
 0xcf7   :  { %v10371_v50 = vsub.f32 %v11677_v0, %v4107_v54  ;;  %v10374_v5 = vsub.f32 %v11678_v32, %v4090_v4  ;;  %v10377_v59 = vsub.f32 %v11680_v6, %v4120_v58  ;;  %7329 = vmatprep.subr.bf16.mxu0 %v7328_v7  ;;  %7357 = vmatprep.subr.bf16.mxu1 %v7356_v1  ;;  %v4093_v51 = vmul.f32 0.01, %v6901_v44  ;;  %v3752_v54 = vpop.f32.mrb[135].mxu0  ;;  %v3967_v0 = vpop.f32.mrb[133].mxu1  ;;  %v11686_v32 = vld [vmem:[#allocation48_spill] sm:$0xff] }
 0xcf8   :  { %v10380_v20 = vsub.f32 %v11682_v47, %v4076_v49  ;;  %v10383_v61 = vsub.f32 %v11683_v45, %v4106_v37  ;;  %v4123_v2 = vmul.f32 0.01, %v6948_v14  ;;  %v11684_v4 = vpack.c.bf16 %v10246_v25, %v10249_v52  ;;  %v11685_v14 = vld [vmem:[#allocation47_spill] sm:$0xff]  ;;  %v11687_v45 = vld [vmem:[#allocation49_spill] sm:$0xff] }
 0xcf9   :  { %11679 = vst [vmem:[#allocation68_spill] sm:$0xff] %v10374_v5  ;;  %11681 = vst [vmem:[#allocation69_spill] sm:$0xff] %v10377_v59  ;;  %v4092_v6 = vmul.f32 0.01, %v3752_v54  ;;  %v4122_v58 = vmul.f32 0.01, %v3967_v0  ;;  %v7332_v7 = vpack.c.bf16 %v10365_v17, %v10374_v5  ;;  %v7360_v49 = vpack.c.bf16 %v10368_v33, %v10377_v59 }
 0xcfa   :  { %7331 = vmatpush3.bf16.msra.mxu0 %v11684_v4  ;;  %7359 = vmatpush3.bf16.msra.mxu1 %v7358_v28  ;;  %v4109_v37 = vmul.f32 0.01, %v10159_v13  ;;  %v4108_v44 = vmul.f32 0.01, %v10165_v60  ;;  %v10395_v1 = vsub.f32 %v11685_v14, %v4093_v51  ;;  %v10398_v47 = vsub.f32 %v11686_v32, %v4123_v2  ;;  %v11688_v54 = vld [vmem:[#allocation50_spill] sm:$0xff]  ;;  %v6951_v4 = vpop.f32.mrb[134].mxu1 }
 0xcfb   :  { %v10401_v28 = vsub.f32 %v11687_v45, %v4092_v6  ;;  %v10404_v0 = vsub.f32 %v11688_v54, %v4122_v58  ;;  %7333 = vmatprep.subr.bf16.mxu0 %v7332_v7  ;;  %7361 = vmatprep.subr.bf16.mxu1 %v7360_v49  ;;  %v4125_v59 = vmul.f32 0.01, %v6951_v4  ;;  %v3977_v5 = vpop.f32.mrb[135].mxu1  ;;  %v7338_v13 = vpack.c.bf16 %v10362_v34, %v10380_v20  ;;  %v11690_v58 = vld [vmem:[#allocation51_spill] sm:$0xff]  ;;  %v11691_v49 = vld [vmem:[#allocation52_spill] sm:$0xff]  ;;  %v11694_v32 = vld [vmem:[#allocation54_spill] sm:$0xff] }
 0xcfc   :  { %v4124_v60 = vmul.f32 0.01, %v3977_v5  ;;  %v7366_v6 = vpack.c.bf16 %v10371_v50, %v10383_v61  ;;  %v10415_v7 = vsub.f32 %v11690_v58, %v4109_v37  ;;  %v10418_v14 = vsub.f32 %v11691_v49, %v4108_v44  ;;  %v7552_v44 = vld [vmem:[%s10836_s0] sm:$0xff]  ;;  %v7554_v54 = vld [vmem:[%s10836_s0 + $0x10] sm:$0xff] }
 0xcfd   :  { %11689 = vst [vmem:[#allocation70_spill] sm:$0xff] %v10404_v0  ;;  %v7336_v51 = vpack.c.bf16 %v10395_v1, %v10401_v28  ;;  %v7364_v2 = vpack.c.bf16 %v10398_v47, %v10404_v0  ;;  %v7555_v4 = vld [vmem:[%s10837_s1 + $0x100] sm:$0xff] }
 0xcfe   :  { %7335 = vmatpush3.bf16.msra.mxu0 %v7334_v15  ;;  %7363 = vmatpush3.bf16.msra.mxu1 %v7362_v40  ;;  %v11692_v15 = vld [vmem:[#allocation53_spill] sm:$0xff]  ;;  %v10424_v5 = vsub.f32 %v11694_v32, %v4124_v60  ;;  %v7370_v37 = vpack.c.bf16 %v10415_v7, %v10418_v14  ;;  %v11696_v32 = vld [vmem:[#allocation16_spill] sm:$0xff] }
 0xcff   :  { %v10421_v40 = vsub.f32 %v11692_v15, %v4125_v59  ;;  %7337 = vmatprep.subr.bf16.mxu0 %v7336_v51  ;;  %7365 = vmatprep.subr.bf16.mxu1 %v7364_v2  ;;  %v7553_v59 = vld [vmem:[%s10837_s1] sm:$0xff] }
 0xd00   :  { %11695 = vst [vmem:[#allocation72_spill] sm:$0xff] %v10424_v5  ;;  %v5734_v2 = vld [vmem:[#allocation3] ss:$0 sm:$0xff] }
 0xd01   :  { %11693 = vst [vmem:[#allocation71_spill] sm:$0xff] %v10421_v40  ;;  %v7368_v45 = vpack.c.bf16 %v10421_v40, %v10424_v5 }
 0xd02   :  { %7339 = vmatpush3.bf16.msra.mxu0 %v7338_v13  ;;  %7367 = vmatpush3.bf16.msra.mxu1 %v7366_v6 }
 0xd03   :  { %7369 = vmatprep.subr.bf16.mxu1 %v7368_v45 }
 0xd05   :  { %4405 = vmatmul.mubr.f32.vlgmr.msra.gmra.mrb[136].mxu0 %v7552_v44 }
 0xd06   :  { %7371 = vmatpush3.bf16.msra.mxu1 %v7370_v37  ;;  %6954 = vmatprep.mubr.msk.f32.mxu0 %vm439_vm1, %v7553_v59  ;;  %v5735_v37 = vld [vmem:[#allocation3 + $0x1] ss:$0 sm:$0xff] }
 0xd09   :  { %4475 = vmatmul.mubr.f32.vlgmr.msra.gmra.mrb[136].mxu1 %v7554_v54 }
 0xd0a   :  { %7004 = vmatprep.mubr.msk.f32.mxu1 %vm439_vm1, %v7555_v4 }
 0xdd8   :  { %v6378_v13 = vpop.f32.mrb[136].mxu0 }
 0xdd9   :  { %v6379_v60 = vpop.f32.mrb[137].mxu0 }
 0xdda   :  { %v6380_v51 = vadd.f32 %v6379_v60, %v6378_v13 }
 0xddc   :  { %v4407_v6 = vadd.f32 %v6380_v51, %v5734_v2  ;;  %v6413_v58 = vpop.f32.mrb[136].mxu1 }
 0xddd   :  { %v6414_v49 = vpop.f32.mrb[137].mxu1 }
 0xdde   :  { %v6415_v15 = vadd.f32 %v6414_v49, %v6413_v58  ;;  %v4480_v45 = vadd.f32 %v4407_v6, %v11696_v32 }
 0xde0   :  { %v4477_v44 = vadd.f32 %v6415_v15, %v5735_v37  ;;  %4482 = vmax.xlane.f32.xlu0 %v4480_v45  ;;  %v7556_v15 = vld [vmem:[%s10838_s2] sm:$0xff]  ;;  %v7557_v37 = vld [vmem:[%s10838_s2 + $0x8] sm:$0xff] }
 0xde2   :  { %v4481_v59 = vadd.f32 %v4477_v44, %v11696_v32 }
 0xde4   :  { %4484 = vmax.xlane.f32.xlu1 %v4481_v59 }
 0xe6d   :  { %v4483_v54 = vpop.xlane.xlu0 %4482 }
 0xe6e   :  { %v4486_v5 = vsub.f32 %v4480_v45, %v4483_v54  ;;  %v7558_v54 = vld [vmem:[%s10837_s1 + $0x8] sm:$0xff] }
 0xe70   :  { %v4488_v40 = vmul.f32 1.442695, %v4486_v5 }
 0xe71   :  { %v4485_v4 = vpop.xlane.xlu1 %4484 }
 0xe72   :  { %7472 = vpow2.f32 %v4488_v40  ;;  %v4487_v0 = vsub.f32 %v4481_v59, %v4485_v4 }
 0xe74   :  { %v4490_v13 = vmul.f32 1.442695, %v4487_v0 }
 0xe76   :  { %7474 = vpow2.f32 %v4490_v13  ;;  %v7559_v13 = vld [vmem:[%s10837_s1 + $0x10] sm:$0xff] }
 0xe7c   :  { %v7473_v60 = vpop.eup %7472 }
 0xe7d   :  { %4492 = vadd.xlane.f32.xlu0 %v7473_v60 }
 0xe80   :  { %v7475_v51 = vpop.eup %7474 }
 0xe81   :  { %4494 = vadd.xlane.f32.xlu1 %v7475_v51 }
 0xf0a   :  { %v4493_v2 = vpop.xlane.xlu0 %4492 }
 0xf0b   :  { %7476 = vrcp.f32 %v4493_v2 }
 0xf0e   :  { %v4495_v6 = vpop.xlane.xlu1 %4494 }
 0xf0f   :  { %7478 = vrcp.f32 %v4495_v6 }
 0xf15   :  { %v7477_v58 = vpop.eup %7476 }
 0xf16   :  { %v4497_v49 = vmul.f32 %v7477_v58, %v7473_v60  ;;  %v7560_v58 = vld [vmem:[%s10837_s1 + $0x18] sm:$0xff] }
 0xf18   :  { %v4500_v5 = vsub.f32 %v4497_v49, %v7556_v15  ;;  %v7561_v49 = vld [vmem:[%s10837_s1 + $0x108] sm:$0xff]  ;;  %v7562_v15 = vld [vmem:[%s10837_s1 + $0x20] sm:$0xff] }
 0xf19   :  { %v7479_v32 = vpop.eup %7478 }
 0xf1a   :  { %v4502_v40 = vmul.f32 0.125, %v4500_v5  ;;  %v4499_v45 = vmul.f32 %v7479_v32, %v7475_v51  ;;  %v7563_v5 = vld [vmem:[%s10837_s1 + $0x110] sm:$0xff] }
 0xf1c   :  { %6952 = vmatprep.subr.mxu0 %v4502_v40  ;;  %v4954_v0 = vrot.slane %v4502_v40, 4  ;;  %v4501_v44 = vsub.f32 %v4499_v45, %v7557_v37  ;;  %v7564_v37 = vld [vmem:[%s10837_s1 + $0x28] sm:$0xff] }
 0xf1d   :  { %6953 = vmatpush3.msra.mxu0 %v4502_v40 }
 0xf1e   :  { %v4955_v59 = vadd.f32 %v4954_v0, %v4502_v40  ;;  %6955 = vmatmul.mubr.msk.f32.vlgmr.msra.gmra.mrb[138].mxu0 %vm439_vm1, %v7558_v54  ;;  %v4503_v4 = vmul.f32 0.125, %v4501_v44  ;;  %v7565_v44 = vld [vmem:[%s10837_s1 + $0x118] sm:$0xff]  ;;  %v7567_v54 = vld [vmem:[%s10837_s1 + $0x120] sm:$0xff] }
 0xf1f   :  { %6957 = vmatprep.mubr.msk.f32.mxu0 %vm439_vm1, %v7559_v13 }
 0xf20   :  { %v4956_v60 = vrot.slane %v4955_v59, 2  ;;  %7002 = vmatprep.subr.mxu1 %v4503_v4  ;;  %v4960_v51 = vrot.slane %v4503_v4, 4 }
 0xf21   :  { %7003 = vmatpush3.msra.mxu1 %v4503_v4 }
 0xf22   :  { %v4957_v2 = vadd.f32 %v4956_v60, %v4955_v59  ;;  %v4961_v6 = vadd.f32 %v4960_v51, %v4503_v4  ;;  %6958 = vmatmul.mubr.msk.f32.gmra.mrb[140].mxu0 %vm439_vm1, %v7560_v58  ;;  %7005 = vmatmul.mubr.msk.f32.vlgmr.msra.gmra.mrb[138].mxu1 %vm439_vm1, %v7561_v49  ;;  %v7566_v59 = vld [vmem:[%s10837_s1 + $0x30] sm:$0xff]  ;;  %v5222_v60 = vld [vmem:[#allocation3] sm:$0x1]  ;;  %v7569_v58 = vld [vmem:[%s10837_s1 + $0x128] sm:$0xff] }
 0xf23   :  { %6960 = vmatprep.mubr.msk.f32.mxu0 %vm439_vm1, %v7562_v15  ;;  %7007 = vmatprep.mubr.msk.f32.mxu1 %vm439_vm1, %v7563_v5  ;;  %v7570_v49 = vld [vmem:[%s10837_s1 + $0x40] sm:$0xff]  ;;  %v7571_v15 = vld [vmem:[%s10837_s1 + $0x130] sm:$0xff] }
 0xf24   :  { %v4958_v32 = vrot.slane %v4957_v2, 1  ;;  %v4962_v40 = vrot.slane %v4961_v6, 2 }
 0xf26   :  { %v4959_v45 = vadd.f32 %v4958_v32, %v4957_v2  ;;  %v4963_v0 = vadd.f32 %v4962_v40, %v4961_v6  ;;  %6961 = vmatmul.mubr.msk.f32.gmra.mrb[142].mxu0 %vm439_vm1, %v7564_v37  ;;  %7008 = vmatmul.mubr.msk.f32.gmra.mrb[140].mxu1 %vm439_vm1, %v7565_v44  ;;  %v7568_v6 = vld [vmem:[%s10837_s1 + $0x38] sm:$0xff]  ;;  %v5223_v32 = vld [vmem:[#allocation3 + $0x1] sm:$0x1]  ;;  %v7574_v37 = vld [vmem:[%s10837_s1 + $0x50] sm:$0xff] }
 0xf27   :  { %6963 = vmatprep.mubr.msk.f32.mxu0 %vm439_vm1, %v7566_v59  ;;  %7010 = vmatprep.mubr.msk.f32.mxu1 %vm439_vm1, %v7567_v54  ;;  %v7575_v44 = vld [vmem:[%s10837_s1 + $0x140] sm:$0xff]  ;;  %v7576_v59 = vld [vmem:[%s10837_s1 + $0x58] sm:$0xff]  ;;  %v7577_v54 = vld [vmem:[%s10837_s1 + $0x148] sm:$0xff] }
 0xf28   :  { %v5224_v4 = vmul.f32 0.01, %v4959_v45  ;;  %v4964_v13 = vrot.slane %v4963_v0, 1  ;;  %v7572_v45 = vld [vmem:[%s10837_s1 + $0x48] sm:$0xff] }
 0xf2a   :  { %v5226_v51 = vsub.f32 %v5222_v60, %v5224_v4  ;;  %v4965_v2 = vadd.f32 %v4964_v13, %v4963_v0  ;;  %6964 = vmatmul.mubr.msk.f32.gmra.mrb[144].mxu0 %vm439_vm1, %v7568_v6  ;;  %7011 = vmatmul.mubr.msk.f32.gmra.mrb[142].mxu1 %vm439_vm1, %v7569_v58  ;;  %v7573_v0 = vld [vmem:[%s10837_s1 + $0x138] sm:$0xff]  ;;  %v7578_v4 = vld [vmem:[%s10837_s1 + $0x60] sm:$0xff]  ;;  %v7579_v13 = vld [vmem:[%s10837_s1 + $0x150] sm:$0xff] }
 0xf2b   :  { %6966 = vmatprep.mubr.msk.f32.mxu0 %vm439_vm1, %v7570_v49  ;;  %7013 = vmatprep.mubr.msk.f32.mxu1 %vm439_vm1, %v7571_v15  ;;  %v7580_v60 = vld [vmem:[%s10837_s1 + $0x68] sm:$0xff]  ;;  %v7583_v6 = vld [vmem:[%s10837_s1 + $0x160] sm:$0xff]  ;;  %v7584_v58 = vld [vmem:[%s10837_s1 + $0x78] sm:$0xff] }
 0xf2c   :  { %5228 = vst [vmem:[#allocation3] sm:$0x1] %v5226_v51  ;;  %v5225_v5 = vmul.f32 0.01, %v4965_v2  ;;  %v7581_v51 = vld [vmem:[%s10837_s1 + $0x158] sm:$0xff]  ;;  %v7582_v2 = vld [vmem:[%s10837_s1 + $0x70] sm:$0xff] }
 0xf2d   :  { %v7585_v49 = vld [vmem:[%s10837_s1 + $0x168] sm:$0xff]  ;;  %v7586_v15 = vld [vmem:[%s10837_s1 + $0x80] sm:$0xff] }
 0xf2e   :  { %v5227_v40 = vsub.f32 %v5223_v32, %v5225_v5  ;;  %6967 = vmatmul.mubr.msk.f32.gmra.mrb[146].mxu0 %vm439_vm1, %v7572_v45  ;;  %7014 = vmatmul.mubr.msk.f32.gmra.mrb[144].mxu1 %vm439_vm1, %v7573_v0  ;;  %v7587_v5 = vld [vmem:[%s10837_s1 + $0x170] sm:$0xff]  ;;  %v7588_v32 = vld [vmem:[%s10837_s1 + $0x88] sm:$0xff]  ;;  %v7591_v0 = vld [vmem:[%s10837_s1 + $0x180] sm:$0xff] }
 0xf2f   :  { %6969 = vmatprep.mubr.msk.f32.mxu0 %vm439_vm1, %v7574_v37  ;;  %7016 = vmatprep.mubr.msk.f32.mxu1 %vm439_vm1, %v7575_v44  ;;  %v7590_v45 = vld [vmem:[%s10837_s1 + $0x90] sm:$0xff]  ;;  %v7592_v37 = vld [vmem:[%s10837_s1 + $0x98] sm:$0xff]  ;;  %v7593_v44 = vld [vmem:[%s10837_s1 + $0x188] sm:$0xff] }
 0xf30   :  { %5229 = vst [vmem:[#allocation3 + $0x1] sm:$0x1] %v5227_v40  ;;  %v7589_v40 = vld [vmem:[%s10837_s1 + $0x178] sm:$0xff] }
 0xf32   :  { %6970 = vmatmul.mubr.msk.f32.gmra.mrb[148].mxu0 %vm439_vm1, %v7576_v59  ;;  %7017 = vmatmul.mubr.msk.f32.gmra.mrb[146].mxu1 %vm439_vm1, %v7577_v54  ;;  %v7594_v59 = vld [vmem:[%s10837_s1 + $0xa0] sm:$0xff]  ;;  %v7595_v54 = vld [vmem:[%s10837_s1 + $0x190] sm:$0xff] }
 0xf33   :  { %6972 = vmatprep.mubr.msk.f32.mxu0 %vm439_vm1, %v7578_v4  ;;  %7019 = vmatprep.mubr.msk.f32.mxu1 %vm439_vm1, %v7579_v13  ;;  %v7596_v4 = vld [vmem:[%s10837_s1 + $0xa8] sm:$0xff]  ;;  %v7597_v13 = vld [vmem:[%s10837_s1 + $0x198] sm:$0xff] }
 0xf36   :  { %6973 = vmatmul.mubr.msk.f32.gmra.mrb[150].mxu0 %vm439_vm1, %v7580_v60  ;;  %7020 = vmatmul.mubr.msk.f32.gmra.mrb[148].mxu1 %vm439_vm1, %v7581_v51  ;;  %v7598_v60 = vld [vmem:[%s10837_s1 + $0xb0] sm:$0xff]  ;;  %v7599_v51 = vld [vmem:[%s10837_s1 + $0x1a0] sm:$0xff] }
 0xf37   :  { %6975 = vmatprep.mubr.msk.f32.mxu0 %vm439_vm1, %v7582_v2  ;;  %7022 = vmatprep.mubr.msk.f32.mxu1 %vm439_vm1, %v7583_v6  ;;  %v7600_v2 = vld [vmem:[%s10837_s1 + $0xb8] sm:$0xff]  ;;  %v7601_v6 = vld [vmem:[%s10837_s1 + $0x1a8] sm:$0xff] }
 0xf3a   :  { %6976 = vmatmul.mubr.msk.f32.gmra.mrb[152].mxu0 %vm439_vm1, %v7584_v58  ;;  %7023 = vmatmul.mubr.msk.f32.gmra.mrb[150].mxu1 %vm439_vm1, %v7585_v49  ;;  %v7602_v58 = vld [vmem:[%s10837_s1 + $0xc0] sm:$0xff]  ;;  %v7603_v49 = vld [vmem:[%s10837_s1 + $0x1b0] sm:$0xff] }
 0xf3b   :  { %6978 = vmatprep.mubr.msk.f32.mxu0 %vm439_vm1, %v7586_v15  ;;  %7025 = vmatprep.mubr.msk.f32.mxu1 %vm439_vm1, %v7587_v5  ;;  %v7604_v15 = vld [vmem:[%s10837_s1 + $0xc8] sm:$0xff]  ;;  %v7605_v5 = vld [vmem:[%s10837_s1 + $0x1b8] sm:$0xff] }
 0xf3e   :  { %6979 = vmatmul.mubr.msk.f32.gmra.mrb[154].mxu0 %vm439_vm1, %v7588_v32  ;;  %7026 = vmatmul.mubr.msk.f32.gmra.mrb[152].mxu1 %vm439_vm1, %v7589_v40  ;;  %v7606_v32 = vld [vmem:[%s10837_s1 + $0xd0] sm:$0xff]  ;;  %v7607_v40 = vld [vmem:[%s10837_s1 + $0x1c0] sm:$0xff] }
 0xf3f   :  { %6981 = vmatprep.mubr.msk.f32.mxu0 %vm439_vm1, %v7590_v45  ;;  %7028 = vmatprep.mubr.msk.f32.mxu1 %vm439_vm1, %v7591_v0  ;;  %v7608_v45 = vld [vmem:[%s10837_s1 + $0xd8] sm:$0xff]  ;;  %v7609_v0 = vld [vmem:[%s10837_s1 + $0x1c8] sm:$0xff] }
 0xf42   :  { %6982 = vmatmul.mubr.msk.f32.gmra.mrb[156].mxu0 %vm439_vm1, %v7592_v37  ;;  %7029 = vmatmul.mubr.msk.f32.gmra.mrb[154].mxu1 %vm439_vm1, %v7593_v44  ;;  %v7610_v37 = vld [vmem:[%s10837_s1 + $0xe0] sm:$0xff]  ;;  %v7611_v44 = vld [vmem:[%s10837_s1 + $0x1d0] sm:$0xff] }
 0xf43   :  { %6984 = vmatprep.mubr.msk.f32.mxu0 %vm439_vm1, %v7594_v59  ;;  %7031 = vmatprep.mubr.msk.f32.mxu1 %vm439_vm1, %v7595_v54  ;;  %v7612_v59 = vld [vmem:[%s10837_s1 + $0xe8] sm:$0xff]  ;;  %v7613_v54 = vld [vmem:[%s10837_s1 + $0x1d8] sm:$0xff] }
 0xf46   :  { %6985 = vmatmul.mubr.msk.f32.gmra.mrb[158].mxu0 %vm439_vm1, %v7596_v4  ;;  %7032 = vmatmul.mubr.msk.f32.gmra.mrb[156].mxu1 %vm439_vm1, %v7597_v13  ;;  %v7614_v4 = vld [vmem:[%s10837_s1 + $0xf0] sm:$0xff]  ;;  %v7615_v13 = vld [vmem:[%s10837_s1 + $0x1e0] sm:$0xff] }
 0xf47   :  { %6987 = vmatprep.mubr.msk.f32.mxu0 %vm439_vm1, %v7598_v60  ;;  %7034 = vmatprep.mubr.msk.f32.mxu1 %vm439_vm1, %v7599_v51  ;;  %v7616_v60 = vld [vmem:[%s10837_s1 + $0xf8] sm:$0xff]  ;;  %v7617_v51 = vld [vmem:[%s10837_s1 + $0x1e8] sm:$0xff] }
 0xf4a   :  { %6988 = vmatmul.mubr.msk.f32.gmra.mrb[160].mxu0 %vm439_vm1, %v7600_v2  ;;  %7035 = vmatmul.mubr.msk.f32.gmra.mrb[158].mxu1 %vm439_vm1, %v7601_v6  ;;  %v7618_v2 = vld [vmem:[%s10837_s1 + $0x1f0] sm:$0xff]  ;;  %v7619_v6 = vld [vmem:[%s10837_s1 + $0x1f8] sm:$0xff] }
 0xf4b   :  { %6990 = vmatprep.mubr.msk.f32.mxu0 %vm439_vm1, %v7602_v58  ;;  %7037 = vmatprep.mubr.msk.f32.mxu1 %vm439_vm1, %v7603_v49  ;;  %v5231_v58 = vld [vmem:[%s10839_s3 + $0x8] sm:$0xff]  ;;  %v5233_v49 = vld [vmem:[%s10839_s3 + $0x18] sm:$0xff] }
 0xf4e   :  { %6991 = vmatmul.mubr.msk.f32.gmra.mrb[162].mxu0 %vm439_vm1, %v7604_v15  ;;  %7038 = vmatmul.mubr.msk.f32.gmra.mrb[160].mxu1 %vm439_vm1, %v7605_v5 }
 0xf4f   :  { %6993 = vmatprep.mubr.msk.f32.mxu0 %vm439_vm1, %v7606_v32  ;;  %7040 = vmatprep.mubr.msk.f32.mxu1 %vm439_vm1, %v7607_v40 }
 0xf52   :  { %6994 = vmatmul.mubr.msk.f32.gmra.mrb[164].mxu0 %vm439_vm1, %v7608_v45  ;;  %7041 = vmatmul.mubr.msk.f32.gmra.mrb[162].mxu1 %vm439_vm1, %v7609_v0 }
 0xf53   :  { %6996 = vmatprep.mubr.msk.f32.mxu0 %vm439_vm1, %v7610_v37  ;;  %7043 = vmatprep.mubr.msk.f32.mxu1 %vm439_vm1, %v7611_v44 }
 0xf56   :  { %6997 = vmatmul.mubr.msk.f32.gmra.mrb[166].mxu0 %vm439_vm1, %v7612_v59  ;;  %7044 = vmatmul.mubr.msk.f32.gmra.mrb[164].mxu1 %vm439_vm1, %v7613_v54 }
 0xf57   :  { %6999 = vmatprep.mubr.msk.f32.mxu0 %vm439_vm1, %v7614_v4  ;;  %7046 = vmatprep.mubr.msk.f32.mxu1 %vm439_vm1, %v7615_v13 }
 0xf5a   :  { %7000 = vmatmul.mubr.msk.f32.gmra.mrb[168].mxu0 %vm439_vm1, %v7616_v60  ;;  %7047 = vmatmul.mubr.msk.f32.gmra.mrb[166].mxu1 %vm439_vm1, %v7617_v51 }
 0xf5b   :  { %7049 = vmatprep.mubr.msk.f32.mxu1 %vm439_vm1, %v7618_v2  ;;  %5376 = vmatprep.mubr.f32.mxu0 %v5231_v58 }
 0xf5e   :  { %7050 = vmatmul.mubr.msk.f32.gmra.mrb[168].mxu1 %vm439_vm1, %v7619_v6 }
 0xf5f   :  { %5446 = vmatprep.mubr.f32.mxu1 %v5233_v49 }
 0xff1   :  { %v6956_v15 = vpop.f32.mrb[138].mxu0 }
 0xff2   :  { %v5031_v5 = vmul.f32 0.01, %v6956_v15  ;;  %v4570_v32 = vpop.f32.mrb[139].mxu0 }
 0xff3   :  { %v5030_v40 = vmul.f32 0.01, %v4570_v32 }
 0xff4   :  { %v5095_v45 = vsub.f32 %v10126_v62, %v5031_v5 }
 0xff5   :  { %v5094_v0 = vsub.f32 %v10129_v39, %v5030_v40  ;;  %v6959_v37 = vpop.f32.mrb[140].mxu0  ;;  %v7006_v44 = vpop.f32.mrb[138].mxu1 }
 0xff6   :  { %v5033_v59 = vmul.f32 0.01, %v6959_v37  ;;  %v5063_v54 = vmul.f32 0.01, %v7006_v44  ;;  %v4580_v4 = vpop.f32.mrb[141].mxu0  ;;  %v4795_v13 = vpop.f32.mrb[139].mxu1 }
 0xff7   :  { %v10708_v60 = vpack.c.bf16 %v5095_v45, %v5094_v0  ;;  %v5032_v51 = vmul.f32 0.01, %v4580_v4  ;;  %v5062_v2 = vmul.f32 0.01, %v4795_v13 }
 0xff8   :  { %v5097_v6 = vsub.f32 %v10132_v29, %v5033_v59  ;;  %v5127_v58 = vsub.f32 %v10142_v43, %v5063_v54 }
 0xff9   :  { %v5096_v49 = vsub.f32 %v10135_v53, %v5032_v51  ;;  %v5126_v62 = vsub.f32 %v10145_v21, %v5062_v2  ;;  %v6962_v15 = vpop.f32.mrb[142].mxu0  ;;  %v7009_v39 = vpop.f32.mrb[140].mxu1 }
 0xffa   :  { %v5035_v5 = vmul.f32 0.01, %v6962_v15  ;;  %v5065_v32 = vmul.f32 0.01, %v7009_v39  ;;  %v4590_v40 = vpop.f32.mrb[143].mxu0  ;;  %v4805_v37 = vpop.f32.mrb[141].mxu1 }
 0xffb   :  { %v10714_v44 = vpack.c.bf16 %v5097_v6, %v5096_v49  ;;  %v10716_v45 = vpack.c.bf16 %v5127_v58, %v5126_v62  ;;  %v5034_v0 = vmul.f32 0.01, %v4590_v40  ;;  %v5064_v4 = vmul.f32 0.01, %v4805_v37 }
 0xffc   :  { %v5099_v29 = vsub.f32 %v10148_v41, %v5035_v5  ;;  %v5129_v43 = vsub.f32 %v10154_v55, %v5065_v32 }
 0xffd   :  { %v5098_v53 = vsub.f32 %v10151_v30, %v5034_v0  ;;  %v5128_v21 = vsub.f32 %v10157_v12, %v5064_v4  ;;  %v6965_v59 = vpop.f32.mrb[144].mxu0  ;;  %v7012_v54 = vpop.f32.mrb[142].mxu1 }
 0xffe   :  { %v5037_v13 = vmul.f32 0.01, %v6965_v59  ;;  %v5067_v51 = vmul.f32 0.01, %v7012_v54  ;;  %v4600_v2 = vpop.f32.mrb[145].mxu0  ;;  %v4815_v15 = vpop.f32.mrb[143].mxu1 }
 0xfff   :  { %v10722_v6 = vpack.c.bf16 %v5099_v29, %v5098_v53  ;;  %v10724_v58 = vpack.c.bf16 %v5129_v43, %v5128_v21  ;;  %v5036_v49 = vmul.f32 0.01, %v4600_v2  ;;  %v5066_v62 = vmul.f32 0.01, %v4815_v15 }
0x1000   :  { %v5101_v41 = vsub.f32 %v10177_v10, %v5037_v13  ;;  %v5131_v55 = vsub.f32 %v10180_v16, %v5067_v51 }
0x1001   :  { %v5100_v30 = vsub.f32 %v10183_v38, %v5036_v49  ;;  %v5130_v12 = vsub.f32 %v10189_v19, %v5066_v62  ;;  %v6968_v39 = vpop.f32.mrb[146].mxu0  ;;  %v7015_v5 = vpop.f32.mrb[144].mxu1 }
0x1002   :  { %v5039_v32 = vmul.f32 0.01, %v6968_v39  ;;  %v5069_v40 = vmul.f32 0.01, %v7015_v5  ;;  %v4610_v37 = vpop.f32.mrb[147].mxu0  ;;  %v4825_v0 = vpop.f32.mrb[145].mxu1 }
0x1003   :  { %v10730_v4 = vpack.c.bf16 %v5101_v41, %v5100_v30  ;;  %v10732_v29 = vpack.c.bf16 %v5131_v55, %v5130_v12  ;;  %v5038_v43 = vmul.f32 0.01, %v4610_v37  ;;  %v5068_v53 = vmul.f32 0.01, %v4825_v0 }
0x1004   :  { %v5103_v10 = vsub.f32 %v10192_v3, %v5039_v32  ;;  %v5133_v16 = vsub.f32 %v10195_v63, %v5069_v40 }
0x1005   :  { %v5102_v38 = vsub.f32 %v10200_v35, %v5038_v43  ;;  %v5132_v19 = vsub.f32 %v10203_v23, %v5068_v53  ;;  %v6971_v21 = vpop.f32.mrb[148].mxu0  ;;  %v7018_v59 = vpop.f32.mrb[146].mxu1 }
0x1006   :  { %v5041_v54 = vmul.f32 0.01, %v6971_v21  ;;  %v5071_v13 = vmul.f32 0.01, %v7018_v59  ;;  %v4620_v51 = vpop.f32.mrb[149].mxu0  ;;  %v4835_v2 = vpop.f32.mrb[147].mxu1 }
0x1007   :  { %v10738_v15 = vpack.c.bf16 %v5103_v10, %v5102_v38  ;;  %v10740_v49 = vpack.c.bf16 %v5133_v16, %v5132_v19  ;;  %v5040_v62 = vmul.f32 0.01, %v4620_v51  ;;  %v5070_v41 = vmul.f32 0.01, %v4835_v2 }
0x1008   :  { %v5105_v3 = vsub.f32 %v10246_v25, %v5041_v54  ;;  %v5135_v63 = vsub.f32 %v10278_v22, %v5071_v13 }
0x1009   :  { %v5104_v35 = vsub.f32 %v10249_v52, %v5040_v62  ;;  %v5134_v23 = vsub.f32 %v10281_v42, %v5070_v41  ;;  %v6974_v55 = vpop.f32.mrb[150].mxu0  ;;  %v7021_v30 = vpop.f32.mrb[148].mxu1 }
0x100a   :  { %v5043_v12 = vmul.f32 0.01, %v6974_v55  ;;  %v5073_v39 = vmul.f32 0.01, %v7021_v30  ;;  %v4630_v5 = vpop.f32.mrb[151].mxu0  ;;  %v4845_v32 = vpop.f32.mrb[149].mxu1 }
0x100b   :  { %v10746_v40 = vpack.c.bf16 %v5105_v3, %v5104_v35  ;;  %v10748_v37 = vpack.c.bf16 %v5135_v63, %v5134_v23  ;;  %v5042_v0 = vmul.f32 0.01, %v4630_v5  ;;  %v5072_v43 = vmul.f32 0.01, %v4845_v32 }
0x100c   :  { %v5107_v25 = vsub.f32 %v10296_v8, %v5043_v12  ;;  %v5137_v22 = vsub.f32 %v10305_v9, %v5073_v39 }
0x100d   :  { %v5106_v52 = vsub.f32 %v10314_v18, %v5042_v0  ;;  %v5136_v42 = vsub.f32 %v10317_v24, %v5072_v43  ;;  %v6977_v53 = vpop.f32.mrb[152].mxu0  ;;  %v7024_v10 = vpop.f32.mrb[150].mxu1 }
0x100e   :  { %v5045_v16 = vmul.f32 0.01, %v6977_v53  ;;  %v5075_v38 = vmul.f32 0.01, %v7024_v10  ;;  %v4640_v19 = vpop.f32.mrb[153].mxu0  ;;  %v4855_v21 = vpop.f32.mrb[151].mxu1 }
0x100f   :  { %v10754_v59 = vpack.c.bf16 %v5107_v25, %v5106_v52  ;;  %v10756_v54 = vpack.c.bf16 %v5137_v22, %v5136_v42  ;;  %v5044_v13 = vmul.f32 0.01, %v4640_v19  ;;  %v5074_v51 = vmul.f32 0.01, %v4855_v21 }
0x1010   :  { %v5109_v8 = vsub.f32 %v10362_v34, %v5045_v16  ;;  %v5139_v9 = vsub.f32 %v10371_v50, %v5075_v38 }
0x1011   :  { %v5108_v18 = vsub.f32 %v10380_v20, %v5044_v13  ;;  %v5138_v24 = vsub.f32 %v10383_v61, %v5074_v51  ;;  %v6980_v2 = vpop.f32.mrb[154].mxu0  ;;  %v7027_v62 = vpop.f32.mrb[152].mxu1 }
0x1012   :  { %v5047_v41 = vmul.f32 0.01, %v6980_v2  ;;  %v5077_v3 = vmul.f32 0.01, %v7027_v62  ;;  %v4650_v63 = vpop.f32.mrb[155].mxu0  ;;  %v4865_v35 = vpop.f32.mrb[153].mxu1 }
0x1013   :  { %v10762_v23 = vpack.c.bf16 %v5109_v8, %v5108_v18  ;;  %v10764_v55 = vpack.c.bf16 %v5139_v9, %v5138_v24  ;;  %v5046_v30 = vmul.f32 0.01, %v4650_v63  ;;  %v5076_v12 = vmul.f32 0.01, %v4865_v35 }
0x1014   :  { %v5111_v34 = vsub.f32 %v10174_v57, %v5047_v41  ;;  %v5141_v50 = vsub.f32 %v10415_v7, %v5077_v3 }
0x1015   :  { %v5110_v20 = vsub.f32 %v10186_v48, %v5046_v30  ;;  %v5140_v61 = vsub.f32 %v10418_v14, %v5076_v12  ;;  %v6983_v39 = vpop.f32.mrb[156].mxu0  ;;  %v7030_v5 = vpop.f32.mrb[154].mxu1  ;;  %v11698_v12 = vld [vmem:[#allocation56_spill] sm:$0xff] }
0x1016   :  { %v5049_v32 = vmul.f32 0.01, %v6983_v39  ;;  %v5079_v0 = vmul.f32 0.01, %v7030_v5  ;;  %v4660_v43 = vpop.f32.mrb[157].mxu0  ;;  %v4875_v25 = vpop.f32.mrb[155].mxu1 }
0x1017   :  { %v10770_v22 = vpack.c.bf16 %v5141_v50, %v5140_v61  ;;  %v5048_v52 = vmul.f32 0.01, %v4660_v43  ;;  %v5078_v42 = vmul.f32 0.01, %v4875_v25  ;;  %v7372_v53 = vpack.c.bf16 %v5111_v34, %v5110_v20  ;;  %v11699_v34 = vld [vmem:[#allocation57_spill] sm:$0xff]  ;;  %v11700_v20 = vld [vmem:[#allocation58_spill] sm:$0xff] }
0x1018   :  { %v5113_v10 = vsub.f32 %v10206_v31, %v5049_v32  ;;  %v5143_v57 = vsub.f32 %v10209_v27, %v5079_v0  ;;  %v11701_v39 = vld [vmem:[#allocation59_spill] sm:$0xff] }
0x1019   :  { %v5112_v7 = vsub.f32 %v10214_v56, %v5048_v52  ;;  %v5142_v48 = vsub.f32 %v10217_v36, %v5078_v42  ;;  %v6986_v14 = vpop.f32.mrb[158].mxu0  ;;  %v7033_v16 = vpop.f32.mrb[156].mxu1  ;;  %7373 = vmatprep.subr.bf16.mxu0 %v7372_v53  ;;  %v11697_v36 = vld [vmem:[#allocation55_spill] sm:$0xff] }
0x101a   :  { %v5051_v38 = vmul.f32 0.01, %v6986_v14  ;;  %v5081_v19 = vmul.f32 0.01, %v7033_v16  ;;  %v4670_v21 = vpop.f32.mrb[159].mxu0  ;;  %v4885_v13 = vpop.f32.mrb[157].mxu1  ;;  %7375 = vmatpush3.bf16.msra.mxu0 %v10708_v60 }
0x101b   :  { %v5050_v51 = vmul.f32 0.01, %v4670_v21  ;;  %v5080_v8 = vmul.f32 0.01, %v4885_v13  ;;  %v7376_v9 = vpack.c.bf16 %v5113_v10, %v5112_v7  ;;  %v7404_v18 = vpack.c.bf16 %v5143_v57, %v5142_v48  ;;  %v11702_v57 = vld [vmem:[#allocation60_spill] sm:$0xff]  ;;  %v11703_v48 = vld [vmem:[#allocation61_spill] sm:$0xff] }
0x101c   :  { %v5115_v31 = vsub.f32 %v10231_v46, %v5051_v38  ;;  %v5145_v27 = vsub.f32 %v10234_v11, %v5081_v19  ;;  %v11704_v16 = vld [vmem:[#allocation62_spill] sm:$0xff]  ;;  %v11705_v19 = vld [vmem:[#allocation63_spill] sm:$0xff] }
0x101d   :  { %v5114_v56 = vsub.f32 %v10240_v26, %v5050_v51  ;;  %v5144_v24 = vsub.f32 %v11697_v36, %v5080_v8  ;;  %v6989_v2 = vpop.f32.mrb[160].mxu0  ;;  %v7036_v62 = vpop.f32.mrb[158].mxu1  ;;  %7377 = vmatprep.subr.bf16.mxu0 %v7376_v9  ;;  %7405 = vmatprep.subr.bf16.mxu1 %v7404_v18  ;;  %v11706_v36 = vld [vmem:[#allocation64_spill] sm:$0xff] }
0x101e   :  { %v5053_v41 = vmul.f32 0.01, %v6989_v2  ;;  %v5083_v3 = vmul.f32 0.01, %v7036_v62  ;;  %v4680_v63 = vpop.f32.mrb[161].mxu0  ;;  %v4895_v60 = vpop.f32.mrb[159].mxu1  ;;  %7379 = vmatpush3.bf16.msra.mxu0 %v10714_v44  ;;  %7407 = vmatpush3.bf16.msra.mxu1 %v10716_v45 }
0x101f   :  { %v5052_v35 = vmul.f32 0.01, %v4680_v63  ;;  %v5082_v46 = vmul.f32 0.01, %v4895_v60  ;;  %v7380_v30 = vpack.c.bf16 %v5115_v31, %v5114_v56  ;;  %v7408_v11 = vpack.c.bf16 %v5145_v27, %v5144_v24  ;;  %v11707_v2 = vld [vmem:[#allocation65_spill] sm:$0xff]  ;;  %v11709_v63 = vld [vmem:[#allocation67_spill] sm:$0xff] }
0x1020   :  { %v5117_v26 = vsub.f32 %v11698_v12, %v5053_v41  ;;  %v5147_v50 = vsub.f32 %v11699_v34, %v5083_v3  ;;  %v11708_v41 = vld [vmem:[#allocation66_spill] sm:$0xff] }
0x1021   :  { %v5116_v61 = vsub.f32 %v11700_v20, %v5052_v35  ;;  %v5146_v5 = vsub.f32 %v11701_v39, %v5082_v46  ;;  %v6992_v32 = vpop.f32.mrb[162].mxu0  ;;  %v7039_v0 = vpop.f32.mrb[160].mxu1  ;;  %7381 = vmatprep.subr.bf16.mxu0 %v7380_v30  ;;  %7409 = vmatprep.subr.bf16.mxu1 %v7408_v11  ;;  %v11710_v39 = vld [vmem:[#allocation68_spill] sm:$0xff] }
0x1022   :  { %v5055_v43 = vmul.f32 0.01, %v6992_v32  ;;  %v5085_v44 = vmul.f32 0.01, %v7039_v0  ;;  %v4690_v25 = vpop.f32.mrb[163].mxu0  ;;  %v4905_v45 = vpop.f32.mrb[161].mxu1  ;;  %7383 = vmatpush3.bf16.msra.mxu0 %v10722_v6  ;;  %7411 = vmatpush3.bf16.msra.mxu1 %v10724_v58 }
0x1023   :  { %v5054_v52 = vmul.f32 0.01, %v4690_v25  ;;  %v5084_v42 = vmul.f32 0.01, %v4905_v45  ;;  %v7384_v53 = vpack.c.bf16 %v5117_v26, %v5116_v61  ;;  %v7412_v10 = vpack.c.bf16 %v5147_v50, %v5146_v5  ;;  %v11711_v32 = vld [vmem:[#allocation69_spill] sm:$0xff] }
0x1024   :  { %v5119_v7 = vsub.f32 %v11702_v57, %v5055_v43  ;;  %v5149_v14 = vsub.f32 %v11703_v48, %v5085_v44 }
0x1025   :  { %v5118_v38 = vsub.f32 %v11704_v16, %v5054_v52  ;;  %v5148_v21 = vsub.f32 %v11705_v19, %v5084_v42  ;;  %v6995_v13 = vpop.f32.mrb[164].mxu0  ;;  %v7042_v51 = vpop.f32.mrb[162].mxu1  ;;  %7385 = vmatprep.subr.bf16.mxu0 %v7384_v53  ;;  %7413 = vmatprep.subr.bf16.mxu1 %v7412_v10 }
0x1026   :  { %v5057_v8 = vmul.f32 0.01, %v6995_v13  ;;  %v5087_v6 = vmul.f32 0.01, %v7042_v51  ;;  %v4700_v9 = vpop.f32.mrb[165].mxu0  ;;  %v4915_v58 = vpop.f32.mrb[163].mxu1  ;;  %7387 = vmatpush3.bf16.msra.mxu0 %v10730_v4  ;;  %7415 = vmatpush3.bf16.msra.mxu1 %v10732_v29 }
0x1027   :  { %v5056_v18 = vmul.f32 0.01, %v4700_v9  ;;  %v5086_v31 = vmul.f32 0.01, %v4915_v58  ;;  %v7388_v27 = vpack.c.bf16 %v5119_v7, %v5118_v38  ;;  %v7416_v56 = vpack.c.bf16 %v5149_v14, %v5148_v21  ;;  %v11712_v7 = vld [vmem:[#allocation70_spill] sm:$0xff]  ;;  %v11713_v21 = vld [vmem:[#allocation71_spill] sm:$0xff] }
0x1028   :  { %v5121_v24 = vsub.f32 %v11706_v36, %v5057_v8  ;;  %v5151_v62 = vsub.f32 %v11707_v2, %v5087_v6  ;;  %v11714_v13 = vld [vmem:[#allocation72_spill] sm:$0xff] }
0x1029   :  { %v5120_v3 = vsub.f32 %v11708_v41, %v5056_v18  ;;  %v5150_v60 = vsub.f32 %v11709_v63, %v5086_v31  ;;  %v6998_v35 = vpop.f32.mrb[166].mxu0  ;;  %v7045_v46 = vpop.f32.mrb[164].mxu1  ;;  %7389 = vmatprep.subr.bf16.mxu0 %v7388_v27  ;;  %7417 = vmatprep.subr.bf16.mxu1 %v7416_v56  ;;  %v5801_v31 = vld [vmem:[#allocation3 + $0x1] ss:$0 sm:$0xff] }
0x102a   :  { %v5059_v30 = vmul.f32 0.01, %v6998_v35  ;;  %v5089_v4 = vmul.f32 0.01, %v7045_v46  ;;  %v4710_v11 = vpop.f32.mrb[167].mxu0  ;;  %v4925_v29 = vpop.f32.mrb[165].mxu1  ;;  %7391 = vmatpush3.bf16.msra.mxu0 %v10738_v15  ;;  %7419 = vmatpush3.bf16.msra.mxu1 %v10740_v49 }
0x102b   :  { %v5058_v12 = vmul.f32 0.01, %v4710_v11  ;;  %v5088_v26 = vmul.f32 0.01, %v4925_v29  ;;  %v7392_v34 = vpack.c.bf16 %v5121_v24, %v5120_v3  ;;  %v7420_v50 = vpack.c.bf16 %v5151_v62, %v5150_v60 }
0x102c   :  { %v5123_v20 = vsub.f32 %v10365_v17, %v5059_v30  ;;  %v5153_v61 = vsub.f32 %v10368_v33, %v5089_v4 }
0x102d   :  { %v5122_v5 = vsub.f32 %v11710_v39, %v5058_v12  ;;  %v5152_v0 = vsub.f32 %v11711_v32, %v5088_v26  ;;  %v7001_v43 = vpop.f32.mrb[168].mxu0  ;;  %v7048_v44 = vpop.f32.mrb[166].mxu1  ;;  %7393 = vmatprep.subr.bf16.mxu0 %v7392_v34  ;;  %7421 = vmatprep.subr.bf16.mxu1 %v7420_v50 }
0x102e   :  { %v5061_v25 = vmul.f32 0.01, %v7001_v43  ;;  %v5091_v15 = vmul.f32 0.01, %v7048_v44  ;;  %v4720_v45 = vpop.f32.mrb[169].mxu0  ;;  %v4935_v49 = vpop.f32.mrb[167].mxu1  ;;  %7395 = vmatpush3.bf16.msra.mxu0 %v10746_v40  ;;  %7423 = vmatpush3.bf16.msra.mxu1 %v10748_v37 }
0x102f   :  { %v5060_v52 = vmul.f32 0.01, %v4720_v45  ;;  %v5090_v17 = vmul.f32 0.01, %v4935_v49  ;;  %v7396_v42 = vpack.c.bf16 %v5123_v20, %v5122_v5  ;;  %v7424_v33 = vpack.c.bf16 %v5153_v61, %v5152_v0 }
0x1030   :  { %v5125_v53 = vsub.f32 %v10395_v1, %v5061_v25  ;;  %v5155_v10 = vsub.f32 %v10398_v47, %v5091_v15 }
0x1031   :  { %v5124_v57 = vsub.f32 %v10401_v28, %v5060_v52  ;;  %v5154_v48 = vsub.f32 %v11712_v7, %v5090_v17  ;;  %v7051_v14 = vpop.f32.mrb[168].mxu1  ;;  %7397 = vmatprep.subr.bf16.mxu0 %v7396_v42  ;;  %7425 = vmatprep.subr.bf16.mxu1 %v7424_v33  ;;  %v5230_v28 = vld [vmem:[%s10839_s3] sm:$0xff] }
0x1032   :  { %v5093_v16 = vmul.f32 0.01, %v7051_v14  ;;  %v4945_v38 = vpop.f32.mrb[169].mxu1  ;;  %7399 = vmatpush3.bf16.msra.mxu0 %v10754_v59  ;;  %7427 = vmatpush3.bf16.msra.mxu1 %v10756_v54  ;;  %v5232_v54 = vld [vmem:[%s10839_s3 + $0x10] sm:$0xff] }
0x1033   :  { %v5092_v40 = vmul.f32 0.01, %v4945_v38  ;;  %v7400_v37 = vpack.c.bf16 %v5125_v53, %v5124_v57  ;;  %v7428_v19 = vpack.c.bf16 %v5155_v10, %v5154_v48 }
0x1034   :  { %v5157_v1 = vsub.f32 %v11713_v21, %v5093_v16 }
0x1035   :  { %v5156_v47 = vsub.f32 %v11714_v13, %v5092_v40  ;;  %7401 = vmatprep.subr.bf16.mxu0 %v7400_v37  ;;  %7429 = vmatprep.subr.bf16.mxu1 %v7428_v19 }
0x1036   :  { %7403 = vmatpush3.bf16.msra.mxu0 %v10762_v23  ;;  %7431 = vmatpush3.bf16.msra.mxu1 %v10764_v55  ;;  %v5800_v23 = vld [vmem:[#allocation3] ss:$0 sm:$0xff] }
0x1037   :  { %v7432_v59 = vpack.c.bf16 %v5157_v1, %v5156_v47 }
0x1039   :  { %5377 = vmatmul.mubr.f32.vlgmr.msra.gmra.mrb[170].mxu0 %v5230_v28  ;;  %7433 = vmatprep.subr.bf16.mxu1 %v7432_v59 }
0x103a   :  { %7435 = vmatpush3.bf16.msra.mxu1 %v10770_v22 }
0x103d   :  { %5447 = vmatmul.mubr.f32.vlgmr.msra.gmra.mrb[170].mxu1 %v5232_v54 }
0x110c   :  { %v6514_v51 = vpop.f32.mrb[170].mxu0 }
0x110d   :  { %v6515_v8 = vpop.f32.mrb[171].mxu0 }
0x110e   :  { %v6516_v6 = vadd.f32 %v6515_v8, %v6514_v51 }
0x1110   :  { %v5379_v9 = vadd.f32 %v6516_v6, %v5800_v23  ;;  %v6549_v55 = vpop.f32.mrb[170].mxu1 }
0x1111   :  { %v6550_v58 = vpop.f32.mrb[171].mxu1 }
0x1112   :  { %5452 = vst [vmem:[#allocation4] sm:$0xff] %v5379_v9  ;;  %v6551_v18 = vadd.f32 %v6550_v58, %v6549_v55 }
0x1114   :  { %v5449_v27 = vadd.f32 %v6551_v18, %v5801_v31 }
0x1116   :  { %5453 = vst [vmem:[#allocation4 + $0x8] sm:$0xff] %v5449_v27 }
0x1117   :  { %7631 = shalt.err (!%p7628_p4)
}
0x1118   :  { %s7632_s20 = scalar_lea.hbm %s10842_s6, 256 }
0x1119   :  { %p7633_p5 = scmp.ne.s32.totalorder %s10842_s6, %s7632_s20  ;;  %p7636_p6 = scmp.lt.u32.totalorder %s7632_s20, %s10842_s6 }
0x111b   :  { %p7638_p7 = pnand %p7636_p6, %p7633_p5 }
0x111d   :  { %7641 = shalt.err (!%p7638_p7)
}
0x111e   :  { %s7646_s22 = smov 128   ;;  %s7647_s23 = smov 8  }
0x111f   :  { %5465 = dma.vmem_to_hbm [thread:$0]  %s5460_s17, 256, %s10842_s6, [#allocation5], %s7646_s22, %s7646_s22, %s7647_s23  }
0x1120   :  { %7642 = dma.done.wait [#allocation5], 256  }
0x1121   :  { %7643 = vsyncadd [#allocation5], 4294967040 }
0x1122   :  { %5469 = vsyncpa [#allocation5], 1 }

</bundles_post_ra>
